<compile_context>
chip_gen: v5e
topology: v5e:2x2
jax: 0.10.0
libtpu: 0.0.40
codegen_flags: <defaults>
</compile_context>

<pallas_src>
import functools

import jax
import jax.numpy as jnp
from jax import lax
from jax.experimental import pallas as pl
from jax.experimental.pallas import tpu as pltpu

BN_EPS = 1e-5
LANE = 128


def _round_up(x, m):
    return (x + m - 1) // m * m


def _vmem_limit_bytes():
    """Per-generation scoped-VMEM limit (~3/4 of physical) instead of a fixed 32 MiB."""
    try:
        phys = int(pltpu.get_tpu_info().vmem_capacity_bytes)
    except Exception:
        phys = 64 * 1024 * 1024  # conservative: v7x physical VMEM per core
    return max(32 * 1024 * 1024, (phys * 3) // 4)


def _cout_tile(cout_p):
    """256-wide Cout tiles feed v6e/v7x's 2x256^2 MXU and halve grid steps;
    keep 128 on v5e (4x128^2 MXU) or when only a single lane tile is available."""
    if cout_p % 256 != 0:
        return LANE
    try:
        kind = jax.devices()[0].device_kind.lower()
        return LANE if "v5" in kind else 256
    except Exception:
        return 256


# --------------------------------------------------------------------------- #
# Kernel 1: conv3x3 (pre-padded input) + centered partial BatchNorm statistics
# --------------------------------------------------------------------------- #
def _conv_stats_kernel(xp_ref, w_ref, y_ref, stats_ref):
    """xp_ref  : (1, H+2, W+2, Cin_p)  spatially pre-padded input        (VMEM)
       w_ref   : (n_ct*9, Cin_p, TC)   ALL Cout tiles' weights, resident (VMEM, DMA'd once)
       y_ref   : (1, H, W, TC)         conv output block
       stats_ref: (1, 2, TC)           [sum, centered M2] over this block"""
    _, Hp, Wp, _ = xp_ref.shape
    H, W = Hp - 2, Wp - 2
    TC = y_ref.shape[-1]
    ct = pl.program_id(1)

    # 9 shifted lane-dense MXU matmuls, value-level accumulation (lets Mosaic keep
    # partials in vregs / the MXU result buffer instead of VMEM round trips).
    # NOTE: a pltpu.roll-based variant could generate the dx shifts on the idle XLU;
    # kept as direct ref slices for clarity/robustness.
    acc = None
    for dy in range(3):
        for dx in range(3):
            patch = xp_ref[0, dy:dy + H, dx:dx + W, :].reshape(H * W, -1)
            tap = jnp.dot(patch, w_ref[ct * 9 + dy * 3 + dx],
                          preferred_element_type=jnp.float32)
            acc = tap if acc is None else acc + tap

    # Conv bias intentionally omitted: training-mode BN subtracts the batch mean,
    # which cancels an additive per-channel bias exactly in the forward output.
    y_ref[...] = acc.reshape(1, H, W, TC).astype(y_ref.dtype)

    # Centered per-block statistics (sum + M2) -> numerically-safe Chan merge in the
    # wrapper (avoids E[x^2] - mean^2 catastrophic cancellation).
    s = jnp.sum(acc, axis=0, keepdims=True)
    mu = s * (1.0 / (H * W))
    d = acc - mu
    stats_ref[0, 0:1, :] = s
    stats_ref[0, 1:2, :] = jnp.sum(d * d, axis=0, keepdims=True)


# --------------------------------------------------------------------------- #
# Kernel 2: fused [BN1 scale/shift + ReLU] -> conv3x3 -> centered partial stats
# --------------------------------------------------------------------------- #
def _bn_relu_conv_stats_kernel(y1_ref, scale_ref, shift_ref, w_ref,
                               y2_ref, stats_ref, pad_ref):
    """y1_ref : (1, H, W, Cmid_p)   stage-1 conv output (bf16 or f32)
       scale/shift: (1, Cmid_p) f32 folded stage-1 BN affine
       w_ref  : (n_ct*9, Cmid_p, TC) resident stage-2 weights
       y2_ref : (1, H, W, TC); stats_ref: (1, 2, TC)
       pad_ref: (H+2, W+2, Cmid_p) VMEM scratch; persists across Cout tiles."""
    _, H, W, Cmid = y1_ref.shape
    TC = y2_ref.shape[-1]
    ct = pl.program_id(1)

    # Build the padded, activated input plane once per batch element.  The Cout-tile
    # grid axis is "arbitrary", so ct==0 is guaranteed to run before ct>0 on the core
    # that owns this batch element, and the scratch persists across those steps.
    @pl.when(ct == 0)
    def _():
        act = jnp.maximum(
            y1_ref[0].astype(jnp.float32) * scale_ref[...] + shift_ref[...], 0.0)
        # Zero only the 4 halo strips (interior fully overwritten below) — VMEM-local,
        # no HBM double-store like the old pad_output path.
        zrow = jnp.zeros((1, W + 2, Cmid), pad_ref.dtype)
        zcol = jnp.zeros((H + 2, 1, Cmid), pad_ref.dtype)
        pad_ref[0:1, :, :] = zrow
        pad_ref[H + 1:H + 2, :, :] = zrow
        pad_ref[:, 0:1, :] = zcol
        pad_ref[:, W + 1:W + 2, :] = zcol
        pad_ref[1:H + 1, 1:W + 1, :] = act.astype(pad_ref.dtype)

    acc = None
    for dy in range(3):
        for dx in range(3):
            patch = pad_ref[dy:dy + H, dx:dx + W, :].reshape(H * W, Cmid)
            tap = jnp.dot(patch, w_ref[ct * 9 + dy * 3 + dx],
                          preferred_element_type=jnp.float32)
            acc = tap if acc is None else acc + tap

    y2_ref[...] = acc.reshape(1, H, W, TC).astype(y2_ref.dtype)
    s = jnp.sum(acc, axis=0, keepdims=True)
    mu = s * (1.0 / (H * W))
    d = acc - mu
    stats_ref[0, 0:1, :] = s
    stats_ref[0, 1:2, :] = jnp.sum(d * d, axis=0, keepdims=True)


# --------------------------------------------------------------------------- #
# Kernel 3: final folded BatchNorm (scale/shift) + ReLU over the whole batch
# --------------------------------------------------------------------------- #
def _bn_relu_kernel(y_ref, scale_ref, shift_ref, out_ref):
    y = y_ref[...].astype(jnp.float32)
    out_ref[...] = jnp.maximum(y * scale_ref[...] + shift_ref[...], 0.0).astype(out_ref.dtype)


# --------------------------------------------------------------------------- #
# Wrapper-side helpers
# --------------------------------------------------------------------------- #
def _prep_weights(w, cin_p, cout_p, tc, dtype):
    """(3,3,Cin,Cout) -> zero-padded, Cout-tiled, flattened (n_ct*9, Cin_p, TC),
    pre-cast to the MXU operand dtype (no in-kernel casts)."""
    _, _, cin, cout = w.shape
    w = jnp.pad(w, ((0, 0), (0, 0), (0, cin_p - cin), (0, cout_p - cout)))
    n_ct = cout_p // tc
    w = w.reshape(3, 3, cin_p, n_ct, tc)
    w = jnp.transpose(w, (3, 0, 1, 2, 4)).reshape(n_ct * 9, cin_p, tc)
    return w.astype(dtype)


def _pad_affine(gamma, beta, c_p):
    c = gamma.size
    g = jnp.pad(gamma.reshape(-1).astype(jnp.float32), (0, c_p - c))
    b = jnp.pad(beta.reshape(-1).astype(jnp.float32), (0, c_p - c))
    return g, b


def _fold_bn(stats, gamma, beta, hw):
    """Chan-merge centered per-(batch, tile) partials and fold the BN affine.

    stats: (N, 2, C) with stats[:,0]=sum over H*W and stats[:,1]=sum((x-block_mean)^2).
    Padded channels have sum=M2=0 -> var=0 -> inv_std=1/sqrt(eps) (~316); that is
    harmless ONLY because gamma/beta are zero-padded, so scale=shift=0 there and the
    padded output lanes stay exactly 0 after relu.
    """
    n = stats.shape[0]
    sums = stats[:, 0, :]
    m2s = stats[:, 1, :]
    means = sums / hw                                  # per-batch-element channel means
    mean = jnp.mean(means, axis=0)                     # equal counts -> plain mean
    m2 = jnp.sum(m2s, axis=0) + hw * jnp.sum((means - mean) ** 2, axis=0)
    var = jnp.maximum(m2 / (n * hw), 0.0)
    inv_std = lax.rsqrt(var + BN_EPS)
    scale = gamma * inv_std
    shift = beta - mean * scale
    c = scale.shape[0]
    return scale.reshape(1, c), shift.reshape(1, c)


@functools.partial(jax.jit, static_argnames=("bf16_mxu",))
def double_conv(x_nchw, params, bf16_mxu=False):
    """Matches DoubleConv.forward: NCHW in, NCHW out, training-mode BatchNorm."""
    mxu_dtype = jnp.bfloat16 if bf16_mxu else jnp.float32
    inter_dtype = jnp.bfloat16 if bf16_mxu else jnp.float32
    n, c_in, h, w_dim = x_nchw.shape
    c_mid = params["w1"].shape[-1]
    c_out = params["w2"].shape[-1]
    cin_p = _round_up(c_in, LANE)
    cmid_p = _round_up(c_mid, LANE)
    cout_p = _round_up(c_out, LANE)
    tc1, tc2 = _cout_tile(cmid_p), _cout_tile(cout_p)
    n_ct1, n_ct2 = cmid_p // tc1, cout_p // tc2
    hp, wp = h + 2, w_dim + 2
    hw = float(h * w_dim)
    vmem_limit = _vmem_limit_bytes()

    conv_cparams = pltpu.CompilerParams(
        # Batch axis "parallel" (megacore split); Cout-tile axis "arbitrary" so the
        # ct==0 prologue of the fused kernel always runs before ct>0 for a given n.
        dimension_semantics=("parallel", "arbitrary"),
        vmem_limit_bytes=vmem_limit,
    )
    apply_cparams = pltpu.CompilerParams(
        dimension_semantics=("parallel",),
        vmem_limit_bytes=vmem_limit,
    )

    # NCHW -> NHWC, zero spatial halo + zero channel padding, pre-cast for the MXU —
    # all fused into one XLA pass over the input.
    x = jnp.transpose(x_nchw, (0, 2, 3, 1))
    xp = jnp.pad(x, ((0, 0), (1, 1), (1, 1), (0, cin_p - c_in))).astype(mxu_dtype)

    w1 = _prep_weights(params["w1"], cin_p, cmid_p, tc1, mxu_dtype)
    w2 = _prep_weights(params["w2"], cmid_p, cout_p, tc2, mxu_dtype)
    g1, be1 = _pad_affine(params["g1"], params["be1"], cmid_p)
    g2, be2 = _pad_affine(params["g2"], params["be2"], cout_p)

    # ---- stage 1: conv1 + centered partial BN stats -------------------------------
    y1, stats1 = pl.pallas_call(
        _conv_stats_kernel,
        grid=(n, n_ct1),
        in_specs=[
            pl.BlockSpec((1, hp, wp, cin_p), lambda nb, c: (nb, 0, 0, 0)),
            pl.BlockSpec(w1.shape, lambda nb, c: (0, 0, 0)),       # resident weights
        ],
        out_specs=[
            pl.BlockSpec((1, h, w_dim, tc1), lambda nb, c: (nb, 0, 0, c)),
            pl.BlockSpec((1, 2, tc1), lambda nb, c: (nb, 0, c)),
        ],
        out_shape=[
            jax.ShapeDtypeStruct((n, h, w_dim, cmid_p), inter_dtype),
            jax.ShapeDtypeStruct((n, 2, cmid_p), jnp.float32),
        ],
        compiler_params=conv_cparams,
    )(xp, w1)
    scale1, shift1 = _fold_bn(stats1, g1, be1, hw)

    # ---- stage 2: fused BN1+ReLU -> conv2 + centered partial BN stats --------------
    y2, stats2 = pl.pallas_call(
        _bn_relu_conv_stats_kernel,
        grid=(n, n_ct2),
        in_specs=[
            pl.BlockSpec((1, h, w_dim, cmid_p), lambda nb, c: (nb, 0, 0, 0)),
            pl.BlockSpec((1, cmid_p), lambda nb, c: (0, 0)),
            pl.BlockSpec((1, cmid_p), lambda nb, c: (0, 0)),
            pl.BlockSpec(w2.shape, lambda nb, c: (0, 0, 0)),       # resident weights
        ],
        out_specs=[
            pl.BlockSpec((1, h, w_dim, tc2), lambda nb, c: (nb, 0, 0, c)),
            pl.BlockSpec((1, 2, tc2), lambda nb, c: (nb, 0, c)),
        ],
        out_shape=[
            jax.ShapeDtypeStruct((n, h, w_dim, cout_p), inter_dtype),
            jax.ShapeDtypeStruct((n, 2, cout_p), jnp.float32),
        ],
        scratch_shapes=[pltpu.VMEM((hp, wp, cmid_p), mxu_dtype)],
        compiler_params=conv_cparams,
    )(y1, scale1, shift1, w2)
    scale2, shift2 = _fold_bn(stats2, g2, be2, hw)

    # ---- stage 2 epilogue: BN2 + ReLU, whole batch per channel tile ----------------
    out = pl.pallas_call(
        _bn_relu_kernel,
        grid=(n_ct2,),
        in_specs=[
            pl.BlockSpec((n, h, w_dim, tc2), lambda c: (0, 0, 0, c)),
            pl.BlockSpec((1, tc2), lambda c: (0, c)),
            pl.BlockSpec((1, tc2), lambda c: (0, c)),
        ],
        out_specs=pl.BlockSpec((n, h, w_dim, tc2), lambda c: (0, 0, 0, c)),
        out_shape=jax.ShapeDtypeStruct((n, h, w_dim, cout_p), jnp.float32),
        compiler_params=apply_cparams,
    )(y2, scale2, shift2)

    # Keep the kernel store lane-dense; the channel un-pad and NHWC->NCHW happen
    # together in one fused XLA pass (a sub-128-lane kernel store would need masked vst).
    out = out[..., :c_out]
    return jnp.transpose(out, (0, 3, 1, 2))


def init_params(key, in_channels, out_channels, mid_channels=None):
    if not mid_channels:
        mid_channels = out_channels
    ks = jax.random.split(key, 8)
    # Conv weights stored as (3, 3, Cin, Cout) for the NHWC kernels.
    w1 = 0.1 * jax.random.normal(ks[0], (3, 3, in_channels, mid_channels), jnp.float32)
    b1 = 0.1 * jax.random.normal(ks[1], (1, mid_channels), jnp.float32)   # reference only
    g1 = 1.0 + 0.1 * jax.random.normal(ks[2], (1, mid_channels), jnp.float32)
    be1 = 0.1 * jax.random.normal(ks[3], (1, mid_channels), jnp.float32)
    w2 = 0.1 * jax.random.normal(ks[4], (3, 3, mid_channels, out_channels), jnp.float32)
    b2 = 0.1 * jax.random.normal(ks[5], (1, out_channels), jnp.float32)   # reference only
    g2 = 1.0 + 0.1 * jax.random.normal(ks[6], (1, out_channels), jnp.float32)
    be2 = 0.1 * jax.random.normal(ks[7], (1, out_channels), jnp.float32)
    return dict(w1=w1, b1=b1, g1=g1, be1=be1, w2=w2, b2=b2, g2=g2, be2=be2)


def _reference_double_conv(x_nchw, params):
    """Pure-JAX NCHW reference mirroring the PyTorch module (training-mode BN, with bias)."""
    def stage(x, w, b, gamma, beta):
        w_oihw = jnp.transpose(w, (3, 2, 0, 1))   # (3,3,Cin,Cout) -> OIHW
        y = lax.conv_general_dilated(
            x, w_oihw, window_strides=(1, 1), padding=((1, 1), (1, 1)),
            dimension_numbers=("NCHW", "OIHW", "NCHW"))
        y = y + b.reshape(1, -1, 1, 1)
        mean = jnp.mean(y, axis=(0, 2, 3), keepdims=True)
        var = jnp.mean((y - mean) ** 2, axis=(0, 2, 3), keepdims=True)
        y = (y - mean) * lax.rsqrt(var + BN_EPS)
        y = y * gamma.reshape(1, -1, 1, 1) + beta.reshape(1, -1, 1, 1)
        return jnp.maximum(y, 0.0)

    y = stage(x_nchw, params["w1"], params["b1"], params["g1"], params["be1"])
    return stage(y, params["w2"], params["b2"], params["g2"], params["be2"])


if __name__ == "__main__":
    # Small shapes consistent with the module: batch=2, in_ch=4, out_ch=8, 16x16.
    key = jax.random.PRNGKey(0)
    k_x, k_p = jax.random.split(key)
    N, Cin, Cout, H, W = 2, 4, 8, 16, 16

    x = jax.random.normal(k_x, (N, Cin, H, W), jnp.float32)
    params = init_params(k_p, Cin, Cout)

    ref = _reference_double_conv(x, params)

    # f32 MXU operands: faithful to the module semantics.
    out = jax.block_until_ready(double_conv(x, params))
    assert out.shape == (N, Cout, H, W), out.shape
    assert jnp.allclose(out, ref, atol=1e-4, rtol=1e-4), float(jnp.max(jnp.abs(out - ref)))

    # bf16 MXU operands + bf16 intermediates (casts done in the wrapper), f32 accumulation
    # and f32 BN statistics: the recommended fast path; checked with a looser tolerance.
    out_bf16 = jax.block_until_ready(double_conv(x, params, bf16_mxu=True))
    assert out_bf16.shape == (N, Cout, H, W), out_bf16.shape
    assert jnp.allclose(out_bf16, ref, atol=2e-1, rtol=1e-1), float(jnp.max(jnp.abs(out_bf16 - ref)))

    print("KERNEL_OK")
</pallas_src>

<mosaic_0001>
module attributes {stable_mosaic.version = 11 : i64} {
  func.func @_conv_stats_kernel(%arg0: i32, %arg1: i32, %arg2: memref<1x18x18x128xf32, #tpu.memory_space<vmem>>, %arg3: memref<9x128x128xf32, #tpu.memory_space<vmem>>, %arg4: memref<1x16x16x128xf32, #tpu.memory_space<vmem>>, %arg5: memref<1x2x128xf32, #tpu.memory_space<vmem>>) attributes {dimension_semantics = [#tpu.dimension_semantics<parallel>, #tpu.dimension_semantics<arbitrary>], iteration_bounds = array<i64: 2, 1>, scalar_prefetch = 0 : i64, scratch_operands = 0 : i64, tpu.core_type = #tpu.core_type<tc>, window_params = [{transform_indices = @transform_0, window_bounds = array<i64: 1, 18, 18, 128>}, {pipeline_mode = #tpu.pipeline_mode<synchronous>, transform_indices = @transform_1, window_bounds = array<i64: 9, 128, 128>}, {transform_indices = @transform_2, window_bounds = array<i64: 1, 16, 16, 128>}, {transform_indices = @transform_3, window_bounds = array<i64: 1, 2, 128>}]} {
    %c0 = arith.constant 0 : index
    %c0_0 = arith.constant 0 : index
    %c0_1 = arith.constant 0 : index
    %c0_2 = arith.constant 0 : index
    %0 = vector.load %arg2[%c0, %c0_0, %c0_1, %c0_2] : memref<1x18x18x128xf32, #tpu.memory_space<vmem>>, vector<1x16x16x128xf32>
    %1 = vector.shape_cast %0 : vector<1x16x16x128xf32> to vector<16x16x128xf32>
    %2 = vector.shape_cast %1 : vector<16x16x128xf32> to vector<256x128xf32>
    %c9_i32 = arith.constant 9 : i32
    %3 = arith.muli %arg1, %c9_i32 : i32
    %c0_i32 = arith.constant 0 : i32
    %4 = arith.addi %3, %c0_i32 : i32
    %c0_i32_3 = arith.constant 0 : i32
    %5 = arith.addi %4, %c0_i32_3 : i32
    %6 = arith.index_cast %5 : i32 to index
    %c0_4 = arith.constant 0 : index
    %c0_5 = arith.constant 0 : index
    %7 = vector.load %arg3[%6, %c0_4, %c0_5] : memref<9x128x128xf32, #tpu.memory_space<vmem>>, vector<1x128x128xf32>
    %8 = vector.shape_cast %7 : vector<1x128x128xf32> to vector<128x128xf32>
    %cst = arith.constant dense<0.000000e+00> : vector<256x128xf32>
    %9 = tpu.matmul %2, %8, %cst {dimension_numbers = #tpu.dot_dimension_numbers<[1], [0], [0], [1], [0, 0, 1, 1], [], []>} : vector<256x128xf32>, vector<128x128xf32>, vector<256x128xf32> -> vector<256x128xf32>
    %c0_6 = arith.constant 0 : index
    %c0_7 = arith.constant 0 : index
    %c1 = arith.constant 1 : index
    %c0_8 = arith.constant 0 : index
    %10 = vector.load %arg2[%c0_6, %c0_7, %c1, %c0_8] : memref<1x18x18x128xf32, #tpu.memory_space<vmem>>, vector<1x16x16x128xf32>
    %11 = vector.shape_cast %10 : vector<1x16x16x128xf32> to vector<16x16x128xf32>
    %12 = vector.shape_cast %11 : vector<16x16x128xf32> to vector<256x128xf32>
    %c9_i32_9 = arith.constant 9 : i32
    %13 = arith.muli %arg1, %c9_i32_9 : i32
    %c0_i32_10 = arith.constant 0 : i32
    %14 = arith.addi %13, %c0_i32_10 : i32
    %c1_i32 = arith.constant 1 : i32
    %15 = arith.addi %14, %c1_i32 : i32
    %16 = arith.index_cast %15 : i32 to index
    %c0_11 = arith.constant 0 : index
    %c0_12 = arith.constant 0 : index
    %17 = vector.load %arg3[%16, %c0_11, %c0_12] : memref<9x128x128xf32, #tpu.memory_space<vmem>>, vector<1x128x128xf32>
    %18 = vector.shape_cast %17 : vector<1x128x128xf32> to vector<128x128xf32>
    %cst_13 = arith.constant dense<0.000000e+00> : vector<256x128xf32>
    %19 = tpu.matmul %12, %18, %cst_13 {dimension_numbers = #tpu.dot_dimension_numbers<[1], [0], [0], [1], [0, 0, 1, 1], [], []>} : vector<256x128xf32>, vector<128x128xf32>, vector<256x128xf32> -> vector<256x128xf32>
    %20 = arith.addf %9, %19 : vector<256x128xf32>
    %c0_14 = arith.constant 0 : index
    %c0_15 = arith.constant 0 : index
    %c2 = arith.constant 2 : index
    %c0_16 = arith.constant 0 : index
    %21 = vector.load %arg2[%c0_14, %c0_15, %c2, %c0_16] : memref<1x18x18x128xf32, #tpu.memory_space<vmem>>, vector<1x16x16x128xf32>
    %22 = vector.shape_cast %21 : vector<1x16x16x128xf32> to vector<16x16x128xf32>
    %23 = vector.shape_cast %22 : vector<16x16x128xf32> to vector<256x128xf32>
    %c9_i32_17 = arith.constant 9 : i32
    %24 = arith.muli %arg1, %c9_i32_17 : i32
    %c0_i32_18 = arith.constant 0 : i32
    %25 = arith.addi %24, %c0_i32_18 : i32
    %c2_i32 = arith.constant 2 : i32
    %26 = arith.addi %25, %c2_i32 : i32
    %27 = arith.index_cast %26 : i32 to index
    %c0_19 = arith.constant 0 : index
    %c0_20 = arith.constant 0 : index
    %28 = vector.load %arg3[%27, %c0_19, %c0_20] : memref<9x128x128xf32, #tpu.memory_space<vmem>>, vector<1x128x128xf32>
    %29 = vector.shape_cast %28 : vector<1x128x128xf32> to vector<128x128xf32>
    %cst_21 = arith.constant dense<0.000000e+00> : vector<256x128xf32>
    %30 = tpu.matmul %23, %29, %cst_21 {dimension_numbers = #tpu.dot_dimension_numbers<[1], [0], [0], [1], [0, 0, 1, 1], [], []>} : vector<256x128xf32>, vector<128x128xf32>, vector<256x128xf32> -> vector<256x128xf32>
    %31 = arith.addf %20, %30 : vector<256x128xf32>
    %c0_22 = arith.constant 0 : index
    %c1_23 = arith.constant 1 : index
    %c0_24 = arith.constant 0 : index
    %c0_25 = arith.constant 0 : index
    %32 = vector.load %arg2[%c0_22, %c1_23, %c0_24, %c0_25] : memref<1x18x18x128xf32, #tpu.memory_space<vmem>>, vector<1x16x16x128xf32>
    %33 = vector.shape_cast %32 : vector<1x16x16x128xf32> to vector<16x16x128xf32>
    %34 = vector.shape_cast %33 : vector<16x16x128xf32> to vector<256x128xf32>
    %c9_i32_26 = arith.constant 9 : i32
    %35 = arith.muli %arg1, %c9_i32_26 : i32
    %c3_i32 = arith.constant 3 : i32
    %36 = arith.addi %35, %c3_i32 : i32
    %c0_i32_27 = arith.constant 0 : i32
    %37 = arith.addi %36, %c0_i32_27 : i32
    %38 = arith.index_cast %37 : i32 to index
    %c0_28 = arith.constant 0 : index
    %c0_29 = arith.constant 0 : index
    %39 = vector.load %arg3[%38, %c0_28, %c0_29] : memref<9x128x128xf32, #tpu.memory_space<vmem>>, vector<1x128x128xf32>
    %40 = vector.shape_cast %39 : vector<1x128x128xf32> to vector<128x128xf32>
    %cst_30 = arith.constant dense<0.000000e+00> : vector<256x128xf32>
    %41 = tpu.matmul %34, %40, %cst_30 {dimension_numbers = #tpu.dot_dimension_numbers<[1], [0], [0], [1], [0, 0, 1, 1], [], []>} : vector<256x128xf32>, vector<128x128xf32>, vector<256x128xf32> -> vector<256x128xf32>
    %42 = arith.addf %31, %41 : vector<256x128xf32>
    %c0_31 = arith.constant 0 : index
    %c1_32 = arith.constant 1 : index
    %c1_33 = arith.constant 1 : index
    %c0_34 = arith.constant 0 : index
    %43 = vector.load %arg2[%c0_31, %c1_32, %c1_33, %c0_34] : memref<1x18x18x128xf32, #tpu.memory_space<vmem>>, vector<1x16x16x128xf32>
    %44 = vector.shape_cast %43 : vector<1x16x16x128xf32> to vector<16x16x128xf32>
    %45 = vector.shape_cast %44 : vector<16x16x128xf32> to vector<256x128xf32>
    %c9_i32_35 = arith.constant 9 : i32
    %46 = arith.muli %arg1, %c9_i32_35 : i32
    %c3_i32_36 = arith.constant 3 : i32
    %47 = arith.addi %46, %c3_i32_36 : i32
    %c1_i32_37 = arith.constant 1 : i32
    %48 = arith.addi %47, %c1_i32_37 : i32
    %49 = arith.index_cast %48 : i32 to index
    %c0_38 = arith.constant 0 : index
    %c0_39 = arith.constant 0 : index
    %50 = vector.load %arg3[%49, %c0_38, %c0_39] : memref<9x128x128xf32, #tpu.memory_space<vmem>>, vector<1x128x128xf32>
    %51 = vector.shape_cast %50 : vector<1x128x128xf32> to vector<128x128xf32>
    %cst_40 = arith.constant dense<0.000000e+00> : vector<256x128xf32>
    %52 = tpu.matmul %45, %51, %cst_40 {dimension_numbers = #tpu.dot_dimension_numbers<[1], [0], [0], [1], [0, 0, 1, 1], [], []>} : vector<256x128xf32>, vector<128x128xf32>, vector<256x128xf32> -> vector<256x128xf32>
    %53 = arith.addf %42, %52 : vector<256x128xf32>
    %c0_41 = arith.constant 0 : index
    %c1_42 = arith.constant 1 : index
    %c2_43 = arith.constant 2 : index
    %c0_44 = arith.constant 0 : index
    %54 = vector.load %arg2[%c0_41, %c1_42, %c2_43, %c0_44] : memref<1x18x18x128xf32, #tpu.memory_space<vmem>>, vector<1x16x16x128xf32>
    %55 = vector.shape_cast %54 : vector<1x16x16x128xf32> to vector<16x16x128xf32>
    %56 = vector.shape_cast %55 : vector<16x16x128xf32> to vector<256x128xf32>
    %c9_i32_45 = arith.constant 9 : i32
    %57 = arith.muli %arg1, %c9_i32_45 : i32
    %c3_i32_46 = arith.constant 3 : i32
    %58 = arith.addi %57, %c3_i32_46 : i32
    %c2_i32_47 = arith.constant 2 : i32
    %59 = arith.addi %58, %c2_i32_47 : i32
    %60 = arith.index_cast %59 : i32 to index
    %c0_48 = arith.constant 0 : index
    %c0_49 = arith.constant 0 : index
    %61 = vector.load %arg3[%60, %c0_48, %c0_49] : memref<9x128x128xf32, #tpu.memory_space<vmem>>, vector<1x128x128xf32>
    %62 = vector.shape_cast %61 : vector<1x128x128xf32> to vector<128x128xf32>
    %cst_50 = arith.constant dense<0.000000e+00> : vector<256x128xf32>
    %63 = tpu.matmul %56, %62, %cst_50 {dimension_numbers = #tpu.dot_dimension_numbers<[1], [0], [0], [1], [0, 0, 1, 1], [], []>} : vector<256x128xf32>, vector<128x128xf32>, vector<256x128xf32> -> vector<256x128xf32>
    %64 = arith.addf %53, %63 : vector<256x128xf32>
    %c0_51 = arith.constant 0 : index
    %c2_52 = arith.constant 2 : index
    %c0_53 = arith.constant 0 : index
    %c0_54 = arith.constant 0 : index
    %65 = vector.load %arg2[%c0_51, %c2_52, %c0_53, %c0_54] : memref<1x18x18x128xf32, #tpu.memory_space<vmem>>, vector<1x16x16x128xf32>
    %66 = vector.shape_cast %65 : vector<1x16x16x128xf32> to vector<16x16x128xf32>
    %67 = vector.shape_cast %66 : vector<16x16x128xf32> to vector<256x128xf32>
    %c9_i32_55 = arith.constant 9 : i32
    %68 = arith.muli %arg1, %c9_i32_55 : i32
    %c6_i32 = arith.constant 6 : i32
    %69 = arith.addi %68, %c6_i32 : i32
    %c0_i32_56 = arith.constant 0 : i32
    %70 = arith.addi %69, %c0_i32_56 : i32
    %71 = arith.index_cast %70 : i32 to index
    %c0_57 = arith.constant 0 : index
    %c0_58 = arith.constant 0 : index
    %72 = vector.load %arg3[%71, %c0_57, %c0_58] : memref<9x128x128xf32, #tpu.memory_space<vmem>>, vector<1x128x128xf32>
    %73 = vector.shape_cast %72 : vector<1x128x128xf32> to vector<128x128xf32>
    %cst_59 = arith.constant dense<0.000000e+00> : vector<256x128xf32>
    %74 = tpu.matmul %67, %73, %cst_59 {dimension_numbers = #tpu.dot_dimension_numbers<[1], [0], [0], [1], [0, 0, 1, 1], [], []>} : vector<256x128xf32>, vector<128x128xf32>, vector<256x128xf32> -> vector<256x128xf32>
    %75 = arith.addf %64, %74 : vector<256x128xf32>
    %c0_60 = arith.constant 0 : index
    %c2_61 = arith.constant 2 : index
    %c1_62 = arith.constant 1 : index
    %c0_63 = arith.constant 0 : index
    %76 = vector.load %arg2[%c0_60, %c2_61, %c1_62, %c0_63] : memref<1x18x18x128xf32, #tpu.memory_space<vmem>>, vector<1x16x16x128xf32>
    %77 = vector.shape_cast %76 : vector<1x16x16x128xf32> to vector<16x16x128xf32>
    %78 = vector.shape_cast %77 : vector<16x16x128xf32> to vector<256x128xf32>
    %c9_i32_64 = arith.constant 9 : i32
    %79 = arith.muli %arg1, %c9_i32_64 : i32
    %c6_i32_65 = arith.constant 6 : i32
    %80 = arith.addi %79, %c6_i32_65 : i32
    %c1_i32_66 = arith.constant 1 : i32
    %81 = arith.addi %80, %c1_i32_66 : i32
    %82 = arith.index_cast %81 : i32 to index
    %c0_67 = arith.constant 0 : index
    %c0_68 = arith.constant 0 : index
    %83 = vector.load %arg3[%82, %c0_67, %c0_68] : memref<9x128x128xf32, #tpu.memory_space<vmem>>, vector<1x128x128xf32>
    %84 = vector.shape_cast %83 : vector<1x128x128xf32> to vector<128x128xf32>
    %cst_69 = arith.constant dense<0.000000e+00> : vector<256x128xf32>
    %85 = tpu.matmul %78, %84, %cst_69 {dimension_numbers = #tpu.dot_dimension_numbers<[1], [0], [0], [1], [0, 0, 1, 1], [], []>} : vector<256x128xf32>, vector<128x128xf32>, vector<256x128xf32> -> vector<256x128xf32>
    %86 = arith.addf %75, %85 : vector<256x128xf32>
    %c0_70 = arith.constant 0 : index
    %c2_71 = arith.constant 2 : index
    %c2_72 = arith.constant 2 : index
    %c0_73 = arith.constant 0 : index
    %87 = vector.load %arg2[%c0_70, %c2_71, %c2_72, %c0_73] : memref<1x18x18x128xf32, #tpu.memory_space<vmem>>, vector<1x16x16x128xf32>
    %88 = vector.shape_cast %87 : vector<1x16x16x128xf32> to vector<16x16x128xf32>
    %89 = vector.shape_cast %88 : vector<16x16x128xf32> to vector<256x128xf32>
    %c9_i32_74 = arith.constant 9 : i32
    %90 = arith.muli %arg1, %c9_i32_74 : i32
    %c6_i32_75 = arith.constant 6 : i32
    %91 = arith.addi %90, %c6_i32_75 : i32
    %c2_i32_76 = arith.constant 2 : i32
    %92 = arith.addi %91, %c2_i32_76 : i32
    %93 = arith.index_cast %92 : i32 to index
    %c0_77 = arith.constant 0 : index
    %c0_78 = arith.constant 0 : index
    %94 = vector.load %arg3[%93, %c0_77, %c0_78] : memref<9x128x128xf32, #tpu.memory_space<vmem>>, vector<1x128x128xf32>
    %95 = vector.shape_cast %94 : vector<1x128x128xf32> to vector<128x128xf32>
    %cst_79 = arith.constant dense<0.000000e+00> : vector<256x128xf32>
    %96 = tpu.matmul %89, %95, %cst_79 {dimension_numbers = #tpu.dot_dimension_numbers<[1], [0], [0], [1], [0, 0, 1, 1], [], []>} : vector<256x128xf32>, vector<128x128xf32>, vector<256x128xf32> -> vector<256x128xf32>
    %97 = arith.addf %86, %96 : vector<256x128xf32>
    %98 = vector.shape_cast %97 : vector<256x128xf32> to vector<1x16x16x128xf32>
    %c0_80 = arith.constant 0 : index
    %c0_81 = arith.constant 0 : index
    %c0_82 = arith.constant 0 : index
    %c0_83 = arith.constant 0 : index
    %99 = vector.load %arg4[%c0_80, %c0_81, %c0_82, %c0_83] : memref<1x16x16x128xf32, #tpu.memory_space<vmem>>, vector<1x16x16x128xf32>
    tpu.vector_store %arg4[%c0_80, %c0_81, %c0_82, %c0_83], %98 {strides = array<i32>} : memref<1x16x16x128xf32, #tpu.memory_space<vmem>>, vector<1x16x16x128xf32>,
    %cst_84 = arith.constant dense<0.000000e+00> : vector<128xf32>
    %100 = vector.multi_reduction <add>, %97, %cst_84 [0] : vector<256x128xf32> to vector<128xf32>
    %101 = vector.shape_cast %100 : vector<128xf32> to vector<1x128xf32>
    %cst_85 = arith.constant 3.906250e-03 : f32
    %102 = vector.broadcast %cst_85 : f32 to vector<1x128xf32>
    %103 = arith.mulf %101, %102 : vector<1x128xf32>
    %104 = vector.broadcast %103 : vector<1x128xf32> to vector<256x128xf32>
    %105 = arith.subf %97, %104 : vector<256x128xf32>
    %c0_86 = arith.constant 0 : index
    %c0_87 = arith.constant 0 : index
    %c0_88 = arith.constant 0 : index
    %106 = vector.load %arg5[%c0_86, %c0_87, %c0_88] : memref<1x2x128xf32, #tpu.memory_space<vmem>>, vector<1x1x128xf32>
    %107 = vector.shape_cast %106 : vector<1x1x128xf32> to vector<1x128xf32>
    %108 = vector.shape_cast %101 : vector<1x128xf32> to vector<1x1x128xf32>
    tpu.vector_store %arg5[%c0_86, %c0_87, %c0_88], %108 {strides = array<i32>} : memref<1x2x128xf32, #tpu.memory_space<vmem>>, vector<1x1x128xf32>,
    %109 = arith.mulf %105, %105 : vector<256x128xf32>
    %cst_89 = arith.constant dense<0.000000e+00> : vector<128xf32>
    %110 = vector.multi_reduction <add>, %109, %cst_89 [0] : vector<256x128xf32> to vector<128xf32>
    %111 = vector.shape_cast %110 : vector<128xf32> to vector<1x128xf32>
    %c0_90 = arith.constant 0 : index
    %c1_91 = arith.constant 1 : index
    %c0_92 = arith.constant 0 : index
    %112 = vector.load %arg5[%c0_90, %c1_91, %c0_92] : memref<1x2x128xf32, #tpu.memory_space<vmem>>, vector<1x1x128xf32>
    %113 = vector.shape_cast %112 : vector<1x1x128xf32> to vector<1x128xf32>
    %114 = vector.shape_cast %111 : vector<1x128xf32> to vector<1x1x128xf32>
    tpu.vector_store %arg5[%c0_90, %c1_91, %c0_92], %114 {strides = array<i32>} : memref<1x2x128xf32, #tpu.memory_space<vmem>>, vector<1x1x128xf32>,
    return
  }
  func.func @transform_0(%arg0: i32, %arg1: i32) -> (i32, i32, i32, i32) {
    %c0_i32 = arith.constant 0 : i32
    %c0_i32_0 = arith.constant 0 : i32
    %c0_i32_1 = arith.constant 0 : i32
    %c0_i32_2 = arith.constant 0 : i32
    return %arg0, %c0_i32, %c0_i32_0, %c0_i32_1 : i32, i32, i32, i32
  }
  func.func @transform_1(%arg0: i32, %arg1: i32) -> (i32, i32, i32) {
    %c0_i32 = arith.constant 0 : i32
    %c0_i32_0 = arith.constant 0 : i32
    %c0_i32_1 = arith.constant 0 : i32
    %c0_i32_2 = arith.constant 0 : i32
    return %c0_i32, %c0_i32_0, %c0_i32_1 : i32, i32, i32
  }
  func.func @transform_2(%arg0: i32, %arg1: i32) -> (i32, i32, i32, i32) {
    %c0_i32 = arith.constant 0 : i32
    %c0_i32_0 = arith.constant 0 : i32
    %c0_i32_1 = arith.constant 0 : i32
    return %arg0, %c0_i32, %c0_i32_0, %arg1 : i32, i32, i32, i32
  }
  func.func @transform_3(%arg0: i32, %arg1: i32) -> (i32, i32, i32) {
    %c0_i32 = arith.constant 0 : i32
    %c0_i32_0 = arith.constant 0 : i32
    return %arg0, %c0_i32, %arg1 : i32, i32, i32
  }
}

module attributes {stable_mosaic.version = 11 : i64} {
  func.func @_bn_relu_conv_stats_kernel(%arg0: i32, %arg1: i32, %arg2: memref<1x16x16x128xf32, #tpu.memory_space<vmem>>, %arg3: memref<1x128xf32, #tpu.memory_space<vmem>>, %arg4: memref<1x128xf32, #tpu.memory_space<vmem>>, %arg5: memref<9x128x128xf32, #tpu.memory_space<vmem>>, %arg6: memref<1x16x16x128xf32, #tpu.memory_space<vmem>>, %arg7: memref<1x2x128xf32, #tpu.memory_space<vmem>>, %arg8: memref<18x18x128xf32, #tpu.memory_space<vmem>>) attributes {dimension_semantics = [#tpu.dimension_semantics<parallel>, #tpu.dimension_semantics<arbitrary>], iteration_bounds = array<i64: 2, 1>, scalar_prefetch = 0 : i64, scratch_operands = 1 : i64, tpu.core_type = #tpu.core_type<tc>, window_params = [{transform_indices = @transform_0, window_bounds = array<i64: 1, 16, 16, 128>}, {pipeline_mode = #tpu.pipeline_mode<synchronous>, transform_indices = @transform_1, window_bounds = array<i64: 1, 128>}, {pipeline_mode = #tpu.pipeline_mode<synchronous>, transform_indices = @transform_2, window_bounds = array<i64: 1, 128>}, {pipeline_mode = #tpu.pipeline_mode<synchronous>, transform_indices = @transform_3, window_bounds = array<i64: 9, 128, 128>}, {transform_indices = @transform_4, window_bounds = array<i64: 1, 16, 16, 128>}, {transform_indices = @transform_5, window_bounds = array<i64: 1, 2, 128>}]} {
    %c0_i32 = arith.constant 0 : i32
    %0 = arith.cmpi eq, %arg1, %c0_i32 : i32
    %1 = arith.extui %0 : i1 to i32
    %c0_i32_0 = arith.constant 0 : i32
    %2 = arith.cmpi ne, %1, %c0_i32_0 : i32
    scf.if %2 {
      %c0_86 = arith.constant 0 : index
      %c0_87 = arith.constant 0 : index
      %c0_88 = arith.constant 0 : index
      %c0_89 = arith.constant 0 : index
      %109 = vector.load %arg2[%c0_86, %c0_87, %c0_88, %c0_89] : memref<1x16x16x128xf32, #tpu.memory_space<vmem>>, vector<1x16x16x128xf32>
      %110 = vector.shape_cast %109 : vector<1x16x16x128xf32> to vector<16x16x128xf32>
      %c0_90 = arith.constant 0 : index
      %c0_91 = arith.constant 0 : index
      %111 = vector.load %arg3[%c0_90, %c0_91] : memref<1x128xf32, #tpu.memory_space<vmem>>, vector<1x128xf32>
      %112 = vector.shape_cast %111 : vector<1x128xf32> to vector<1x1x128xf32>
      %113 = vector.broadcast %112 : vector<1x1x128xf32> to vector<16x16x128xf32>
      %114 = arith.mulf %110, %113 : vector<16x16x128xf32>
      %c0_92 = arith.constant 0 : index
      %c0_93 = arith.constant 0 : index
      %115 = vector.load %arg4[%c0_92, %c0_93] : memref<1x128xf32, #tpu.memory_space<vmem>>, vector<1x128xf32>
      %116 = vector.shape_cast %115 : vector<1x128xf32> to vector<1x1x128xf32>
      %117 = vector.broadcast %116 : vector<1x1x128xf32> to vector<16x16x128xf32>
      %118 = arith.addf %114, %117 : vector<16x16x128xf32>
      %cst_94 = arith.constant 0.000000e+00 : f32
      %119 = vector.broadcast %cst_94 : f32 to vector<16x16x128xf32>
      %120 = arith.maximumf %118, %119 : vector<16x16x128xf32>
      %cst_95 = arith.constant 0.000000e+00 : f32
      %121 = vector.broadcast %cst_95 : f32 to vector<1x18x128xf32>
      %cst_96 = arith.constant 0.000000e+00 : f32
      %122 = vector.broadcast %cst_96 : f32 to vector<18x1x128xf32>
      %c0_97 = arith.constant 0 : index
      %c0_98 = arith.constant 0 : index
      %c0_99 = arith.constant 0 : index
      %123 = vector.load %arg8[%c0_97, %c0_98, %c0_99] : memref<18x18x128xf32, #tpu.memory_space<vmem>>, vector<1x18x128xf32>
      tpu.vector_store %arg8[%c0_97, %c0_98, %c0_99], %121 {strides = array<i32>} : memref<18x18x128xf32, #tpu.memory_space<vmem>>, vector<1x18x128xf32>,
      %c17 = arith.constant 17 : index
      %c0_100 = arith.constant 0 : index
      %c0_101 = arith.constant 0 : index
      %124 = vector.load %arg8[%c17, %c0_100, %c0_101] : memref<18x18x128xf32, #tpu.memory_space<vmem>>, vector<1x18x128xf32>
      tpu.vector_store %arg8[%c17, %c0_100, %c0_101], %121 {strides = array<i32>} : memref<18x18x128xf32, #tpu.memory_space<vmem>>, vector<1x18x128xf32>,
      %c0_102 = arith.constant 0 : index
      %c0_103 = arith.constant 0 : index
      %c0_104 = arith.constant 0 : index
      %125 = vector.load %arg8[%c0_102, %c0_103, %c0_104] : memref<18x18x128xf32, #tpu.memory_space<vmem>>, vector<18x1x128xf32>
      tpu.vector_store %arg8[%c0_102, %c0_103, %c0_104], %122 {strides = array<i32>} : memref<18x18x128xf32, #tpu.memory_space<vmem>>, vector<18x1x128xf32>,
      %c0_105 = arith.constant 0 : index
      %c17_106 = arith.constant 17 : index
      %c0_107 = arith.constant 0 : index
      %126 = vector.load %arg8[%c0_105, %c17_106, %c0_107] : memref<18x18x128xf32, #tpu.memory_space<vmem>>, vector<18x1x128xf32>
      tpu.vector_store %arg8[%c0_105, %c17_106, %c0_107], %122 {strides = array<i32>} : memref<18x18x128xf32, #tpu.memory_space<vmem>>, vector<18x1x128xf32>,
      %c1_108 = arith.constant 1 : index
      %c1_109 = arith.constant 1 : index
      %c0_110 = arith.constant 0 : index
      %127 = vector.load %arg8[%c1_108, %c1_109, %c0_110] : memref<18x18x128xf32, #tpu.memory_space<vmem>>, vector<16x16x128xf32>
      tpu.vector_store %arg8[%c1_108, %c1_109, %c0_110], %120 {strides = array<i32>} : memref<18x18x128xf32, #tpu.memory_space<vmem>>, vector<16x16x128xf32>,
    } else {
    }
    %c0 = arith.constant 0 : index
    %c0_1 = arith.constant 0 : index
    %c0_2 = arith.constant 0 : index
    %3 = vector.load %arg8[%c0, %c0_1, %c0_2] : memref<18x18x128xf32, #tpu.memory_space<vmem>>, vector<16x16x128xf32>
    %4 = vector.shape_cast %3 : vector<16x16x128xf32> to vector<256x128xf32>
    %c9_i32 = arith.constant 9 : i32
    %5 = arith.muli %arg1, %c9_i32 : i32
    %c0_i32_3 = arith.constant 0 : i32
    %6 = arith.addi %5, %c0_i32_3 : i32
    %c0_i32_4 = arith.constant 0 : i32
    %7 = arith.addi %6, %c0_i32_4 : i32
    %8 = arith.index_cast %7 : i32 to index
    %c0_5 = arith.constant 0 : index
    %c0_6 = arith.constant 0 : index
    %9 = vector.load %arg5[%8, %c0_5, %c0_6] : memref<9x128x128xf32, #tpu.memory_space<vmem>>, vector<1x128x128xf32>
    %10 = vector.shape_cast %9 : vector<1x128x128xf32> to vector<128x128xf32>
    %cst = arith.constant dense<0.000000e+00> : vector<256x128xf32>
    %11 = tpu.matmul %4, %10, %cst {dimension_numbers = #tpu.dot_dimension_numbers<[1], [0], [0], [1], [0, 0, 1, 1], [], []>} : vector<256x128xf32>, vector<128x128xf32>, vector<256x128xf32> -> vector<256x128xf32>
    %c0_7 = arith.constant 0 : index
    %c1 = arith.constant 1 : index
    %c0_8 = arith.constant 0 : index
    %12 = vector.load %arg8[%c0_7, %c1, %c0_8] : memref<18x18x128xf32, #tpu.memory_space<vmem>>, vector<16x16x128xf32>
    %13 = vector.shape_cast %12 : vector<16x16x128xf32> to vector<256x128xf32>
    %c9_i32_9 = arith.constant 9 : i32
    %14 = arith.muli %arg1, %c9_i32_9 : i32
    %c0_i32_10 = arith.constant 0 : i32
    %15 = arith.addi %14, %c0_i32_10 : i32
    %c1_i32 = arith.constant 1 : i32
    %16 = arith.addi %15, %c1_i32 : i32
    %17 = arith.index_cast %16 : i32 to index
    %c0_11 = arith.constant 0 : index
    %c0_12 = arith.constant 0 : index
    %18 = vector.load %arg5[%17, %c0_11, %c0_12] : memref<9x128x128xf32, #tpu.memory_space<vmem>>, vector<1x128x128xf32>
    %19 = vector.shape_cast %18 : vector<1x128x128xf32> to vector<128x128xf32>
    %cst_13 = arith.constant dense<0.000000e+00> : vector<256x128xf32>
    %20 = tpu.matmul %13, %19, %cst_13 {dimension_numbers = #tpu.dot_dimension_numbers<[1], [0], [0], [1], [0, 0, 1, 1], [], []>} : vector<256x128xf32>, vector<128x128xf32>, vector<256x128xf32> -> vector<256x128xf32>
    %21 = arith.addf %11, %20 : vector<256x128xf32>
    %c0_14 = arith.constant 0 : index
    %c2 = arith.constant 2 : index
    %c0_15 = arith.constant 0 : index
    %22 = vector.load %arg8[%c0_14, %c2, %c0_15] : memref<18x18x128xf32, #tpu.memory_space<vmem>>, vector<16x16x128xf32>
    %23 = vector.shape_cast %22 : vector<16x16x128xf32> to vector<256x128xf32>
    %c9_i32_16 = arith.constant 9 : i32
    %24 = arith.muli %arg1, %c9_i32_16 : i32
    %c0_i32_17 = arith.constant 0 : i32
    %25 = arith.addi %24, %c0_i32_17 : i32
    %c2_i32 = arith.constant 2 : i32
    %26 = arith.addi %25, %c2_i32 : i32
    %27 = arith.index_cast %26 : i32 to index
    %c0_18 = arith.constant 0 : index
    %c0_19 = arith.constant 0 : index
    %28 = vector.load %arg5[%27, %c0_18, %c0_19] : memref<9x128x128xf32, #tpu.memory_space<vmem>>, vector<1x128x128xf32>
    %29 = vector.shape_cast %28 : vector<1x128x128xf32> to vector<128x128xf32>
    %cst_20 = arith.constant dense<0.000000e+00> : vector<256x128xf32>
    %30 = tpu.matmul %23, %29, %cst_20 {dimension_numbers = #tpu.dot_dimension_numbers<[1], [0], [0], [1], [0, 0, 1, 1], [], []>} : vector<256x128xf32>, vector<128x128xf32>, vector<256x128xf32> -> vector<256x128xf32>
    %31 = arith.addf %21, %30 : vector<256x128xf32>
    %c1_21 = arith.constant 1 : index
    %c0_22 = arith.constant 0 : index
    %c0_23 = arith.constant 0 : index
    %32 = vector.load %arg8[%c1_21, %c0_22, %c0_23] : memref<18x18x128xf32, #tpu.memory_space<vmem>>, vector<16x16x128xf32>
    %33 = vector.shape_cast %32 : vector<16x16x128xf32> to vector<256x128xf32>
    %c9_i32_24 = arith.constant 9 : i32
    %34 = arith.muli %arg1, %c9_i32_24 : i32
    %c3_i32 = arith.constant 3 : i32
    %35 = arith.addi %34, %c3_i32 : i32
    %c0_i32_25 = arith.constant 0 : i32
    %36 = arith.addi %35, %c0_i32_25 : i32
    %37 = arith.index_cast %36 : i32 to index
    %c0_26 = arith.constant 0 : index
    %c0_27 = arith.constant 0 : index
    %38 = vector.load %arg5[%37, %c0_26, %c0_27] : memref<9x128x128xf32, #tpu.memory_space<vmem>>, vector<1x128x128xf32>
    %39 = vector.shape_cast %38 : vector<1x128x128xf32> to vector<128x128xf32>
    %cst_28 = arith.constant dense<0.000000e+00> : vector<256x128xf32>
    %40 = tpu.matmul %33, %39, %cst_28 {dimension_numbers = #tpu.dot_dimension_numbers<[1], [0], [0], [1], [0, 0, 1, 1], [], []>} : vector<256x128xf32>, vector<128x128xf32>, vector<256x128xf32> -> vector<256x128xf32>
    %41 = arith.addf %31, %40 : vector<256x128xf32>
    %c1_29 = arith.constant 1 : index
    %c1_30 = arith.constant 1 : index
    %c0_31 = arith.constant 0 : index
    %42 = vector.load %arg8[%c1_29, %c1_30, %c0_31] : memref<18x18x128xf32, #tpu.memory_space<vmem>>, vector<16x16x128xf32>
    %43 = vector.shape_cast %42 : vector<16x16x128xf32> to vector<256x128xf32>
    %c9_i32_32 = arith.constant 9 : i32
    %44 = arith.muli %arg1, %c9_i32_32 : i32
    %c3_i32_33 = arith.constant 3 : i32
    %45 = arith.addi %44, %c3_i32_33 : i32
    %c1_i32_34 = arith.constant 1 : i32
    %46 = arith.addi %45, %c1_i32_34 : i32
    %47 = arith.index_cast %46 : i32 to index
    %c0_35 = arith.constant 0 : index
    %c0_36 = arith.constant 0 : index
    %48 = vector.load %arg5[%47, %c0_35, %c0_36] : memref<9x128x128xf32, #tpu.memory_space<vmem>>, vector<1x128x128xf32>
    %49 = vector.shape_cast %48 : vector<1x128x128xf32> to vector<128x128xf32>
    %cst_37 = arith.constant dense<0.000000e+00> : vector<256x128xf32>
    %50 = tpu.matmul %43, %49, %cst_37 {dimension_numbers = #tpu.dot_dimension_numbers<[1], [0], [0], [1], [0, 0, 1, 1], [], []>} : vector<256x128xf32>, vector<128x128xf32>, vector<256x128xf32> -> vector<256x128xf32>
    %51 = arith.addf %41, %50 : vector<256x128xf32>
    %c1_38 = arith.constant 1 : index
    %c2_39 = arith.constant 2 : index
    %c0_40 = arith.constant 0 : index
    %52 = vector.load %arg8[%c1_38, %c2_39, %c0_40] : memref<18x18x128xf32, #tpu.memory_space<vmem>>, vector<16x16x128xf32>
    %53 = vector.shape_cast %52 : vector<16x16x128xf32> to vector<256x128xf32>
    %c9_i32_41 = arith.constant 9 : i32
    %54 = arith.muli %arg1, %c9_i32_41 : i32
    %c3_i32_42 = arith.constant 3 : i32
    %55 = arith.addi %54, %c3_i32_42 : i32
    %c2_i32_43 = arith.constant 2 : i32
    %56 = arith.addi %55, %c2_i32_43 : i32
    %57 = arith.index_cast %56 : i32 to index
    %c0_44 = arith.constant 0 : index
    %c0_45 = arith.constant 0 : index
    %58 = vector.load %arg5[%57, %c0_44, %c0_45] : memref<9x128x128xf32, #tpu.memory_space<vmem>>, vector<1x128x128xf32>
    %59 = vector.shape_cast %58 : vector<1x128x128xf32> to vector<128x128xf32>
    %cst_46 = arith.constant dense<0.000000e+00> : vector<256x128xf32>
    %60 = tpu.matmul %53, %59, %cst_46 {dimension_numbers = #tpu.dot_dimension_numbers<[1], [0], [0], [1], [0, 0, 1, 1], [], []>} : vector<256x128xf32>, vector<128x128xf32>, vector<256x128xf32> -> vector<256x128xf32>
    %61 = arith.addf %51, %60 : vector<256x128xf32>
    %c2_47 = arith.constant 2 : index
    %c0_48 = arith.constant 0 : index
    %c0_49 = arith.constant 0 : index
    %62 = vector.load %arg8[%c2_47, %c0_48, %c0_49] : memref<18x18x128xf32, #tpu.memory_space<vmem>>, vector<16x16x128xf32>
    %63 = vector.shape_cast %62 : vector<16x16x128xf32> to vector<256x128xf32>
    %c9_i32_50 = arith.constant 9 : i32
    %64 = arith.muli %arg1, %c9_i32_50 : i32
    %c6_i32 = arith.constant 6 : i32
    %65 = arith.addi %64, %c6_i32 : i32
    %c0_i32_51 = arith.constant 0 : i32
    %66 = arith.addi %65, %c0_i32_51 : i32
    %67 = arith.index_cast %66 : i32 to index
    %c0_52 = arith.constant 0 : index
    %c0_53 = arith.constant 0 : index
    %68 = vector.load %arg5[%67, %c0_52, %c0_53] : memref<9x128x128xf32, #tpu.memory_space<vmem>>, vector<1x128x128xf32>
    %69 = vector.shape_cast %68 : vector<1x128x128xf32> to vector<128x128xf32>
    %cst_54 = arith.constant dense<0.000000e+00> : vector<256x128xf32>
    %70 = tpu.matmul %63, %69, %cst_54 {dimension_numbers = #tpu.dot_dimension_numbers<[1], [0], [0], [1], [0, 0, 1, 1], [], []>} : vector<256x128xf32>, vector<128x128xf32>, vector<256x128xf32> -> vector<256x128xf32>
    %71 = arith.addf %61, %70 : vector<256x128xf32>
    %c2_55 = arith.constant 2 : index
    %c1_56 = arith.constant 1 : index
    %c0_57 = arith.constant 0 : index
    %72 = vector.load %arg8[%c2_55, %c1_56, %c0_57] : memref<18x18x128xf32, #tpu.memory_space<vmem>>, vector<16x16x128xf32>
    %73 = vector.shape_cast %72 : vector<16x16x128xf32> to vector<256x128xf32>
    %c9_i32_58 = arith.constant 9 : i32
    %74 = arith.muli %arg1, %c9_i32_58 : i32
    %c6_i32_59 = arith.constant 6 : i32
    %75 = arith.addi %74, %c6_i32_59 : i32
    %c1_i32_60 = arith.constant 1 : i32
    %76 = arith.addi %75, %c1_i32_60 : i32
    %77 = arith.index_cast %76 : i32 to index
    %c0_61 = arith.constant 0 : index
    %c0_62 = arith.constant 0 : index
    %78 = vector.load %arg5[%77, %c0_61, %c0_62] : memref<9x128x128xf32, #tpu.memory_space<vmem>>, vector<1x128x128xf32>
    %79 = vector.shape_cast %78 : vector<1x128x128xf32> to vector<128x128xf32>
    %cst_63 = arith.constant dense<0.000000e+00> : vector<256x128xf32>
    %80 = tpu.matmul %73, %79, %cst_63 {dimension_numbers = #tpu.dot_dimension_numbers<[1], [0], [0], [1], [0, 0, 1, 1], [], []>} : vector<256x128xf32>, vector<128x128xf32>, vector<256x128xf32> -> vector<256x128xf32>
    %81 = arith.addf %71, %80 : vector<256x128xf32>
    %c2_64 = arith.constant 2 : index
    %c2_65 = arith.constant 2 : index
    %c0_66 = arith.constant 0 : index
    %82 = vector.load %arg8[%c2_64, %c2_65, %c0_66] : memref<18x18x128xf32, #tpu.memory_space<vmem>>, vector<16x16x128xf32>
    %83 = vector.shape_cast %82 : vector<16x16x128xf32> to vector<256x128xf32>
    %c9_i32_67 = arith.constant 9 : i32
    %84 = arith.muli %arg1, %c9_i32_67 : i32
    %c6_i32_68 = arith.constant 6 : i32
    %85 = arith.addi %84, %c6_i32_68 : i32
    %c2_i32_69 = arith.constant 2 : i32
    %86 = arith.addi %85, %c2_i32_69 : i32
    %87 = arith.index_cast %86 : i32 to index
    %c0_70 = arith.constant 0 : index
    %c0_71 = arith.constant 0 : index
    %88 = vector.load %arg5[%87, %c0_70, %c0_71] : memref<9x128x128xf32, #tpu.memory_space<vmem>>, vector<1x128x128xf32>
    %89 = vector.shape_cast %88 : vector<1x128x128xf32> to vector<128x128xf32>
    %cst_72 = arith.constant dense<0.000000e+00> : vector<256x128xf32>
    %90 = tpu.matmul %83, %89, %cst_72 {dimension_numbers = #tpu.dot_dimension_numbers<[1], [0], [0], [1], [0, 0, 1, 1], [], []>} : vector<256x128xf32>, vector<128x128xf32>, vector<256x128xf32> -> vector<256x128xf32>
    %91 = arith.addf %81, %90 : vector<256x128xf32>
    %92 = vector.shape_cast %91 : vector<256x128xf32> to vector<1x16x16x128xf32>
    %c0_73 = arith.constant 0 : index
    %c0_74 = arith.constant 0 : index
    %c0_75 = arith.constant 0 : index
    %c0_76 = arith.constant 0 : index
    %93 = vector.load %arg6[%c0_73, %c0_74, %c0_75, %c0_76] : memref<1x16x16x128xf32, #tpu.memory_space<vmem>>, vector<1x16x16x128xf32>
    tpu.vector_store %arg6[%c0_73, %c0_74, %c0_75, %c0_76], %92 {strides = array<i32>} : memref<1x16x16x128xf32, #tpu.memory_space<vmem>>, vector<1x16x16x128xf32>,
    %cst_77 = arith.constant dense<0.000000e+00> : vector<128xf32>
    %94 = vector.multi_reduction <add>, %91, %cst_77 [0] : vector<256x128xf32> to vector<128xf32>
    %95 = vector.shape_cast %94 : vector<128xf32> to vector<1x128xf32>
    %cst_78 = arith.constant 3.906250e-03 : f32
    %96 = vector.broadcast %cst_78 : f32 to vector<1x128xf32>
    %97 = arith.mulf %95, %96 : vector<1x128xf32>
    %98 = vector.broadcast %97 : vector<1x128xf32> to vector<256x128xf32>
    %99 = arith.subf %91, %98 : vector<256x128xf32>
    %c0_79 = arith.constant 0 : index
    %c0_80 = arith.constant 0 : index
    %c0_81 = arith.constant 0 : index
    %100 = vector.load %arg7[%c0_79, %c0_80, %c0_81] : memref<1x2x128xf32, #tpu.memory_space<vmem>>, vector<1x1x128xf32>
    %101 = vector.shape_cast %100 : vector<1x1x128xf32> to vector<1x128xf32>
    %102 = vector.shape_cast %95 : vector<1x128xf32> to vector<1x1x128xf32>
    tpu.vector_store %arg7[%c0_79, %c0_80, %c0_81], %102 {strides = array<i32>} : memref<1x2x128xf32, #tpu.memory_space<vmem>>, vector<1x1x128xf32>,
    %103 = arith.mulf %99, %99 : vector<256x128xf32>
    %cst_82 = arith.constant dense<0.000000e+00> : vector<128xf32>
    %104 = vector.multi_reduction <add>, %103, %cst_82 [0] : vector<256x128xf32> to vector<128xf32>
    %105 = vector.shape_cast %104 : vector<128xf32> to vector<1x128xf32>
    %c0_83 = arith.constant 0 : index
    %c1_84 = arith.constant 1 : index
    %c0_85 = arith.constant 0 : index
    %106 = vector.load %arg7[%c0_83, %c1_84, %c0_85] : memref<1x2x128xf32, #tpu.memory_space<vmem>>, vector<1x1x128xf32>
    %107 = vector.shape_cast %106 : vector<1x1x128xf32> to vector<1x128xf32>
    %108 = vector.shape_cast %105 : vector<1x128xf32> to vector<1x1x128xf32>
    tpu.vector_store %arg7[%c0_83, %c1_84, %c0_85], %108 {strides = array<i32>} : memref<1x2x128xf32, #tpu.memory_space<vmem>>, vector<1x1x128xf32>,
    return
  }
  func.func @transform_0(%arg0: i32, %arg1: i32) -> (i32, i32, i32, i32) {
    %c0_i32 = arith.constant 0 : i32
    %c0_i32_0 = arith.constant 0 : i32
    %c0_i32_1 = arith.constant 0 : i32
    %c0_i32_2 = arith.constant 0 : i32
    return %arg0, %c0_i32, %c0_i32_0, %c0_i32_1 : i32, i32, i32, i32
  }
  func.func @transform_1(%arg0: i32, %arg1: i32) -> (i32, i32) {
    %c0_i32 = arith.constant 0 : i32
    %c0_i32_0 = arith.constant 0 : i32
    %c0_i32_1 = arith.constant 0 : i32
    return %c0_i32, %c0_i32_0 : i32, i32
  }
  func.func @transform_2(%arg0: i32, %arg1: i32) -> (i32, i32) {
    %c0_i32 = arith.constant 0 : i32
    %c0_i32_0 = arith.constant 0 : i32
    %c0_i32_1 = arith.constant 0 : i32
    return %c0_i32, %c0_i32_0 : i32, i32
  }
  func.func @transform_3(%arg0: i32, %arg1: i32) -> (i32, i32, i32) {
    %c0_i32 = arith.constant 0 : i32
    %c0_i32_0 = arith.constant 0 : i32
    %c0_i32_1 = arith.constant 0 : i32
    %c0_i32_2 = arith.constant 0 : i32
    return %c0_i32, %c0_i32_0, %c0_i32_1 : i32, i32, i32
  }
  func.func @transform_4(%arg0: i32, %arg1: i32) -> (i32, i32, i32, i32) {
    %c0_i32 = arith.constant 0 : i32
    %c0_i32_0 = arith.constant 0 : i32
    %c0_i32_1 = arith.constant 0 : i32
    return %arg0, %c0_i32, %c0_i32_0, %arg1 : i32, i32, i32, i32
  }
  func.func @transform_5(%arg0: i32, %arg1: i32) -> (i32, i32, i32) {
    %c0_i32 = arith.constant 0 : i32
    %c0_i32_0 = arith.constant 0 : i32
    return %arg0, %c0_i32, %arg1 : i32, i32, i32
  }
}

module attributes {stable_mosaic.version = 11 : i64} {
  func.func @_bn_relu_kernel(%arg0: i32, %arg1: memref<2x16x16x128xf32, #tpu.memory_space<vmem>>, %arg2: memref<1x128xf32, #tpu.memory_space<vmem>>, %arg3: memref<1x128xf32, #tpu.memory_space<vmem>>, %arg4: memref<2x16x16x128xf32, #tpu.memory_space<vmem>>) attributes {dimension_semantics = [#tpu.dimension_semantics<parallel>], iteration_bounds = array<i64: 1>, scalar_prefetch = 0 : i64, scratch_operands = 0 : i64, tpu.core_type = #tpu.core_type<tc>, window_params = [{transform_indices = @transform_0, window_bounds = array<i64: 2, 16, 16, 128>}, {transform_indices = @transform_1, window_bounds = array<i64: 1, 128>}, {transform_indices = @transform_2, window_bounds = array<i64: 1, 128>}, {transform_indices = @transform_3, window_bounds = array<i64: 2, 16, 16, 128>}]} {
    %c0 = arith.constant 0 : index
    %c0_0 = arith.constant 0 : index
    %c0_1 = arith.constant 0 : index
    %c0_2 = arith.constant 0 : index
    %0 = vector.load %arg1[%c0, %c0_0, %c0_1, %c0_2] : memref<2x16x16x128xf32, #tpu.memory_space<vmem>>, vector<2x16x16x128xf32>
    %c0_3 = arith.constant 0 : index
    %c0_4 = arith.constant 0 : index
    %1 = vector.load %arg2[%c0_3, %c0_4] : memref<1x128xf32, #tpu.memory_space<vmem>>, vector<1x128xf32>
    %2 = vector.shape_cast %1 : vector<1x128xf32> to vector<1x1x1x128xf32>
    %3 = vector.broadcast %2 : vector<1x1x1x128xf32> to vector<2x16x16x128xf32>
    %4 = arith.mulf %0, %3 : vector<2x16x16x128xf32>
    %c0_5 = arith.constant 0 : index
    %c0_6 = arith.constant 0 : index
    %5 = vector.load %arg3[%c0_5, %c0_6] : memref<1x128xf32, #tpu.memory_space<vmem>>, vector<1x128xf32>
    %6 = vector.shape_cast %5 : vector<1x128xf32> to vector<1x1x1x128xf32>
    %7 = vector.broadcast %6 : vector<1x1x1x128xf32> to vector<2x16x16x128xf32>
    %8 = arith.addf %4, %7 : vector<2x16x16x128xf32>
    %cst = arith.constant 0.000000e+00 : f32
    %9 = vector.broadcast %cst : f32 to vector<2x16x16x128xf32>
    %10 = arith.maximumf %8, %9 : vector<2x16x16x128xf32>
    %c0_7 = arith.constant 0 : index
    %c0_8 = arith.constant 0 : index
    %c0_9 = arith.constant 0 : index
    %c0_10 = arith.constant 0 : index
    %11 = vector.load %arg4[%c0_7, %c0_8, %c0_9, %c0_10] : memref<2x16x16x128xf32, #tpu.memory_space<vmem>>, vector<2x16x16x128xf32>
    tpu.vector_store %arg4[%c0_7, %c0_8, %c0_9, %c0_10], %10 {strides = array<i32>} : memref<2x16x16x128xf32, #tpu.memory_space<vmem>>, vector<2x16x16x128xf32>,
    return
  }
  func.func @transform_0(%arg0: i32) -> (i32, i32, i32, i32) {
    %c0_i32 = arith.constant 0 : i32
    %c0_i32_0 = arith.constant 0 : i32
    %c0_i32_1 = arith.constant 0 : i32
    %c0_i32_2 = arith.constant 0 : i32
    return %c0_i32, %c0_i32_0, %c0_i32_1, %arg0 : i32, i32, i32, i32
  }
  func.func @transform_1(%arg0: i32) -> (i32, i32) {
    %c0_i32 = arith.constant 0 : i32
    %c0_i32_0 = arith.constant 0 : i32
    return %c0_i32, %arg0 : i32, i32
  }
  func.func @transform_2(%arg0: i32) -> (i32, i32) {
    %c0_i32 = arith.constant 0 : i32
    %c0_i32_0 = arith.constant 0 : i32
    return %c0_i32, %arg0 : i32, i32
  }
  func.func @transform_3(%arg0: i32) -> (i32, i32, i32, i32) {
    %c0_i32 = arith.constant 0 : i32
    %c0_i32_0 = arith.constant 0 : i32
    %c0_i32_1 = arith.constant 0 : i32
    %c0_i32_2 = arith.constant 0 : i32
    return %c0_i32, %c0_i32_0, %c0_i32_1, %arg0 : i32, i32, i32, i32
  }
}

</mosaic_0001>

<bundles_post_ra>
// kernel: double_conv.5
= control target key start
LH: loop header
LB: loop body
LE: loop exit
PB: predicated region body
PF: predicated region fallthrough
CT: control target
= control target key end

     0   :  { %s893_s0 = inlined_call_operand.vmem [shape: f32[2,16,16,128], index: 0, kind: input, shape index: {}]   ;;  %s894_s1 = inlined_call_operand.vmem [shape: f32[1,128], index: 1, kind: input, shape index: {}]   ;;  %s895_s2 = inlined_call_operand.vmem [shape: f32[1,128], index: 2, kind: input, shape index: {}]   ;;  %s896_s3 = inlined_call_operand.vmem [shape: f32[2,16,16,128], index: 3, kind: output, shape index: {}]  }
   0x1   :  { %v14_v0 = vld [vmem:[%s893_s0] sm:$0xff]  ;;  %v15_v3 = vld [vmem:[%s893_s0 + $0x8] sm:$0xff]  ;;  %v16_v6 = vld [vmem:[%s893_s0 + $0x10] sm:$0xff] }
   0x2   :  { %v374_v1 = vld [vmem:[%s894_s1] ss:$0 sm:$0xff]  ;;  %v17_v7 = vld [vmem:[%s893_s0 + $0x18] sm:$0xff]  ;;  %v19_v12 = vld [vmem:[%s893_s0 + $0x28] sm:$0xff] }
   0x3   :  { %v379_v2 = vld [vmem:[%s895_s2] ss:$0 sm:$0xff]  ;;  %v82_v4 = vmul.f32 %v374_v1, %v14_v0  ;;  %v83_v5 = vmul.f32 %v374_v1, %v15_v3  ;;  %v84_v9 = vmul.f32 %v374_v1, %v16_v6  ;;  %v85_v10 = vmul.f32 %v374_v1, %v17_v7  ;;  %v20_v13 = vld [vmem:[%s893_s0 + $0x30] sm:$0xff]  ;;  %v21_v14 = vld [vmem:[%s893_s0 + $0x38] sm:$0xff] }
   0x4   :  { %v18_v8 = vld [vmem:[%s893_s0 + $0x20] sm:$0xff]  ;;  %v87_v17 = vmul.f32 %v374_v1, %v19_v12  ;;  %v88_v18 = vmul.f32 %v374_v1, %v20_v13  ;;  %v89_v22 = vmul.f32 %v374_v1, %v21_v14  ;;  %v23_v24 = vld [vmem:[%s893_s0 + $0x48] sm:$0xff]  ;;  %v24_v29 = vld [vmem:[%s893_s0 + $0x50] sm:$0xff] }
   0x5   :  { %v86_v11 = vmul.f32 %v374_v1, %v18_v8  ;;  %v150_v15 = vadd.f32 %v379_v2, %v82_v4  ;;  %v151_v16 = vadd.f32 %v379_v2, %v83_v5  ;;  %v152_v19 = vadd.f32 %v379_v2, %v84_v9  ;;  %v22_v23 = vld [vmem:[%s893_s0 + $0x40] sm:$0xff]  ;;  %v25_v30 = vld [vmem:[%s893_s0 + $0x58] sm:$0xff]  ;;  %v27_v35 = vld [vmem:[%s893_s0 + $0x68] sm:$0xff] }
   0x6   :  { %v153_v20 = vadd.f32 %v379_v2, %v85_v10  ;;  %v155_v27 = vadd.f32 %v379_v2, %v87_v17  ;;  %v156_v28 = vadd.f32 %v379_v2, %v88_v18  ;;  %v26_v31 = vld [vmem:[%s893_s0 + $0x60] sm:$0xff]  ;;  %v157_v34 = vadd.f32 %v379_v2, %v89_v22  ;;  %v28_v36 = vld [vmem:[%s893_s0 + $0x70] sm:$0xff]  ;;  %v29_v41 = vld [vmem:[%s893_s0 + $0x78] sm:$0xff] }
   0x7   :  { %v154_v21 = vadd.f32 %v379_v2, %v86_v11  ;;  %v214_v25 = vmax.f32 %v150_v15, 0.0  ;;  %v215_v26 = vmax.f32 %v151_v16, 0.0  ;;  %v216_v32 = vmax.f32 %v152_v19, 0.0  ;;  %v30_v54 = vld [vmem:[%s893_s0 + $0x80] sm:$0xff]  ;;  %v31_v55 = vld [vmem:[%s893_s0 + $0x88] sm:$0xff]  ;;  %v32_v58 = vld [vmem:[%s893_s0 + $0x90] sm:$0xff] }
   0x8   :  { %v217_v33 = vmax.f32 %v153_v20, 0.0  ;;  %v219_v38 = vmax.f32 %v155_v27, 0.0  ;;  %v90_v39 = vmul.f32 %v374_v1, %v22_v23  ;;  %v91_v40 = vmul.f32 %v374_v1, %v23_v24  ;;  %v33_v59 = vld [vmem:[%s893_s0 + $0x98] sm:$0xff]  ;;  %v34_v62 = vld [vmem:[%s893_s0 + $0xa0] sm:$0xff]  ;;  %v35_v5 = vld [vmem:[%s893_s0 + $0xa8] sm:$0xff] }
   0x9   :  { %278 = vst [vmem:[%s896_s3] sm:$0xff] %v214_v25  ;;  %v218_v37 = vmax.f32 %v154_v21, 0.0  ;;  %v220_v42 = vmax.f32 %v156_v28, 0.0  ;;  %v92_v43 = vmul.f32 %v374_v1, %v24_v29  ;;  %v93_v44 = vmul.f32 %v374_v1, %v25_v30  ;;  %v36_v10 = vld [vmem:[%s893_s0 + $0xb0] sm:$0xff]  ;;  %v37_v14 = vld [vmem:[%s893_s0 + $0xb8] sm:$0xff]  ;;  %v38_v18 = vld [vmem:[%s893_s0 + $0xc0] sm:$0xff] }
   0xa   :  { %279 = vst [vmem:[%s896_s3 + $0x8] sm:$0xff] %v215_v26  ;;  %v94_v45 = vmul.f32 %v374_v1, %v26_v31  ;;  %v158_v46 = vadd.f32 %v379_v2, %v90_v39  ;;  %v159_v47 = vadd.f32 %v379_v2, %v91_v40  ;;  %v95_v48 = vmul.f32 %v374_v1, %v27_v35  ;;  %v39_v22 = vld [vmem:[%s893_s0 + $0xc8] sm:$0xff]  ;;  %v40_v26 = vld [vmem:[%s893_s0 + $0xd0] sm:$0xff]  ;;  %v41_v30 = vld [vmem:[%s893_s0 + $0xd8] sm:$0xff] }
   0xb   :  { %280 = vst [vmem:[%s896_s3 + $0x10] sm:$0xff] %v216_v32  ;;  %v96_v49 = vmul.f32 %v374_v1, %v28_v36  ;;  %v221_v50 = vmax.f32 %v157_v34, 0.0  ;;  %v160_v51 = vadd.f32 %v379_v2, %v92_v43  ;;  %v161_v52 = vadd.f32 %v379_v2, %v93_v44  ;;  %v42_v34 = vld [vmem:[%s893_s0 + $0xe0] sm:$0xff] }
   0xc   :  { %281 = vst [vmem:[%s896_s3 + $0x18] sm:$0xff] %v217_v33  ;;  %v97_v53 = vmul.f32 %v374_v1, %v29_v41  ;;  %v222_v56 = vmax.f32 %v158_v46, 0.0  ;;  %v162_v57 = vadd.f32 %v379_v2, %v94_v45  ;;  %v223_v60 = vmax.f32 %v159_v47, 0.0  ;;  %v45_v46 = vld [vmem:[%s893_s0 + $0xf8] sm:$0xff] }
   0xd   :  { %282 = vst [vmem:[%s896_s3 + $0x20] sm:$0xff] %v218_v37  ;;  %v163_v61 = vadd.f32 %v379_v2, %v95_v48  ;;  %v224_v63 = vmax.f32 %v160_v51, 0.0  ;;  %v164_v0 = vadd.f32 %v379_v2, %v96_v49  ;;  %v98_v3 = vmul.f32 %v374_v1, %v30_v54  ;;  %v47_v54 = vld [vmem:[%s893_s0 + $0x108] sm:$0xff] }
   0xe   :  { %283 = vst [vmem:[%s896_s3 + $0x28] sm:$0xff] %v219_v38  ;;  %v99_v4 = vmul.f32 %v374_v1, %v31_v55  ;;  %v225_v6 = vmax.f32 %v161_v52, 0.0  ;;  %v165_v7 = vadd.f32 %v379_v2, %v97_v53  ;;  %v100_v8 = vmul.f32 %v374_v1, %v32_v58  ;;  %v43_v38 = vld [vmem:[%s893_s0 + $0xe8] sm:$0xff]  ;;  %v48_v58 = vld [vmem:[%s893_s0 + $0x110] sm:$0xff] }
   0xf   :  { %284 = vst [vmem:[%s896_s3 + $0x30] sm:$0xff] %v220_v42  ;;  %v101_v9 = vmul.f32 %v374_v1, %v33_v59  ;;  %v226_v11 = vmax.f32 %v162_v57, 0.0  ;;  %v166_v12 = vadd.f32 %v379_v2, %v98_v3  ;;  %v102_v13 = vmul.f32 %v374_v1, %v34_v62  ;;  %v44_v42 = vld [vmem:[%s893_s0 + $0xf0] sm:$0xff]  ;;  %v49_v62 = vld [vmem:[%s893_s0 + $0x118] sm:$0xff] }
  0x10   :  { %285 = vst [vmem:[%s896_s3 + $0x38] sm:$0xff] %v221_v50  ;;  %v227_v15 = vmax.f32 %v163_v61, 0.0  ;;  %v167_v16 = vadd.f32 %v379_v2, %v99_v4  ;;  %v103_v17 = vmul.f32 %v374_v1, %v35_v5  ;;  %v228_v19 = vmax.f32 %v164_v0, 0.0  ;;  %v46_v50 = vld [vmem:[%s893_s0 + $0x100] sm:$0xff] }
  0x11   :  { %286 = vst [vmem:[%s896_s3 + $0x40] sm:$0xff] %v222_v56  ;;  %v168_v20 = vadd.f32 %v379_v2, %v100_v8  ;;  %v104_v21 = vmul.f32 %v374_v1, %v36_v10  ;;  %v229_v23 = vmax.f32 %v165_v7, 0.0  ;;  %v169_v24 = vadd.f32 %v379_v2, %v101_v9  ;;  %v50_v4 = vld [vmem:[%s893_s0 + $0x120] sm:$0xff]  ;;  %v51_v8 = vld [vmem:[%s893_s0 + $0x128] sm:$0xff] }
  0x12   :  { %287 = vst [vmem:[%s896_s3 + $0x48] sm:$0xff] %v223_v60  ;;  %v105_v25 = vmul.f32 %v374_v1, %v37_v14  ;;  %v230_v27 = vmax.f32 %v166_v12, 0.0  ;;  %v170_v28 = vadd.f32 %v379_v2, %v102_v13  ;;  %v106_v29 = vmul.f32 %v374_v1, %v38_v18  ;;  %v52_v12 = vld [vmem:[%s893_s0 + $0x130] sm:$0xff] }
  0x13   :  { %288 = vst [vmem:[%s896_s3 + $0x50] sm:$0xff] %v224_v63  ;;  %v231_v31 = vmax.f32 %v167_v16, 0.0  ;;  %v171_v32 = vadd.f32 %v379_v2, %v103_v17  ;;  %v107_v33 = vmul.f32 %v374_v1, %v39_v22  ;;  %v232_v35 = vmax.f32 %v168_v20, 0.0  ;;  %v53_v16 = vld [vmem:[%s893_s0 + $0x138] sm:$0xff]  ;;  %v54_v20 = vld [vmem:[%s893_s0 + $0x140] sm:$0xff] }
  0x14   :  { %289 = vst [vmem:[%s896_s3 + $0x58] sm:$0xff] %v225_v6  ;;  %v172_v36 = vadd.f32 %v379_v2, %v104_v21  ;;  %v108_v37 = vmul.f32 %v374_v1, %v40_v26  ;;  %v233_v39 = vmax.f32 %v169_v24, 0.0  ;;  %v173_v40 = vadd.f32 %v379_v2, %v105_v25  ;;  %v55_v24 = vld [vmem:[%s893_s0 + $0x148] sm:$0xff] }
  0x15   :  { %290 = vst [vmem:[%s896_s3 + $0x60] sm:$0xff] %v226_v11  ;;  %v109_v41 = vmul.f32 %v374_v1, %v41_v30  ;;  %v234_v43 = vmax.f32 %v170_v28, 0.0  ;;  %v174_v44 = vadd.f32 %v379_v2, %v106_v29  ;;  %v110_v45 = vmul.f32 %v374_v1, %v42_v34  ;;  %v56_v28 = vld [vmem:[%s893_s0 + $0x150] sm:$0xff] }
  0x16   :  { %291 = vst [vmem:[%s896_s3 + $0x68] sm:$0xff] %v227_v15  ;;  %v235_v47 = vmax.f32 %v171_v32, 0.0  ;;  %v175_v48 = vadd.f32 %v379_v2, %v107_v33  ;;  %v111_v49 = vmul.f32 %v374_v1, %v43_v38  ;;  %v236_v51 = vmax.f32 %v172_v36, 0.0  ;;  %v57_v32 = vld [vmem:[%s893_s0 + $0x158] sm:$0xff]  ;;  %v58_v36 = vld [vmem:[%s893_s0 + $0x160] sm:$0xff] }
  0x17   :  { %292 = vst [vmem:[%s896_s3 + $0x70] sm:$0xff] %v228_v19  ;;  %v176_v52 = vadd.f32 %v379_v2, %v108_v37  ;;  %v112_v53 = vmul.f32 %v374_v1, %v44_v42  ;;  %v237_v55 = vmax.f32 %v173_v40, 0.0  ;;  %v177_v56 = vadd.f32 %v379_v2, %v109_v41  ;;  %v59_v40 = vld [vmem:[%s893_s0 + $0x168] sm:$0xff] }
  0x18   :  { %293 = vst [vmem:[%s896_s3 + $0x78] sm:$0xff] %v229_v23  ;;  %v113_v57 = vmul.f32 %v374_v1, %v45_v46  ;;  %v238_v59 = vmax.f32 %v174_v44, 0.0  ;;  %v178_v60 = vadd.f32 %v379_v2, %v110_v45  ;;  %v114_v61 = vmul.f32 %v374_v1, %v46_v50  ;;  %v60_v44 = vld [vmem:[%s893_s0 + $0x170] sm:$0xff] }
  0x19   :  { %294 = vst [vmem:[%s896_s3 + $0x80] sm:$0xff] %v230_v27  ;;  %v239_v63 = vmax.f32 %v175_v48, 0.0  ;;  %v179_v0 = vadd.f32 %v379_v2, %v111_v49  ;;  %v115_v3 = vmul.f32 %v374_v1, %v47_v54  ;;  %v240_v5 = vmax.f32 %v176_v52, 0.0  ;;  %v61_v48 = vld [vmem:[%s893_s0 + $0x178] sm:$0xff]  ;;  %v62_v52 = vld [vmem:[%s893_s0 + $0x180] sm:$0xff] }
  0x1a   :  { %295 = vst [vmem:[%s896_s3 + $0x88] sm:$0xff] %v231_v31  ;;  %v180_v6 = vadd.f32 %v379_v2, %v112_v53  ;;  %v116_v7 = vmul.f32 %v374_v1, %v48_v58  ;;  %v241_v9 = vmax.f32 %v177_v56, 0.0  ;;  %v181_v10 = vadd.f32 %v379_v2, %v113_v57  ;;  %v63_v56 = vld [vmem:[%s893_s0 + $0x188] sm:$0xff] }
  0x1b   :  { %296 = vst [vmem:[%s896_s3 + $0x90] sm:$0xff] %v232_v35  ;;  %v117_v11 = vmul.f32 %v374_v1, %v49_v62  ;;  %v242_v13 = vmax.f32 %v178_v60, 0.0  ;;  %v182_v14 = vadd.f32 %v379_v2, %v114_v61  ;;  %v118_v15 = vmul.f32 %v374_v1, %v50_v4  ;;  %v64_v60 = vld [vmem:[%s893_s0 + $0x190] sm:$0xff] }
  0x1c   :  { %297 = vst [vmem:[%s896_s3 + $0x98] sm:$0xff] %v233_v39  ;;  %v243_v17 = vmax.f32 %v179_v0, 0.0  ;;  %v183_v18 = vadd.f32 %v379_v2, %v115_v3  ;;  %v119_v19 = vmul.f32 %v374_v1, %v51_v8  ;;  %v244_v21 = vmax.f32 %v180_v6, 0.0  ;;  %v65_v0 = vld [vmem:[%s893_s0 + $0x198] sm:$0xff] }
  0x1d   :  { %298 = vst [vmem:[%s896_s3 + $0xa0] sm:$0xff] %v234_v43  ;;  %v184_v22 = vadd.f32 %v379_v2, %v116_v7  ;;  %v120_v23 = vmul.f32 %v374_v1, %v52_v12  ;;  %v245_v25 = vmax.f32 %v181_v10, 0.0  ;;  %v185_v26 = vadd.f32 %v379_v2, %v117_v11  ;;  %v77_v3 = vld [vmem:[%s893_s0 + $0x1f8] sm:$0xff]  ;;  %v66_v7 = vld [vmem:[%s893_s0 + $0x1a0] sm:$0xff]  ;;  %v67_v11 = vld [vmem:[%s893_s0 + $0x1a8] sm:$0xff] }
  0x1e   :  { %299 = vst [vmem:[%s896_s3 + $0xa8] sm:$0xff] %v235_v47  ;;  %v121_v27 = vmul.f32 %v374_v1, %v53_v16  ;;  %v246_v29 = vmax.f32 %v182_v14, 0.0  ;;  %v186_v30 = vadd.f32 %v379_v2, %v118_v15  ;;  %v122_v31 = vmul.f32 %v374_v1, %v54_v20  ;;  %v68_v15 = vld [vmem:[%s893_s0 + $0x1b0] sm:$0xff]  ;;  %v69_v20 = vld [vmem:[%s893_s0 + $0x1b8] sm:$0xff] }
  0x1f   :  { %300 = vst [vmem:[%s896_s3 + $0xb0] sm:$0xff] %v236_v51  ;;  %v247_v33 = vmax.f32 %v183_v18, 0.0  ;;  %v187_v34 = vadd.f32 %v379_v2, %v119_v19  ;;  %v123_v35 = vmul.f32 %v374_v1, %v55_v24  ;;  %v248_v37 = vmax.f32 %v184_v22, 0.0  ;;  %v70_v24 = vld [vmem:[%s893_s0 + $0x1c0] sm:$0xff] }
  0x20   :  { %301 = vst [vmem:[%s896_s3 + $0xb8] sm:$0xff] %v237_v55  ;;  %v188_v38 = vadd.f32 %v379_v2, %v120_v23  ;;  %v124_v39 = vmul.f32 %v374_v1, %v56_v28  ;;  %v249_v41 = vmax.f32 %v185_v26, 0.0  ;;  %v189_v42 = vadd.f32 %v379_v2, %v121_v27 }
  0x21   :  { %302 = vst [vmem:[%s896_s3 + $0xc0] sm:$0xff] %v238_v59  ;;  %v125_v43 = vmul.f32 %v374_v1, %v57_v32  ;;  %v250_v45 = vmax.f32 %v186_v30, 0.0  ;;  %v190_v46 = vadd.f32 %v379_v2, %v122_v31  ;;  %v126_v47 = vmul.f32 %v374_v1, %v58_v36 }
  0x22   :  { %303 = vst [vmem:[%s896_s3 + $0xc8] sm:$0xff] %v239_v63  ;;  %v251_v49 = vmax.f32 %v187_v34, 0.0  ;;  %v191_v50 = vadd.f32 %v379_v2, %v123_v35  ;;  %v127_v51 = vmul.f32 %v374_v1, %v59_v40  ;;  %v252_v53 = vmax.f32 %v188_v38, 0.0 }
  0x23   :  { %304 = vst [vmem:[%s896_s3 + $0xd0] sm:$0xff] %v240_v5  ;;  %v192_v54 = vadd.f32 %v379_v2, %v124_v39  ;;  %v128_v55 = vmul.f32 %v374_v1, %v60_v44  ;;  %v253_v57 = vmax.f32 %v189_v42, 0.0  ;;  %v193_v58 = vadd.f32 %v379_v2, %v125_v43 }
  0x24   :  { %305 = vst [vmem:[%s896_s3 + $0xd8] sm:$0xff] %v241_v9  ;;  %v129_v59 = vmul.f32 %v374_v1, %v61_v48  ;;  %v254_v61 = vmax.f32 %v190_v46, 0.0  ;;  %v194_v62 = vadd.f32 %v379_v2, %v126_v47  ;;  %v130_v63 = vmul.f32 %v374_v1, %v62_v52 }
  0x25   :  { %306 = vst [vmem:[%s896_s3 + $0xe0] sm:$0xff] %v242_v13  ;;  %v255_v4 = vmax.f32 %v191_v50, 0.0  ;;  %v195_v5 = vadd.f32 %v379_v2, %v127_v51  ;;  %v131_v6 = vmul.f32 %v374_v1, %v63_v56  ;;  %v256_v8 = vmax.f32 %v192_v54, 0.0 }
  0x26   :  { %307 = vst [vmem:[%s896_s3 + $0xe8] sm:$0xff] %v243_v17  ;;  %v196_v9 = vadd.f32 %v379_v2, %v128_v55  ;;  %v132_v10 = vmul.f32 %v374_v1, %v64_v60  ;;  %v257_v12 = vmax.f32 %v193_v58, 0.0  ;;  %v197_v13 = vadd.f32 %v379_v2, %v129_v59 }
  0x27   :  { %308 = vst [vmem:[%s896_s3 + $0xf0] sm:$0xff] %v244_v21  ;;  %v133_v14 = vmul.f32 %v374_v1, %v65_v0  ;;  %v145_v16 = vmul.f32 %v374_v1, %v77_v3  ;;  %v258_v17 = vmax.f32 %v194_v62, 0.0  ;;  %v198_v18 = vadd.f32 %v379_v2, %v130_v63 }
  0x28   :  { %309 = vst [vmem:[%s896_s3 + $0xf8] sm:$0xff] %v245_v25  ;;  %v134_v19 = vmul.f32 %v374_v1, %v66_v7  ;;  %v259_v21 = vmax.f32 %v195_v5, 0.0  ;;  %v199_v22 = vadd.f32 %v379_v2, %v131_v6  ;;  %v135_v23 = vmul.f32 %v374_v1, %v67_v11 }
  0x29   :  { %310 = vst [vmem:[%s896_s3 + $0x100] sm:$0xff] %v246_v29  ;;  %v784_v25 = vadd.f32 %v379_v2, %v145_v16  ;;  %v260_v26 = vmax.f32 %v196_v9, 0.0  ;;  %v200_v27 = vadd.f32 %v379_v2, %v132_v10  ;;  %v136_v28 = vmul.f32 %v374_v1, %v68_v15  ;;  %v71_v29 = vld [vmem:[%s893_s0 + $0x1c8] sm:$0xff] }
  0x2a   :  { %311 = vst [vmem:[%s896_s3 + $0x108] sm:$0xff] %v247_v33  ;;  %v261_v30 = vmax.f32 %v197_v13, 0.0  ;;  %v201_v31 = vadd.f32 %v379_v2, %v133_v14  ;;  %v137_v32 = vmul.f32 %v374_v1, %v69_v20  ;;  %v72_v33 = vld [vmem:[%s893_s0 + $0x1d0] sm:$0xff]  ;;  %v262_v34 = vmax.f32 %v198_v18, 0.0 }
  0x2b   :  { %312 = vst [vmem:[%s896_s3 + $0x110] sm:$0xff] %v248_v37  ;;  %v202_v35 = vadd.f32 %v379_v2, %v134_v19  ;;  %v138_v36 = vmul.f32 %v374_v1, %v70_v24  ;;  %v73_v37 = vld [vmem:[%s893_s0 + $0x1d8] sm:$0xff]  ;;  %v263_v38 = vmax.f32 %v199_v22, 0.0  ;;  %v203_v39 = vadd.f32 %v379_v2, %v135_v23 }
  0x2c   :  { %313 = vst [vmem:[%s896_s3 + $0x118] sm:$0xff] %v249_v41  ;;  %v139_v40 = vmul.f32 %v374_v1, %v71_v29  ;;  %v74_v41 = vld [vmem:[%s893_s0 + $0x1e0] sm:$0xff]  ;;  %v264_v42 = vmax.f32 %v200_v27, 0.0  ;;  %v204_v43 = vadd.f32 %v379_v2, %v136_v28  ;;  %v140_v44 = vmul.f32 %v374_v1, %v72_v33 }
  0x2d   :  { %314 = vst [vmem:[%s896_s3 + $0x120] sm:$0xff] %v250_v45  ;;  %v75_v45 = vld [vmem:[%s893_s0 + $0x1e8] sm:$0xff]  ;;  %v265_v46 = vmax.f32 %v201_v31, 0.0  ;;  %v205_v47 = vadd.f32 %v379_v2, %v137_v32  ;;  %v141_v48 = vmul.f32 %v374_v1, %v73_v37  ;;  %v266_v50 = vmax.f32 %v202_v35, 0.0 }
  0x2e   :  { %315 = vst [vmem:[%s896_s3 + $0x128] sm:$0xff] %v251_v49  ;;  %v76_v49 = vld [vmem:[%s893_s0 + $0x1f0] sm:$0xff]  ;;  %v206_v51 = vadd.f32 %v379_v2, %v138_v36  ;;  %v142_v52 = vmul.f32 %v374_v1, %v74_v41  ;;  %v207_v54 = vadd.f32 %v379_v2, %v139_v40  ;;  %v143_v55 = vmul.f32 %v374_v1, %v75_v45 }
  0x2f   :  { %316 = vst [vmem:[%s896_s3 + $0x130] sm:$0xff] %v252_v53  ;;  %v267_v53 = vmax.f32 %v203_v39, 0.0  ;;  %v268_v56 = vmax.f32 %v204_v43, 0.0  ;;  %v144_v58 = vmul.f32 %v374_v1, %v76_v49  ;;  %v269_v59 = vmax.f32 %v205_v47, 0.0 }
  0x30   :  { %317 = vst [vmem:[%s896_s3 + $0x138] sm:$0xff] %v253_v57  ;;  %v208_v57 = vadd.f32 %v379_v2, %v140_v44  ;;  %v209_v60 = vadd.f32 %v379_v2, %v141_v48  ;;  %v210_v62 = vadd.f32 %v379_v2, %v142_v52  ;;  %v271_v63 = vmax.f32 %v207_v54, 0.0 }
  0x31   :  { %318 = vst [vmem:[%s896_s3 + $0x140] sm:$0xff] %v254_v61  ;;  %v270_v61 = vmax.f32 %v206_v51, 0.0  ;;  %v211_v1 = vadd.f32 %v379_v2, %v143_v55  ;;  %v212_v3 = vadd.f32 %v379_v2, %v144_v58  ;;  %v277_v7 = vmax.f32 %v784_v25, 0.0 }
  0x32   :  { %319 = vst [vmem:[%s896_s3 + $0x148] sm:$0xff] %v255_v4  ;;  %v272_v0 = vmax.f32 %v208_v57, 0.0  ;;  %v273_v4 = vmax.f32 %v209_v60, 0.0  ;;  %v274_v5 = vmax.f32 %v210_v62, 0.0 }
  0x33   :  { %320 = vst [vmem:[%s896_s3 + $0x150] sm:$0xff] %v256_v8  ;;  %v275_v6 = vmax.f32 %v211_v1, 0.0  ;;  %v276_v2 = vmax.f32 %v212_v3, 0.0 }
  0x34   :  { %321 = vst [vmem:[%s896_s3 + $0x158] sm:$0xff] %v257_v12 }
  0x35   :  { %322 = vst [vmem:[%s896_s3 + $0x160] sm:$0xff] %v258_v17 }
  0x36   :  { %323 = vst [vmem:[%s896_s3 + $0x168] sm:$0xff] %v259_v21 }
  0x37   :  { %324 = vst [vmem:[%s896_s3 + $0x170] sm:$0xff] %v260_v26 }
  0x38   :  { %325 = vst [vmem:[%s896_s3 + $0x178] sm:$0xff] %v261_v30 }
  0x39   :  { %326 = vst [vmem:[%s896_s3 + $0x180] sm:$0xff] %v262_v34 }
  0x3a   :  { %327 = vst [vmem:[%s896_s3 + $0x188] sm:$0xff] %v263_v38 }
  0x3b   :  { %328 = vst [vmem:[%s896_s3 + $0x190] sm:$0xff] %v264_v42 }
  0x3c   :  { %329 = vst [vmem:[%s896_s3 + $0x198] sm:$0xff] %v265_v46 }
  0x3d   :  { %330 = vst [vmem:[%s896_s3 + $0x1a0] sm:$0xff] %v266_v50 }
  0x3e   :  { %331 = vst [vmem:[%s896_s3 + $0x1a8] sm:$0xff] %v267_v53 }
  0x3f   :  { %332 = vst [vmem:[%s896_s3 + $0x1b0] sm:$0xff] %v268_v56 }
  0x40   :  { %333 = vst [vmem:[%s896_s3 + $0x1b8] sm:$0xff] %v269_v59 }
  0x41   :  { %334 = vst [vmem:[%s896_s3 + $0x1c0] sm:$0xff] %v270_v61 }
  0x42   :  { %335 = vst [vmem:[%s896_s3 + $0x1c8] sm:$0xff] %v271_v63 }
  0x43   :  { %336 = vst [vmem:[%s896_s3 + $0x1d0] sm:$0xff] %v272_v0 }
  0x44   :  { %337 = vst [vmem:[%s896_s3 + $0x1d8] sm:$0xff] %v273_v4 }
  0x45   :  { %338 = vst [vmem:[%s896_s3 + $0x1e0] sm:$0xff] %v274_v5 }
  0x46   :  { %339 = vst [vmem:[%s896_s3 + $0x1e8] sm:$0xff] %v275_v6 }
  0x47   :  { %340 = vst [vmem:[%s896_s3 + $0x1f0] sm:$0xff] %v276_v2 }
  0x48   :  { %341 = vst [vmem:[%s896_s3 + $0x1f8] sm:$0xff] %v277_v7 }

// kernel: double_conv.3
= control target key start
LH: loop header
LB: loop body
LE: loop exit
PB: predicated region body
PF: predicated region fallthrough
CT: control target
= control target key end

     0   :  { %s2686_s12 = smov 0   ;;  %s2688_s13 = smov 0   ;;  %s3958_s0 = inlined_call_operand.vmem [shape: f32[2,18,18,128], index: 0, kind: input, shape index: {}]   ;;  %s3959_s1 = inlined_call_operand.vmem [shape: f32[9,128,128], index: 1, kind: input, shape index: {}]   ;;  %s3960_s2 = inlined_call_operand.vmem [shape: f32[2,16,16,128], index: 2, kind: output, shape index: {0}]   ;;  %s3961_s3 = inlined_call_operand.vmem [shape: f32[2,2,128], index: 3, kind: output, shape index: {1}]  }
   0x1   :  { %s2690_s14 = smov 0  }
   0x2 LB: > { %s26_s15 = sadd.s32 1, %s2660_s13  ;;  %p2241_p0 = scmp.ge.s32.totalorder %s2664_s14, 1  ;;  %s2664_s14 = sphi %s2690_s14, %s14_s14   ;;  %s2660_s13 = sphi %s2688_s13, %s3980_s13   ;;  %s2656_s12 = sphi %s2686_s12, %s3979_s12  }
   0x3   : > { %p28_p1 = scmp.ge.s32.totalorder %s26_s15, 2  ;;  %p156_p2 = scmp.lt.s32.totalorder %s2664_s14, 3 }
   0x5   : > { %s3982_s15 = smov (%p28_p1, %s26_s15), 0  ;;  %p157_p3 = pnand %p2241_p0, %p156_p2 }
   0x7   : > { %160 = sbr.rel (%p157_p3) target bundleno = 846 (0x34e), region = 28 }
   0xc   : > { %v2261_v0 = vld [vmem:[%s3959_s1 + $0xf8] sm:$0xff]  ;;  %v2260_v1 = vld [vmem:[%s3959_s1 + $0xf0] sm:$0xff]  ;;  %v2259_v2 = vld [vmem:[%s3959_s1 + $0xe8] sm:$0xff]  ;;  %p190_p4 = scmp.lt.s32.totalorder %s2656_s12, 1 }
   0xd   : > { %2569 = vmatpush.msra.mxu1 %v2261_v0  ;;  %2570 = vmatpush.msra.mxu2 %v2261_v0  ;;  %v2258_v3 = vld [vmem:[%s3959_s1 + $0xe0] sm:$0xff]  ;;  %v2257_v4 = vld [vmem:[%s3959_s1 + $0xd8] sm:$0xff]  ;;  %v2256_v5 = vld [vmem:[%s3959_s1 + $0xd0] sm:$0xff] }
   0xe   : > { %2571 = vmatpush.msra.mxu3 %v2261_v0  ;;  %312 = vmatpush.msra.mxu0 %v2261_v0  ;;  %v2255_v6 = vld [vmem:[%s3959_s1 + $0xc8] sm:$0xff]  ;;  %v2254_v7 = vld [vmem:[%s3959_s1 + $0xc0] sm:$0xff]  ;;  %v2253_v8 = vld [vmem:[%s3959_s1 + $0xb8] sm:$0xff]  ;;  %s3984_s12 = smov (!%p190_p4, %s2656_s12), 1 }
   0xf   : > { %2572 = vmatpush.msra.mxu1 %v2260_v1  ;;  %2573 = vmatpush.msra.mxu2 %v2260_v1  ;;  %v2252_v9 = vld [vmem:[%s3959_s1 + $0xb0] sm:$0xff]  ;;  %v2251_v10 = vld [vmem:[%s3959_s1 + $0xa8] sm:$0xff]  ;;  %v2250_v11 = vld [vmem:[%s3959_s1 + $0xa0] sm:$0xff]  ;;  %s2617_s19 = smul.u32 432, %s3984_s12  ;;  %s2568_s20 = sshll.u32 %s3984_s12, 8 }
  0x10   : > { %2574 = vmatpush.msra.mxu3 %v2260_v1  ;;  %313 = vmatpush.msra.mxu0 %v2260_v1  ;;  %v2249_v12 = vld [vmem:[%s3959_s1 + $0x98] sm:$0xff]  ;;  %v2248_v13 = vld [vmem:[%s3959_s1 + $0x90] sm:$0xff]  ;;  %v2247_v14 = vld [vmem:[%s3959_s1 + $0x88] sm:$0xff]  ;;  %s3630_s23 = scalar_lea.vmem %s3960_s2, %s2568_s20 }
  0x11   : > { %2575 = vmatpush.msra.mxu1 %v2259_v2  ;;  %2576 = vmatpush.msra.mxu2 %v2259_v2  ;;  %s2759_s26 = scalar_lea.vmem %s3958_s0, %s2617_s19  ;;  %v2246_v15 = vld [vmem:[%s3959_s1 + $0x80] sm:$0xff]  ;;  %v2277_v18 = vld [vmem:[%s3959_s1 + $0x178] sm:$0xff]  ;;  %v2276_v22 = vld [vmem:[%s3959_s1 + $0x170] sm:$0xff] }
  0x12   : > { %2577 = vmatpush.msra.mxu3 %v2259_v2  ;;  %314 = vmatpush.msra.mxu0 %v2259_v2  ;;  %v2765_v16 = vld [vmem:[%s2759_s26 + $0x61] sm:$0xff]  ;;  %v260_v20 = vld [vmem:[%s3959_s1 + $0x78] sm:$0xff]  ;;  %v259_v23 = vld [vmem:[%s3959_s1 + $0x70] sm:$0xff] }
  0x13   : > { %2578 = vmatpush.msra.mxu1 %v2258_v3  ;;  %2579 = vmatpush.msra.mxu2 %v2258_v3  ;;  %v2768_v17 = vld [vmem:[%s2759_s26 + $0xc1] sm:$0xff]  ;;  %v2325_v21 = vld [vmem:[%s3959_s1 + $0x1f8] sm:$0xff]  ;;  %v2324_v24 = vld [vmem:[%s3959_s1 + $0x1f0] sm:$0xff] }
  0x14   : > { %2580 = vmatpush.msra.mxu3 %v2258_v3  ;;  %315 = vmatpush.msra.mxu0 %v2258_v3  ;;  %v285_v19 = vld [vmem:[%s2759_s26 + $0x121] sm:$0xff]  ;;  %v2373_v29 = vld [vmem:[%s3959_s1 + $0x278] sm:$0xff]  ;;  %v2805_v30 = vld [vmem:[%s2759_s26 + $0x69] sm:$0xff] }
  0x15   : > { %2581 = vmatpush.msra.mxu1 %v2257_v4  ;;  %2582 = vmatpush.msra.mxu2 %v2257_v4  ;;  %v2275_v25 = vld [vmem:[%s3959_s1 + $0x168] sm:$0xff]  ;;  %v2274_v32 = vld [vmem:[%s3959_s1 + $0x160] sm:$0xff]  ;;  %v2372_v35 = vld [vmem:[%s3959_s1 + $0x270] sm:$0xff] }
  0x16   : > { %2583 = vmatpush.msra.mxu3 %v2257_v4  ;;  %316 = vmatpush.msra.mxu0 %v2257_v4  ;;  %v261_v26 = vld [vmem:[%s2759_s26 + $0x1] sm:$0xff]  ;;  %v2808_v31 = vld [vmem:[%s2759_s26 + $0xc9] sm:$0xff]  ;;  %v2273_v37 = vld [vmem:[%s3959_s1 + $0x158] sm:$0xff] }
  0x17   : > { %2584 = vmatpush.msra.mxu1 %v2256_v5  ;;  %2585 = vmatpush.msra.mxu2 %v2256_v5  ;;  %v258_v27 = vld [vmem:[%s3959_s1 + $0x68] sm:$0xff]  ;;  %v2322_v33 = vld [vmem:[%s3959_s1 + $0x1e0] sm:$0xff]  ;;  %v2321_v38 = vld [vmem:[%s3959_s1 + $0x1d8] sm:$0xff] }
  0x18   : > { %2586 = vmatpush.msra.mxu3 %v2256_v5  ;;  %317 = vmatpush.msra.mxu0 %v2256_v5  ;;  %v2323_v28 = vld [vmem:[%s3959_s1 + $0x1e8] sm:$0xff]  ;;  %v257_v36 = vld [vmem:[%s3959_s1 + $0x60] sm:$0xff]  ;;  %v256_v40 = vld [vmem:[%s3959_s1 + $0x58] sm:$0xff] }
  0x19   : > { %2587 = vmatpush.msra.mxu1 %v2255_v6  ;;  %2588 = vmatpush.msra.mxu2 %v2255_v6  ;;  %v286_v34 = vld [vmem:[%s2759_s26 + $0x129] sm:$0xff]  ;;  %v2370_v44 = vld [vmem:[%s3959_s1 + $0x260] sm:$0xff]  ;;  %v2369_v51 = vld [vmem:[%s3959_s1 + $0x258] sm:$0xff] }
  0x1a   : > { %2589 = vmatpush.msra.mxu3 %v2255_v6  ;;  %318 = vmatpush.msra.mxu0 %v2255_v6  ;;  %v2371_v39 = vld [vmem:[%s3959_s1 + $0x268] sm:$0xff]  ;;  %v2272_v41 = vld [vmem:[%s3959_s1 + $0x150] sm:$0xff]  ;;  %v2851_v46 = vld [vmem:[%s2759_s26 + $0x79] sm:$0xff] }
  0x1b   : > { %2590 = vmatpush.msra.mxu1 %v2254_v7  ;;  %2591 = vmatpush.msra.mxu2 %v2254_v7  ;;  %v262_v42 = vld [vmem:[%s2759_s26 + $0x9] sm:$0xff]  ;;  %v2854_v47 = vld [vmem:[%s2759_s26 + $0xd9] sm:$0xff]  ;;  %v2899_v62 = vld [vmem:[%s2759_s26 + $0x81] sm:$0xff] }
  0x1c   : > { %2592 = vmatpush.msra.mxu3 %v2254_v7  ;;  %319 = vmatpush.msra.mxu0 %v2254_v7  ;;  %v2320_v43 = vld [vmem:[%s3959_s1 + $0x1d0] sm:$0xff]  ;;  %v2271_v48 = vld [vmem:[%s3959_s1 + $0x148] sm:$0xff]  ;;  %v287_v50 = vld [vmem:[%s2759_s26 + $0x139] sm:$0xff] }
  0x1d   : > { %2593 = vmatpush.msra.mxu1 %v2253_v8  ;;  %2594 = vmatpush.msra.mxu2 %v2253_v8  ;;  %v255_v45 = vld [vmem:[%s3959_s1 + $0x50] sm:$0xff]  ;;  %v2319_v49 = vld [vmem:[%s3959_s1 + $0x1c8] sm:$0xff]  ;;  %v2270_v53 = vld [vmem:[%s3959_s1 + $0x140] sm:$0xff] }
  0x1e   : > { %2595 = vmatpush.msra.mxu3 %v2253_v8  ;;  %320 = vmatpush.msra.mxu0 %v2253_v8  ;;  %v254_v52 = vld [vmem:[%s3959_s1 + $0x48] sm:$0xff]  ;;  %v2318_v54 = vld [vmem:[%s3959_s1 + $0x1c0] sm:$0xff]  ;;  %v2368_v55 = vld [vmem:[%s3959_s1 + $0x250] sm:$0xff] }
  0x1f   : > { %2596 = vmatpush.msra.mxu1 %v2252_v9  ;;  %2597 = vmatpush.msra.mxu2 %v2252_v9  ;;  %v253_v56 = vld [vmem:[%s3959_s1 + $0x40] sm:$0xff]  ;;  %v2269_v57 = vld [vmem:[%s3959_s1 + $0x138] sm:$0xff]  ;;  %v2367_v60 = vld [vmem:[%s3959_s1 + $0x248] sm:$0xff] }
  0x20   : > { %2598 = vmatpush.msra.mxu3 %v2252_v9  ;;  %321 = vmatpush.msra.mxu0 %v2252_v9  ;;  %v2887_v58 = vld [vmem:[%s2759_s26 + $0x19] sm:$0xff]  ;;  %v2902_v63 = vld [vmem:[%s2759_s26 + $0xe1] sm:$0xff]  ;;  %v2268_v0 = vld [vmem:[%s3959_s1 + $0x130] sm:$0xff] }
  0x21   : > { %2599 = vmatpush.msra.mxu1 %v2251_v10  ;;  %2600 = vmatpush.msra.mxu2 %v2251_v10  ;;  %v2317_v59 = vld [vmem:[%s3959_s1 + $0x1b8] sm:$0xff]  ;;  %v2316_v1 = vld [vmem:[%s3959_s1 + $0x1b0] sm:$0xff]  ;;  %v288_v2 = vld [vmem:[%s2759_s26 + $0x141] sm:$0xff] }
  0x22   : > { %2601 = vmatpush.msra.mxu3 %v2251_v10  ;;  %322 = vmatpush.msra.mxu0 %v2251_v10  ;;  %v252_v61 = vld [vmem:[%s3959_s1 + $0x38] sm:$0xff]  ;;  %v2366_v3 = vld [vmem:[%s3959_s1 + $0x240] sm:$0xff]  ;;  %v251_v4 = vld [vmem:[%s3959_s1 + $0x30] sm:$0xff] }
  0x23   : > { %2602 = vmatpush.msra.mxu1 %v2250_v11  ;;  %2603 = vmatpush.msra.mxu2 %v2250_v11  ;;  %v2267_v5 = vld [vmem:[%s3959_s1 + $0x128] sm:$0xff]  ;;  %v2365_v7 = vld [vmem:[%s3959_s1 + $0x238] sm:$0xff]  ;;  %v2266_v9 = vld [vmem:[%s3959_s1 + $0x120] sm:$0xff] }
  0x24   : > { %2604 = vmatpush.msra.mxu3 %v2250_v11  ;;  %323 = vmatpush.msra.mxu0 %v2250_v11  ;;  %v2315_v6 = vld [vmem:[%s3959_s1 + $0x1a8] sm:$0xff]  ;;  %v2314_v11 = vld [vmem:[%s3959_s1 + $0x1a0] sm:$0xff] }
  0x25   : > { %2605 = vmatpush.msra.mxu1 %v2249_v12  ;;  %2606 = vmatpush.msra.mxu2 %v2249_v12  ;;  %v250_v8 = vld [vmem:[%s3959_s1 + $0x28] sm:$0xff] }
  0x26   : > { %2607 = vmatpush.msra.mxu3 %v2249_v12  ;;  %324 = vmatpush.msra.mxu0 %v2249_v12  ;;  %v2936_v10 = vld [vmem:[%s2759_s26 + $0x21] sm:$0xff]  ;;  %v2364_v12 = vld [vmem:[%s3959_s1 + $0x230] sm:$0xff] }
  0x27   : > { %2608 = vmatpush.msra.mxu1 %v2248_v13  ;;  %2609 = vmatpush.msra.mxu2 %v2248_v13 }
  0x28   : > { %2610 = vmatpush.msra.mxu3 %v2248_v13  ;;  %325 = vmatpush.msra.mxu0 %v2248_v13  ;;  %v249_v13 = vld [vmem:[%s3959_s1 + $0x20] sm:$0xff] }
  0x29   : > { %2611 = vmatpush.msra.mxu1 %v2247_v14  ;;  %2612 = vmatpush.msra.mxu2 %v2247_v14 }
  0x2a   : > { %2613 = vmatpush.msra.mxu3 %v2247_v14  ;;  %326 = vmatpush.msra.mxu0 %v2247_v14  ;;  %v2948_v14 = vld [vmem:[%s2759_s26 + $0x91] sm:$0xff] }
  0x2b   : > { %2614 = vmatpush.msra.mxu1 %v2246_v15  ;;  %2615 = vmatpush.msra.mxu2 %v2246_v15 }
  0x2c   : > { %352 = vmatmul.f32.vlgmr.msra.gmra.mxu1 %v2765_v16  ;;  %376 = vmatmul.f32.vlgmr.msra.gmra.mxu2 %v2768_v17 }
  0x2d   : > { %589 = vmatpush.msrb.mxu2 %v2277_v18  ;;  %2616 = vmatpush.msra.mxu3 %v2246_v15  ;;  %v2265_v18 = vld [vmem:[%s3959_s1 + $0x118] sm:$0xff] }
  0x2e   : > { %400 = vmatmul.f32.vlgmr.msra.gmra.mxu3 %v285_v19  ;;  %425 = vmatpush.msrb.mxu1 %v260_v20  ;;  %v2313_v19 = vld [vmem:[%s3959_s1 + $0x198] sm:$0xff] }
  0x2f   : > { %786 = vmatpush.msrb.mxu3 %v2325_v21  ;;  %590 = vmatpush.msrb.mxu2 %v2276_v22  ;;  %v289_v20 = vld [vmem:[%s2759_s26 + $0x151] sm:$0xff]  ;;  %v2363_v21 = vld [vmem:[%s3959_s1 + $0x228] sm:$0xff] }
  0x30   : > { %426 = vmatpush.msrb.mxu1 %v259_v23  ;;  %327 = vmatpush.msra.mxu0 %v2246_v15  ;;  %v2951_v15 = vld [vmem:[%s2759_s26 + $0xf1] sm:$0xff] }
  0x31   : > { %787 = vmatpush.msrb.mxu3 %v2324_v24  ;;  %591 = vmatpush.msrb.mxu2 %v2275_v25  ;;  %v248_v22 = vld [vmem:[%s3959_s1 + $0x18] sm:$0xff]  ;;  %v2264_v23 = vld [vmem:[%s3959_s1 + $0x110] sm:$0xff]  ;;  %v2362_v25 = vld [vmem:[%s3959_s1 + $0x220] sm:$0xff] }
  0x32   : > { %328 = vmatmul.f32.vlgmr.msra.gmra.mxu0 %v261_v26  ;;  %427 = vmatpush.msrb.mxu1 %v258_v27  ;;  %v2312_v24 = vld [vmem:[%s3959_s1 + $0x190] sm:$0xff]  ;;  %v2263_v27 = vld [vmem:[%s3959_s1 + $0x108] sm:$0xff] }
  0x33   : > { %788 = vmatpush.msrb.mxu3 %v2323_v28  ;;  %982 = vmatpush.msrb.mxu0 %v2373_v29  ;;  %v247_v26 = vld [vmem:[%s3959_s1 + $0x10] sm:$0xff]  ;;  %v2311_v29 = vld [vmem:[%s3959_s1 + $0x188] sm:$0xff] }
  0x34   : > { %355 = vmatmul.f32.gmra.mxu1 %v2805_v30  ;;  %379 = vmatmul.f32.gmra.mxu2 %v2808_v31  ;;  %v2985_v28 = vld [vmem:[%s2759_s26 + $0x31] sm:$0xff] }
  0x35   : > { %592 = vmatpush.msrb.mxu2 %v2274_v32  ;;  %789 = vmatpush.msrb.mxu3 %v2322_v33  ;;  %v2361_v32 = vld [vmem:[%s3959_s1 + $0x218] sm:$0xff]  ;;  %v246_v33 = vld [vmem:[%s3959_s1 + $0x8] sm:$0xff] }
  0x36   : > { %403 = vmatmul.f32.gmra.mxu3 %v286_v34  ;;  %983 = vmatpush.msrb.mxu0 %v2372_v35  ;;  %v2997_v34 = vld [vmem:[%s2759_s26 + $0x99] sm:$0xff] }
  0x37   : > { %428 = vmatpush.msrb.mxu1 %v257_v36  ;;  %593 = vmatpush.msrb.mxu2 %v2273_v37  ;;  %v3000_v35 = vld [vmem:[%s2759_s26 + $0xf9] sm:$0xff] }
  0x38   : > { %790 = vmatpush.msrb.mxu3 %v2321_v38  ;;  %984 = vmatpush.msrb.mxu0 %v2371_v39  ;;  %v2262_v36 = vld [vmem:[%s3959_s1 + $0x100] sm:$0xff]  ;;  %v2360_v39 = vld [vmem:[%s3959_s1 + $0x210] sm:$0xff] }
  0x39   : > { %429 = vmatpush.msrb.mxu1 %v256_v40  ;;  %594 = vmatpush.msrb.mxu2 %v2272_v41  ;;  %v2310_v37 = vld [vmem:[%s3959_s1 + $0x180] sm:$0xff]  ;;  %v2469_v41 = vld [vmem:[%s3959_s1 + $0x378] sm:$0xff] }
  0x3a   : > { %331 = vmatmul.f32.gmra.mxu0 %v262_v42  ;;  %791 = vmatpush.msrb.mxu3 %v2320_v43  ;;  %v290_v38 = vld [vmem:[%s2759_s26 + $0x159] sm:$0xff]  ;;  %v2359_v42 = vld [vmem:[%s3959_s1 + $0x208] sm:$0xff] }
  0x3b   : > { %985 = vmatpush.msrb.mxu0 %v2370_v44  ;;  %430 = vmatpush.msrb.mxu1 %v255_v45  ;;  %v245_v40 = vld [vmem:[%s3959_s1] sm:$0xff]  ;;  %v2517_v43 = vld [vmem:[%s3959_s1 + $0x3f8] sm:$0xff] }
  0x3c   : > { %358 = vmatmul.f32.gmra.mxu1 %v2851_v46  ;;  %382 = vmatmul.f32.gmra.mxu2 %v2854_v47  ;;  %v2421_v44 = vld [vmem:[%s3959_s1 + $0x2f8] sm:$0xff] }
  0x3d   : > { %595 = vmatpush.msrb.mxu2 %v2271_v48  ;;  %792 = vmatpush.msrb.mxu3 %v2319_v49  ;;  %v3031_v45 = vld [vmem:[%s2759_s26 + $0x39] sm:$0xff]  ;;  %v3037_v49 = vld [vmem:[%s2759_s26 + $0xa9] sm:$0xff] }
  0x3e   : > { %406 = vmatmul.f32.gmra.mxu3 %v287_v50  ;;  %986 = vmatpush.msrb.mxu0 %v2369_v51  ;;  %v2358_v48 = vld [vmem:[%s3959_s1 + $0x200] sm:$0xff]  ;;  %v3040_v50 = vld [vmem:[%s2759_s26 + $0x109] sm:$0xff]  ;;  %v2565_v51 = vld [vmem:[%s3959_s1 + $0x478] sm:$0xff] }
  0x3f   : > { %431 = vmatpush.msrb.mxu1 %v254_v52  ;;  %596 = vmatpush.msrb.mxu2 %v2270_v53  ;;  %v291_v52 = vld [vmem:[%s2759_s26 + $0x169] sm:$0xff] }
  0x40   : > { %793 = vmatpush.msrb.mxu3 %v2318_v54  ;;  %987 = vmatpush.msrb.mxu0 %v2368_v55  ;;  %v2468_v53 = vld [vmem:[%s3959_s1 + $0x370] sm:$0xff] }
  0x41   : > { %432 = vmatpush.msrb.mxu1 %v253_v56  ;;  %597 = vmatpush.msrb.mxu2 %v2269_v57  ;;  %v2516_v54 = vld [vmem:[%s3959_s1 + $0x3f0] sm:$0xff] }
  0x42   : > { %334 = vmatmul.f32.gmra.mxu0 %v2887_v58  ;;  %794 = vmatpush.msrb.mxu3 %v2317_v59  ;;  %v2420_v55 = vld [vmem:[%s3959_s1 + $0x2f0] sm:$0xff] }
  0x43   : > { %988 = vmatpush.msrb.mxu0 %v2367_v60  ;;  %433 = vmatpush.msrb.mxu1 %v252_v61  ;;  %v3059_v56 = vld [vmem:[%s2759_s26 + $0x49] sm:$0xff]  ;;  %v3062_v57 = vld [vmem:[%s2759_s26 + $0xb1] sm:$0xff] }
  0x44   : > { %361 = vmatmul.f32.gmra.mxu1 %v2899_v62  ;;  %385 = vmatmul.f32.gmra.mxu2 %v2902_v63  ;;  %v3065_v59 = vld [vmem:[%s2759_s26 + $0x111] sm:$0xff] }
  0x45   : > { %598 = vmatpush.msrb.mxu2 %v2268_v0  ;;  %795 = vmatpush.msrb.mxu3 %v2316_v1  ;;  %v292_v60 = vld [vmem:[%s2759_s26 + $0x171] sm:$0xff]  ;;  %v210_v1 = vld [vmem:[%s2759_s26] sm:$0xff] }
  0x46   : > { %409 = vmatmul.f32.gmra.mxu3 %v288_v2  ;;  %989 = vmatpush.msrb.mxu0 %v2366_v3  ;;  %v2564_v61 = vld [vmem:[%s3959_s1 + $0x470] sm:$0xff]  ;;  %v538_v2 = vld [vmem:[%s2759_s26 + $0x2] sm:$0xff]  ;;  %v2278_v3 = vld [vmem:[%s2759_s26 + $0x18] sm:$0xff] }
  0x47   : > { %434 = vmatpush.msrb.mxu1 %v251_v4  ;;  %599 = vmatpush.msrb.mxu2 %v2267_v5  ;;  %v3075_v0 = vld [vmem:[%s2759_s26 + $0x51] sm:$0xff]  ;;  %v2467_v4 = vld [vmem:[%s3959_s1 + $0x368] sm:$0xff] }
  0x48   : > { %796 = vmatpush.msrb.mxu3 %v2315_v6  ;;  %990 = vmatpush.msrb.mxu0 %v2365_v7  ;;  %v2515_v5 = vld [vmem:[%s3959_s1 + $0x3e8] sm:$0xff] }
  0x49   : > { %435 = vmatpush.msrb.mxu1 %v250_v8  ;;  %600 = vmatpush.msrb.mxu2 %v2266_v9  ;;  %v2419_v6 = vld [vmem:[%s3959_s1 + $0x2e8] sm:$0xff]  ;;  %v2279_v9 = vld [vmem:[%s2759_s26 + $0x20] sm:$0xff] }
  0x4a   : > { %337 = vmatmul.f32.gmra.mxu0 %v2936_v10  ;;  %797 = vmatpush.msrb.mxu3 %v2314_v11  ;;  %v211_v7 = vld [vmem:[%s2759_s26 + $0x8] sm:$0xff] }
  0x4b   : > { %991 = vmatpush.msrb.mxu0 %v2364_v12  ;;  %436 = vmatpush.msrb.mxu1 %v249_v13  ;;  %v539_v8 = vld [vmem:[%s2759_s26 + $0xa] sm:$0xff]  ;;  %v540_v12 = vld [vmem:[%s2759_s26 + $0x1a] sm:$0xff] }
  0x4c   : > { %364 = vmatmul.f32.gmra.mxu1 %v2948_v14  ;;  %388 = vmatmul.f32.gmra.mxu2 %v2951_v15  ;;  %v2563_v11 = vld [vmem:[%s3959_s1 + $0x468] sm:$0xff]  ;;  %v2280_v13 = vld [vmem:[%s2759_s26 + $0x30] sm:$0xff] }
  0x4d   : > { %601 = vmatpush.msrb.mxu2 %v2265_v18  ;;  %798 = vmatpush.msrb.mxu3 %v2313_v19  ;;  %v2514_v18 = vld [vmem:[%s3959_s1 + $0x3e0] sm:$0xff] }
  0x4e   : > { %412 = vmatmul.f32.gmra.mxu3 %v289_v20  ;;  %992 = vmatpush.msrb.mxu0 %v2363_v21  ;;  %v2418_v19 = vld [vmem:[%s3959_s1 + $0x2e0] sm:$0xff]  ;;  %v2281_v20 = vld [vmem:[%s2759_s26 + $0x38] sm:$0xff] }
  0x4f   : > { %437 = vmatpush.msrb.mxu1 %v248_v22  ;;  %602 = vmatpush.msrb.mxu2 %v2264_v23  ;;  %v2562_v21 = vld [vmem:[%s3959_s1 + $0x460] sm:$0xff]  ;;  %v542_v22 = vld [vmem:[%s2759_s26 + $0x32] sm:$0xff]  ;;  %v2282_v23 = vld [vmem:[%s2759_s26 + $0x48] sm:$0xff] }
  0x50   : > { %799 = vmatpush.msrb.mxu3 %v2312_v24  ;;  %993 = vmatpush.msrb.mxu0 %v2362_v25  ;;  %v2465_v24 = vld [vmem:[%s3959_s1 + $0x358] sm:$0xff] }
  0x51   : > { %438 = vmatpush.msrb.mxu1 %v247_v26  ;;  %603 = vmatpush.msrb.mxu2 %v2263_v27  ;;  %v2513_v25 = vld [vmem:[%s3959_s1 + $0x3d8] sm:$0xff] }
  0x52   : > { %340 = vmatmul.f32.gmra.mxu0 %v2985_v28  ;;  %800 = vmatpush.msrb.mxu3 %v2311_v29  ;;  %v2417_v26 = vld [vmem:[%s3959_s1 + $0x2d8] sm:$0xff] }
  0x53   : > { %994 = vmatpush.msrb.mxu0 %v2361_v32  ;;  %439 = vmatpush.msrb.mxu1 %v246_v33  ;;  %v543_v27 = vld [vmem:[%s2759_s26 + $0x3a] sm:$0xff]  ;;  %v544_v32 = vld [vmem:[%s2759_s26 + $0x4a] sm:$0xff] }
  0x54   : > { %367 = vmatmul.f32.gmra.mxu1 %v2997_v34  ;;  %391 = vmatmul.f32.gmra.mxu2 %v3000_v35  ;;  %v2561_v29 = vld [vmem:[%s3959_s1 + $0x458] sm:$0xff]  ;;  %v2284_v33 = vld [vmem:[%s2759_s26 + $0x60] sm:$0xff] }
  0x55   : > { %604 = vmatpush.msrb.mxu2 %v2262_v36  ;;  %801 = vmatpush.msrb.mxu3 %v2310_v37  ;;  %v2464_v36 = vld [vmem:[%s3959_s1 + $0x350] sm:$0xff] }
  0x56   : > { %415 = vmatmul.f32.gmra.mxu3 %v290_v38  ;;  %995 = vmatpush.msrb.mxu0 %v2360_v39  ;;  %v2512_v37 = vld [vmem:[%s3959_s1 + $0x3d0] sm:$0xff] }
  0x57   : > { %440 = vmatpush.msrb.mxu1 %v245_v40  ;;  %1375 = vmatpush.msra.mxu2 %v2469_v41  ;;  %v2416_v38 = vld [vmem:[%s3959_s1 + $0x2d0] sm:$0xff]  ;;  %v2285_v40 = vld [vmem:[%s2759_s26 + $0x68] sm:$0xff] }
  0x58   : > { %996 = vmatpush.msrb.mxu0 %v2359_v42  ;;  %1571 = vmatpush.msra.mxu3 %v2517_v43  ;;  %v545_v39 = vld [vmem:[%s2759_s26 + $0x52] sm:$0xff]  ;;  %v546_v43 = vld [vmem:[%s2759_s26 + $0x62] sm:$0xff] }
  0x59   : > { %1178 = vmatpush.msra.mxu1 %v2421_v44  ;;  %1376 = vmatpush.msra.mxu2 %v2468_v53  ;;  %v2560_v41 = vld [vmem:[%s3959_s1 + $0x450] sm:$0xff]  ;;  %v2286_v44 = vld [vmem:[%s2759_s26 + $0x78] sm:$0xff] }
  0x5a   : > { %343 = vmatmul.f32.gmra.mxu0 %v3031_v45  ;;  %1572 = vmatpush.msra.mxu3 %v2516_v54  ;;  %v547_v54 = vld [vmem:[%s2759_s26 + $0x6a] sm:$0xff] }
  0x5b   : > { %997 = vmatpush.msrb.mxu0 %v2358_v48  ;;  %1179 = vmatpush.msra.mxu1 %v2420_v55  ;;  %v2287_v55 = vld [vmem:[%s2759_s26 + $0x80] sm:$0xff] }
  0x5c   : > { %370 = vmatmul.f32.gmra.mxu1 %v3037_v49  ;;  %394 = vmatmul.f32.gmra.mxu2 %v3040_v50 }
  0x5d   : > { %1767 = vmatpush.msra.mxu0 %v2565_v51  ;;  %1377 = vmatpush.msra.mxu2 %v2467_v4  ;;  %v2510_v4 = vld [vmem:[%s3959_s1 + $0x3c0] sm:$0xff] }
  0x5e   : > { %418 = vmatmul.f32.gmra.mxu3 %v291_v52  ;;  %1180 = vmatpush.msra.mxu1 %v2419_v6 }
  0x5f   : > { %1768 = vmatpush.msra.mxu0 %v2564_v61  ;;  %1573 = vmatpush.msra.mxu3 %v2515_v5 }
  0x60   : > { %1181 = vmatpush.msra.mxu1 %v2418_v19 }
  0x61   : > { %1769 = vmatpush.msra.mxu0 %v2563_v11  ;;  %1574 = vmatpush.msra.mxu3 %v2514_v18  ;;  %v2289_v11 = vld [vmem:[%s2759_s26 + $0x98] sm:$0xff] }
  0x62   : > { %346 = vmatmul.f32.gmra.mxu0 %v3059_v56  ;;  %1182 = vmatpush.msra.mxu1 %v2417_v26  ;;  %v551_v26 = vld [vmem:[%s2759_s26 + $0x9a] sm:$0xff] }
  0x63   : > { %1770 = vmatpush.msra.mxu0 %v2562_v21  ;;  %1575 = vmatpush.msra.mxu3 %v2513_v25  ;;  %v2509_v21 = vld [vmem:[%s3959_s1 + $0x3b8] sm:$0xff] }
  0x64   : > { %373 = vmatmul.f32.gmra.mxu1 %v3062_v57  ;;  %397 = vmatmul.f32.gmra.mxu2 %v3065_v59 }
  0x65   : > { %1771 = vmatpush.msra.mxu0 %v2561_v29  ;;  %1576 = vmatpush.msra.mxu3 %v2512_v37  ;;  %v552_v37 = vld [vmem:[%s2759_s26 + $0xaa] sm:$0xff] }
  0x66   : > { %421 = vmatmul.f32.gmra.mxu3 %v292_v60  ;;  %1183 = vmatpush.msra.mxu1 %v2416_v38  ;;  %v2460_v38 = vld [vmem:[%s3959_s1 + $0x330] sm:$0xff] }
  0x67   : > { %1772 = vmatpush.msra.mxu0 %v2560_v41 }
  0x6a   : > { %349 = vmatmul.f32.gmra.mxu0 %v3075_v0 }
  0x6c   : > { %441 = vmatmul.f32.vlgmr.msrb.gmra.mxu1 %v210_v1  ;;  %605 = vmatmul.f32.vlgmr.msrb.gmra.mxu2 %v538_v2  ;;  %v548_v2 = vld [vmem:[%s2759_s26 + $0x7a] sm:$0xff] }
  0x6e   : > { %802 = vmatmul.f32.vlgmr.msrb.gmra.mxu3 %v2278_v3 }
  0x72   : > { %998 = vmatmul.f32.vlgmr.msrb.gmra.mxu0 %v2887_v58  ;;  %v2466_v58 = vld [vmem:[%s3959_s1 + $0x360] sm:$0xff] }
  0x73   : > { %1378 = vmatpush.msra.mxu2 %v2466_v58 }
  0x74   : > { %444 = vmatmul.f32.gmra.mxu1 %v211_v7  ;;  %608 = vmatmul.f32.gmra.mxu2 %v539_v8 }
  0x75   : > { %1379 = vmatpush.msra.mxu2 %v2465_v24 }
  0x76   : > { %805 = vmatmul.f32.gmra.mxu3 %v2279_v9 }
  0x77   : > { %1380 = vmatpush.msra.mxu2 %v2464_v36 }
  0x7a   : > { %1001 = vmatmul.f32.gmra.mxu0 %v2936_v10  ;;  %v541_v10 = vld [vmem:[%s2759_s26 + $0x22] sm:$0xff] }
  0x7c   : > { %447 = vmatmul.f32.gmra.mxu1 %v2278_v3  ;;  %611 = vmatmul.f32.gmra.mxu2 %v540_v12  ;;  %v2462_v3 = vld [vmem:[%s3959_s1 + $0x340] sm:$0xff] }
  0x7d   : > { %v2558_v12 = vld [vmem:[%s3959_s1 + $0x440] sm:$0xff] }
  0x7e   : > { %808 = vmatmul.f32.gmra.mxu3 %v2280_v13 }
  0x82   : > { %1004 = vmatmul.f32.gmra.mxu0 %v2985_v28  ;;  %v2283_v28 = vld [vmem:[%s2759_s26 + $0x50] sm:$0xff] }
  0x84   : > { %450 = vmatmul.f32.gmra.mxu1 %v2279_v9  ;;  %614 = vmatmul.f32.gmra.mxu2 %v541_v10  ;;  %v549_v9 = vld [vmem:[%s2759_s26 + $0x82] sm:$0xff]  ;;  %v550_v10 = vld [vmem:[%s2759_s26 + $0x92] sm:$0xff] }
  0x86   : > { %811 = vmatmul.f32.gmra.mxu3 %v2281_v20 }
  0x8a   : > { %1007 = vmatmul.f32.gmra.mxu0 %v3031_v45  ;;  %v2511_v45 = vld [vmem:[%s3959_s1 + $0x3c8] sm:$0xff] }
  0x8b   : > { %1577 = vmatpush.msra.mxu3 %v2511_v45  ;;  %v2293_v45 = vld [vmem:[%s2759_s26 + $0xc8] sm:$0xff] }
  0x8c   : > { %453 = vmatmul.f32.gmra.mxu1 %v2280_v13  ;;  %617 = vmatmul.f32.gmra.mxu2 %v542_v22 }
  0x8d   : > { %1578 = vmatpush.msra.mxu3 %v2510_v4 }
  0x8e   : > { %814 = vmatmul.f32.gmra.mxu3 %v2282_v23 }
  0x8f   : > { %1579 = vmatpush.msra.mxu3 %v2509_v21 }
  0x92   : > { %1010 = vmatmul.f32.gmra.mxu0 %v3059_v56  ;;  %v2559_v56 = vld [vmem:[%s3959_s1 + $0x448] sm:$0xff] }
  0x93   : > { %1773 = vmatpush.msra.mxu0 %v2559_v56 }
  0x94   : > { %456 = vmatmul.f32.gmra.mxu1 %v2281_v20  ;;  %620 = vmatmul.f32.gmra.mxu2 %v543_v27  ;;  %v2461_v20 = vld [vmem:[%s3959_s1 + $0x338] sm:$0xff]  ;;  %v2291_v27 = vld [vmem:[%s2759_s26 + $0xb0] sm:$0xff] }
  0x95   : > { %1774 = vmatpush.msra.mxu0 %v2558_v12  ;;  %v2411_v12 = vld [vmem:[%s3959_s1 + $0x2a8] sm:$0xff] }
  0x96   : > { %817 = vmatmul.f32.gmra.mxu3 %v2283_v28 }
  0x9a   : > { %1013 = vmatmul.f32.gmra.mxu0 %v3075_v0 }
  0x9c   : > { %459 = vmatmul.f32.gmra.mxu1 %v2282_v23  ;;  %623 = vmatmul.f32.gmra.mxu2 %v544_v32 }
  0x9e   : > { %820 = vmatmul.f32.gmra.mxu3 %v2284_v33 }
  0xa2   : > { %1016 = vmatmul.f32.gmra.mxu0 %v2765_v16  ;;  %v2463_v16 = vld [vmem:[%s3959_s1 + $0x348] sm:$0xff] }
  0xa3   : > { %1381 = vmatpush.msra.mxu2 %v2463_v16  ;;  %v553_v16 = vld [vmem:[%s2759_s26 + $0xb2] sm:$0xff] }
  0xa4   : > { %462 = vmatmul.f32.gmra.mxu1 %v2283_v28  ;;  %626 = vmatmul.f32.gmra.mxu2 %v545_v39  ;;  %v2557_v28 = vld [vmem:[%s3959_s1 + $0x438] sm:$0xff]  ;;  %v2508_v39 = vld [vmem:[%s3959_s1 + $0x3b0] sm:$0xff] }
  0xa5   : > { %1382 = vmatpush.msra.mxu2 %v2462_v3  ;;  %1775 = vmatpush.msra.mxu0 %v2557_v28  ;;  %v2459_v3 = vld [vmem:[%s3959_s1 + $0x328] sm:$0xff] }
  0xa6   : > { %823 = vmatmul.f32.gmra.mxu3 %v2285_v40 }
  0xa7   : > { %1383 = vmatpush.msra.mxu2 %v2461_v20  ;;  %1580 = vmatpush.msra.mxu3 %v2508_v39  ;;  %v555_v20 = vld [vmem:[%s2759_s26 + $0xca] sm:$0xff] }
  0xa9   : > { %v3151_v42 = vpop.f32.mrf.mxu1  ;;  %1384 = vmatpush.msra.mxu2 %v2460_v38 }
  0xaa   : > { %1019 = vmatmul.f32.gmra.mxu0 %v2805_v30  ;;  %v2415_v30 = vld [vmem:[%s3959_s1 + $0x2c8] sm:$0xff] }
  0xab   : > { %1184 = vmatpush.msra.mxu1 %v2415_v30  ;;  %v2556_v30 = vld [vmem:[%s3959_s1 + $0x430] sm:$0xff]  ;;  %1385 = vmatpush.msra.mxu2 %v2459_v3 }
  0xac   : > { %465 = vmatmul.f32.gmra.mxu1 %v2284_v33  ;;  %629 = vmatmul.f32.gmra.mxu2 %v546_v43 }
  0xad   : > { %1776 = vmatpush.msra.mxu0 %v2556_v30 }
  0xae   : > { %826 = vmatmul.f32.gmra.mxu3 %v2286_v44 }
  0xaf   : > { %v3162_v48 = vpop.f32.mrf.mxu2  ;;  %v3164_v51 = vpop.f32.mrf.mxu0 }
  0xb1   : > { %v3169_v52 = vpop.f32.mrf.mxu1  ;;  %v3171_v53 = vpop.f32.mrf.mxu3 }
  0xb2   : > { %1022 = vmatmul.f32.gmra.mxu0 %v2851_v46  ;;  %v2288_v46 = vld [vmem:[%s2759_s26 + $0x90] sm:$0xff] }
  0xb4   : > { %468 = vmatmul.f32.gmra.mxu1 %v2285_v40  ;;  %632 = vmatmul.f32.gmra.mxu2 %v547_v54 }
  0xb6   : > { %829 = vmatmul.f32.gmra.mxu3 %v2287_v55 }
  0xb7   : > { %v3179_v60 = vpop.f32.mrf.mxu2  ;;  %v3181_v61 = vpop.f32.mrf.mxu0 }
  0xb9   : > { %v3183_v0 = vpop.f32.mrf.mxu1  ;;  %v3185_v1 = vpop.f32.mrf.mxu3 }
  0xba   : > { %1025 = vmatmul.f32.gmra.mxu0 %v2899_v62  ;;  %v2414_v62 = vld [vmem:[%s3959_s1 + $0x2c0] sm:$0xff] }
  0xbb   : > { %1185 = vmatpush.msra.mxu1 %v2414_v62  ;;  %v2507_v62 = vld [vmem:[%s3959_s1 + $0x3a8] sm:$0xff] }
  0xbc   : > { %471 = vmatmul.f32.gmra.mxu1 %v2286_v44  ;;  %635 = vmatmul.f32.gmra.mxu2 %v548_v2 }
  0xbd   : > { %1581 = vmatpush.msra.mxu3 %v2507_v62 }
  0xbe   : > { %832 = vmatmul.f32.gmra.mxu3 %v2288_v46 }
  0xbf   : > { %v3196_v5 = vpop.f32.mrf.mxu2  ;;  %v3198_v6 = vpop.f32.mrf.mxu0 }
  0xc1   : > { %v3203_v7 = vpop.f32.mrf.mxu1  ;;  %v3205_v8 = vpop.f32.mrf.mxu3 }
  0xc2   : > { %1028 = vmatmul.f32.gmra.mxu0 %v2948_v14  ;;  %v2290_v14 = vld [vmem:[%s2759_s26 + $0xa8] sm:$0xff] }
  0xc4   : > { %474 = vmatmul.f32.gmra.mxu1 %v2287_v55  ;;  %638 = vmatmul.f32.gmra.mxu2 %v549_v9 }
  0xc6   : > { %835 = vmatmul.f32.gmra.mxu3 %v2289_v11 }
  0xc7   : > { %v3213_v13 = vpop.f32.mrf.mxu2  ;;  %v3215_v58 = vpop.f32.mrf.mxu0 }
  0xc9   : > { %v3217_v18 = vpop.f32.mrf.mxu1  ;;  %v3219_v19 = vpop.f32.mrf.mxu3 }
  0xca   : > { %1031 = vmatmul.f32.gmra.mxu0 %v2997_v34  ;;  %v2413_v34 = vld [vmem:[%s3959_s1 + $0x2b8] sm:$0xff] }
  0xcb   : > { %1186 = vmatpush.msra.mxu1 %v2413_v34 }
  0xcc   : > { %477 = vmatmul.f32.gmra.mxu1 %v2288_v46  ;;  %641 = vmatmul.f32.gmra.mxu2 %v550_v10  ;;  %v554_v46 = vld [vmem:[%s2759_s26 + $0xc2] sm:$0xff] }
  0xce   : > { %838 = vmatmul.f32.gmra.mxu3 %v2290_v14 }
  0xcf   : > { %v3230_v22 = vpop.f32.mrf.mxu2  ;;  %v3232_v23 = vpop.f32.mrf.mxu0 }
  0xd1   : > { %v3237_v24 = vpop.f32.mrf.mxu1  ;;  %v3239_v25 = vpop.f32.mrf.mxu3 }
  0xd2   : > { %1034 = vmatmul.f32.gmra.mxu0 %v3037_v49  ;;  %v2292_v49 = vld [vmem:[%s2759_s26 + $0xc0] sm:$0xff] }
  0xd4   : > { %480 = vmatmul.f32.gmra.mxu1 %v2289_v11  ;;  %644 = vmatmul.f32.gmra.mxu2 %v551_v26 }
  0xd6   : > { %841 = vmatmul.f32.gmra.mxu3 %v2291_v27 }
  0xd7   : > { %v3247_v29 = vpop.f32.mrf.mxu2  ;;  %v3249_v32 = vpop.f32.mrf.mxu0 }
  0xd9   : > { %v3251_v33 = vpop.f32.mrf.mxu1  ;;  %v3253_v36 = vpop.f32.mrf.mxu3 }
  0xda   : > { %1037 = vmatmul.f32.gmra.mxu0 %v3062_v57  ;;  %v2412_v57 = vld [vmem:[%s3959_s1 + $0x2b0] sm:$0xff] }
  0xdb   : > { %1187 = vmatpush.msra.mxu1 %v2412_v57 }
  0xdc   : > { %483 = vmatmul.f32.gmra.mxu1 %v2290_v14  ;;  %647 = vmatmul.f32.gmra.mxu2 %v552_v37 }
  0xdd   : > { %1188 = vmatpush.msra.mxu1 %v2411_v12 }
  0xde   : > { %844 = vmatmul.f32.gmra.mxu3 %v2292_v49 }
  0xdf   : > { %v3264_v40 = vpop.f32.mrf.mxu2  ;;  %v3266_v41 = vpop.f32.mrf.mxu0 }
  0xe1   : > { %v3271_v43 = vpop.f32.mrf.mxu1  ;;  %v3273_v44 = vpop.f32.mrf.mxu3 }
  0xe2   : > { %1040 = vmatmul.f32.gmra.mxu0 %v2768_v17  ;;  %v2294_v17 = vld [vmem:[%s2759_s26 + $0xd8] sm:$0xff] }
  0xe4   : > { %486 = vmatmul.f32.gmra.mxu1 %v2291_v27  ;;  %650 = vmatmul.f32.gmra.mxu2 %v553_v16  ;;  %v2555_v27 = vld [vmem:[%s3959_s1 + $0x428] sm:$0xff]  ;;  %v2296_v16 = vld [vmem:[%s2759_s26 + $0xf0] sm:$0xff] }
  0xe5   : > { %1777 = vmatpush.msra.mxu0 %v2555_v27 }
  0xe6   : > { %847 = vmatmul.f32.gmra.mxu3 %v2293_v45 }
  0xe7   : > { %v3281_v54 = vpop.f32.mrf.mxu2  ;;  %v3283_v55 = vpop.f32.mrf.mxu0 }
  0xe9   : > { %v3285_v56 = vpop.f32.mrf.mxu3  ;;  %v442_v2 = vpop.f32.mrf.mxu1 }
  0xea   : > { %1043 = vmatmul.f32.gmra.mxu0 %v2808_v31  ;;  %v443_v4 = vadd.f32 %v442_v2, %v3164_v51  ;;  %v2295_v51 = vld [vmem:[%s2759_s26 + $0xe0] sm:$0xff] }
  0xeb   : > { %v2506_v2 = vld [vmem:[%s3959_s1 + $0x3a0] sm:$0xff] }
  0xec   : > { %489 = vmatmul.f32.gmra.mxu1 %v2292_v49  ;;  %653 = vmatmul.f32.gmra.mxu2 %v554_v46 }
  0xed   : > { %1582 = vmatpush.msra.mxu3 %v2506_v2 }
  0xee   : > { %850 = vmatmul.f32.gmra.mxu3 %v2294_v17 }
  0xef   : > { %v606_v9 = vpop.f32.mrf.mxu2  ;;  %v999_v11 = vpop.f32.mrf.mxu0 }
  0xf0   : > { %v702_v31 = vadd.f32 %v606_v9, %v443_v4  ;;  %v557_v9 = vld [vmem:[%s2759_s26 + $0xe2] sm:$0xff] }
  0xf1   : > { %v445_v10 = vpop.f32.mrf.mxu1  ;;  %v803_v14 = vpop.f32.mrf.mxu3 }
  0xf2   : > { %v899_v21 = vadd.f32 %v803_v14, %v702_v31  ;;  %1046 = vmatmul.f32.gmra.mxu0 %v2854_v47  ;;  %v446_v26 = vadd.f32 %v445_v10, %v3181_v61  ;;  %v556_v47 = vld [vmem:[%s2759_s26 + $0xda] sm:$0xff] }
  0xf3   : > { %v2458_v61 = vld [vmem:[%s3959_s1 + $0x320] sm:$0xff] }
  0xf4   : > { %v3303_v34 = vadd.f32 %v999_v11, %v899_v21  ;;  %492 = vmatmul.f32.gmra.mxu1 %v2293_v45  ;;  %656 = vmatmul.f32.gmra.mxu2 %v555_v20  ;;  %v2554_v10 = vld [vmem:[%s3959_s1 + $0x420] sm:$0xff] }
  0xf5   : > { %1386 = vmatpush.msra.mxu2 %v2458_v61  ;;  %1778 = vmatpush.msra.mxu0 %v2554_v10 }
  0xf6   : > { %853 = vmatmul.f32.gmra.mxu3 %v2295_v51 }
  0xf7   : > { %v609_v28 = vpop.f32.mrf.mxu2  ;;  %v1002_v37 = vpop.f32.mrf.mxu0 }
  0xf8   : > { %v703_v49 = vadd.f32 %v609_v28, %v446_v26 }
  0xf9   : > { %v448_v38 = vpop.f32.mrf.mxu1  ;;  %v806_v39 = vpop.f32.mrf.mxu3 }
  0xfa   : > { %v900_v57 = vadd.f32 %v806_v39, %v703_v49  ;;  %1049 = vmatmul.f32.gmra.mxu0 %v2902_v63  ;;  %v449_v30 = vadd.f32 %v448_v38, %v3198_v6  ;;  %v2297_v6 = vld [vmem:[%s2759_s26 + $0xf8] sm:$0xff] }
  0xfb   : > { %v2505_v38 = vld [vmem:[%s3959_s1 + $0x398] sm:$0xff] }
  0xfc   : > { %v3312_v45 = vadd.f32 %v1002_v37, %v900_v57  ;;  %495 = vmatmul.f32.gmra.mxu1 %v2294_v17  ;;  %659 = vmatmul.f32.gmra.mxu2 %v556_v47  ;;  %v2410_v17 = vld [vmem:[%s3959_s1 + $0x2a0] sm:$0xff]  ;;  %v2298_v37 = vld [vmem:[%s2759_s26 + $0x108] sm:$0xff]  ;;  %v2409_v57 = vld [vmem:[%s3959_s1 + $0x298] sm:$0xff] }
  0xfd   : > { %1189 = vmatpush.msra.mxu1 %v2410_v17  ;;  %1583 = vmatpush.msra.mxu3 %v2505_v38 }
  0xfe   : > { %856 = vmatmul.f32.gmra.mxu3 %v2296_v16 }
  0xff   : > { %v612_v63 = vpop.f32.mrf.mxu2  ;;  %v1005_v46 = vpop.f32.mrf.mxu0  ;;  %1190 = vmatpush.msra.mxu1 %v2409_v57 }
 0x100   : > { %v704_v3 = vadd.f32 %v612_v63, %v449_v30  ;;  %v559_v30 = vld [vmem:[%s2759_s26 + $0xfa] sm:$0xff] }
 0x101   : > { %v451_v4 = vpop.f32.mrf.mxu1  ;;  %v809_v62 = vpop.f32.mrf.mxu3 }
 0x102   : > { %v901_v11 = vadd.f32 %v809_v62, %v704_v3  ;;  %1052 = vmatmul.f32.gmra.mxu0 %v2951_v15  ;;  %v452_v12 = vadd.f32 %v451_v4, %v3215_v58  ;;  %v558_v15 = vld [vmem:[%s2759_s26 + $0xf2] sm:$0xff] }
 0x103   : > { %v2457_v58 = vld [vmem:[%s3959_s1 + $0x318] sm:$0xff] }
 0x104   : > { %v3327_v31 = vadd.f32 %v1005_v46, %v901_v11  ;;  %498 = vmatmul.f32.gmra.mxu1 %v2295_v51  ;;  %662 = vmatmul.f32.gmra.mxu2 %v557_v9  ;;  %v2553_v3 = vld [vmem:[%s3959_s1 + $0x418] sm:$0xff]  ;;  %v560_v11 = vld [vmem:[%s2759_s26 + $0x10a] sm:$0xff] }
 0x105   : > { %1387 = vmatpush.msra.mxu2 %v2457_v58  ;;  %1779 = vmatpush.msra.mxu0 %v2553_v3  ;;  %v3376_v58 = vld [vmem:[%s2759_s26 + $0x112] sm:$0xff] }
 0x106   : > { %859 = vmatmul.f32.gmra.mxu3 %v2297_v6 }
 0x107   : > { %v615_v14 = vpop.f32.mrf.mxu2  ;;  %v1008_v20 = vpop.f32.mrf.mxu0 }
 0x108   : > { %v705_v21 = vadd.f32 %v615_v14, %v452_v12 }
 0x109   : > { %v454_v26 = vpop.f32.mrf.mxu1  ;;  %v812_v27 = vpop.f32.mrf.mxu3 }
 0x10a   : > { %v902_v28 = vadd.f32 %v812_v27, %v705_v21  ;;  %1055 = vmatmul.f32.gmra.mxu0 %v3000_v35  ;;  %v455_v49 = vadd.f32 %v454_v26, %v3232_v23  ;;  %v2299_v23 = vld [vmem:[%s2759_s26 + $0x110] sm:$0xff]  ;;  %v3370_v26 = vld [vmem:[%s2759_s26 + $0x121] sm:$0xff] }
 0x10c   : > { %v3336_v51 = vadd.f32 %v1008_v20, %v902_v28  ;;  %501 = vmatmul.f32.gmra.mxu1 %v2296_v16  ;;  %665 = vmatmul.f32.gmra.mxu2 %v558_v15  ;;  %v2504_v20 = vld [vmem:[%s3959_s1 + $0x390] sm:$0xff] }
 0x10d   : > { %1584 = vmatpush.msra.mxu3 %v2504_v20  ;;  %v2408_v15 = vld [vmem:[%s3959_s1 + $0x290] sm:$0xff] }
 0x10e   : > { %862 = vmatmul.f32.gmra.mxu3 %v2298_v37  ;;  %1191 = vmatpush.msra.mxu1 %v2408_v15  ;;  %v3412_v20 = vld [vmem:[%s2759_s26 + $0x12a] sm:$0xff] }
 0x10f   : > { %v618_v35 = vpop.f32.mrf.mxu2  ;;  %v1011_v39 = vpop.f32.mrf.mxu0  ;;  %v2551_v15 = vld [vmem:[%s3959_s1 + $0x408] sm:$0xff] }
 0x110   : > { %v706_v47 = vadd.f32 %v618_v35, %v455_v49  ;;  %v2301_v49 = vld [vmem:[%s2759_s26 + $0x128] sm:$0xff] }
 0x111   : > { %v457_v16 = vpop.f32.mrf.mxu1  ;;  %v815_v61 = vpop.f32.mrf.mxu3 }
 0x112   : > { %v903_v2 = vadd.f32 %v815_v61, %v706_v47  ;;  %1058 = vmatmul.f32.gmra.mxu0 %v3040_v50  ;;  %v458_v46 = vadd.f32 %v457_v16, %v3249_v32  ;;  %v2456_v32 = vld [vmem:[%s3959_s1 + $0x310] sm:$0xff] }
 0x113   : > { %1388 = vmatpush.msra.mxu2 %v2456_v32  ;;  %v3388_v16 = vld [vmem:[%s2759_s26 + $0x129] sm:$0xff] }
 0x114   : > { %v3351_v63 = vadd.f32 %v1011_v39, %v903_v2  ;;  %504 = vmatmul.f32.gmra.mxu1 %v2297_v6  ;;  %668 = vmatmul.f32.gmra.mxu2 %v559_v30  ;;  %v2300_v6 = vld [vmem:[%s2759_s26 + $0x120] sm:$0xff]  ;;  %v2552_v39 = vld [vmem:[%s3959_s1 + $0x410] sm:$0xff] }
 0x115   : > { %1780 = vmatpush.msra.mxu0 %v2552_v39 }
 0x116   : > { %865 = vmatmul.f32.gmra.mxu3 %v2299_v23 }
 0x117   : > { %v621_v17 = vpop.f32.mrf.mxu2  ;;  %v1014_v4 = vpop.f32.mrf.mxu0  ;;  %1781 = vmatpush.msra.mxu0 %v2551_v15 }
 0x118   : > { %v707_v62 = vadd.f32 %v621_v17, %v458_v46  ;;  %v3391_v46 = vld [vmem:[%s2759_s26 + $0x122] sm:$0xff] }
 0x119   : > { %v460_v9 = vpop.f32.mrf.mxu1  ;;  %v818_v50 = vpop.f32.mrf.mxu3  ;;  %v2455_v17 = vld [vmem:[%s3959_s1 + $0x308] sm:$0xff] }
 0x11a   : > { %v904_v12 = vadd.f32 %v818_v50, %v707_v62  ;;  %1061 = vmatmul.f32.gmra.mxu0 %v3065_v59  ;;  %v461_v14 = vadd.f32 %v460_v9, %v3266_v41  ;;  %1389 = vmatpush.msra.mxu2 %v2455_v17  ;;  %v2503_v62 = vld [vmem:[%s3959_s1 + $0x388] sm:$0xff] }
 0x11b   : > { %1585 = vmatpush.msra.mxu3 %v2503_v62  ;;  %v3442_v62 = vld [vmem:[%s2759_s26 + $0x151] sm:$0xff] }
 0x11c   : > { %v3360_v10 = vadd.f32 %v1014_v4, %v904_v12  ;;  %507 = vmatmul.f32.gmra.mxu1 %v2298_v37  ;;  %671 = vmatmul.f32.gmra.mxu2 %v560_v11  ;;  %v3406_v11 = vld [vmem:[%s2759_s26 + $0x139] sm:$0xff] }
 0x11e   : > { %868 = vmatmul.f32.gmra.mxu3 %v2300_v6 }
 0x11f   : > { %v624_v59 = vpop.f32.mrf.mxu2  ;;  %v1017_v21 = vpop.f32.mrf.mxu0 }
 0x120   : > { %v708_v27 = vadd.f32 %v624_v59, %v461_v14  ;;  %v2303_v59 = vld [vmem:[%s2759_s26 + $0x140] sm:$0xff] }
 0x121   : > { %v463_v28 = vpop.f32.mrf.mxu1  ;;  %v821_v37 = vpop.f32.mrf.mxu3 }
 0x122   : > { %v905_v41 = vadd.f32 %v821_v37, %v708_v27  ;;  %1064 = vmatmul.f32.gmra.mxu0 %v3370_v26  ;;  %v464_v35 = vadd.f32 %v463_v28, %v3283_v55  ;;  %v2302_v55 = vld [vmem:[%s2759_s26 + $0x138] sm:$0xff] }
 0x124   : > { %v3380_v38 = vadd.f32 %v1017_v21, %v905_v41  ;;  %510 = vmatmul.f32.gmra.mxu1 %v2299_v23  ;;  %674 = vmatmul.f32.gmra.mxu2 %v3376_v58  ;;  %v3424_v41 = vld [vmem:[%s2759_s26 + $0x141] sm:$0xff] }
 0x126   : > { %871 = vmatmul.f32.gmra.mxu3 %v2301_v49 }
 0x127   : > { %v627_v47 = vpop.f32.mrf.mxu2  ;;  %v1020_v57 = vpop.f32.mrf.mxu0 }
 0x128   : > { %v709_v61 = vadd.f32 %v627_v47, %v464_v35 }
 0x129   : > { %v466_v30 = vpop.f32.mrf.mxu1  ;;  %v824_v2 = vpop.f32.mrf.mxu3 }
 0x12a   : > { %v906_v23 = vadd.f32 %v824_v2, %v709_v61  ;;  %1067 = vmatmul.f32.gmra.mxu0 %v3388_v16  ;;  %v467_v4 = vadd.f32 %v466_v30, %v3151_v42  ;;  %v2454_v30 = vld [vmem:[%s3959_s1 + $0x300] sm:$0xff] }
 0x12b   : > { %1390 = vmatpush.msra.mxu2 %v2454_v30 }
 0x12c   : > { %v3395_v3 = vadd.f32 %v1020_v57, %v906_v23  ;;  %513 = vmatmul.f32.gmra.mxu1 %v2300_v6  ;;  %677 = vmatmul.f32.gmra.mxu2 %v3391_v46  ;;  %v2407_v6 = vld [vmem:[%s3959_s1 + $0x288] sm:$0xff]  ;;  %v3427_v57 = vld [vmem:[%s2759_s26 + $0x13a] sm:$0xff] }
 0x12d   : > { %1192 = vmatpush.msra.mxu1 %v2407_v6  ;;  %v2502_v23 = vld [vmem:[%s3959_s1 + $0x380] sm:$0xff] }
 0x12e   : > { %874 = vmatmul.f32.gmra.mxu3 %v2302_v55  ;;  %v3448_v6 = vld [vmem:[%s2759_s26 + $0x142] sm:$0xff] }
 0x12f   : > { %v630_v9 = vpop.f32.mrf.mxu2  ;;  %v1023_v50 = vpop.f32.mrf.mxu0  ;;  %1586 = vmatpush.msra.mxu3 %v2502_v23 }
 0x130   : > { %v710_v12 = vadd.f32 %v630_v9, %v467_v4  ;;  %v2406_v9 = vld [vmem:[%s3959_s1 + $0x280] sm:$0xff] }
 0x131   : > { %v469_v32 = vpop.f32.mrf.mxu1  ;;  %v827_v14 = vpop.f32.mrf.mxu3  ;;  %1193 = vmatpush.msra.mxu1 %v2406_v9 }
 0x132   : > { %v907_v42 = vadd.f32 %v827_v14, %v710_v12  ;;  %1070 = vmatmul.f32.gmra.mxu0 %v3406_v11  ;;  %v470_v27 = vadd.f32 %v469_v32, %v3169_v52  ;;  %v2304_v52 = vld [vmem:[%s2759_s26 + $0x150] sm:$0xff]  ;;  %v2305_v32 = vld [vmem:[%s2759_s26 + $0x158] sm:$0xff] }
 0x134   : > { %v3416_v21 = vadd.f32 %v1023_v50, %v907_v42  ;;  %516 = vmatmul.f32.gmra.mxu1 %v2301_v49  ;;  %680 = vmatmul.f32.gmra.mxu2 %v3412_v20 }
 0x136   : > { %877 = vmatmul.f32.gmra.mxu3 %v2303_v59 }
 0x137   : > { %v633_v28 = vpop.f32.mrf.mxu2  ;;  %v1026_v37 = vpop.f32.mrf.mxu0 }
 0x138   : > { %v711_v35 = vadd.f32 %v633_v28, %v470_v27  ;;  %v2550_v27 = vld [vmem:[%s3959_s1 + $0x400] sm:$0xff] }
 0x139   : > { %v472_v39 = vpop.f32.mrf.mxu1  ;;  %v830_v47 = vpop.f32.mrf.mxu3  ;;  %1782 = vmatpush.msra.mxu0 %v2550_v27 }
 0x13a   : > { %v908_v49 = vadd.f32 %v830_v47, %v711_v35  ;;  %1073 = vmatmul.f32.gmra.mxu0 %v3424_v41  ;;  %v473_v2 = vadd.f32 %v472_v39, %v3183_v0 }
 0x13c   : > { %v3431_v61 = vadd.f32 %v1026_v37, %v908_v49  ;;  %519 = vmatmul.f32.gmra.mxu1 %v2302_v55  ;;  %683 = vmatmul.f32.gmra.mxu2 %v3427_v57  ;;  %v3460_v37 = vld [vmem:[%s2759_s26 + $0x159] sm:$0xff] }
 0x13e   : > { %880 = vmatmul.f32.gmra.mxu3 %v2304_v52 }
 0x13f   : > { %v636_v17 = vpop.f32.mrf.mxu2  ;;  %v1029_v4 = vpop.f32.mrf.mxu0 }
 0x140   : > { %v712_v55 = vadd.f32 %v636_v17, %v473_v2 }
 0x141   : > { %v475_v50 = vpop.f32.mrf.mxu1  ;;  %v833_v12 = vpop.f32.mrf.mxu3 }
 0x142   : > { %v909_v0 = vadd.f32 %v833_v12, %v712_v55  ;;  %1076 = vmatmul.f32.gmra.mxu0 %v3442_v62  ;;  %v476_v42 = vadd.f32 %v475_v50, %v3203_v7  ;;  %v2306_v7 = vld [vmem:[%s2759_s26 + $0x168] sm:$0xff]  ;;  %v3475_v12 = vld [vmem:[%s2759_s26 + $0x15a] sm:$0xff] }
 0x144   : > { %v3452_v14 = vadd.f32 %v1029_v4, %v909_v0  ;;  %522 = vmatmul.f32.gmra.mxu1 %v2303_v59  ;;  %686 = vmatmul.f32.gmra.mxu2 %v3448_v6  ;;  %v3463_v59 = vld [vmem:[%s2759_s26 + $0x152] sm:$0xff]  ;;  %v3472_v4 = vld [vmem:[%s2759_s26 + $0x169] sm:$0xff] }
 0x146   : > { %883 = vmatmul.f32.gmra.mxu3 %v2305_v32 }
 0x147   : > { %v639_v15 = vpop.f32.mrf.mxu2  ;;  %v1032_v28 = vpop.f32.mrf.mxu0 }
 0x148   : > { %v713_v35 = vadd.f32 %v639_v15, %v476_v42 }
 0x149   : > { %v478_v39 = vpop.f32.mrf.mxu1  ;;  %v836_v47 = vpop.f32.mrf.mxu3 }
 0x14a   : > { %v910_v49 = vadd.f32 %v836_v47, %v713_v35  ;;  %1079 = vmatmul.f32.gmra.mxu0 %v3460_v37  ;;  %v479_v2 = vadd.f32 %v478_v39, %v3217_v18 }
 0x14c   : > { %v3467_v30 = vadd.f32 %v1032_v28, %v910_v49  ;;  %525 = vmatmul.f32.gmra.mxu1 %v2304_v52  ;;  %689 = vmatmul.f32.gmra.mxu2 %v3463_v59  ;;  %v3479_v52 = vld [vmem:[%s2759_s26 + $0x170] sm:$0xff] }
 0x14d   : > { %v3487_v28 = vld [vmem:[%s2759_s26 + $0x171] sm:$0xff] }
 0x14e   : > { %886 = vmatmul.f32.gmra.mxu3 %v2306_v7  ;;  %v3490_v49 = vld [vmem:[%s2759_s26 + $0x16a] sm:$0xff] }
 0x14f   : > { %v642_v23 = vpop.f32.mrf.mxu2  ;;  %v1035_v17 = vpop.f32.mrf.mxu0 }
 0x150   : > { %v714_v55 = vadd.f32 %v642_v23, %v479_v2 }
 0x151   : > { %v481_v9 = vpop.f32.mrf.mxu1  ;;  %v839_v50 = vpop.f32.mrf.mxu3 }
 0x152   : > { %v911_v0 = vadd.f32 %v839_v50, %v714_v55  ;;  %1082 = vmatmul.f32.gmra.mxu0 %v3472_v4  ;;  %v482_v18 = vadd.f32 %v481_v9, %v3237_v24  ;;  %v3502_v9 = vld [vmem:[%s2759_s26 + $0x181] sm:$0xff] }
 0x153   : > { %3968 = vst [vmem:[#allocation5_spill] sm:$0xff] %v3502_v9 }
 0x154   : > { %v3481_v42 = vadd.f32 %v1035_v17, %v911_v0  ;;  %528 = vmatmul.f32.gmra.mxu1 %v2305_v32  ;;  %692 = vmatmul.f32.gmra.mxu2 %v3475_v12  ;;  %v3494_v32 = vld [vmem:[%s2759_s26 + $0x180] sm:$0xff] }
 0x155   : > { %3966 = vst [vmem:[#allocation3_spill] sm:$0xff] %v3494_v32 }
 0x156   : > { %3965 = vst [vmem:[#allocation2_spill] sm:$0xff] %v3481_v42  ;;  %889 = vmatmul.f32.gmra.mxu3 %v3479_v52 }
 0x157   : > { %v645_v27 = vpop.f32.mrf.mxu2  ;;  %v1038_v15 = vpop.f32.mrf.mxu0 }
 0x158   : > { %v715_v35 = vadd.f32 %v645_v27, %v482_v18  ;;  %v3505_v27 = vld [vmem:[%s2759_s26 + $0x172] sm:$0xff] }
 0x159   : > { %v484_v39 = vpop.f32.mrf.mxu1  ;;  %v842_v47 = vpop.f32.mrf.mxu3 }
 0x15a   : > { %v912_v2 = vadd.f32 %v842_v47, %v715_v35  ;;  %1085 = vmatmul.f32.gmra.mxu0 %v3487_v28  ;;  %v485_v23 = vadd.f32 %v484_v39, %v3251_v33 }
 0x15c   : > { %v3496_v24 = vadd.f32 %v1038_v15, %v912_v2  ;;  %531 = vmatmul.f32.gmra.mxu1 %v2306_v7  ;;  %695 = vmatmul.f32.gmra.mxu2 %v3490_v49  ;;  %v3509_v7 = vld [vmem:[%s2759_s26 + $0x188] sm:$0xff] }
 0x15d   : > { %3969 = vst [vmem:[#allocation6_spill] sm:$0xff] %v3509_v7  ;;  %v3518_v2 = vld [vmem:[%s2759_s26 + $0x189] sm:$0xff] }
 0x15e   : > { %3967 = vst [vmem:[#allocation4_spill] sm:$0xff] %v3496_v24  ;;  %892 = vmatmul.f32.gmra.mxu3 %v3494_v32  ;;  %v2375_v32 = vld [vmem:[%s2759_s26 + $0x22] sm:$0xff] }
 0x15f   : > { %v648_v17 = vpop.f32.mrf.mxu2  ;;  %v1041_v55 = vpop.f32.mrf.mxu0 }
 0x160   : > { %v716_v50 = vadd.f32 %v648_v17, %v485_v23 }
 0x161   : > { %v487_v0 = vpop.f32.mrf.mxu1  ;;  %v845_v18 = vpop.f32.mrf.mxu3 }
 0x162   : > { %v913_v15 = vadd.f32 %v845_v18, %v716_v50  ;;  %1088 = vmatmul.f32.gmra.mxu0 %v3502_v9  ;;  %v488_v35 = vadd.f32 %v487_v0, %v3271_v43  ;;  %v2374_v18 = vld [vmem:[%s2759_s26 + $0x1a] sm:$0xff] }
 0x164   : > { %v3511_v33 = vadd.f32 %v1041_v55, %v913_v15  ;;  %534 = vmatmul.f32.gmra.mxu1 %v3479_v52  ;;  %698 = vmatmul.f32.gmra.mxu2 %v3505_v27  ;;  %v2422_v55 = vld [vmem:[%s2759_s26 + $0x30] sm:$0xff] }
 0x166   : > { %3970 = vst [vmem:[#allocation7_spill] sm:$0xff] %v3511_v33  ;;  %895 = vmatmul.f32.gmra.mxu3 %v3509_v7  ;;  %v2470_v33 = vld [vmem:[%s2759_s26 + $0x31] sm:$0xff] }
 0x167   : > { %v651_v39 = vpop.f32.mrf.mxu2  ;;  %v1044_v47 = vpop.f32.mrf.mxu0 }
 0x168   : > { %v717_v23 = vadd.f32 %v651_v39, %v488_v35  ;;  %v2518_v39 = vld [vmem:[%s2759_s26 + $0x32] sm:$0xff] }
 0x169   : > { %v490_v17 = vpop.f32.mrf.mxu1  ;;  %v848_v50 = vpop.f32.mrf.mxu3 }
 0x16a   : > { %v914_v15 = vadd.f32 %v848_v50, %v717_v23  ;;  %1091 = vmatmul.f32.gmra.mxu0 %v3518_v2  ;;  %v491_v0 = vadd.f32 %v490_v17, %v3162_v48  ;;  %v2423_v23 = vld [vmem:[%s2759_s26 + $0x38] sm:$0xff] }
 0x16c   : > { %v3524_v43 = vadd.f32 %v1044_v47, %v914_v15  ;;  %1194 = vmatmul.f32.vlgmr.msra.gmra.mxu1 %v2374_v18  ;;  %1391 = vmatmul.f32.vlgmr.msra.gmra.mxu2 %v2422_v55  ;;  %v2471_v47 = vld [vmem:[%s2759_s26 + $0x39] sm:$0xff] }
 0x16e   : > { %3971 = vst [vmem:[#allocation8_spill] sm:$0xff] %v3524_v43  ;;  %1587 = vmatmul.f32.vlgmr.msra.gmra.mxu3 %v2470_v33  ;;  %v2424_v43 = vld [vmem:[%s2759_s26 + $0x48] sm:$0xff] }
 0x16f   : > { %v654_v24 = vpop.f32.mrf.mxu2  ;;  %v1047_v35 = vpop.f32.mrf.mxu0 }
 0x170   : > { %v718_v7 = vadd.f32 %v654_v24, %v491_v0  ;;  %v2519_v24 = vld [vmem:[%s2759_s26 + $0x3a] sm:$0xff] }
 0x171   : > { %v493_v9 = vpop.f32.mrf.mxu1  ;;  %v851_v42 = vpop.f32.mrf.mxu3 }
 0x172   : > { %v915_v50 = vadd.f32 %v851_v42, %v718_v7  ;;  %1783 = vmatmul.f32.vlgmr.msra.gmra.mxu0 %v2518_v39  ;;  %v494_v48 = vadd.f32 %v493_v9, %v3179_v60  ;;  %v2472_v7 = vld [vmem:[%s2759_s26 + $0x49] sm:$0xff] }
 0x174   : > { %v3531_v15 = vadd.f32 %v1047_v35, %v915_v50  ;;  %1197 = vmatmul.f32.gmra.mxu1 %v2375_v32  ;;  %1394 = vmatmul.f32.gmra.mxu2 %v2423_v23  ;;  %v2520_v23 = vld [vmem:[%s2759_s26 + $0x4a] sm:$0xff] }
 0x176   : > { %1590 = vmatmul.f32.gmra.mxu3 %v2471_v47 }
 0x177   : > { %v657_v33 = vpop.f32.mrf.mxu2  ;;  %v1050_v17 = vpop.f32.mrf.mxu0 }
 0x178   : > { %v719_v18 = vadd.f32 %v657_v33, %v494_v48  ;;  %v2425_v33 = vld [vmem:[%s2759_s26 + $0x50] sm:$0xff] }
 0x179   : > { %v496_v55 = vpop.f32.mrf.mxu1  ;;  %v854_v0 = vpop.f32.mrf.mxu3 }
 0x17a   : > { %v916_v42 = vadd.f32 %v854_v0, %v719_v18  ;;  %1786 = vmatmul.f32.gmra.mxu0 %v2519_v24  ;;  %v497_v60 = vadd.f32 %v496_v55, %v3196_v5  ;;  %v2473_v0 = vld [vmem:[%s2759_s26 + $0x51] sm:$0xff] }
 0x17b   : > { %v2521_v55 = vld [vmem:[%s2759_s26 + $0x52] sm:$0xff] }
 0x17c   : > { %v3537_v35 = vadd.f32 %v1050_v17, %v916_v42  ;;  %1200 = vmatmul.f32.gmra.mxu1 %v2518_v39  ;;  %1397 = vmatmul.f32.gmra.mxu2 %v2424_v43 }
 0x17e   : > { %1593 = vmatmul.f32.gmra.mxu3 %v2472_v7 }
 0x17f   : > { %v660_v32 = vpop.f32.mrf.mxu2  ;;  %v1053_v9 = vpop.f32.mrf.mxu0 }
 0x180   : > { %v720_v50 = vadd.f32 %v660_v32, %v497_v60  ;;  %v2426_v32 = vld [vmem:[%s2759_s26 + $0x60] sm:$0xff] }
 0x181   : > { %v499_v47 = vpop.f32.mrf.mxu1  ;;  %v857_v48 = vpop.f32.mrf.mxu3 }
 0x182   : > { %v917_v18 = vadd.f32 %v857_v48, %v720_v50  ;;  %1789 = vmatmul.f32.gmra.mxu0 %v2520_v23  ;;  %v500_v5 = vadd.f32 %v499_v47, %v3213_v13  ;;  %v2474_v48 = vld [vmem:[%s2759_s26 + $0x61] sm:$0xff] }
 0x184   : > { %v3543_v17 = vadd.f32 %v1053_v9, %v917_v18  ;;  %1203 = vmatmul.f32.gmra.mxu1 %v2519_v24  ;;  %1400 = vmatmul.f32.gmra.mxu2 %v2425_v33  ;;  %v2522_v33 = vld [vmem:[%s2759_s26 + $0x62] sm:$0xff] }
 0x186   : > { %1596 = vmatmul.f32.gmra.mxu3 %v2473_v0 }
 0x187   : > { %v663_v43 = vpop.f32.mrf.mxu2  ;;  %v1056_v39 = vpop.f32.mrf.mxu0 }
 0x188   : > { %v721_v42 = vadd.f32 %v663_v43, %v500_v5  ;;  %v2427_v43 = vld [vmem:[%s2759_s26 + $0x68] sm:$0xff] }
 0x189   : > { %v502_v7 = vpop.f32.mrf.mxu1  ;;  %v860_v60 = vpop.f32.mrf.mxu3 }
 0x18a   : > { %v918_v50 = vadd.f32 %v860_v60, %v721_v42  ;;  %1792 = vmatmul.f32.gmra.mxu0 %v2521_v55  ;;  %v503_v13 = vadd.f32 %v502_v7, %v3230_v22  ;;  %v2475_v60 = vld [vmem:[%s2759_s26 + $0x69] sm:$0xff] }
 0x18c   : > { %v3549_v9 = vadd.f32 %v1056_v39, %v918_v50  ;;  %1206 = vmatmul.f32.gmra.mxu1 %v2520_v23  ;;  %1403 = vmatmul.f32.gmra.mxu2 %v2426_v32  ;;  %v2523_v32 = vld [vmem:[%s2759_s26 + $0x6a] sm:$0xff] }
 0x18e   : > { %1599 = vmatmul.f32.gmra.mxu3 %v2474_v48 }
 0x18f   : > { %v666_v24 = vpop.f32.mrf.mxu2  ;;  %v1059_v47 = vpop.f32.mrf.mxu0 }
 0x190   : > { %v722_v18 = vadd.f32 %v666_v24, %v503_v13  ;;  %v2428_v24 = vld [vmem:[%s2759_s26 + $0x78] sm:$0xff] }
 0x191   : > { %v505_v0 = vpop.f32.mrf.mxu1  ;;  %v863_v5 = vpop.f32.mrf.mxu3 }
 0x192   : > { %v919_v42 = vadd.f32 %v863_v5, %v722_v18  ;;  %1795 = vmatmul.f32.gmra.mxu0 %v2522_v33  ;;  %v506_v22 = vadd.f32 %v505_v0, %v3247_v29  ;;  %v2476_v5 = vld [vmem:[%s2759_s26 + $0x79] sm:$0xff] }
 0x194   : > { %v3555_v39 = vadd.f32 %v1059_v47, %v919_v42  ;;  %1209 = vmatmul.f32.gmra.mxu1 %v2521_v55  ;;  %1406 = vmatmul.f32.gmra.mxu2 %v2427_v43  ;;  %v2524_v43 = vld [vmem:[%s2759_s26 + $0x7a] sm:$0xff] }
 0x196   : > { %1602 = vmatmul.f32.gmra.mxu3 %v2475_v60 }
 0x197   : > { %v669_v23 = vpop.f32.mrf.mxu2  ;;  %v1062_v7 = vpop.f32.mrf.mxu0 }
 0x198   : > { %v723_v50 = vadd.f32 %v669_v23, %v506_v22  ;;  %v2429_v23 = vld [vmem:[%s2759_s26 + $0x80] sm:$0xff] }
 0x199   : > { %v508_v48 = vpop.f32.mrf.mxu1  ;;  %v866_v13 = vpop.f32.mrf.mxu3 }
 0x19a   : > { %v920_v18 = vadd.f32 %v866_v13, %v723_v50  ;;  %1798 = vmatmul.f32.gmra.mxu0 %v2523_v32  ;;  %v509_v29 = vadd.f32 %v508_v48, %v3264_v40  ;;  %v2477_v13 = vld [vmem:[%s2759_s26 + $0x81] sm:$0xff] }
 0x19c   : > { %v3561_v47 = vadd.f32 %v1062_v7, %v920_v18  ;;  %1212 = vmatmul.f32.gmra.mxu1 %v2522_v33  ;;  %1409 = vmatmul.f32.gmra.mxu2 %v2428_v24  ;;  %v2525_v24 = vld [vmem:[%s2759_s26 + $0x82] sm:$0xff] }
 0x19e   : > { %1605 = vmatmul.f32.gmra.mxu3 %v2476_v5 }
 0x19f   : > { %v672_v55 = vpop.f32.mrf.mxu2  ;;  %v1065_v0 = vpop.f32.mrf.mxu0 }
 0x1a0   : > { %v724_v42 = vadd.f32 %v672_v55, %v509_v29  ;;  %v2430_v55 = vld [vmem:[%s2759_s26 + $0x90] sm:$0xff] }
 0x1a1   : > { %v511_v60 = vpop.f32.mrf.mxu1  ;;  %v869_v22 = vpop.f32.mrf.mxu3 }
 0x1a2   : > { %v921_v50 = vadd.f32 %v869_v22, %v724_v42  ;;  %1801 = vmatmul.f32.gmra.mxu0 %v2524_v43  ;;  %v512_v40 = vadd.f32 %v511_v60, %v3281_v54  ;;  %v2478_v22 = vld [vmem:[%s2759_s26 + $0x91] sm:$0xff] }
 0x1a4   : > { %v3567_v7 = vadd.f32 %v1065_v0, %v921_v50  ;;  %1215 = vmatmul.f32.gmra.mxu1 %v2523_v32  ;;  %1412 = vmatmul.f32.gmra.mxu2 %v2429_v23  ;;  %v2526_v23 = vld [vmem:[%s2759_s26 + $0x92] sm:$0xff] }
 0x1a6   : > { %1608 = vmatmul.f32.gmra.mxu3 %v2477_v13 }
 0x1a7   : > { %v675_v33 = vpop.f32.mrf.mxu2  ;;  %v1068_v48 = vpop.f32.mrf.mxu0 }
 0x1a8   : > { %v725_v18 = vadd.f32 %v675_v33, %v512_v40  ;;  %v2431_v33 = vld [vmem:[%s2759_s26 + $0x98] sm:$0xff] }
 0x1a9   : > { %v514_v5 = vpop.f32.mrf.mxu1  ;;  %v872_v29 = vpop.f32.mrf.mxu3 }
 0x1aa   : > { %v922_v42 = vadd.f32 %v872_v29, %v725_v18  ;;  %1804 = vmatmul.f32.gmra.mxu0 %v2525_v24  ;;  %v515_v54 = vadd.f32 %v514_v5, %v3171_v53  ;;  %v2479_v29 = vld [vmem:[%s2759_s26 + $0x99] sm:$0xff] }
 0x1ac   : > { %v3573_v0 = vadd.f32 %v1068_v48, %v922_v42  ;;  %1218 = vmatmul.f32.gmra.mxu1 %v2524_v43  ;;  %1415 = vmatmul.f32.gmra.mxu2 %v2430_v55  ;;  %v2527_v55 = vld [vmem:[%s2759_s26 + $0x9a] sm:$0xff] }
 0x1ae   : > { %1611 = vmatmul.f32.gmra.mxu3 %v2478_v22 }
 0x1af   : > { %v678_v32 = vpop.f32.mrf.mxu2  ;;  %v1071_v60 = vpop.f32.mrf.mxu0 }
 0x1b0   : > { %v726_v50 = vadd.f32 %v678_v32, %v515_v54  ;;  %v2432_v32 = vld [vmem:[%s2759_s26 + $0xa8] sm:$0xff] }
 0x1b1   : > { %v517_v13 = vpop.f32.mrf.mxu1  ;;  %v875_v40 = vpop.f32.mrf.mxu3 }
 0x1b2   : > { %v923_v18 = vadd.f32 %v875_v40, %v726_v50  ;;  %1807 = vmatmul.f32.gmra.mxu0 %v2526_v23  ;;  %v518_v53 = vadd.f32 %v517_v13, %v3185_v1  ;;  %v2480_v40 = vld [vmem:[%s2759_s26 + $0xa9] sm:$0xff] }
 0x1b4   : > { %v3579_v48 = vadd.f32 %v1071_v60, %v923_v18  ;;  %1221 = vmatmul.f32.gmra.mxu1 %v2525_v24  ;;  %1418 = vmatmul.f32.gmra.mxu2 %v2431_v33  ;;  %v2528_v33 = vld [vmem:[%s2759_s26 + $0xaa] sm:$0xff] }
 0x1b6   : > { %1614 = vmatmul.f32.gmra.mxu3 %v2479_v29 }
 0x1b7   : > { %v681_v43 = vpop.f32.mrf.mxu2  ;;  %v1074_v5 = vpop.f32.mrf.mxu0 }
 0x1b8   : > { %v727_v42 = vadd.f32 %v681_v43, %v518_v53  ;;  %v2433_v43 = vld [vmem:[%s2759_s26 + $0xb0] sm:$0xff] }
 0x1b9   : > { %v520_v22 = vpop.f32.mrf.mxu1  ;;  %v878_v54 = vpop.f32.mrf.mxu3 }
 0x1ba   : > { %v924_v50 = vadd.f32 %v878_v54, %v727_v42  ;;  %1810 = vmatmul.f32.gmra.mxu0 %v2527_v55  ;;  %v521_v1 = vadd.f32 %v520_v22, %v3205_v8  ;;  %v2481_v54 = vld [vmem:[%s2759_s26 + $0xb1] sm:$0xff] }
 0x1bc   : > { %v3585_v60 = vadd.f32 %v1074_v5, %v924_v50  ;;  %1224 = vmatmul.f32.gmra.mxu1 %v2526_v23  ;;  %1421 = vmatmul.f32.gmra.mxu2 %v2432_v32  ;;  %v2529_v32 = vld [vmem:[%s2759_s26 + $0xb2] sm:$0xff] }
 0x1be   : > { %1617 = vmatmul.f32.gmra.mxu3 %v2480_v40 }
 0x1bf   : > { %v684_v24 = vpop.f32.mrf.mxu2  ;;  %v1077_v13 = vpop.f32.mrf.mxu0 }
 0x1c0   : > { %v728_v18 = vadd.f32 %v684_v24, %v521_v1  ;;  %v2434_v24 = vld [vmem:[%s2759_s26 + $0xc0] sm:$0xff] }
 0x1c1   : > { %v523_v29 = vpop.f32.mrf.mxu1  ;;  %v881_v53 = vpop.f32.mrf.mxu3 }
 0x1c2   : > { %v925_v42 = vadd.f32 %v881_v53, %v728_v18  ;;  %1813 = vmatmul.f32.gmra.mxu0 %v2528_v33  ;;  %v524_v8 = vadd.f32 %v523_v29, %v3219_v19  ;;  %v2482_v53 = vld [vmem:[%s2759_s26 + $0xc1] sm:$0xff] }
 0x1c4   : > { %v3591_v5 = vadd.f32 %v1077_v13, %v925_v42  ;;  %1227 = vmatmul.f32.gmra.mxu1 %v2527_v55  ;;  %1424 = vmatmul.f32.gmra.mxu2 %v2433_v43  ;;  %v2530_v43 = vld [vmem:[%s2759_s26 + $0xc2] sm:$0xff] }
 0x1c6   : > { %1620 = vmatmul.f32.gmra.mxu3 %v2481_v54 }
 0x1c7   : > { %v687_v23 = vpop.f32.mrf.mxu2  ;;  %v1080_v22 = vpop.f32.mrf.mxu0 }
 0x1c8   : > { %v729_v50 = vadd.f32 %v687_v23, %v524_v8  ;;  %v2435_v23 = vld [vmem:[%s2759_s26 + $0xc8] sm:$0xff] }
 0x1c9   : > { %v526_v40 = vpop.f32.mrf.mxu1  ;;  %v884_v1 = vpop.f32.mrf.mxu3 }
 0x1ca   : > { %v926_v18 = vadd.f32 %v884_v1, %v729_v50  ;;  %1816 = vmatmul.f32.gmra.mxu0 %v2529_v32  ;;  %v527_v19 = vadd.f32 %v526_v40, %v3239_v25  ;;  %v2483_v1 = vld [vmem:[%s2759_s26 + $0xc9] sm:$0xff] }
 0x1cc   : > { %v3597_v13 = vadd.f32 %v1080_v22, %v926_v18  ;;  %1230 = vmatmul.f32.gmra.mxu1 %v2528_v33  ;;  %1427 = vmatmul.f32.gmra.mxu2 %v2434_v24  ;;  %v2531_v24 = vld [vmem:[%s2759_s26 + $0xca] sm:$0xff] }
 0x1ce   : > { %1623 = vmatmul.f32.gmra.mxu3 %v2482_v53 }
 0x1cf   : > { %v690_v55 = vpop.f32.mrf.mxu2  ;;  %v1083_v29 = vpop.f32.mrf.mxu0 }
 0x1d0   : > { %v730_v42 = vadd.f32 %v690_v55, %v527_v19  ;;  %v2436_v55 = vld [vmem:[%s2759_s26 + $0xd8] sm:$0xff] }
 0x1d1   : > { %v529_v54 = vpop.f32.mrf.mxu1  ;;  %v887_v8 = vpop.f32.mrf.mxu3 }
 0x1d2   : > { %v927_v50 = vadd.f32 %v887_v8, %v730_v42  ;;  %1819 = vmatmul.f32.gmra.mxu0 %v2530_v43  ;;  %v530_v25 = vadd.f32 %v529_v54, %v3253_v36  ;;  %v2484_v8 = vld [vmem:[%s2759_s26 + $0xd9] sm:$0xff] }
 0x1d4   : > { %v3603_v22 = vadd.f32 %v1083_v29, %v927_v50  ;;  %1233 = vmatmul.f32.gmra.mxu1 %v2529_v32  ;;  %1430 = vmatmul.f32.gmra.mxu2 %v2435_v23  ;;  %v2532_v23 = vld [vmem:[%s2759_s26 + $0xda] sm:$0xff] }
 0x1d6   : > { %1626 = vmatmul.f32.gmra.mxu3 %v2483_v1 }
 0x1d7   : > { %v693_v33 = vpop.f32.mrf.mxu2  ;;  %v1086_v40 = vpop.f32.mrf.mxu0 }
 0x1d8   : > { %v731_v18 = vadd.f32 %v693_v33, %v530_v25  ;;  %v2437_v33 = vld [vmem:[%s2759_s26 + $0xe0] sm:$0xff] }
 0x1d9   : > { %v532_v53 = vpop.f32.mrf.mxu1  ;;  %v890_v19 = vpop.f32.mrf.mxu3 }
 0x1da   : > { %v928_v42 = vadd.f32 %v890_v19, %v731_v18  ;;  %1822 = vmatmul.f32.gmra.mxu0 %v2531_v24  ;;  %v533_v36 = vadd.f32 %v532_v53, %v3273_v44  ;;  %v2485_v19 = vld [vmem:[%s2759_s26 + $0xe1] sm:$0xff] }
 0x1dc   : > { %v3609_v29 = vadd.f32 %v1086_v40, %v928_v42  ;;  %1236 = vmatmul.f32.gmra.mxu1 %v2530_v43  ;;  %1433 = vmatmul.f32.gmra.mxu2 %v2436_v55  ;;  %v2533_v55 = vld [vmem:[%s2759_s26 + $0xe2] sm:$0xff] }
 0x1de   : > { %1629 = vmatmul.f32.gmra.mxu3 %v2484_v8 }
 0x1df   : > { %v696_v32 = vpop.f32.mrf.mxu2  ;;  %v1089_v54 = vpop.f32.mrf.mxu0 }
 0x1e0   : > { %v732_v50 = vadd.f32 %v696_v32, %v533_v36  ;;  %v2438_v32 = vld [vmem:[%s2759_s26 + $0xf0] sm:$0xff] }
 0x1e1   : > { %v535_v1 = vpop.f32.mrf.mxu1  ;;  %v893_v25 = vpop.f32.mrf.mxu3 }
 0x1e2   : > { %v929_v18 = vadd.f32 %v893_v25, %v732_v50  ;;  %1825 = vmatmul.f32.gmra.mxu0 %v2532_v23  ;;  %v536_v44 = vadd.f32 %v535_v1, %v3285_v56  ;;  %v2486_v25 = vld [vmem:[%s2759_s26 + $0xf1] sm:$0xff] }
 0x1e4   : > { %v3615_v40 = vadd.f32 %v1089_v54, %v929_v18  ;;  %1239 = vmatmul.f32.gmra.mxu1 %v2531_v24  ;;  %1436 = vmatmul.f32.gmra.mxu2 %v2437_v33  ;;  %v2534_v33 = vld [vmem:[%s2759_s26 + $0xf2] sm:$0xff] }
 0x1e6   : > { %1632 = vmatmul.f32.gmra.mxu3 %v2485_v19 }
 0x1e7   : > { %v699_v43 = vpop.f32.mrf.mxu2  ;;  %v1092_v53 = vpop.f32.mrf.mxu0 }
 0x1e8   : > { %v733_v42 = vadd.f32 %v699_v43, %v536_v44  ;;  %v2439_v43 = vld [vmem:[%s2759_s26 + $0xf8] sm:$0xff] }
 0x1e9   : > { %v896_v8 = vpop.f32.mrf.mxu3  ;;  %v1195_v36 = vpop.f32.mrf.mxu1 }
 0x1ea   : > { %v930_v50 = vadd.f32 %v896_v8, %v733_v42  ;;  %1828 = vmatmul.f32.gmra.mxu0 %v2533_v55  ;;  %v1291_v56 = vadd.f32 %v1195_v36, %v3303_v34  ;;  %v2487_v34 = vld [vmem:[%s2759_s26 + $0xf9] sm:$0xff] }
 0x1ec   : > { %v3621_v54 = vadd.f32 %v1092_v53, %v930_v50  ;;  %1242 = vmatmul.f32.gmra.mxu1 %v2532_v23  ;;  %1439 = vmatmul.f32.gmra.mxu2 %v2438_v32  ;;  %v2535_v32 = vld [vmem:[%s2759_s26 + $0xfa] sm:$0xff] }
 0x1ee   : > { %1635 = vmatmul.f32.gmra.mxu3 %v2486_v25 }
 0x1ef   : > { %v1392_v24 = vpop.f32.mrf.mxu2  ;;  %v1784_v1 = vpop.f32.mrf.mxu0 }
 0x1f0   : > { %v1488_v18 = vadd.f32 %v1392_v24, %v1291_v56  ;;  %v2440_v24 = vld [vmem:[%s2759_s26 + $0x108] sm:$0xff] }
 0x1f1   : > { %v1198_v19 = vpop.f32.mrf.mxu1  ;;  %v1588_v44 = vpop.f32.mrf.mxu3 }
 0x1f2   : > { %v1684_v42 = vadd.f32 %v1588_v44, %v1488_v18  ;;  %1831 = vmatmul.f32.gmra.mxu0 %v2534_v33  ;;  %v1292_v53 = vadd.f32 %v1198_v19, %v3312_v45 }
 0x1f4   : > { %v3633_v23 = vadd.f32 %v1784_v1, %v1684_v42  ;;  %1245 = vmatmul.f32.gmra.mxu1 %v2533_v55  ;;  %1442 = vmatmul.f32.gmra.mxu2 %v2439_v43  ;;  %v2488_v1 = vld [vmem:[%s2759_s26 + $0x109] sm:$0xff] }
 0x1f5   : > { %v2536_v43 = vld [vmem:[%s2759_s26 + $0x10a] sm:$0xff] }
 0x1f6   : > { %1912 = vst [vmem:[%s3630_s23] sm:$0xff] %v3633_v23  ;;  %1638 = vmatmul.f32.gmra.mxu3 %v2487_v34 }
 0x1f7   : > { %v1395_v8 = vpop.f32.mrf.mxu2  ;;  %v1787_v36 = vpop.f32.mrf.mxu0 }
 0x1f8   : > { %v1489_v50 = vadd.f32 %v1395_v8, %v1292_v53  ;;  %v2441_v8 = vld [vmem:[%s2759_s26 + $0x110] sm:$0xff] }
 0x1f9   : > { %v1201_v25 = vpop.f32.mrf.mxu1  ;;  %v1591_v56 = vpop.f32.mrf.mxu3 }
 0x1fa   : > { %v1685_v18 = vadd.f32 %v1591_v56, %v1489_v50  ;;  %1834 = vmatmul.f32.gmra.mxu0 %v2535_v32  ;;  %v1293_v45 = vadd.f32 %v1201_v25, %v3327_v31 }
 0x1fc   : > { %v3641_v55 = vadd.f32 %v1787_v36, %v1685_v18  ;;  %1248 = vmatmul.f32.gmra.mxu1 %v2534_v33  ;;  %1445 = vmatmul.f32.gmra.mxu2 %v2440_v24  ;;  %v2489_v36 = vld [vmem:[%s2759_s26 + $0x111] sm:$0xff] }
 0x1fe   : > { %1913 = vst [vmem:[%s3630_s23 + $0x8] sm:$0xff] %v3641_v55  ;;  %1641 = vmatmul.f32.gmra.mxu3 %v2488_v1 }
 0x1ff   : > { %v1398_v19 = vpop.f32.mrf.mxu2  ;;  %v1790_v44 = vpop.f32.mrf.mxu0 }
 0x200   : > { %v1490_v42 = vadd.f32 %v1398_v19, %v1293_v45  ;;  %v2442_v45 = vld [vmem:[%s2759_s26 + $0x120] sm:$0xff] }
 0x201   : > { %v1204_v34 = vpop.f32.mrf.mxu1  ;;  %v1594_v53 = vpop.f32.mrf.mxu3 }
 0x202   : > { %v1686_v50 = vadd.f32 %v1594_v53, %v1490_v42  ;;  %1837 = vmatmul.f32.gmra.mxu0 %v2536_v43  ;;  %v1294_v31 = vadd.f32 %v1204_v34, %v3336_v51 }
 0x204   : > { %v3649_v56 = vadd.f32 %v1790_v44, %v1686_v50  ;;  %1251 = vmatmul.f32.gmra.mxu1 %v2535_v32  ;;  %1448 = vmatmul.f32.gmra.mxu2 %v2441_v8  ;;  %v2395_v50 = vld [vmem:[%s2759_s26 + $0x112] sm:$0xff] }
 0x206   : > { %1914 = vst [vmem:[%s3630_s23 + $0x10] sm:$0xff] %v3649_v56  ;;  %1644 = vmatmul.f32.gmra.mxu3 %v2489_v36 }
 0x207   : > { %v1401_v33 = vpop.f32.mrf.mxu2  ;;  %v1793_v25 = vpop.f32.mrf.mxu0 }
 0x208   : > { %v1491_v24 = vadd.f32 %v1401_v33, %v1294_v31 }
 0x209   : > { %v1207_v18 = vpop.f32.mrf.mxu1  ;;  %v1597_v1 = vpop.f32.mrf.mxu3 }
 0x20a   : > { %v1687_v19 = vadd.f32 %v1597_v1, %v1491_v24  ;;  %1840 = vmatmul.f32.gmra.mxu0 %v3376_v58  ;;  %v1295_v51 = vadd.f32 %v1207_v18, %v3351_v63  ;;  %v2443_v58 = vld [vmem:[%s2759_s26 + $0x128] sm:$0xff] }
 0x20b   : > { %v2396_v18 = vld [vmem:[%s2759_s26 + $0x122] sm:$0xff] }
 0x20c   : > { %v3656_v44 = vadd.f32 %v1793_v25, %v1687_v19  ;;  %1254 = vmatmul.f32.gmra.mxu1 %v2536_v43  ;;  %1451 = vmatmul.f32.gmra.mxu2 %v2442_v45 }
 0x20e   : > { %1915 = vst [vmem:[%s3630_s23 + $0x18] sm:$0xff] %v3656_v44  ;;  %1647 = vmatmul.f32.gmra.mxu3 %v3370_v26 }
 0x20f   : > { %v1404_v32 = vpop.f32.mrf.mxu2  ;;  %v1796_v42 = vpop.f32.mrf.mxu0 }
 0x210   : > { %v1492_v34 = vadd.f32 %v1404_v32, %v1295_v51 }
 0x211   : > { %v1210_v53 = vpop.f32.mrf.mxu1  ;;  %v1600_v8 = vpop.f32.mrf.mxu3 }
 0x212   : > { %v1688_v36 = vadd.f32 %v1600_v8, %v1492_v34  ;;  %1843 = vmatmul.f32.gmra.mxu0 %v3391_v46  ;;  %v1296_v63 = vadd.f32 %v1210_v53, %v3360_v10  ;;  %v2444_v46 = vld [vmem:[%s2759_s26 + $0x138] sm:$0xff]  ;;  %v2397_v34 = vld [vmem:[%s2759_s26 + $0x12a] sm:$0xff] }
 0x214   : > { %v3665_v43 = vadd.f32 %v1796_v42, %v1688_v36  ;;  %1257 = vmatmul.f32.gmra.mxu1 %v2395_v50  ;;  %1454 = vmatmul.f32.gmra.mxu2 %v2443_v58 }
 0x216   : > { %1916 = vst [vmem:[%s3630_s23 + $0x20] sm:$0xff] %v3665_v43  ;;  %1650 = vmatmul.f32.gmra.mxu3 %v3388_v16 }
 0x217   : > { %v1407_v26 = vpop.f32.mrf.mxu2  ;;  %v1799_v31 = vpop.f32.mrf.mxu0 }
 0x218   : > { %v1493_v33 = vadd.f32 %v1407_v26, %v1296_v63  ;;  %v2398_v26 = vld [vmem:[%s2759_s26 + $0x13a] sm:$0xff] }
 0x219   : > { %v1213_v25 = vpop.f32.mrf.mxu1  ;;  %v1603_v24 = vpop.f32.mrf.mxu3 }
 0x21a   : > { %v1689_v1 = vadd.f32 %v1603_v24, %v1493_v33  ;;  %1846 = vmatmul.f32.gmra.mxu0 %v3412_v20  ;;  %v1297_v10 = vadd.f32 %v1213_v25, %v3380_v38  ;;  %v2445_v20 = vld [vmem:[%s2759_s26 + $0x140] sm:$0xff] }
 0x21c   : > { %v3674_v45 = vadd.f32 %v1799_v31, %v1689_v1  ;;  %1260 = vmatmul.f32.gmra.mxu1 %v2396_v18  ;;  %1457 = vmatmul.f32.gmra.mxu2 %v2444_v46  ;;  %v2399_v1 = vld [vmem:[%s2759_s26 + $0x142] sm:$0xff] }
 0x21e   : > { %1917 = vst [vmem:[%s3630_s23 + $0x28] sm:$0xff] %v3674_v45  ;;  %1653 = vmatmul.f32.gmra.mxu3 %v3406_v11 }
 0x21f   : > { %v1410_v16 = vpop.f32.mrf.mxu2  ;;  %v1802_v19 = vpop.f32.mrf.mxu0 }
 0x220   : > { %v1494_v51 = vadd.f32 %v1410_v16, %v1297_v10 }
 0x221   : > { %v1216_v32 = vpop.f32.mrf.mxu1  ;;  %v1606_v42 = vpop.f32.mrf.mxu3 }
 0x222   : > { %v1690_v53 = vadd.f32 %v1606_v42, %v1494_v51  ;;  %1849 = vmatmul.f32.gmra.mxu0 %v3427_v57  ;;  %v1298_v38 = vadd.f32 %v1216_v32, %v3395_v3  ;;  %v2446_v57 = vld [vmem:[%s2759_s26 + $0x150] sm:$0xff] }
 0x224   : > { %v3683_v8 = vadd.f32 %v1802_v19, %v1690_v53  ;;  %1263 = vmatmul.f32.gmra.mxu1 %v2397_v34  ;;  %1460 = vmatmul.f32.gmra.mxu2 %v2445_v20  ;;  %v2400_v34 = vld [vmem:[%s2759_s26 + $0x152] sm:$0xff]  ;;  %v2448_v20 = vld [vmem:[%s2759_s26 + $0x168] sm:$0xff] }
 0x226   : > { %1918 = vst [vmem:[%s3630_s23 + $0x30] sm:$0xff] %v3683_v8  ;;  %1656 = vmatmul.f32.gmra.mxu3 %v3424_v41 }
 0x227   : > { %v1413_v11 = vpop.f32.mrf.mxu2  ;;  %v1805_v50 = vpop.f32.mrf.mxu0 }
 0x228   : > { %v1495_v58 = vadd.f32 %v1413_v11, %v1298_v38 }
 0x229   : > { %v1219_v36 = vpop.f32.mrf.mxu1  ;;  %v1609_v63 = vpop.f32.mrf.mxu3 }
 0x22a   : > { %v1691_v31 = vadd.f32 %v1609_v63, %v1495_v58  ;;  %1852 = vmatmul.f32.gmra.mxu0 %v3448_v6  ;;  %v1299_v3 = vadd.f32 %v1219_v36, %v3416_v21  ;;  %v2447_v6 = vld [vmem:[%s2759_s26 + $0x158] sm:$0xff] }
 0x22c   : > { %v3692_v33 = vadd.f32 %v1805_v50, %v1691_v31  ;;  %1266 = vmatmul.f32.gmra.mxu1 %v2398_v26  ;;  %1463 = vmatmul.f32.gmra.mxu2 %v2446_v57 }
 0x22e   : > { %1919 = vst [vmem:[%s3630_s23 + $0x38] sm:$0xff] %v3692_v33  ;;  %1659 = vmatmul.f32.gmra.mxu3 %v3442_v62 }
 0x22f   : > { %v1416_v41 = vpop.f32.mrf.mxu2  ;;  %v1808_v25 = vpop.f32.mrf.mxu0 }
 0x230   : > { %v1496_v24 = vadd.f32 %v1416_v41, %v1299_v3 }
 0x231   : > { %v1222_v18 = vpop.f32.mrf.mxu1  ;;  %v1612_v46 = vpop.f32.mrf.mxu3 }
 0x232   : > { %v1692_v10 = vadd.f32 %v1612_v46, %v1496_v24  ;;  %1855 = vmatmul.f32.gmra.mxu0 %v3463_v59  ;;  %v1300_v21 = vadd.f32 %v1222_v18, %v3431_v61  ;;  %v2546_v46 = vld [vmem:[%s2759_s26 + $0x182] sm:$0xff] }
 0x234   : > { %v3701_v16 = vadd.f32 %v1808_v25, %v1692_v10  ;;  %1269 = vmatmul.f32.gmra.mxu1 %v2399_v1  ;;  %1466 = vmatmul.f32.gmra.mxu2 %v2447_v6 }
 0x236   : > { %1920 = vst [vmem:[%s3630_s23 + $0x40] sm:$0xff] %v3701_v16  ;;  %1662 = vmatmul.f32.gmra.mxu3 %v3460_v37 }
 0x237   : > { %v1419_v62 = vpop.f32.mrf.mxu2  ;;  %v1811_v19 = vpop.f32.mrf.mxu0 }
 0x238   : > { %v1497_v51 = vadd.f32 %v1419_v62, %v1300_v21  ;;  %v3975_v62 = vld [vmem:[#allocation6_spill] sm:$0xff] }
 0x239   : > { %v1225_v32 = vpop.f32.mrf.mxu1  ;;  %v1615_v42 = vpop.f32.mrf.mxu3 }
 0x23a   : > { %v1693_v53 = vadd.f32 %v1615_v42, %v1497_v51  ;;  %1858 = vmatmul.f32.gmra.mxu0 %v3475_v12  ;;  %v1301_v61 = vadd.f32 %v1225_v32, %v3452_v14 }
 0x23c   : > { %v3710_v59 = vadd.f32 %v1811_v19, %v1693_v53  ;;  %1272 = vmatmul.f32.gmra.mxu1 %v2400_v34  ;;  %1469 = vmatmul.f32.gmra.mxu2 %v2448_v20  ;;  %v3976_v19 = vld [vmem:[#allocation4_spill] sm:$0xff] }
 0x23d   : > { %v2547_v34 = vld [vmem:[%s2759_s26 + $0x18a] sm:$0xff] }
 0x23e   : > { %1921 = vst [vmem:[%s3630_s23 + $0x48] sm:$0xff] %v3710_v59  ;;  %1665 = vmatmul.f32.gmra.mxu3 %v3472_v4 }
 0x23f   : > { %v1422_v37 = vpop.f32.mrf.mxu2  ;;  %v1814_v38 = vpop.f32.mrf.mxu0 }
 0x240   : > { %v1498_v11 = vadd.f32 %v1422_v37, %v1301_v61  ;;  %v2452_v37 = vld [vmem:[%s2759_s26 + $0x198] sm:$0xff] }
 0x241   : > { %v1228_v50 = vpop.f32.mrf.mxu1  ;;  %v1618_v58 = vpop.f32.mrf.mxu3 }
 0x242   : > { %v1694_v36 = vadd.f32 %v1618_v58, %v1498_v11  ;;  %1861 = vmatmul.f32.gmra.mxu0 %v3490_v49  ;;  %v1302_v14 = vadd.f32 %v1228_v50, %v3467_v30  ;;  %v3973_v30 = vld [vmem:[#allocation2_spill] sm:$0xff]  ;;  %v3977_v50 = vld [vmem:[#allocation7_spill] sm:$0xff] }
 0x244   : > { %v3717_v63 = vadd.f32 %v1814_v38, %v1694_v36  ;;  %1275 = vmatmul.f32.gmra.mxu1 %v3475_v12  ;;  %1472 = vmatmul.f32.gmra.mxu2 %v3479_v52  ;;  %v3972_v12 = vld [vmem:[#allocation3_spill] sm:$0xff] }
 0x246   : > { %1922 = vst [vmem:[%s3630_s23 + $0x50] sm:$0xff] %v3717_v63  ;;  %1668 = vmatmul.f32.gmra.mxu3 %v3487_v28  ;;  %v3974_v28 = vld [vmem:[#allocation5_spill] sm:$0xff] }
 0x247   : > { %v1425_v4 = vpop.f32.mrf.mxu2  ;;  %v1817_v26 = vpop.f32.mrf.mxu0 }
 0x248   : > { %v1499_v57 = vadd.f32 %v1425_v4, %v1302_v14  ;;  %v2548_v14 = vld [vmem:[%s2759_s26 + $0x19a] sm:$0xff] }
 0x249   : > { %v1231_v31 = vpop.f32.mrf.mxu1  ;;  %v1621_v3 = vpop.f32.mrf.mxu3 }
 0x24a   : > { %v1695_v41 = vadd.f32 %v1621_v3, %v1499_v57  ;;  %1864 = vmatmul.f32.gmra.mxu0 %v3505_v27  ;;  %v1303_v52 = vadd.f32 %v1231_v31, %v3973_v30  ;;  %v2453_v31 = vld [vmem:[%s2759_s26 + $0x1a0] sm:$0xff]  ;;  %v3978_v30 = vld [vmem:[#allocation8_spill] sm:$0xff] }
 0x24c   : > { %v3726_v25 = vadd.f32 %v1817_v26, %v1695_v41  ;;  %1278 = vmatmul.f32.gmra.mxu1 %v3490_v49  ;;  %1475 = vmatmul.f32.gmra.mxu2 %v3972_v12  ;;  %v2501_v41 = vld [vmem:[%s2759_s26 + $0x1a1] sm:$0xff] }
 0x24e   : > { %1923 = vst [vmem:[%s3630_s23 + $0x58] sm:$0xff] %v3726_v25  ;;  %1671 = vmatmul.f32.gmra.mxu3 %v3974_v28 }
 0x24f   : > { %v1428_v24 = vpop.f32.mrf.mxu2  ;;  %v1820_v18 = vpop.f32.mrf.mxu0 }
 0x250   : > { %v1500_v1 = vadd.f32 %v1428_v24, %v1303_v52 }
 0x251   : > { %v1234_v6 = vpop.f32.mrf.mxu1  ;;  %v1624_v10 = vpop.f32.mrf.mxu3 }
 0x252   : > { %v1696_v21 = vadd.f32 %v1624_v10, %v1500_v1  ;;  %1867 = vmatmul.f32.gmra.mxu0 %v2546_v46  ;;  %v1304_v51 = vadd.f32 %v1234_v6, %v3976_v19 }
 0x254   : > { %v3735_v49 = vadd.f32 %v1820_v18, %v1696_v21  ;;  %1281 = vmatmul.f32.gmra.mxu1 %v3505_v27  ;;  %1478 = vmatmul.f32.gmra.mxu2 %v3975_v62  ;;  %v2500_v27 = vld [vmem:[%s2759_s26 + $0x199] sm:$0xff]  ;;  %v2549_v18 = vld [vmem:[%s2759_s26 + $0x1a2] sm:$0xff]  ;;  %s2245_s26 = sshll.u32 %s3984_s12, 1 }
 0x255   : > { %s3860_s27 = scalar_lea.vmem %s3961_s3, %s2245_s26 }
 0x256   : > { %1924 = vst [vmem:[%s3630_s23 + $0x60] sm:$0xff] %v3735_v49  ;;  %1674 = vmatmul.f32.gmra.mxu3 %v3518_v2 }
 0x257   : > { %v1431_v32 = vpop.f32.mrf.mxu2  ;;  %v1823_v42 = vpop.f32.mrf.mxu0 }
 0x258   : > { %v1501_v20 = vadd.f32 %v1431_v32, %v1304_v51 }
 0x259   : > { %v1237_v53 = vpop.f32.mrf.mxu1  ;;  %v1627_v61 = vpop.f32.mrf.mxu3 }
 0x25a   : > { %v1697_v38 = vadd.f32 %v1627_v61, %v1501_v20  ;;  %1870 = vmatmul.f32.gmra.mxu0 %v2547_v34  ;;  %v1305_v58 = vadd.f32 %v1237_v53, %v3977_v50 }
 0x25c   : > { %v3746_v11 = vadd.f32 %v1823_v42, %v1697_v38  ;;  %1284 = vmatmul.f32.gmra.mxu1 %v2546_v46  ;;  %1481 = vmatmul.f32.gmra.mxu2 %v2452_v37 }
 0x25e   : > { %1925 = vst [vmem:[%s3630_s23 + $0x68] sm:$0xff] %v3746_v11  ;;  %1677 = vmatmul.f32.gmra.mxu3 %v2500_v27 }
 0x25f   : > { %v1434_v2 = vpop.f32.mrf.mxu2  ;;  %v1826_v36 = vpop.f32.mrf.mxu0 }
 0x260   : > { %v1502_v4 = vadd.f32 %v1434_v2, %v1305_v58 }
 0x261   : > { %v1240_v26 = vpop.f32.mrf.mxu1  ;;  %v1630_v57 = vpop.f32.mrf.mxu3 }
 0x262   : > { %v1698_v3 = vadd.f32 %v1630_v57, %v1502_v4  ;;  %1873 = vmatmul.f32.gmra.mxu0 %v2548_v14  ;;  %v1306_v52 = vadd.f32 %v1240_v26, %v3978_v30 }
 0x264   : > { %v3754_v12 = vadd.f32 %v1826_v36, %v1698_v3  ;;  %1287 = vmatmul.f32.gmra.mxu1 %v2547_v34  ;;  %1484 = vmatmul.f32.gmra.mxu2 %v2453_v31 }
 0x266   : > { %1926 = vst [vmem:[%s3630_s23 + $0x70] sm:$0xff] %v3754_v12  ;;  %1680 = vmatmul.f32.gmra.mxu3 %v2501_v41 }
 0x267   : > { %v1437_v28 = vpop.f32.mrf.mxu2  ;;  %v1829_v24 = vpop.f32.mrf.mxu0 }
 0x268   : > { %v1503_v46 = vadd.f32 %v1437_v28, %v1306_v52 }
 0x269   : > { %v1243_v1 = vpop.f32.mrf.mxu1  ;;  %v1633_v6 = vpop.f32.mrf.mxu3 }
 0x26a   : > { %v1699_v10 = vadd.f32 %v1633_v6, %v1503_v46  ;;  %1876 = vmatmul.f32.gmra.mxu0 %v2549_v18  ;;  %v1307_v62 = vadd.f32 %v1243_v1, %v3531_v15 }
 0x26c   : > { %v3760_v21 = vadd.f32 %v1829_v24, %v1699_v10 }
 0x26e   : > { %1927 = vst [vmem:[%s3630_s23 + $0x78] sm:$0xff] %v3760_v21 }
 0x26f   : > { %v1440_v19 = vpop.f32.mrf.mxu2  ;;  %v1832_v51 = vpop.f32.mrf.mxu0 }
 0x270   : > { %v1504_v32 = vadd.f32 %v1440_v19, %v1307_v62 }
 0x271   : > { %v1246_v42 = vpop.f32.mrf.mxu1  ;;  %v1636_v34 = vpop.f32.mrf.mxu3 }
 0x272   : > { %v1700_v20 = vadd.f32 %v1636_v34, %v1504_v32  ;;  %v1308_v61 = vadd.f32 %v1246_v42, %v3537_v35 }
 0x274   : > { %v3765_v53 = vadd.f32 %v1832_v51, %v1700_v20 }
 0x276   : > { %1928 = vst [vmem:[%s3630_s23 + $0x80] sm:$0xff] %v3765_v53 }
 0x277   : > { %v1443_v37 = vpop.f32.mrf.mxu2  ;;  %v1835_v38 = vpop.f32.mrf.mxu0 }
 0x278   : > { %v1505_v27 = vadd.f32 %v1443_v37, %v1308_v61 }
 0x279   : > { %v1249_v15 = vpop.f32.mrf.mxu1  ;;  %v1639_v50 = vpop.f32.mrf.mxu3 }
 0x27a   : > { %v1701_v58 = vadd.f32 %v1639_v50, %v1505_v27  ;;  %v1309_v36 = vadd.f32 %v1249_v15, %v3543_v17 }
 0x27c   : > { %v3770_v2 = vadd.f32 %v1835_v38, %v1701_v58  ;;  %v1944_v38 = vadd.f32 %v3641_v55, %v3633_v23 }
 0x27e   : > { %1929 = vst [vmem:[%s3630_s23 + $0x88] sm:$0xff] %v3770_v2  ;;  %v1945_v15 = vadd.f32 %v1944_v38, %v3649_v56 }
 0x27f   : > { %v1446_v14 = vpop.f32.mrf.mxu2  ;;  %v1838_v4 = vpop.f32.mrf.mxu0 }
 0x280   : > { %v1506_v26 = vadd.f32 %v1446_v14, %v1309_v36  ;;  %v1946_v58 = vadd.f32 %v1945_v15, %v3656_v44 }
 0x281   : > { %v1252_v35 = vpop.f32.mrf.mxu1  ;;  %v1642_v57 = vpop.f32.mrf.mxu3 }
 0x282   : > { %v1702_v31 = vadd.f32 %v1642_v57, %v1506_v26  ;;  %v1310_v41 = vadd.f32 %v1252_v35, %v3549_v9 }
 0x284   : > { %v3775_v3 = vadd.f32 %v1838_v4, %v1702_v31  ;;  %v1947_v4 = vadd.f32 %v1946_v58, %v3665_v43 }
 0x286   : > { %1930 = vst [vmem:[%s3630_s23 + $0x90] sm:$0xff] %v3775_v3  ;;  %v1948_v31 = vadd.f32 %v1947_v4, %v3674_v45 }
 0x287   : > { %v1449_v30 = vpop.f32.mrf.mxu2  ;;  %v1841_v52 = vpop.f32.mrf.mxu0 }
 0x288   : > { %v1507_v28 = vadd.f32 %v1449_v30, %v1310_v41  ;;  %v1949_v30 = vadd.f32 %v1948_v31, %v3683_v8 }
 0x289   : > { %v1255_v17 = vpop.f32.mrf.mxu1  ;;  %v1645_v24 = vpop.f32.mrf.mxu3 }
 0x28a   : > { %v1703_v18 = vadd.f32 %v1645_v24, %v1507_v28  ;;  %v1311_v1 = vadd.f32 %v1255_v17, %v3555_v39  ;;  %v1950_v28 = vadd.f32 %v1949_v30, %v3692_v33 }
 0x28c   : > { %v3780_v46 = vadd.f32 %v1841_v52, %v1703_v18  ;;  %v1951_v18 = vadd.f32 %v1950_v28, %v3701_v16 }
 0x28e   : > { %1931 = vst [vmem:[%s3630_s23 + $0x98] sm:$0xff] %v3780_v46 }
 0x28f   : > { %v1452_v6 = vpop.f32.mrf.mxu2  ;;  %v1844_v10 = vpop.f32.mrf.mxu0 }
 0x290   : > { %v1508_v62 = vadd.f32 %v1452_v6, %v1311_v1 }
 0x291   : > { %v1258_v19 = vpop.f32.mrf.mxu1  ;;  %v1648_v9 = vpop.f32.mrf.mxu3 }
 0x292   : > { %v1704_v51 = vadd.f32 %v1648_v9, %v1508_v62  ;;  %v1312_v42 = vadd.f32 %v1258_v19, %v3561_v47  ;;  %v1952_v62 = vadd.f32 %v1951_v18, %v3710_v59 }
 0x294   : > { %v3785_v32 = vadd.f32 %v1844_v10, %v1704_v51  ;;  %v1953_v9 = vadd.f32 %v1952_v62, %v3717_v63 }
 0x296   : > { %1932 = vst [vmem:[%s3630_s23 + $0xa0] sm:$0xff] %v3785_v32 }
 0x297   : > { %v1455_v34 = vpop.f32.mrf.mxu2  ;;  %v1847_v20 = vpop.f32.mrf.mxu0 }
 0x298   : > { %v1509_v61 = vadd.f32 %v1455_v34, %v1312_v42  ;;  %v1954_v42 = vadd.f32 %v1953_v9, %v3726_v25 }
 0x299   : > { %v1261_v37 = vpop.f32.mrf.mxu1  ;;  %v1651_v39 = vpop.f32.mrf.mxu3 }
 0x29a   : > { %v1705_v27 = vadd.f32 %v1651_v39, %v1509_v61  ;;  %v1313_v47 = vadd.f32 %v1261_v37, %v3567_v7  ;;  %v1955_v61 = vadd.f32 %v1954_v42, %v3735_v49 }
 0x29c   : > { %v3793_v50 = vadd.f32 %v1847_v20, %v1705_v27  ;;  %v1956_v27 = vadd.f32 %v1955_v61, %v3746_v11 }
 0x29e   : > { %1933 = vst [vmem:[%s3630_s23 + $0xa8] sm:$0xff] %v3793_v50  ;;  %v1957_v58 = vadd.f32 %v1956_v27, %v3754_v12 }
 0x29f   : > { %v1458_v36 = vpop.f32.mrf.mxu2  ;;  %v1850_v14 = vpop.f32.mrf.mxu0 }
 0x2a0   : > { %v1510_v26 = vadd.f32 %v1458_v36, %v1313_v47  ;;  %v1958_v36 = vadd.f32 %v1957_v58, %v3760_v21 }
 0x2a1   : > { %v1264_v35 = vpop.f32.mrf.mxu1  ;;  %v1654_v57 = vpop.f32.mrf.mxu3 }
 0x2a2   : > { %v1706_v41 = vadd.f32 %v1654_v57, %v1510_v26  ;;  %v1314_v7 = vadd.f32 %v1264_v35, %v3573_v0  ;;  %v1959_v26 = vadd.f32 %v1958_v36, %v3765_v53 }
 0x2a4   : > { %v3802_v52 = vadd.f32 %v1850_v14, %v1706_v41  ;;  %v1960_v41 = vadd.f32 %v1959_v26, %v3770_v2 }
 0x2a6   : > { %1934 = vst [vmem:[%s3630_s23 + $0xb0] sm:$0xff] %v3802_v52  ;;  %v1961_v28 = vadd.f32 %v1960_v41, %v3775_v3 }
 0x2a7   : > { %v1461_v17 = vpop.f32.mrf.mxu2  ;;  %v1853_v24 = vpop.f32.mrf.mxu0 }
 0x2a8   : > { %v1511_v1 = vadd.f32 %v1461_v17, %v1314_v7  ;;  %v1962_v17 = vadd.f32 %v1961_v28, %v3780_v46 }
 0x2a9   : > { %v1267_v6 = vpop.f32.mrf.mxu1  ;;  %v1657_v10 = vpop.f32.mrf.mxu3 }
 0x2aa   : > { %v1707_v19 = vadd.f32 %v1657_v10, %v1511_v1  ;;  %v1315_v0 = vadd.f32 %v1267_v6, %v3579_v48  ;;  %v1963_v1 = vadd.f32 %v1962_v17, %v3785_v32 }
 0x2ac   : > { %v3811_v51 = vadd.f32 %v1853_v24, %v1707_v19  ;;  %v1964_v19 = vadd.f32 %v1963_v1, %v3793_v50 }
 0x2ae   : > { %1935 = vst [vmem:[%s3630_s23 + $0xb8] sm:$0xff] %v3811_v51  ;;  %v1965_v42 = vadd.f32 %v1964_v19, %v3802_v52 }
 0x2af   : > { %v1464_v34 = vpop.f32.mrf.mxu2  ;;  %v1856_v20 = vpop.f32.mrf.mxu0 }
 0x2b0   : > { %v1512_v37 = vadd.f32 %v1464_v34, %v1315_v0  ;;  %v1966_v34 = vadd.f32 %v1965_v42, %v3811_v51 }
 0x2b1   : > { %v1270_v39 = vpop.f32.mrf.mxu1  ;;  %v1660_v38 = vpop.f32.mrf.mxu3 }
 0x2b2   : > { %v1708_v15 = vadd.f32 %v1660_v38, %v1512_v37  ;;  %v1316_v48 = vadd.f32 %v1270_v39, %v3585_v60 }
 0x2b4   : > { %v3820_v47 = vadd.f32 %v1856_v20, %v1708_v15 }
 0x2b6   : > { %1936 = vst [vmem:[%s3630_s23 + $0xc0] sm:$0xff] %v3820_v47  ;;  %v1967_v37 = vadd.f32 %v1966_v34, %v3820_v47 }
 0x2b7   : > { %v1467_v14 = vpop.f32.mrf.mxu2  ;;  %v1859_v4 = vpop.f32.mrf.mxu0 }
 0x2b8   : > { %v1513_v35 = vadd.f32 %v1467_v14, %v1316_v48 }
 0x2b9   : > { %v1273_v57 = vpop.f32.mrf.mxu1  ;;  %v1663_v31 = vpop.f32.mrf.mxu3 }
 0x2ba   : > { %v1709_v30 = vadd.f32 %v1663_v31, %v1513_v35  ;;  %v1317_v60 = vadd.f32 %v1273_v57, %v3591_v5 }
 0x2bc   : > { %v3829_v7 = vadd.f32 %v1859_v4, %v1709_v30 }
 0x2be   : > { %1937 = vst [vmem:[%s3630_s23 + $0xc8] sm:$0xff] %v3829_v7  ;;  %v1968_v15 = vadd.f32 %v1967_v37, %v3829_v7 }
 0x2bf   : > { %v1470_v24 = vpop.f32.mrf.mxu2  ;;  %v1862_v18 = vpop.f32.mrf.mxu0 }
 0x2c0   : > { %v1514_v6 = vadd.f32 %v1470_v24, %v1317_v60 }
 0x2c1   : > { %v1276_v10 = vpop.f32.mrf.mxu1  ;;  %v1666_v62 = vpop.f32.mrf.mxu3 }
 0x2c2   : > { %v1710_v9 = vadd.f32 %v1666_v62, %v1514_v6  ;;  %v1318_v5 = vadd.f32 %v1276_v10, %v3597_v13 }
 0x2c4   : > { %v3838_v0 = vadd.f32 %v1862_v18, %v1710_v9 }
 0x2c6   : > { %1938 = vst [vmem:[%s3630_s23 + $0xd0] sm:$0xff] %v3838_v0  ;;  %v1969_v36 = vadd.f32 %v1968_v15, %v3838_v0 }
 0x2c7   : > { %v1473_v20 = vpop.f32.mrf.mxu2  ;;  %v1865_v61 = vpop.f32.mrf.mxu0 }
 0x2c8   : > { %v1515_v39 = vadd.f32 %v1473_v20, %v1318_v5 }
 0x2c9   : > { %v1279_v38 = vpop.f32.mrf.mxu1  ;;  %v1669_v27 = vpop.f32.mrf.mxu3 }
 0x2ca   : > { %v1711_v58 = vadd.f32 %v1669_v27, %v1515_v39  ;;  %v1319_v14 = vadd.f32 %v1279_v38, %v3603_v22 }
 0x2cc   : > { %v1907_v48 = vadd.f32 %v1865_v61, %v1711_v58 }
 0x2ce   : > { %1939 = vst [vmem:[%s3630_s23 + $0xd8] sm:$0xff] %v1907_v48  ;;  %v1970_v13 = vadd.f32 %v1969_v36, %v1907_v48 }
 0x2cf   : > { %v1476_v4 = vpop.f32.mrf.mxu2  ;;  %v1868_v26 = vpop.f32.mrf.mxu0 }
 0x2d0   : > { %v1516_v35 = vadd.f32 %v1476_v4, %v1319_v14 }
 0x2d1   : > { %v1282_v57 = vpop.f32.mrf.mxu1  ;;  %v1672_v31 = vpop.f32.mrf.mxu3 }
 0x2d2   : > { %v1712_v41 = vadd.f32 %v1672_v31, %v1516_v35  ;;  %v1320_v28 = vadd.f32 %v1282_v57, %v3609_v29 }
 0x2d4   : > { %v1908_v30 = vadd.f32 %v1868_v26, %v1712_v41 }
 0x2d6   : > { %1940 = vst [vmem:[%s3630_s23 + $0xe0] sm:$0xff] %v1908_v30  ;;  %v1971_v17 = vadd.f32 %v1970_v13, %v1908_v30 }
 0x2d7   : > { %v1479_v60 = vpop.f32.mrf.mxu2  ;;  %v1871_v24 = vpop.f32.mrf.mxu0 }
 0x2d8   : > { %v1517_v18 = vadd.f32 %v1479_v60, %v1320_v28 }
 0x2d9   : > { %v1285_v1 = vpop.f32.mrf.mxu1  ;;  %v1675_v22 = vpop.f32.mrf.mxu3 }
 0x2da   : > { %v1713_v6 = vadd.f32 %v1675_v22, %v1517_v18  ;;  %v1321_v62 = vadd.f32 %v1285_v1, %v3615_v40 }
 0x2dc   : > { %v1909_v10 = vadd.f32 %v1871_v24, %v1713_v6 }
 0x2de   : > { %1941 = vst [vmem:[%s3630_s23 + $0xe8] sm:$0xff] %v1909_v10  ;;  %v1972_v19 = vadd.f32 %v1971_v17, %v1909_v10 }
 0x2df   : > { %v1482_v9 = vpop.f32.mrf.mxu2  ;;  %v1874_v42 = vpop.f32.mrf.mxu0 }
 0x2e0   : > { %v1518_v34 = vadd.f32 %v1482_v9, %v1321_v62 }
 0x2e1   : > { %v1678_v5 = vpop.f32.mrf.mxu3  ;;  %v1288_v20 = vpop.f32.mrf.mxu1 }
 0x2e2   : > { %v1714_v29 = vadd.f32 %v1678_v5, %v1518_v34  ;;  %v1322_v37 = vadd.f32 %v1288_v20, %v3621_v54 }
 0x2e4   : > { %v1910_v61 = vadd.f32 %v1874_v42, %v1714_v29 }
 0x2e6   : > { %1942 = vst [vmem:[%s3630_s23 + $0xf0] sm:$0xff] %v1910_v61  ;;  %v1973_v39 = vadd.f32 %v1972_v19, %v1910_v61 }
 0x2e7   : > { %v1485_v38 = vpop.f32.mrf.mxu2  ;;  %v1877_v58 = vpop.f32.mrf.mxu0 }
 0x2e8   : > { %v1519_v27 = vadd.f32 %v1485_v38, %v1322_v37 }
 0x2e9   : > { %v1681_v15 = vpop.f32.mrf.mxu3 }
 0x2ea   : > { %v1715_v40 = vadd.f32 %v1681_v15, %v1519_v27 }
 0x2ec   : > { %v1911_v36 = vadd.f32 %v1877_v58, %v1715_v40 }
 0x2ee   : > { %1943 = vst [vmem:[%s3630_s23 + $0xf8] sm:$0xff] %v1911_v36  ;;  %v1974_v14 = vadd.f32 %v1973_v39, %v1911_v36 }
 0x2f0   : > { %v1975_v13 = vrot.slane %v1974_v14, 4 }
 0x2f2   : > { %v1976_v4 = vadd.f32 %v1975_v13, %v1974_v14 }
 0x2f4   : > { %v1977_v26 = vrot.slane %v1976_v4, 2 }
 0x2f6   : > { %v1978_v35 = vadd.f32 %v1977_v26, %v1976_v4 }
 0x2f8   : > { %v1979_v57 = vrot.slane %v1978_v35, 1 }
 0x2fa   : > { %v1980_v54 = vadd.f32 %v1979_v57, %v1978_v35 }
 0x2fc   : > { %2014 = vst [vmem:[%s3860_s27] sm:$0x1] %v1980_v54  ;;  %v3863_v31 = vmul.f32 0.00390625, %v1980_v54 }
 0x2fe   : > { %v3867_v41 = vsub.f32 %v3838_v0, %v3863_v31  ;;  %v3870_v28 = vsub.f32 %v1907_v48, %v3863_v31  ;;  %v3873_v17 = vsub.f32 %v1908_v30, %v3863_v31  ;;  %v3876_v60 = vsub.f32 %v1909_v10, %v3863_v31 }
 0x2ff   : > { %v3879_v24 = vsub.f32 %v1910_v61, %v3863_v31  ;;  %v3882_v18 = vsub.f32 %v1911_v36, %v3863_v31  ;;  %v1982_v1 = vsub.f32 %v3633_v23, %v3863_v31  ;;  %v1983_v0 = vsub.f32 %v3641_v55, %v3863_v31 }
 0x300   : > { %v1984_v48 = vsub.f32 %v3649_v56, %v3863_v31  ;;  %v1985_v6 = vsub.f32 %v3656_v44, %v3863_v31  ;;  %v1986_v10 = vsub.f32 %v3665_v43, %v3863_v31  ;;  %v1987_v9 = vsub.f32 %v3674_v45, %v3863_v31 }
 0x301   : > { %v2015_v30 = vmul.f32 %v1982_v1, %v1982_v1  ;;  %v2016_v22 = vmul.f32 %v1983_v0, %v1983_v0  ;;  %v1988_v55 = vsub.f32 %v3683_v8, %v3863_v31  ;;  %v1989_v5 = vsub.f32 %v3692_v33, %v3863_v31 }
 0x302   : > { %v2017_v62 = vmul.f32 %v1984_v48, %v1984_v48  ;;  %v2018_v23 = vmul.f32 %v1985_v6, %v1985_v6  ;;  %v2019_v34 = vmul.f32 %v1986_v10, %v1986_v10  ;;  %v2020_v29 = vmul.f32 %v1987_v9, %v1987_v9 }
 0x303   : > { %v2047_v19 = vadd.f32 %v2016_v22, %v2015_v30  ;;  %v1990_v43 = vsub.f32 %v3701_v16, %v3863_v31  ;;  %v2021_v20 = vmul.f32 %v1988_v55, %v1988_v55  ;;  %v1991_v45 = vsub.f32 %v3710_v59, %v3863_v31 }
 0x304   : > { %v2022_v37 = vmul.f32 %v1989_v5, %v1989_v5  ;;  %v1992_v8 = vsub.f32 %v3717_v63, %v3863_v31  ;;  %v1993_v33 = vsub.f32 %v3726_v25, %v3863_v31  ;;  %v1994_v16 = vsub.f32 %v3735_v49, %v3863_v31 }
 0x305   : > { %v2048_v42 = vadd.f32 %v2047_v19, %v2017_v62  ;;  %v2023_v38 = vmul.f32 %v1990_v43, %v1990_v43  ;;  %v2024_v15 = vmul.f32 %v1991_v45, %v1991_v45  ;;  %v1995_v59 = vsub.f32 %v3746_v11, %v3863_v31 }
 0x306   : > { %v2025_v40 = vmul.f32 %v1992_v8, %v1992_v8  ;;  %v2026_v14 = vmul.f32 %v1993_v33, %v1993_v33  ;;  %v1996_v63 = vsub.f32 %v3754_v12, %v3863_v31  ;;  %v2027_v4 = vmul.f32 %v1994_v16, %v1994_v16 }
 0x307   : > { %v2049_v56 = vadd.f32 %v2048_v42, %v2018_v23  ;;  %v1997_v25 = vsub.f32 %v3760_v21, %v3863_v31  ;;  %v2028_v35 = vmul.f32 %v1995_v59, %v1995_v59  ;;  %v1998_v49 = vsub.f32 %v3765_v53, %v3863_v31 }
 0x308   : > { %v2029_v54 = vmul.f32 %v1996_v63, %v1996_v63  ;;  %v1999_v11 = vsub.f32 %v3770_v2, %v3863_v31  ;;  %v2000_v12 = vsub.f32 %v3775_v3, %v3863_v31  ;;  %v2001_v21 = vsub.f32 %v3780_v46, %v3863_v31 }
 0x309   : > { %v2050_v44 = vadd.f32 %v2049_v56, %v2019_v34  ;;  %v2030_v0 = vmul.f32 %v1997_v25, %v1997_v25  ;;  %v2031_v30 = vmul.f32 %v1998_v49, %v1998_v49  ;;  %v2002_v53 = vsub.f32 %v3785_v32, %v3863_v31 }
 0x30a   : > { %v2032_v6 = vmul.f32 %v1999_v11, %v1999_v11  ;;  %v2033_v62 = vmul.f32 %v2000_v12, %v2000_v12  ;;  %v2003_v2 = vsub.f32 %v3793_v50, %v3863_v31  ;;  %v2034_v9 = vmul.f32 %v2001_v21, %v2001_v21 }
 0x30b   : > { %v2051_v61 = vadd.f32 %v2050_v44, %v2020_v29  ;;  %v2004_v3 = vsub.f32 %v3802_v52, %v3863_v31  ;;  %v2035_v42 = vmul.f32 %v2002_v53, %v2002_v53  ;;  %v2005_v46 = vsub.f32 %v3811_v51, %v3863_v31 }
 0x30c   : > { %v2036_v34 = vmul.f32 %v2003_v2, %v2003_v2  ;;  %v2006_v32 = vsub.f32 %v3820_v47, %v3863_v31  ;;  %v2007_v50 = vsub.f32 %v3829_v7, %v3863_v31  ;;  %v2043_v47 = vmul.f32 %v3873_v17, %v3873_v17 }
 0x30d   : > { %v2052_v39 = vadd.f32 %v2051_v61, %v2021_v20  ;;  %v2037_v5 = vmul.f32 %v2004_v3, %v2004_v3  ;;  %v2038_v44 = vmul.f32 %v2005_v46, %v2005_v46  ;;  %v2044_v7 = vmul.f32 %v3876_v60, %v3876_v60 }
 0x30e   : > { %v2039_v20 = vmul.f32 %v2006_v32, %v2006_v32  ;;  %v2040_v52 = vmul.f32 %v2007_v50, %v2007_v50 }
 0x30f   : > { %v2053_v27 = vadd.f32 %v2052_v39, %v2022_v37  ;;  %v2041_v37 = vmul.f32 %v3867_v41, %v3867_v41  ;;  %v2042_v39 = vmul.f32 %v3870_v28, %v3870_v28  ;;  %v2046_v41 = vmul.f32 %v3882_v18, %v3882_v18 }
 0x311   : > { %v2054_v58 = vadd.f32 %v2053_v27, %v2023_v38  ;;  %v2045_v27 = vmul.f32 %v3879_v24, %v3879_v24 }
 0x313   : > { %v2055_v36 = vadd.f32 %v2054_v58, %v2024_v15 }
 0x315   : > { %v2056_v13 = vadd.f32 %v2055_v36, %v2025_v40 }
 0x317   : > { %v2057_v26 = vadd.f32 %v2056_v13, %v2026_v14 }
 0x319   : > { %v2058_v57 = vadd.f32 %v2057_v26, %v2027_v4 }
 0x31b   : > { %v2059_v1 = vadd.f32 %v2058_v57, %v2028_v35 }
 0x31d   : > { %v2060_v48 = vadd.f32 %v2059_v1, %v2029_v54 }
 0x31f   : > { %v2061_v22 = vadd.f32 %v2060_v48, %v2030_v0 }
 0x321   : > { %v2062_v10 = vadd.f32 %v2061_v22, %v2031_v30 }
 0x323   : > { %v2063_v19 = vadd.f32 %v2062_v10, %v2032_v6 }
 0x325   : > { %v2064_v23 = vadd.f32 %v2063_v19, %v2033_v62 }
 0x327   : > { %v2065_v55 = vadd.f32 %v2064_v23, %v2034_v9 }
 0x329   : > { %v2066_v56 = vadd.f32 %v2065_v55, %v2035_v42 }
 0x32b   : > { %v2067_v29 = vadd.f32 %v2066_v56, %v2036_v34 }
 0x32d   : > { %v2068_v43 = vadd.f32 %v2067_v29, %v2037_v5 }
 0x32f   : > { %v2069_v61 = vadd.f32 %v2068_v43, %v2038_v44 }
 0x331   : > { %v2070_v45 = vadd.f32 %v2069_v61, %v2039_v20 }
 0x333   : > { %v2071_v51 = vadd.f32 %v2070_v45, %v2040_v52 }
 0x335   : > { %v2072_v8 = vadd.f32 %v2071_v51, %v2041_v37 }
 0x337   : > { %v2073_v38 = vadd.f32 %v2072_v8, %v2042_v39 }
 0x339   : > { %v2074_v31 = vadd.f32 %v2073_v38, %v2043_v47 }
 0x33b   : > { %v2075_v33 = vadd.f32 %v2074_v31, %v2044_v7 }
 0x33d   : > { %v2076_v15 = vadd.f32 %v2075_v33, %v2045_v27 }
 0x33f   : > { %v2077_v58 = vadd.f32 %v2076_v15, %v2046_v41 }
 0x341   : > { %v2078_v28 = vrot.slane %v2077_v58, 4 }
 0x343   : > { %v2079_v16 = vadd.f32 %v2078_v28, %v2077_v58 }
 0x345   : > { %v2080_v40 = vrot.slane %v2079_v16, 2 }
 0x347   : > { %v2081_v36 = vadd.f32 %v2080_v40, %v2079_v16 }
 0x349   : > { %v2082_v59 = vrot.slane %v2081_v36, 1 }
 0x34b   : > { %v2083_v17 = vadd.f32 %v2082_v59, %v2081_v36 }
 0x34d   : > { %2084 = vst [vmem:[%s3860_s27 + $0x1] sm:$0x1] %v2083_v17 }
 0x34e PF: > { %s14_s14 = sadd.s32 1, %s2664_s14   ;;  %s3979_s12 = smov %s2660_s13 }
 0x34f   : > { %p11_p5 = scmp.ge.s32.totalorder %s14_s14, 4   ;;  %s3980_s13 = smov %s3982_s15 }
 0x351   :  { %13 = sbr.rel (!%p11_p5) target bundleno = 2 (0x2), region = 81 }

// kernel: double_conv.4
= control target key start
LH: loop header
LB: loop body
LE: loop exit
PB: predicated region body
PF: predicated region fallthrough
CT: control target
= control target key end

     0   :  { %s2783_s18 = smov 0   ;;  %s2785_s19 = smov 0   ;;  %s4046_s0 = inlined_call_operand.vmem [shape: f32[2,16,16,128], index: 0, kind: input, shape index: {}]   ;;  %s4047_s1 = inlined_call_operand.vmem [shape: f32[1,128], index: 1, kind: input, shape index: {}]   ;;  %s4048_s2 = inlined_call_operand.vmem [shape: f32[1,128], index: 2, kind: input, shape index: {}]   ;;  %s4049_s3 = inlined_call_operand.vmem [shape: f32[9,128,128], index: 3, kind: input, shape index: {}]   ;;  %s4050_s4 = inlined_call_operand.vmem [shape: f32[2,16,16,128], index: 4, kind: output, shape index: {0}]   ;;  %s4051_s5 = inlined_call_operand.vmem [shape: f32[2,2,128], index: 5, kind: output, shape index: {1}]  }
   0x1   :  { %s2787_s20 = smov 0  }
   0x2 LB: > { %s28_s21 = sadd.s32 1, %s2746_s19  ;;  %p2511_p0 = scmp.ge.s32.totalorder %s2750_s20, 1  ;;  %s2750_s20 = sphi %s2787_s20, %s16_s20   ;;  %s2746_s19 = sphi %s2785_s19, %s4053_s19   ;;  %s2742_s18 = sphi %s2783_s18, %s4052_s18  }
   0x3   : > { %p30_p1 = scmp.ge.s32.totalorder %s28_s21, 2  ;;  %p206_p2 = scmp.lt.s32.totalorder %s2750_s20, 3 }
   0x5   : > { %s4055_s21 = smov (%p30_p1, %s28_s21), 0  ;;  %p207_p3 = pnand %p2511_p0, %p206_p2 }
   0x6   : > { %p244_p4 = scmp.lt.s32.totalorder (!%p207_p3), %s2742_s18, 1 }
   0x7   : > { %210 = sbr.rel (%p207_p3) target bundleno = 846 (0x34e), region = 36 }
   0xc   : > { %v2532_v0 = vld [vmem:[%s4049_s3 + $0xf8] sm:$0xff]  ;;  %v2531_v1 = vld [vmem:[%s4049_s3 + $0xf0] sm:$0xff]  ;;  %v2530_v2 = vld [vmem:[%s4049_s3 + $0xe8] sm:$0xff]  ;;  %s4057_s18 = smov (!%p244_p4, %s2742_s18), 1  ;;  %v2752_v3 = vmov 0.0  }
   0xd   : > { %2649 = vmatpush.msra.mxu1 %v2532_v0  ;;  %2650 = vmatpush.msra.mxu2 %v2532_v0  ;;  %404 = vst [vmem:[#allocation2] sm:$0xff] %v2752_v3  ;;  %v2529_v4 = vld [vmem:[%s4049_s3 + $0xe0] sm:$0xff]  ;;  %s2647_s30 = sshll.u32 %s4057_s18, 8  ;;  %v2528_v5 = vld [vmem:[%s4049_s3 + $0xd8] sm:$0xff]  ;;  %v2527_v12 = vld [vmem:[%s4049_s3 + $0xd0] sm:$0xff] }
   0xe   : > { %2651 = vmatpush.msra.mxu3 %v2532_v0  ;;  %582 = vmatpush.msra.mxu0 %v2532_v0  ;;  %405 = vst [vmem:[#allocation2 + $0x8] sm:$0xff] %v2752_v3  ;;  %s2827_s10 = scalar_lea.vmem %s4046_s0, %s2647_s30  ;;  %v2832_v6 = vld [vmem:[%s4047_s1] ss:$0 sm:$0xff]  ;;  %v2526_v18 = vld [vmem:[%s4049_s3 + $0xc8] sm:$0xff]  ;;  %v2524_v29 = vld [vmem:[%s4049_s3 + $0xb8] sm:$0xff]  ;;  %s3757_s13 = scalar_lea.vmem %s4050_s4, %s2647_s30 }
   0xf   : > { %2652 = vmatpush.msra.mxu1 %v2531_v1  ;;  %2653 = vmatpush.msra.mxu2 %v2531_v1  ;;  %406 = vst [vmem:[#allocation2 + $0x10] sm:$0x3] %v2752_v3  ;;  %v274_v7 = vld [vmem:[%s2827_s10 + $0x30] sm:$0xff]  ;;  %v2839_v8 = vld [vmem:[%s4048_s2] ss:$0 sm:$0xff]  ;;  %v275_v16 = vld [vmem:[%s2827_s10 + $0x38] sm:$0xff] }
  0x10   : > { %2654 = vmatpush.msra.mxu3 %v2531_v1  ;;  %583 = vmatpush.msra.mxu0 %v2531_v1  ;;  %408 = vst [vmem:[#allocation2 + $0x198] sm:$0xff] %v2752_v3  ;;  %v310_v9 = vmul.f32 %v2832_v6, %v274_v7  ;;  %v282_v10 = vld [vmem:[%s2827_s10 + $0x70] sm:$0xff]  ;;  %v283_v17 = vld [vmem:[%s2827_s10 + $0x78] sm:$0xff]  ;;  %v311_v21 = vmul.f32 %v2832_v6, %v275_v16  ;;  %v2525_v24 = vld [vmem:[%s4049_s3 + $0xc0] sm:$0xff]  ;;  %s2516_s30 = sshll.u32 %s4057_s18, 1 }
  0x11   : > { %2655 = vmatpush.msra.mxu1 %v2530_v2  ;;  %2656 = vmatpush.msra.mxu2 %v2530_v2  ;;  %409 = vst [vmem:[#allocation2 + $0x1a0] sm:$0xff] %v2752_v3  ;;  %v290_v11 = vld [vmem:[%s2827_s10 + $0xb0] sm:$0xff]  ;;  %v318_v13 = vmul.f32 %v2832_v6, %v282_v10  ;;  %v319_v23 = vmul.f32 %v2832_v6, %v283_v17  ;;  %v2522_v33 = vld [vmem:[%s4049_s3 + $0xa8] sm:$0xff]  ;;  %v2521_v34 = vld [vmem:[%s4049_s3 + $0xa0] sm:$0xff]  ;;  %s3948_s16 = scalar_lea.vmem %s4051_s5, %s2516_s30 }
  0x12   : > { %2657 = vmatpush.msra.mxu3 %v2530_v2  ;;  %584 = vmatpush.msra.mxu0 %v2530_v2  ;;  %410 = vst [vmem:[#allocation2 + $0x1a8] sm:$0x3] %v2752_v3  ;;  %v326_v14 = vmul.f32 %v2832_v6, %v290_v11  ;;  %v346_v15 = vadd.f32 %v2839_v8, %v310_v9  ;;  %v2523_v32 = vld [vmem:[%s4049_s3 + $0xb0] sm:$0xff]  ;;  %v2520_v35 = vld [vmem:[%s4049_s3 + $0x98] sm:$0xff]  ;;  %v2518_v37 = vld [vmem:[%s4049_s3 + $0x88] sm:$0xff] }
  0x13   : > { %2658 = vmatpush.msra.mxu1 %v2529_v4  ;;  %2659 = vmatpush.msra.mxu2 %v2529_v4  ;;  %411 = vst [vmem:[#allocation2] sm:$0x1] %v2752_v3  ;;  %v2860_v19 = vadd.f32 %v2839_v8, %v318_v13  ;;  %v347_v26 = vadd.f32 %v2839_v8, %v311_v21  ;;  %v2519_v36 = vld [vmem:[%s4049_s3 + $0x90] sm:$0xff]  ;;  %v291_v38 = vld [vmem:[%s2827_s10 + $0xb8] sm:$0xff]  ;;  %v2517_v39 = vld [vmem:[%s4049_s3 + $0x80] sm:$0xff] }
  0x14   : > { %2660 = vmatpush.msra.mxu3 %v2529_v4  ;;  %585 = vmatpush.msra.mxu0 %v2529_v4  ;;  %412 = vst [vmem:[#allocation2 + $0x18] sm:$0x1] %v2752_v3  ;;  %v2863_v20 = vadd.f32 %v2839_v8, %v326_v14  ;;  %v2867_v22 = vmax.f32 %v346_v15, 0.0  ;;  %v2880_v28 = vadd.f32 %v2839_v8, %v319_v23  ;;  %v2548_v40 = vld [vmem:[%s4049_s3 + $0x178] sm:$0xff]  ;;  %v2547_v44 = vld [vmem:[%s4049_s3 + $0x170] sm:$0xff]  ;;  %v276_v45 = vld [vmem:[%s2827_s10 + $0x40] sm:$0xff] }
  0x15   : > { %2661 = vmatpush.msra.mxu1 %v2528_v5  ;;  %2662 = vmatpush.msra.mxu2 %v2528_v5  ;;  %413 = vst [vmem:[#allocation2 + $0x30] sm:$0x1] %v2752_v3  ;;  %v386_v25 = vmax.f32 %v2860_v19, 0.0  ;;  %v2887_v30 = vmax.f32 %v347_v26, 0.0  ;;  %v327_v41 = vmul.f32 %v2832_v6, %v291_v38  ;;  %v530_v42 = vld [vmem:[%s4049_s3 + $0x78] sm:$0xff]  ;;  %v529_v46 = vld [vmem:[%s4049_s3 + $0x70] sm:$0xff]  ;;  %v312_v53 = vmul.f32 %v2832_v6, %v276_v45 }
  0x16   : > { %2663 = vmatpush.msra.mxu3 %v2528_v5  ;;  %586 = vmatpush.msra.mxu0 %v2528_v5  ;;  %414 = vst [vmem:[#allocation2 + $0x48] sm:$0x1] %v2752_v3  ;;  %v394_v27 = vmax.f32 %v2863_v20, 0.0  ;;  %v387_v31 = vmax.f32 %v2880_v28, 0.0  ;;  %v2564_v43 = vld [vmem:[%s4049_s3 + $0x1f8] sm:$0xff]  ;;  %v284_v47 = vld [vmem:[%s2827_s10 + $0x80] sm:$0xff] }
  0x17   : > { %2664 = vmatpush.msra.mxu1 %v2527_v12  ;;  %2665 = vmatpush.msra.mxu2 %v2527_v12  ;;  %415 = vst [vmem:[#allocation2 + $0x60] sm:$0x1] %v2752_v3  ;;  %v2563_v48 = vld [vmem:[%s4049_s3 + $0x1f0] sm:$0xff]  ;;  %v2546_v49 = vld [vmem:[%s4049_s3 + $0x168] sm:$0xff]  ;;  %v2964_v50 = vadd.f32 %v2839_v8, %v327_v41  ;;  %v292_v54 = vld [vmem:[%s2827_s10 + $0xc0] sm:$0xff]  ;;  %v320_v57 = vmul.f32 %v2832_v6, %v284_v47 }
  0x18   : > { %2666 = vmatpush.msra.mxu3 %v2527_v12  ;;  %587 = vmatpush.msra.mxu0 %v2527_v12  ;;  %454 = vst [vmem:[#allocation2 + $0x61] sm:$0xff] %v2867_v22  ;;  %v531_v51 = vld [vmem:[#allocation2 + $0x1] sm:$0xff]  ;;  %v2580_v56 = vld [vmem:[%s4049_s3 + $0x278] sm:$0xff]  ;;  %v328_v61 = vmul.f32 %v2832_v6, %v292_v54  ;;  %v2579_v62 = vld [vmem:[%s4049_s3 + $0x270] sm:$0xff]  ;;  %v348_v63 = vadd.f32 %v2839_v8, %v312_v53 }
  0x19   : > { %2667 = vmatpush.msra.mxu1 %v2526_v18  ;;  %2668 = vmatpush.msra.mxu2 %v2526_v18  ;;  %462 = vst [vmem:[#allocation2 + $0xc1] sm:$0xff] %v386_v25  ;;  %v528_v52 = vld [vmem:[%s4049_s3 + $0x68] sm:$0xff]  ;;  %v395_v58 = vmax.f32 %v2964_v50, 0.0  ;;  %v2545_v59 = vld [vmem:[%s4049_s3 + $0x160] sm:$0xff]  ;;  %v3001_v1 = vadd.f32 %v2839_v8, %v320_v57  ;;  %v2544_v4 = vld [vmem:[%s4049_s3 + $0x158] sm:$0xff] }
  0x1a   : > { %2669 = vmatpush.msra.mxu3 %v2526_v18  ;;  %588 = vmatpush.msra.mxu0 %v2526_v18  ;;  %470 = vst [vmem:[#allocation2 + $0x121] sm:$0xff] %v394_v27  ;;  %v2562_v55 = vld [vmem:[%s4049_s3 + $0x1e8] sm:$0xff]  ;;  %v2561_v60 = vld [vmem:[%s4049_s3 + $0x1e0] sm:$0xff]  ;;  %v2560_v7 = vld [vmem:[%s4049_s3 + $0x1d8] sm:$0xff]  ;;  %v3020_v11 = vadd.f32 %v2839_v8, %v328_v61  ;;  %v3030_v15 = vmax.f32 %v348_v63, 0.0 }
  0x1b   : > { %2670 = vmatpush.msra.mxu1 %v2525_v24  ;;  %2671 = vmatpush.msra.mxu2 %v2525_v24  ;;  %455 = vst [vmem:[#allocation2 + $0x69] sm:$0xff] %v2887_v30  ;;  %v268_v0 = vld [vmem:[%s2827_s10] sm:$0xff]  ;;  %v277_v5 = vld [vmem:[%s2827_s10 + $0x48] sm:$0xff]  ;;  %v526_v12 = vld [vmem:[%s4049_s3 + $0x58] sm:$0xff]  ;;  %v388_v20 = vmax.f32 %v3001_v1, 0.0 }
  0x1c   : > { %2672 = vmatpush.msra.mxu3 %v2525_v24  ;;  %589 = vmatpush.msra.mxu0 %v2525_v24  ;;  %463 = vst [vmem:[#allocation2 + $0xc9] sm:$0xff] %v387_v31  ;;  %v527_v2 = vld [vmem:[%s4049_s3 + $0x60] sm:$0xff]  ;;  %v2578_v9 = vld [vmem:[%s4049_s3 + $0x268] sm:$0xff]  ;;  %v2543_v13 = vld [vmem:[%s4049_s3 + $0x150] sm:$0xff]  ;;  %v304_v14 = vmul.f32 %v2832_v6, %v268_v0  ;;  %v313_v18 = vmul.f32 %v2832_v6, %v277_v5 }
  0x1d   : > { %2673 = vmatpush.msra.mxu1 %v2524_v29  ;;  %2674 = vmatpush.msra.mxu2 %v2524_v29  ;;  %416 = vst [vmem:[#allocation2 + $0x78] sm:$0x1] %v2752_v3  ;;  %v285_v10 = vld [vmem:[%s2827_s10 + $0x88] sm:$0xff]  ;;  %v2559_v17 = vld [vmem:[%s4049_s3 + $0x1d0] sm:$0xff]  ;;  %v2577_v21 = vld [vmem:[%s4049_s3 + $0x260] sm:$0xff] }
  0x1e   : > { %2675 = vmatpush.msra.mxu3 %v2524_v29  ;;  %590 = vmatpush.msra.mxu0 %v2524_v29  ;;  %417 = vst [vmem:[#allocation2 + $0x90] sm:$0x1] %v2752_v3  ;;  %v532_v16 = vld [vmem:[#allocation2 + $0x9] sm:$0xff]  ;;  %v321_v23 = vmul.f32 %v2832_v6, %v285_v10  ;;  %v340_v29 = vadd.f32 %v2839_v8, %v304_v14  ;;  %v2540_v50 = vld [vmem:[%s4049_s3 + $0x138] sm:$0xff]  ;;  %v280_v63 = vld [vmem:[%s2827_s10 + $0x60] sm:$0xff] }
  0x1f   : > { %2676 = vmatpush.msra.mxu1 %v2523_v32  ;;  %2677 = vmatpush.msra.mxu2 %v2523_v32  ;;  %418 = vst [vmem:[#allocation2 + $0xa8] sm:$0x1] %v2752_v3  ;;  %v293_v19 = vld [vmem:[%s2827_s10 + $0xc8] sm:$0xff]  ;;  %v525_v24 = vld [vmem:[%s4049_s3 + $0x50] sm:$0xff]  ;;  %v295_v57 = vld [vmem:[%s2827_s10 + $0xd8] sm:$0xff] }
  0x20   : > { %2678 = vmatpush.msra.mxu3 %v2523_v32  ;;  %591 = vmatpush.msra.mxu0 %v2523_v32  ;;  %419 = vst [vmem:[#allocation2 + $0xc0] sm:$0x1] %v2752_v3  ;;  %v286_v26 = vld [vmem:[%s2827_s10 + $0x90] sm:$0xff]  ;;  %v2542_v28 = vld [vmem:[%s4049_s3 + $0x148] sm:$0xff]  ;;  %v357_v38 = vadd.f32 %v2839_v8, %v321_v23  ;;  %v3087_v47 = vmax.f32 %v340_v29, 0.0  ;;  %v522_v61 = vld [vmem:[%s4049_s3 + $0x38] sm:$0xff]  ;;  %v331_v10 = vmul.f32 %v2832_v6, %v295_v57 }
  0x21   : > { %2679 = vmatpush.msra.mxu1 %v2522_v33  ;;  %2680 = vmatpush.msra.mxu2 %v2522_v33  ;;  %420 = vst [vmem:[#allocation2 + $0xd8] sm:$0x1] %v2752_v3  ;;  %v2558_v32 = vld [vmem:[%s4049_s3 + $0x1c8] sm:$0xff]  ;;  %v322_v41 = vmul.f32 %v2832_v6, %v286_v26  ;;  %v2552_v57 = vld [vmem:[%s4049_s3 + $0x198] sm:$0xff] }
  0x22   : > { %2681 = vmatpush.msra.mxu3 %v2522_v33  ;;  %592 = vmatpush.msra.mxu0 %v2522_v33  ;;  %421 = vst [vmem:[#allocation2 + $0xf0] sm:$0x1] %v2752_v3  ;;  %v269_v33 = vld [vmem:[%s2827_s10 + $0x8] sm:$0xff] }
  0x23   : > { %2682 = vmatpush.msra.mxu1 %v2521_v34  ;;  %2683 = vmatpush.msra.mxu2 %v2521_v34  ;;  %422 = vst [vmem:[#allocation2 + $0x108] sm:$0x1] %v2752_v3  ;;  %v305_v45 = vmul.f32 %v2832_v6, %v269_v33  ;;  %v3174_v33 = vadd.f32 %v2839_v8, %v331_v10 }
  0x24   : > { %2684 = vmatpush.msra.mxu3 %v2521_v34  ;;  %593 = vmatpush.msra.mxu0 %v2521_v34  ;;  %423 = vst [vmem:[#allocation2 + $0x120] sm:$0x1] %v2752_v3  ;;  %v349_v34 = vadd.f32 %v2839_v8, %v313_v18 }
  0x25   : > { %2685 = vmatpush.msra.mxu1 %v2520_v35  ;;  %2686 = vmatpush.msra.mxu2 %v2520_v35  ;;  %424 = vst [vmem:[#allocation2 + $0x138] sm:$0x1] %v2752_v3  ;;  %v341_v0 = vadd.f32 %v2839_v8, %v305_v45 }
  0x26   : > { %2687 = vmatpush.msra.mxu3 %v2520_v35  ;;  %594 = vmatpush.msra.mxu0 %v2520_v35  ;;  %425 = vst [vmem:[#allocation2 + $0x150] sm:$0x1] %v2752_v3  ;;  %v2576_v35 = vld [vmem:[%s4049_s3 + $0x258] sm:$0xff]  ;;  %v3100_v53 = vmax.f32 %v349_v34, 0.0  ;;  %v520_v34 = vld [vmem:[%s4049_s3 + $0x28] sm:$0xff] }
  0x27   : > { %2688 = vmatpush.msra.mxu1 %v2519_v36  ;;  %2689 = vmatpush.msra.mxu2 %v2519_v36  ;;  %426 = vst [vmem:[#allocation2 + $0x168] sm:$0x1] %v2752_v3 }
  0x28   : > { %2690 = vmatpush.msra.mxu3 %v2519_v36  ;;  %595 = vmatpush.msra.mxu0 %v2519_v36  ;;  %427 = vst [vmem:[#allocation2 + $0x180] sm:$0x1] %v2752_v3 }
  0x29   : > { %2691 = vmatpush.msra.mxu1 %v2518_v37  ;;  %2692 = vmatpush.msra.mxu2 %v2518_v37  ;;  %430 = vst [vmem:[#allocation2 + $0x29] sm:$0x1] %v2752_v3 }
  0x2a   : > { %2693 = vmatpush.msra.mxu3 %v2518_v37  ;;  %596 = vmatpush.msra.mxu0 %v2518_v37  ;;  %431 = vst [vmem:[#allocation2 + $0x41] sm:$0x1] %v2752_v3  ;;  %v294_v37 = vld [vmem:[%s2827_s10 + $0xd0] sm:$0xff] }
  0x2b   : > { %2694 = vmatpush.msra.mxu1 %v2517_v39  ;;  %2695 = vmatpush.msra.mxu2 %v2517_v39  ;;  %432 = vst [vmem:[#allocation2 + $0x59] sm:$0x1] %v2752_v3 }
  0x2c   : > { %622 = vmatmul.f32.vlgmr.msra.gmra.mxu1 %v2867_v22  ;;  %646 = vmatmul.f32.vlgmr.msra.gmra.mxu2 %v386_v25  ;;  %433 = vst [vmem:[#allocation2 + $0x71] sm:$0x1] %v2752_v3  ;;  %v278_v25 = vld [vmem:[%s2827_s10 + $0x50] sm:$0xff] }
  0x2d   : > { %859 = vmatpush.msrb.mxu2 %v2548_v40  ;;  %2696 = vmatpush.msra.mxu3 %v2517_v39  ;;  %434 = vst [vmem:[#allocation2 + $0x89] sm:$0x1] %v2752_v3  ;;  %v314_v36 = vmul.f32 %v2832_v6, %v278_v25  ;;  %v2541_v40 = vld [vmem:[%s4049_s3 + $0x140] sm:$0xff]  ;;  %v3160_v25 = vmax.f32 %v341_v0, 0.0 }
  0x2e   : > { %670 = vmatmul.f32.vlgmr.msra.gmra.mxu3 %v394_v27  ;;  %695 = vmatpush.msrb.mxu1 %v530_v42  ;;  %435 = vst [vmem:[#allocation2 + $0xa1] sm:$0x1] %v2752_v3  ;;  %v396_v27 = vmax.f32 %v3020_v11, 0.0  ;;  %v279_v42 = vld [vmem:[%s2827_s10 + $0x58] sm:$0xff] }
  0x2f   : > { %1056 = vmatpush.msrb.mxu3 %v2564_v43  ;;  %860 = vmatpush.msrb.mxu2 %v2547_v44  ;;  %436 = vst [vmem:[#allocation2 + $0xb9] sm:$0x1] %v2752_v3  ;;  %v2557_v43 = vld [vmem:[%s4049_s3 + $0x1c0] sm:$0xff]  ;;  %v2575_v44 = vld [vmem:[%s4049_s3 + $0x250] sm:$0xff]  ;;  %v350_v54 = vadd.f32 %v2839_v8, %v314_v36  ;;  %v271_v11 = vld [vmem:[%s2827_s10 + $0x18] sm:$0xff] }
  0x30   : > { %696 = vmatpush.msrb.mxu1 %v529_v46  ;;  %597 = vmatpush.msra.mxu0 %v2517_v39  ;;  %437 = vst [vmem:[#allocation2 + $0xd1] sm:$0x1] %v2752_v3  ;;  %v524_v39 = vld [vmem:[%s4049_s3 + $0x48] sm:$0xff]  ;;  %v287_v46 = vld [vmem:[%s2827_s10 + $0x98] sm:$0xff]  ;;  %v307_v29 = vmul.f32 %v2832_v6, %v271_v11  ;;  %v517_v11 = vld [vmem:[%s4049_s3 + $0x10] sm:$0xff] }
  0x31   : > { %1057 = vmatpush.msrb.mxu3 %v2563_v48  ;;  %861 = vmatpush.msrb.mxu2 %v2546_v49  ;;  %438 = vst [vmem:[#allocation2 + $0xe9] sm:$0x1] %v2752_v3  ;;  %v523_v49 = vld [vmem:[%s4049_s3 + $0x40] sm:$0xff] }
  0x32   : > { %598 = vmatmul.f32.vlgmr.msra.gmra.mxu0 %v531_v51  ;;  %697 = vmatpush.msrb.mxu1 %v528_v52  ;;  %439 = vst [vmem:[#allocation2 + $0x101] sm:$0x1] %v2752_v3  ;;  %v330_v51 = vmul.f32 %v2832_v6, %v294_v37  ;;  %v270_v52 = vld [vmem:[%s2827_s10 + $0x10] sm:$0xff]  ;;  %v272_v37 = vld [vmem:[%s2827_s10 + $0x20] sm:$0xff] }
  0x33   : > { %1058 = vmatpush.msrb.mxu3 %v2562_v55  ;;  %1252 = vmatpush.msrb.mxu0 %v2580_v56  ;;  %440 = vst [vmem:[#allocation2 + $0x119] sm:$0x1] %v2752_v3  ;;  %v2556_v55 = vld [vmem:[%s4049_s3 + $0x1b8] sm:$0xff]  ;;  %v315_v56 = vmul.f32 %v2832_v6, %v279_v42  ;;  %v306_v1 = vmul.f32 %v2832_v6, %v270_v52  ;;  %v297_v42 = vld [vmem:[%s2827_s10 + $0xe8] sm:$0xff] }
  0x34   : > { %625 = vmatmul.f32.gmra.mxu1 %v2887_v30  ;;  %649 = vmatmul.f32.gmra.mxu2 %v387_v31  ;;  %441 = vst [vmem:[#allocation2 + $0x131] sm:$0x1] %v2752_v3  ;;  %v329_v31 = vmul.f32 %v2832_v6, %v293_v19  ;;  %v3127_v5 = vadd.f32 %v2839_v8, %v330_v51 }
  0x35   : > { %862 = vmatpush.msrb.mxu2 %v2545_v59  ;;  %1059 = vmatpush.msrb.mxu3 %v2561_v60  ;;  %442 = vst [vmem:[#allocation2 + $0x149] sm:$0x1] %v2752_v3  ;;  %v358_v59 = vadd.f32 %v2839_v8, %v322_v41  ;;  %v2574_v60 = vld [vmem:[%s4049_s3 + $0x248] sm:$0xff]  ;;  %v351_v14 = vadd.f32 %v2839_v8, %v315_v56 }
  0x36   : > { %673 = vmatmul.f32.gmra.mxu3 %v395_v58  ;;  %1253 = vmatpush.msrb.mxu0 %v2579_v62  ;;  %443 = vst [vmem:[#allocation2 + $0x161] sm:$0x1] %v2752_v3  ;;  %v3090_v48 = vadd.f32 %v2839_v8, %v329_v31  ;;  %v323_v62 = vmul.f32 %v2832_v6, %v287_v46  ;;  %v289_v31 = vld [vmem:[%s2827_s10 + $0xa8] sm:$0xff]  ;;  %v519_v46 = vld [vmem:[%s4049_s3 + $0x20] sm:$0xff] }
  0x37   : > { %698 = vmatpush.msrb.mxu1 %v527_v2  ;;  %863 = vmatpush.msrb.mxu2 %v2544_v4  ;;  %444 = vst [vmem:[#allocation2 + $0x179] sm:$0x1] %v2752_v3  ;;  %v288_v2 = vld [vmem:[%s2827_s10 + $0xa0] sm:$0xff]  ;;  %v3148_v18 = vmax.f32 %v358_v59, 0.0  ;;  %v342_v26 = vadd.f32 %v2839_v8, %v306_v1  ;;  %v343_v51 = vadd.f32 %v2839_v8, %v307_v29  ;;  %v518_v1 = vld [vmem:[%s4049_s3 + $0x18] sm:$0xff] }
  0x38   : > { %1060 = vmatpush.msrb.mxu3 %v2560_v7  ;;  %1254 = vmatpush.msrb.mxu0 %v2578_v9  ;;  %445 = vst [vmem:[#allocation2 + $0x191] sm:$0x1] %v2752_v3  ;;  %v397_v4 = vmax.f32 %v3090_v48, 0.0  ;;  %v2539_v7 = vld [vmem:[%s4049_s3 + $0x130] sm:$0xff]  ;;  %v359_v19 = vadd.f32 %v2839_v8, %v323_v62  ;;  %v324_v23 = vmul.f32 %v2832_v6, %v288_v2 }
  0x39   : > { %699 = vmatpush.msrb.mxu1 %v526_v12  ;;  %864 = vmatpush.msrb.mxu2 %v2543_v13  ;;  %471 = vst [vmem:[#allocation2 + $0x129] sm:$0xff] %v395_v58  ;;  %v3108_v58 = vmax.f32 %v357_v38, 0.0  ;;  %v2555_v9 = vld [vmem:[%s4049_s3 + $0x1b0] sm:$0xff]  ;;  %v3138_v12 = vmax.f32 %v350_v54, 0.0  ;;  %v2573_v13 = vld [vmem:[%s4049_s3 + $0x240] sm:$0xff]  ;;  %v3185_v38 = vmax.f32 %v351_v14, 0.0  ;;  %v325_v48 = vmul.f32 %v2832_v6, %v289_v31 }
  0x3a   : > { %601 = vmatmul.f32.gmra.mxu0 %v532_v16  ;;  %1061 = vmatpush.msrb.mxu3 %v2559_v17  ;;  %428 = vst [vmem:[#allocation2 + $0x198] sm:$0x1] %v2752_v3  ;;  %v316_v16 = vmul.f32 %v2832_v6, %v280_v63  ;;  %v296_v17 = vld [vmem:[%s2827_s10 + $0xe0] sm:$0xff]  ;;  %v360_v45 = vadd.f32 %v2839_v8, %v324_v23  ;;  %v399_v54 = vmax.f32 %v3174_v33, 0.0  ;;  %v2535_v2 = vld [vmem:[%s4049_s3 + $0x110] sm:$0xff]  ;;  %v516_v23 = vld [vmem:[%s4049_s3 + $0x8] sm:$0xff] }
  0x3b   : > { %1255 = vmatpush.msrb.mxu0 %v2577_v21  ;;  %700 = vmatpush.msrb.mxu1 %v525_v24  ;;  %429 = vst [vmem:[#allocation2 + $0x11] sm:$0x1] %v2752_v3  ;;  %v2538_v21 = vld [vmem:[%s4049_s3 + $0x128] sm:$0xff]  ;;  %v332_v36 = vmul.f32 %v2832_v6, %v296_v17  ;;  %v308_v52 = vmul.f32 %v2832_v6, %v272_v37  ;;  %v515_v31 = vld [vmem:[%s4049_s3] sm:$0xff]  ;;  %v2644_v33 = vld [vmem:[%s4049_s3 + $0x478] sm:$0xff] }
  0x3c   : > { %628 = vmatmul.f32.gmra.mxu1 %v3030_v15  ;;  %652 = vmatmul.f32.gmra.mxu2 %v388_v20  ;;  %446 = vst [vmem:[#allocation2 + $0x1a9] sm:$0x1] %v2752_v3  ;;  %v281_v24 = vld [vmem:[%s2827_s10 + $0x68] sm:$0xff]  ;;  %v333_v59 = vmul.f32 %v2832_v6, %v297_v42  ;;  %v3234_v0 = vmax.f32 %v360_v45, 0.0  ;;  %v2565_v37 = vld [vmem:[%s4049_s3 + $0x200] sm:$0xff]  ;;  %v2643_v42 = vld [vmem:[%s4049_s3 + $0x470] sm:$0xff] }
  0x3d   : > { %865 = vmatpush.msrb.mxu2 %v2542_v28  ;;  %1062 = vmatpush.msrb.mxu3 %v2558_v32  ;;  %456 = vst [vmem:[#allocation2 + $0x79] sm:$0xff] %v3030_v15  ;;  %v2572_v28 = vld [vmem:[%s4049_s3 + $0x238] sm:$0xff]  ;;  %v398_v32 = vmax.f32 %v3127_v5, 0.0  ;;  %v317_v41 = vmul.f32 %v2832_v6, %v281_v24  ;;  %v3216_v56 = vadd.f32 %v2839_v8, %v332_v36  ;;  %v2551_v5 = vld [vmem:[%s4049_s3 + $0x190] sm:$0xff]  ;;  %v2550_v17 = vld [vmem:[%s4049_s3 + $0x188] sm:$0xff] }
  0x3e   : > { %676 = vmatmul.f32.gmra.mxu3 %v396_v27  ;;  %1256 = vmatpush.msrb.mxu0 %v2576_v35  ;;  %464 = vst [vmem:[#allocation2 + $0xd9] sm:$0xff] %v388_v20  ;;  %v521_v20 = vld [vmem:[%s4049_s3 + $0x30] sm:$0xff]  ;;  %v2537_v35 = vld [vmem:[%s4049_s3 + $0x120] sm:$0xff]  ;;  %v3262_v14 = vadd.f32 %v2839_v8, %v333_v59  ;;  %v2596_v36 = vld [vmem:[%s4049_s3 + $0x2f8] sm:$0xff] }
  0x3f   : > { %701 = vmatpush.msrb.mxu1 %v524_v39  ;;  %866 = vmatpush.msrb.mxu2 %v2541_v40  ;;  %472 = vst [vmem:[#allocation2 + $0x139] sm:$0xff] %v396_v27  ;;  %v2554_v27 = vld [vmem:[%s4049_s3 + $0x1a8] sm:$0xff]  ;;  %v2553_v39 = vld [vmem:[%s4049_s3 + $0x1a0] sm:$0xff]  ;;  %v352_v40 = vadd.f32 %v2839_v8, %v316_v16  ;;  %v353_v62 = vadd.f32 %v2839_v8, %v317_v41  ;;  %v400_v10 = vmax.f32 %v3216_v56, 0.0  ;;  %v2595_v41 = vld [vmem:[%s4049_s3 + $0x2f0] sm:$0xff] }
  0x40   : > { %1063 = vmatpush.msrb.mxu3 %v2557_v43  ;;  %1257 = vmatpush.msrb.mxu0 %v2575_v44  ;;  %457 = vst [vmem:[#allocation2 + $0x81] sm:$0xff] %v3100_v53  ;;  %v3193_v43 = vmax.f32 %v359_v19, 0.0  ;;  %v2571_v44 = vld [vmem:[%s4049_s3 + $0x230] sm:$0xff]  ;;  %v808_v45 = vld [vmem:[#allocation2 + $0x2] sm:$0xff] }
  0x41   : > { %702 = vmatpush.msrb.mxu1 %v523_v49  ;;  %867 = vmatpush.msrb.mxu2 %v2540_v50  ;;  %465 = vst [vmem:[#allocation2 + $0xe1] sm:$0xff] %v3108_v58  ;;  %v273_v49 = vld [vmem:[%s2827_s10 + $0x28] sm:$0xff]  ;;  %v3205_v50 = vmax.f32 %v342_v26, 0.0  ;;  %v3265_v16 = vmax.f32 %v353_v62, 0.0  ;;  %v2533_v26 = vld [vmem:[%s4049_s3 + $0x100] sm:$0xff] }
  0x42   : > { %604 = vmatmul.f32.gmra.mxu0 %v3087_v47  ;;  %1064 = vmatpush.msrb.mxu3 %v2556_v55  ;;  %448 = vst [vmem:[#allocation2 + $0x19] sm:$0xff] %v3087_v47  ;;  %v2536_v55 = vld [vmem:[%s4049_s3 + $0x118] sm:$0xff]  ;;  %v309_v63 = vmul.f32 %v2832_v6, %v273_v49  ;;  %v3244_v6 = vmax.f32 %v343_v51, 0.0  ;;  %v2626_v49 = vld [vmem:[%s4049_s3 + $0x3e8] sm:$0xff]  ;;  %v2593_v59 = vld [vmem:[%s4049_s3 + $0x2e0] sm:$0xff] }
  0x43   : > { %1258 = vmatpush.msrb.mxu0 %v2574_v60  ;;  %703 = vmatpush.msrb.mxu1 %v522_v61  ;;  %473 = vst [vmem:[#allocation2 + $0x141] sm:$0xff] %v397_v4  ;;  %v3223_v60 = vmax.f32 %v352_v40, 0.0  ;;  %v2570_v61 = vld [vmem:[%s4049_s3 + $0x228] sm:$0xff]  ;;  %v2627_v40 = vld [vmem:[%s4049_s3 + $0x3f0] sm:$0xff]  ;;  %v2641_v62 = vld [vmem:[%s4049_s3 + $0x460] sm:$0xff] }
  0x44   : > { %631 = vmatmul.f32.gmra.mxu1 %v3100_v53  ;;  %655 = vmatmul.f32.gmra.mxu2 %v3108_v58  ;;  %458 = vst [vmem:[#allocation2 + $0x91] sm:$0xff] %v3138_v12  ;;  %v345_v19 = vadd.f32 %v2839_v8, %v309_v63  ;;  %v2594_v51 = vld [vmem:[%s4049_s3 + $0x2e8] sm:$0xff] }
  0x45   : > { %868 = vmatpush.msrb.mxu2 %v2539_v7  ;;  %1065 = vmatpush.msrb.mxu3 %v2555_v9  ;;  %466 = vst [vmem:[#allocation2 + $0xf1] sm:$0xff] %v3148_v18  ;;  %v2569_v7 = vld [vmem:[%s4049_s3 + $0x220] sm:$0xff]  ;;  %v344_v9 = vadd.f32 %v2839_v8, %v308_v52  ;;  %v809_v52 = vld [vmem:[#allocation2 + $0xa] sm:$0xff] }
  0x46   : > { %679 = vmatmul.f32.gmra.mxu3 %v397_v4  ;;  %1259 = vmatpush.msrb.mxu0 %v2573_v13  ;;  %449 = vst [vmem:[#allocation2 + $0x21] sm:$0xff] %v3160_v25  ;;  %v361_v4 = vadd.f32 %v2839_v8, %v325_v48  ;;  %v2534_v13 = vld [vmem:[%s4049_s3 + $0x108] sm:$0xff]  ;;  %v401_v8 = vmax.f32 %v3262_v14, 0.0  ;;  %v3295_v29 = vmax.f32 %v345_v19, 0.0  ;;  %v2591_v14 = vld [vmem:[%s4049_s3 + $0x2d0] sm:$0xff] }
  0x47   : > { %704 = vmatpush.msrb.mxu1 %v521_v20  ;;  %869 = vmatpush.msrb.mxu2 %v2538_v21  ;;  %474 = vst [vmem:[#allocation2 + $0x151] sm:$0xff] %v398_v32  ;;  %v2568_v21 = vld [vmem:[%s4049_s3 + $0x218] sm:$0xff]  ;;  %v3280_v24 = vmax.f32 %v344_v9, 0.0  ;;  %v2610_v48 = vld [vmem:[%s4049_s3 + $0x368] sm:$0xff] }
  0x48   : > { %1066 = vmatpush.msrb.mxu3 %v2554_v27  ;;  %1260 = vmatpush.msrb.mxu0 %v2572_v28  ;;  %459 = vst [vmem:[#allocation2 + $0x99] sm:$0xff] %v3185_v38  ;;  %v3271_v20 = vmax.f32 %v361_v4, 0.0  ;;  %v2549_v27 = vld [vmem:[%s4049_s3 + $0x180] sm:$0xff]  ;;  %v2567_v28 = vld [vmem:[%s4049_s3 + $0x210] sm:$0xff]  ;;  %v2592_v4 = vld [vmem:[%s4049_s3 + $0x2d8] sm:$0xff] }
  0x49   : > { %705 = vmatpush.msrb.mxu1 %v520_v34  ;;  %870 = vmatpush.msrb.mxu2 %v2537_v35  ;;  %467 = vst [vmem:[#allocation2 + $0xf9] sm:$0xff] %v3193_v43  ;;  %v2566_v34 = vld [vmem:[%s4049_s3 + $0x208] sm:$0xff]  ;;  %v2628_v35 = vld [vmem:[%s4049_s3 + $0x3f8] sm:$0xff] }
  0x4a   : > { %607 = vmatmul.f32.gmra.mxu0 %v3160_v25  ;;  %1067 = vmatpush.msrb.mxu3 %v2553_v39  ;;  %450 = vst [vmem:[#allocation2 + $0x31] sm:$0xff] %v3205_v50  ;;  %v2611_v39 = vld [vmem:[%s4049_s3 + $0x370] sm:$0xff]  ;;  %v1012_v19 = vld [vmem:[#allocation2 + $0x68] sm:$0xff] }
  0x4b   : > { %1261 = vmatpush.msrb.mxu0 %v2571_v44  ;;  %706 = vmatpush.msrb.mxu1 %v519_v46  ;;  %475 = vst [vmem:[#allocation2 + $0x159] sm:$0xff] %v399_v54  ;;  %v480_v44 = vld [vmem:[#allocation2] sm:$0xff]  ;;  %v1005_v46 = vld [vmem:[#allocation2 + $0x18] sm:$0xff] }
  0x4c   : > { %634 = vmatmul.f32.gmra.mxu1 %v3138_v12  ;;  %658 = vmatmul.f32.gmra.mxu2 %v3148_v18  ;;  %460 = vst [vmem:[#allocation2 + $0xa9] sm:$0xff] %v3223_v60 }
  0x4d   : > { %871 = vmatpush.msrb.mxu2 %v2536_v55  ;;  %1068 = vmatpush.msrb.mxu3 %v2552_v57  ;;  %468 = vst [vmem:[#allocation2 + $0x109] sm:$0xff] %v3234_v0  ;;  %v2642_v55 = vld [vmem:[%s4049_s3 + $0x468] sm:$0xff]  ;;  %v810_v56 = vld [vmem:[#allocation2 + $0x1a] sm:$0xff] }
  0x4e   : > { %682 = vmatmul.f32.gmra.mxu3 %v398_v32  ;;  %1262 = vmatpush.msrb.mxu0 %v2570_v61  ;;  %451 = vst [vmem:[#allocation2 + $0x39] sm:$0xff] %v3244_v6  ;;  %v2612_v32 = vld [vmem:[%s4049_s3 + $0x378] sm:$0xff] }
  0x4f   : > { %707 = vmatpush.msrb.mxu1 %v518_v1  ;;  %872 = vmatpush.msrb.mxu2 %v2535_v2  ;;  %476 = vst [vmem:[#allocation2 + $0x169] sm:$0xff] %v400_v10  ;;  %v2608_v2 = vld [vmem:[%s4049_s3 + $0x358] sm:$0xff] }
  0x50   : > { %1069 = vmatpush.msrb.mxu3 %v2551_v5  ;;  %1263 = vmatpush.msrb.mxu0 %v2569_v7  ;;  %461 = vst [vmem:[#allocation2 + $0xb1] sm:$0xff] %v3265_v16  ;;  %v2640_v7 = vld [vmem:[%s4049_s3 + $0x458] sm:$0xff] }
  0x51   : > { %708 = vmatpush.msrb.mxu1 %v517_v11  ;;  %873 = vmatpush.msrb.mxu2 %v2534_v13  ;;  %469 = vst [vmem:[#allocation2 + $0x111] sm:$0xff] %v3271_v20  ;;  %v1007_v57 = vld [vmem:[#allocation2 + $0x30] sm:$0xff] }
  0x52   : > { %610 = vmatmul.f32.gmra.mxu0 %v3205_v50  ;;  %1070 = vmatpush.msrb.mxu3 %v2550_v17  ;;  %452 = vst [vmem:[#allocation2 + $0x49] sm:$0xff] %v3280_v24  ;;  %v2607_v11 = vld [vmem:[%s4049_s3 + $0x350] sm:$0xff] }
  0x53   : > { %1264 = vmatpush.msrb.mxu0 %v2568_v21  ;;  %709 = vmatpush.msrb.mxu1 %v516_v23  ;;  %477 = vst [vmem:[#allocation2 + $0x171] sm:$0xff] %v401_v8  ;;  %v2623_v13 = vld [vmem:[%s4049_s3 + $0x3d0] sm:$0xff] }
  0x54   : > { %637 = vmatmul.f32.gmra.mxu1 %v3185_v38  ;;  %661 = vmatmul.f32.gmra.mxu2 %v3193_v43  ;;  %453 = vst [vmem:[#allocation2 + $0x51] sm:$0xff] %v3295_v29  ;;  %v2639_v21 = vld [vmem:[%s4049_s3 + $0x450] sm:$0xff] }
  0x55   : > { %874 = vmatpush.msrb.mxu2 %v2533_v26  ;;  %1071 = vmatpush.msrb.mxu3 %v2549_v27  ;;  %v1008_v61 = vld [vmem:[#allocation2 + $0x38] sm:$0xff]  ;;  %v2622_v26 = vld [vmem:[%s4049_s3 + $0x3c8] sm:$0xff] }
  0x56   : > { %685 = vmatmul.f32.gmra.mxu3 %v399_v54  ;;  %1265 = vmatpush.msrb.mxu0 %v2567_v28  ;;  %v1006_v54 = vld [vmem:[#allocation2 + $0x20] sm:$0xff]  ;;  %v812_v63 = vld [vmem:[#allocation2 + $0x32] sm:$0xff] }
  0x57   : > { %710 = vmatpush.msrb.mxu1 %v515_v31  ;;  %1645 = vmatpush.msra.mxu2 %v2612_v32  ;;  %v817_v32 = vld [vmem:[#allocation2 + $0x6a] sm:$0xff] }
  0x58   : > { %1266 = vmatpush.msrb.mxu0 %v2566_v34  ;;  %1841 = vmatpush.msra.mxu3 %v2628_v35  ;;  %v1014_v34 = vld [vmem:[#allocation2 + $0x80] sm:$0xff]  ;;  %v2638_v35 = vld [vmem:[%s4049_s3 + $0x448] sm:$0xff] }
  0x59   : > { %1448 = vmatpush.msra.mxu1 %v2596_v36  ;;  %1646 = vmatpush.msra.mxu2 %v2611_v39  ;;  %v1009_v1 = vld [vmem:[#allocation2 + $0x48] sm:$0xff] }
  0x5a   : > { %613 = vmatmul.f32.gmra.mxu0 %v3244_v6  ;;  %1842 = vmatpush.msra.mxu3 %v2627_v40  ;;  %v818_v40 = vld [vmem:[#allocation2 + $0x7a] sm:$0xff] }
  0x5b   : > { %1267 = vmatpush.msrb.mxu0 %v2565_v37  ;;  %1449 = vmatpush.msra.mxu1 %v2595_v41  ;;  %v1010_v5 = vld [vmem:[#allocation2 + $0x50] sm:$0xff]  ;;  %v2605_v41 = vld [vmem:[%s4049_s3 + $0x340] sm:$0xff] }
  0x5c   : > { %640 = vmatmul.f32.gmra.mxu1 %v3223_v60  ;;  %664 = vmatmul.f32.gmra.mxu2 %v3234_v0  ;;  %v814_v9 = vld [vmem:[#allocation2 + $0x4a] sm:$0xff]  ;;  %v815_v17 = vld [vmem:[#allocation2 + $0x52] sm:$0xff] }
  0x5d   : > { %2037 = vmatpush.msra.mxu0 %v2644_v33  ;;  %1647 = vmatpush.msra.mxu2 %v2610_v48 }
  0x5e   : > { %688 = vmatmul.f32.gmra.mxu3 %v400_v10  ;;  %1450 = vmatpush.msra.mxu1 %v2594_v51  ;;  %v1011_v10 = vld [vmem:[#allocation2 + $0x60] sm:$0xff]  ;;  %v1016_v51 = vld [vmem:[#allocation2 + $0x98] sm:$0xff] }
  0x5f   : > { %2038 = vmatpush.msra.mxu0 %v2643_v42  ;;  %1843 = vmatpush.msra.mxu3 %v2626_v49  ;;  %v2621_v42 = vld [vmem:[%s4049_s3 + $0x3c0] sm:$0xff] }
  0x60   : > { %1451 = vmatpush.msra.mxu1 %v2593_v59  ;;  %v819_v49 = vld [vmem:[#allocation2 + $0x82] sm:$0xff]  ;;  %v2620_v59 = vld [vmem:[%s4049_s3 + $0x3b8] sm:$0xff] }
  0x61   : > { %2039 = vmatpush.msra.mxu0 %v2642_v55 }
  0x62   : > { %616 = vmatmul.f32.gmra.mxu0 %v3280_v24  ;;  %1452 = vmatpush.msra.mxu1 %v2592_v4 }
  0x63   : > { %2040 = vmatpush.msra.mxu0 %v2641_v62 }
  0x64   : > { %643 = vmatmul.f32.gmra.mxu1 %v3265_v16  ;;  %667 = vmatmul.f32.gmra.mxu2 %v3271_v20 }
  0x65   : > { %2041 = vmatpush.msra.mxu0 %v2640_v7  ;;  %1453 = vmatpush.msra.mxu1 %v2591_v14 }
  0x66   : > { %691 = vmatmul.f32.gmra.mxu3 %v401_v8  ;;  %v1013_v8 = vld [vmem:[#allocation2 + $0x78] sm:$0xff] }
  0x67   : > { %2042 = vmatpush.msra.mxu0 %v2639_v21 }
  0x69   : > { %2043 = vmatpush.msra.mxu0 %v2638_v35 }
  0x6a   : > { %619 = vmatmul.f32.gmra.mxu0 %v3295_v29 }
  0x6c   : > { %711 = vmatmul.f32.vlgmr.msrb.gmra.mxu1 %v480_v44  ;;  %875 = vmatmul.f32.vlgmr.msrb.gmra.mxu2 %v808_v45 }
  0x6e   : > { %1072 = vmatmul.f32.vlgmr.msrb.gmra.mxu3 %v1005_v46 }
  0x72   : > { %1268 = vmatmul.f32.vlgmr.msrb.gmra.mxu0 %v3087_v47  ;;  %v2609_v47 = vld [vmem:[%s4049_s3 + $0x360] sm:$0xff] }
  0x73   : > { %1648 = vmatpush.msra.mxu2 %v2609_v47  ;;  %v820_v47 = vld [vmem:[#allocation2 + $0x92] sm:$0xff] }
  0x74   : > { %714 = vmatmul.f32.gmra.mxu1 %v2752_v3  ;;  %878 = vmatmul.f32.gmra.mxu2 %v809_v52  ;;  %v2625_v3 = vld [vmem:[%s4049_s3 + $0x3e0] sm:$0xff] }
  0x75   : > { %1844 = vmatpush.msra.mxu3 %v2625_v3  ;;  %1649 = vmatpush.msra.mxu2 %v2608_v2  ;;  %v2637_v52 = vld [vmem:[%s4049_s3 + $0x440] sm:$0xff]  ;;  %v2604_v3 = vld [vmem:[%s4049_s3 + $0x338] sm:$0xff]  ;;  %v1018_v2 = vld [vmem:[#allocation2 + $0xb0] sm:$0xff] }
  0x76   : > { %1075 = vmatmul.f32.gmra.mxu3 %v1006_v54  ;;  %2044 = vmatpush.msra.mxu0 %v2637_v52  ;;  %v1217_v52 = vld [vmem:[#allocation2 + $0xd9] sm:$0xff] }
  0x77   : > { %1650 = vmatpush.msra.mxu2 %v2607_v11  ;;  %v2619_v11 = vld [vmem:[%s4049_s3 + $0x3b0] sm:$0xff] }
  0x7a   : > { %1271 = vmatmul.f32.gmra.mxu0 %v3160_v25  ;;  %v811_v25 = vld [vmem:[#allocation2 + $0x22] sm:$0xff] }
  0x7c   : > { %717 = vmatmul.f32.gmra.mxu1 %v1005_v46  ;;  %881 = vmatmul.f32.gmra.mxu2 %v810_v56 }
  0x7e   : > { %1078 = vmatmul.f32.gmra.mxu3 %v1007_v57 }
  0x82   : > { %1274 = vmatmul.f32.gmra.mxu0 %v3205_v50  ;;  %v2624_v50 = vld [vmem:[%s4049_s3 + $0x3d8] sm:$0xff] }
  0x83   : > { %1845 = vmatpush.msra.mxu3 %v2624_v50  ;;  %v2636_v50 = vld [vmem:[%s4049_s3 + $0x438] sm:$0xff] }
  0x84   : > { %720 = vmatmul.f32.gmra.mxu1 %v1006_v54  ;;  %884 = vmatmul.f32.gmra.mxu2 %v811_v25 }
  0x85   : > { %1846 = vmatpush.msra.mxu3 %v2623_v13  ;;  %2045 = vmatpush.msra.mxu0 %v2636_v50 }
  0x86   : > { %1081 = vmatmul.f32.gmra.mxu3 %v1008_v61 }
  0x87   : > { %1847 = vmatpush.msra.mxu3 %v2622_v26 }
  0x89   : > { %1848 = vmatpush.msra.mxu3 %v2621_v42 }
  0x8a   : > { %1277 = vmatmul.f32.gmra.mxu0 %v3244_v6  ;;  %v813_v6 = vld [vmem:[#allocation2 + $0x3a] sm:$0xff] }
  0x8b   : > { %1849 = vmatpush.msra.mxu3 %v2620_v59 }
  0x8c   : > { %723 = vmatmul.f32.gmra.mxu1 %v1007_v57  ;;  %887 = vmatmul.f32.gmra.mxu2 %v812_v63 }
  0x8d   : > { %1850 = vmatpush.msra.mxu3 %v2619_v11 }
  0x8e   : > { %1084 = vmatmul.f32.gmra.mxu3 %v1009_v1 }
  0x92   : > { %1280 = vmatmul.f32.gmra.mxu0 %v3280_v24  ;;  %v816_v24 = vld [vmem:[#allocation2 + $0x62] sm:$0xff] }
  0x94   : > { %726 = vmatmul.f32.gmra.mxu1 %v1008_v61  ;;  %890 = vmatmul.f32.gmra.mxu2 %v813_v6 }
  0x96   : > { %1087 = vmatmul.f32.gmra.mxu3 %v1010_v5 }
  0x9a   : > { %1283 = vmatmul.f32.gmra.mxu0 %v3295_v29 }
  0x9c   : > { %729 = vmatmul.f32.gmra.mxu1 %v1009_v1  ;;  %893 = vmatmul.f32.gmra.mxu2 %v814_v9  ;;  %v821_v1 = vld [vmem:[#allocation2 + $0x9a] sm:$0xff]  ;;  %v822_v9 = vld [vmem:[#allocation2 + $0xaa] sm:$0xff] }
  0x9e   : > { %1090 = vmatmul.f32.gmra.mxu3 %v1011_v10 }
  0xa2   : > { %1286 = vmatmul.f32.gmra.mxu0 %v2867_v22  ;;  %v2606_v22 = vld [vmem:[%s4049_s3 + $0x348] sm:$0xff] }
  0xa3   : > { %1651 = vmatpush.msra.mxu2 %v2606_v22  ;;  %v2635_v22 = vld [vmem:[%s4049_s3 + $0x430] sm:$0xff] }
  0xa4   : > { %732 = vmatmul.f32.gmra.mxu1 %v1010_v5  ;;  %896 = vmatmul.f32.gmra.mxu2 %v815_v17  ;;  %v1215_v17 = vld [vmem:[#allocation2 + $0xc1] sm:$0xff] }
  0xa5   : > { %1652 = vmatpush.msra.mxu2 %v2605_v41  ;;  %2046 = vmatpush.msra.mxu0 %v2635_v22  ;;  %v2602_v41 = vld [vmem:[%s4049_s3 + $0x328] sm:$0xff] }
  0xa6   : > { %1093 = vmatmul.f32.gmra.mxu3 %v1012_v19 }
  0xa7   : > { %1653 = vmatpush.msra.mxu2 %v2604_v3 }
  0xa9   : > { %v3398_v23 = vpop.f32.mrf.mxu1 }
  0xaa   : > { %1289 = vmatmul.f32.gmra.mxu0 %v2887_v30  ;;  %v2590_v30 = vld [vmem:[%s4049_s3 + $0x2c8] sm:$0xff] }
  0xab   : > { %1454 = vmatpush.msra.mxu1 %v2590_v30 }
  0xac   : > { %735 = vmatmul.f32.gmra.mxu1 %v1011_v10  ;;  %899 = vmatmul.f32.gmra.mxu2 %v816_v24  ;;  %v2603_v10 = vld [vmem:[%s4049_s3 + $0x330] sm:$0xff] }
  0xad   : > { %1654 = vmatpush.msra.mxu2 %v2603_v10  ;;  %v823_v24 = vld [vmem:[#allocation2 + $0xb2] sm:$0xff] }
  0xae   : > { %1096 = vmatmul.f32.gmra.mxu3 %v1013_v8 }
  0xaf   : > { %v3407_v27 = vpop.f32.mrf.mxu2  ;;  %v3409_v28 = vpop.f32.mrf.mxu0  ;;  %1655 = vmatpush.msra.mxu2 %v2602_v41 }
  0xb1   : > { %v3414_v29 = vpop.f32.mrf.mxu1  ;;  %v3416_v31 = vpop.f32.mrf.mxu3 }
  0xb2   : > { %1292 = vmatmul.f32.gmra.mxu0 %v3030_v15  ;;  %v1015_v15 = vld [vmem:[#allocation2 + $0x90] sm:$0xff] }
  0xb4   : > { %738 = vmatmul.f32.gmra.mxu1 %v1012_v19  ;;  %902 = vmatmul.f32.gmra.mxu2 %v817_v32  ;;  %v1216_v32 = vld [vmem:[#allocation2 + $0xc9] sm:$0xff] }
  0xb6   : > { %1099 = vmatmul.f32.gmra.mxu3 %v1014_v34 }
  0xb7   : > { %v3422_v36 = vpop.f32.mrf.mxu2  ;;  %v3424_v37 = vpop.f32.mrf.mxu0 }
  0xb9   : > { %v3426_v33 = vpop.f32.mrf.mxu1  ;;  %v3428_v39 = vpop.f32.mrf.mxu3 }
  0xba   : > { %1295 = vmatmul.f32.gmra.mxu0 %v3100_v53  ;;  %v2589_v53 = vld [vmem:[%s4049_s3 + $0x2c0] sm:$0xff] }
  0xbb   : > { %1455 = vmatpush.msra.mxu1 %v2589_v53  ;;  %v2618_v53 = vld [vmem:[%s4049_s3 + $0x3a8] sm:$0xff] }
  0xbc   : > { %741 = vmatmul.f32.gmra.mxu1 %v1013_v8  ;;  %905 = vmatmul.f32.gmra.mxu2 %v818_v40  ;;  %v1020_v8 = vld [vmem:[#allocation2 + $0xc8] sm:$0xff] }
  0xbd   : > { %v824_v40 = vld [vmem:[#allocation2 + $0xc2] sm:$0xff]  ;;  %1851 = vmatpush.msra.mxu3 %v2618_v53 }
  0xbe   : > { %1102 = vmatmul.f32.gmra.mxu3 %v1015_v15 }
  0xbf   : > { %v3437_v44 = vpop.f32.mrf.mxu2  ;;  %v3439_v45 = vpop.f32.mrf.mxu0 }
  0xc1   : > { %v3444_v46 = vpop.f32.mrf.mxu1  ;;  %v3446_v48 = vpop.f32.mrf.mxu3 }
  0xc2   : > { %1298 = vmatmul.f32.gmra.mxu0 %v3138_v12  ;;  %v1017_v12 = vld [vmem:[#allocation2 + $0xa8] sm:$0xff] }
  0xc4   : > { %744 = vmatmul.f32.gmra.mxu1 %v1014_v34  ;;  %908 = vmatmul.f32.gmra.mxu2 %v819_v49 }
  0xc6   : > { %1105 = vmatmul.f32.gmra.mxu3 %v1016_v51 }
  0xc7   : > { %v3452_v54 = vpop.f32.mrf.mxu2  ;;  %v3454_v55 = vpop.f32.mrf.mxu0 }
  0xc9   : > { %v3456_v56 = vpop.f32.mrf.mxu1  ;;  %v3458_v57 = vpop.f32.mrf.mxu3 }
  0xca   : > { %1301 = vmatmul.f32.gmra.mxu0 %v3185_v38  ;;  %v2588_v38 = vld [vmem:[%s4049_s3 + $0x2b8] sm:$0xff] }
  0xcb   : > { %1456 = vmatpush.msra.mxu1 %v2588_v38  ;;  %v825_v38 = vld [vmem:[#allocation2 + $0xca] sm:$0xff] }
  0xcc   : > { %747 = vmatmul.f32.gmra.mxu1 %v1015_v15  ;;  %911 = vmatmul.f32.gmra.mxu2 %v820_v47  ;;  %v1021_v15 = vld [vmem:[#allocation2 + $0xd8] sm:$0xff] }
  0xce   : > { %1108 = vmatmul.f32.gmra.mxu3 %v1017_v12 }
  0xcf   : > { %v3467_v25 = vpop.f32.mrf.mxu2  ;;  %v3469_v61 = vpop.f32.mrf.mxu0 }
  0xd1   : > { %v3474_v62 = vpop.f32.mrf.mxu1  ;;  %v3476_v63 = vpop.f32.mrf.mxu3 }
  0xd2   : > { %1304 = vmatmul.f32.gmra.mxu0 %v3223_v60  ;;  %v1019_v60 = vld [vmem:[#allocation2 + $0xc0] sm:$0xff] }
  0xd4   : > { %750 = vmatmul.f32.gmra.mxu1 %v1016_v51  ;;  %914 = vmatmul.f32.gmra.mxu2 %v821_v1 }
  0xd6   : > { %1111 = vmatmul.f32.gmra.mxu3 %v1018_v2 }
  0xd7   : > { %v3482_v4 = vpop.f32.mrf.mxu2  ;;  %v3484_v6 = vpop.f32.mrf.mxu0 }
  0xd9   : > { %v3486_v5 = vpop.f32.mrf.mxu1  ;;  %v3488_v7 = vpop.f32.mrf.mxu3 }
  0xda   : > { %1307 = vmatmul.f32.gmra.mxu0 %v3265_v16  ;;  %v2587_v16 = vld [vmem:[%s4049_s3 + $0x2b0] sm:$0xff] }
  0xdb   : > { %1457 = vmatpush.msra.mxu1 %v2587_v16 }
  0xdc   : > { %753 = vmatmul.f32.gmra.mxu1 %v1017_v12  ;;  %917 = vmatmul.f32.gmra.mxu2 %v822_v9  ;;  %v2586_v12 = vld [vmem:[%s4049_s3 + $0x2a8] sm:$0xff] }
  0xdd   : > { %1458 = vmatpush.msra.mxu1 %v2586_v12  ;;  %v2634_v9 = vld [vmem:[%s4049_s3 + $0x428] sm:$0xff] }
  0xde   : > { %1114 = vmatmul.f32.gmra.mxu3 %v1019_v60  ;;  %2047 = vmatpush.msra.mxu0 %v2634_v9 }
  0xdf   : > { %v3497_v13 = vpop.f32.mrf.mxu2  ;;  %v3499_v14 = vpop.f32.mrf.mxu0 }
  0xe1   : > { %v3504_v19 = vpop.f32.mrf.mxu1  ;;  %v3506_v21 = vpop.f32.mrf.mxu3 }
  0xe2   : > { %1310 = vmatmul.f32.gmra.mxu0 %v1215_v17 }
  0xe4   : > { %756 = vmatmul.f32.gmra.mxu1 %v1018_v2  ;;  %920 = vmatmul.f32.gmra.mxu2 %v823_v24  ;;  %v826_v24 = vld [vmem:[#allocation2 + $0xda] sm:$0xff] }
  0xe6   : > { %1117 = vmatmul.f32.gmra.mxu3 %v1020_v8 }
  0xe7   : > { %v3511_v26 = vpop.f32.mrf.mxu2  ;;  %v3513_v30 = vpop.f32.mrf.mxu0 }
  0xe9   : > { %v3515_v34 = vpop.f32.mrf.mxu3  ;;  %v712_v35 = vpop.f32.mrf.mxu1 }
  0xea   : > { %1313 = vmatmul.f32.gmra.mxu0 %v1216_v32  ;;  %v713_v42 = vadd.f32 %v712_v35, %v3409_v28  ;;  %v1022_v28 = vld [vmem:[#allocation2 + $0xe0] sm:$0xff]  ;;  %v1023_v32 = vld [vmem:[#allocation2 + $0xf0] sm:$0xff] }
  0xec   : > { %759 = vmatmul.f32.gmra.mxu1 %v1019_v60  ;;  %923 = vmatmul.f32.gmra.mxu2 %v824_v40  ;;  %v2617_v40 = vld [vmem:[%s4049_s3 + $0x3a0] sm:$0xff] }
  0xed   : > { %1852 = vmatpush.msra.mxu3 %v2617_v40 }
  0xee   : > { %1120 = vmatmul.f32.gmra.mxu3 %v1021_v15 }
  0xef   : > { %v876_v49 = vpop.f32.mrf.mxu2  ;;  %v1269_v51 = vpop.f32.mrf.mxu0 }
  0xf0   : > { %v972_v47 = vadd.f32 %v876_v49, %v713_v42 }
  0xf1   : > { %v715_v3 = vpop.f32.mrf.mxu1  ;;  %v1073_v59 = vpop.f32.mrf.mxu3 }
  0xf2   : > { %v1169_v1 = vadd.f32 %v1073_v59, %v972_v47  ;;  %1316 = vmatmul.f32.gmra.mxu0 %v1217_v52  ;;  %v716_v50 = vadd.f32 %v715_v3, %v3424_v37  ;;  %v2601_v37 = vld [vmem:[%s4049_s3 + $0x320] sm:$0xff] }
  0xf3   : > { %1656 = vmatpush.msra.mxu2 %v2601_v37  ;;  %v2633_v3 = vld [vmem:[%s4049_s3 + $0x420] sm:$0xff] }
  0xf4   : > { %v3527_v2 = vadd.f32 %v1269_v51, %v1169_v1  ;;  %762 = vmatmul.f32.gmra.mxu1 %v1020_v8  ;;  %926 = vmatmul.f32.gmra.mxu2 %v825_v38  ;;  %v827_v51 = vld [vmem:[#allocation2 + $0xe2] sm:$0xff] }
  0xf5   : > { %2048 = vmatpush.msra.mxu0 %v2633_v3  ;;  %v1027_v3 = vld [vmem:[#allocation2 + $0x120] sm:$0xff] }
  0xf6   : > { %1123 = vmatmul.f32.gmra.mxu3 %v1022_v28 }
  0xf7   : > { %v879_v60 = vpop.f32.mrf.mxu2  ;;  %v1272_v10 = vpop.f32.mrf.mxu0 }
  0xf8   : > { %v973_v11 = vadd.f32 %v879_v60, %v716_v50  ;;  %v828_v60 = vld [vmem:[#allocation2 + $0xf2] sm:$0xff] }
  0xf9   : > { %v718_v17 = vpop.f32.mrf.mxu1  ;;  %v1076_v16 = vpop.f32.mrf.mxu3 }
  0xfa   : > { %v1170_v22 = vadd.f32 %v1076_v16, %v973_v11  ;;  %1319 = vmatmul.f32.gmra.mxu0 %v3108_v58  ;;  %v719_v35 = vadd.f32 %v718_v17, %v3439_v45  ;;  %v1024_v45 = vld [vmem:[#allocation2 + $0xf8] sm:$0xff] }
  0xfb   : > { %v2616_v17 = vld [vmem:[%s4049_s3 + $0x398] sm:$0xff] }
  0xfc   : > { %v3534_v8 = vadd.f32 %v1272_v10, %v1170_v22  ;;  %765 = vmatmul.f32.gmra.mxu1 %v1021_v15  ;;  %929 = vmatmul.f32.gmra.mxu2 %v826_v24  ;;  %v2585_v15 = vld [vmem:[%s4049_s3 + $0x2a0] sm:$0xff]  ;;  %v1025_v10 = vld [vmem:[#allocation2 + $0x108] sm:$0xff]  ;;  %v2584_v22 = vld [vmem:[%s4049_s3 + $0x298] sm:$0xff] }
  0xfd   : > { %1459 = vmatpush.msra.mxu1 %v2585_v15  ;;  %1853 = vmatpush.msra.mxu3 %v2616_v17 }
  0xfe   : > { %1126 = vmatmul.f32.gmra.mxu3 %v1023_v32 }
  0xff   : > { %v882_v41 = vpop.f32.mrf.mxu2  ;;  %v1275_v42 = vpop.f32.mrf.mxu0  ;;  %1460 = vmatpush.msra.mxu1 %v2584_v22 }
 0x100   : > { %v974_v58 = vadd.f32 %v882_v41, %v719_v35  ;;  %v829_v35 = vld [vmem:[#allocation2 + $0xfa] sm:$0xff] }
 0x101   : > { %v721_v53 = vpop.f32.mrf.mxu1  ;;  %v1079_v49 = vpop.f32.mrf.mxu3 }
 0x102   : > { %v1171_v52 = vadd.f32 %v1079_v49, %v974_v58  ;;  %1322 = vmatmul.f32.gmra.mxu0 %v3148_v18  ;;  %v722_v12 = vadd.f32 %v721_v53, %v3454_v55  ;;  %v2600_v55 = vld [vmem:[%s4049_s3 + $0x318] sm:$0xff] }
 0x103   : > { %1657 = vmatpush.msra.mxu2 %v2600_v55  ;;  %v2632_v58 = vld [vmem:[%s4049_s3 + $0x418] sm:$0xff] }
 0x104   : > { %v3547_v47 = vadd.f32 %v1275_v42, %v1171_v52  ;;  %768 = vmatmul.f32.gmra.mxu1 %v1022_v28  ;;  %932 = vmatmul.f32.gmra.mxu2 %v827_v51  ;;  %v831_v55 = vld [vmem:[#allocation2 + $0x112] sm:$0xff] }
 0x105   : > { %2049 = vmatpush.msra.mxu0 %v2632_v58 }
 0x106   : > { %1129 = vmatmul.f32.gmra.mxu3 %v1024_v45 }
 0x107   : > { %v885_v59 = vpop.f32.mrf.mxu2  ;;  %v1278_v38 = vpop.f32.mrf.mxu0 }
 0x108   : > { %v975_v1 = vadd.f32 %v885_v59, %v722_v12  ;;  %v830_v12 = vld [vmem:[#allocation2 + $0x10a] sm:$0xff] }
 0x109   : > { %v724_v50 = vpop.f32.mrf.mxu1  ;;  %v1082_v9 = vpop.f32.mrf.mxu3 }
 0x10a   : > { %v1172_v18 = vadd.f32 %v1082_v9, %v975_v1  ;;  %1325 = vmatmul.f32.gmra.mxu0 %v3193_v43  ;;  %v725_v11 = vadd.f32 %v724_v50, %v3469_v61  ;;  %v1026_v61 = vld [vmem:[#allocation2 + $0x110] sm:$0xff] }
 0x10c   : > { %v3554_v28 = vadd.f32 %v1278_v38, %v1172_v18  ;;  %771 = vmatmul.f32.gmra.mxu1 %v1023_v32  ;;  %935 = vmatmul.f32.gmra.mxu2 %v828_v60  ;;  %v2615_v38 = vld [vmem:[%s4049_s3 + $0x390] sm:$0xff] }
 0x10d   : > { %1854 = vmatpush.msra.mxu3 %v2615_v38  ;;  %v2583_v60 = vld [vmem:[%s4049_s3 + $0x290] sm:$0xff] }
 0x10e   : > { %1132 = vmatmul.f32.gmra.mxu3 %v1025_v10  ;;  %1461 = vmatpush.msra.mxu1 %v2583_v60 }
 0x10f   : > { %v888_v16 = vpop.f32.mrf.mxu2  ;;  %v1281_v24 = vpop.f32.mrf.mxu0 }
 0x110   : > { %v976_v43 = vadd.f32 %v888_v16, %v725_v11 }
 0x111   : > { %v727_v32 = vpop.f32.mrf.mxu1  ;;  %v1085_v37 = vpop.f32.mrf.mxu3 }
 0x112   : > { %v1173_v40 = vadd.f32 %v1085_v37, %v976_v43  ;;  %1328 = vmatmul.f32.gmra.mxu0 %v3234_v0  ;;  %v728_v42 = vadd.f32 %v727_v32, %v3484_v6  ;;  %v2599_v6 = vld [vmem:[%s4049_s3 + $0x310] sm:$0xff] }
 0x113   : > { %1658 = vmatpush.msra.mxu2 %v2599_v6  ;;  %v3592_v32 = vld [vmem:[#allocation2 + $0x129] sm:$0xff] }
 0x114   : > { %v3567_v41 = vadd.f32 %v1281_v24, %v1173_v40  ;;  %774 = vmatmul.f32.gmra.mxu1 %v1024_v45  ;;  %938 = vmatmul.f32.gmra.mxu2 %v829_v35  ;;  %v2631_v24 = vld [vmem:[%s4049_s3 + $0x410] sm:$0xff]  ;;  %v2582_v6 = vld [vmem:[%s4049_s3 + $0x288] sm:$0xff] }
 0x115   : > { %2050 = vmatpush.msra.mxu0 %v2631_v24  ;;  %1462 = vmatpush.msra.mxu1 %v2582_v6 }
 0x116   : > { %1135 = vmatmul.f32.gmra.mxu3 %v1026_v61 }
 0x117   : > { %v891_v15 = vpop.f32.mrf.mxu2  ;;  %v1284_v53 = vpop.f32.mrf.mxu0 }
 0x118   : > { %v977_v49 = vadd.f32 %v891_v15, %v728_v42  ;;  %v832_v42 = vld [vmem:[#allocation2 + $0x122] sm:$0xff] }
 0x119   : > { %v730_v51 = vpop.f32.mrf.mxu1  ;;  %v1088_v52 = vpop.f32.mrf.mxu3  ;;  %v2598_v15 = vld [vmem:[%s4049_s3 + $0x308] sm:$0xff] }
 0x11a   : > { %v1174_v0 = vadd.f32 %v1088_v52, %v977_v49  ;;  %1331 = vmatmul.f32.gmra.mxu0 %v3271_v20  ;;  %v731_v59 = vadd.f32 %v730_v51, %v3499_v14  ;;  %v1223_v20 = vld [vmem:[#allocation2 + $0x121] sm:$0xff]  ;;  %1659 = vmatpush.msra.mxu2 %v2598_v15 }
 0x11b   : > { %v1028_v14 = vld [vmem:[#allocation2 + $0x128] sm:$0xff] }
 0x11c   : > { %v3574_v45 = vadd.f32 %v1284_v53, %v1174_v0  ;;  %777 = vmatmul.f32.gmra.mxu1 %v1025_v10  ;;  %941 = vmatmul.f32.gmra.mxu2 %v830_v12  ;;  %v2614_v49 = vld [vmem:[%s4049_s3 + $0x388] sm:$0xff]  ;;  %v3604_v12 = vld [vmem:[#allocation2 + $0x139] sm:$0xff]  ;;  %v298_v0 = vld [vmem:[%s2827_s10 + $0xf0] sm:$0xff] }
 0x11d   : > { %1855 = vmatpush.msra.mxu3 %v2614_v49 }
 0x11e   : > { %1138 = vmatmul.f32.gmra.mxu3 %v1027_v3 }
 0x11f   : > { %v894_v1 = vpop.f32.mrf.mxu2  ;;  %v1287_v50 = vpop.f32.mrf.mxu0 }
 0x120   : > { %v978_v9 = vadd.f32 %v894_v1, %v731_v59 }
 0x121   : > { %v733_v18 = vpop.f32.mrf.mxu1  ;;  %v1091_v10 = vpop.f32.mrf.mxu3 }
 0x122   : > { %v1175_v11 = vadd.f32 %v1091_v10, %v978_v9  ;;  %1334 = vmatmul.f32.gmra.mxu0 %v1223_v20  ;;  %v734_v16 = vadd.f32 %v733_v18, %v3513_v30  ;;  %v2725_v9 = vld [vmem:[%s4048_s2] ss:$0 sm:$0xff] }
 0x123   : > { %v1030_v18 = vld [vmem:[#allocation2 + $0x140] sm:$0xff] }
 0x124   : > { %v3586_v17 = vadd.f32 %v1287_v50, %v1175_v11  ;;  %780 = vmatmul.f32.gmra.mxu1 %v1026_v61  ;;  %944 = vmatmul.f32.gmra.mxu2 %v831_v55  ;;  %v1029_v61 = vld [vmem:[#allocation2 + $0x138] sm:$0xff]  ;;  %v833_v50 = vld [vmem:[#allocation2 + $0x12a] sm:$0xff] }
 0x126   : > { %1141 = vmatmul.f32.gmra.mxu3 %v1028_v14 }
 0x127   : > { %v897_v43 = vpop.f32.mrf.mxu2  ;;  %v1290_v22 = vpop.f32.mrf.mxu0 }
 0x128   : > { %v979_v37 = vadd.f32 %v897_v43, %v734_v16  ;;  %v2630_v16 = vld [vmem:[%s4049_s3 + $0x408] sm:$0xff] }
 0x129   : > { %v736_v35 = vpop.f32.mrf.mxu1  ;;  %v1094_v40 = vpop.f32.mrf.mxu3  ;;  %2051 = vmatpush.msra.mxu0 %v2630_v16 }
 0x12a   : > { %v1176_v58 = vadd.f32 %v1094_v40, %v979_v37  ;;  %1337 = vmatmul.f32.gmra.mxu0 %v3592_v32  ;;  %v737_v53 = vadd.f32 %v736_v35, %v3398_v23  ;;  %v2724_v23 = vld [vmem:[%s4047_s1] ss:$0 sm:$0xff]  ;;  %v299_v37 = vld [vmem:[%s2827_s10 + $0xf8] sm:$0xff] }
 0x12b   : > { %v334_v59 = vmul.f32 %v2724_v23, %v298_v0  ;;  %v335_v35 = vmul.f32 %v2724_v23, %v299_v37  ;;  %v3646_v23 = vld [vmem:[#allocation2 + $0x151] sm:$0xff] }
 0x12c   : > { %v3595_v30 = vadd.f32 %v1290_v22, %v1176_v58  ;;  %783 = vmatmul.f32.gmra.mxu1 %v1027_v3  ;;  %947 = vmatmul.f32.gmra.mxu2 %v832_v42  ;;  %v3628_v22 = vld [vmem:[#allocation2 + $0x141] sm:$0xff] }
 0x12d   : > { %v3617_v60 = vadd.f32 %v2725_v9, %v334_v59  ;;  %v834_v58 = vld [vmem:[#allocation2 + $0x13a] sm:$0xff]  ;;  %v3632_v15 = vadd.f32 %v2725_v9, %v335_v35 }
 0x12e   : > { %1144 = vmatmul.f32.gmra.mxu3 %v1029_v61  ;;  %v1032_v9 = vld [vmem:[#allocation2 + $0x158] sm:$0xff] }
 0x12f   : > { %v900_v51 = vpop.f32.mrf.mxu2  ;;  %v1293_v52 = vpop.f32.mrf.mxu0  ;;  %v402_v55 = vmax.f32 %v3617_v60, 0.0 }
 0x130   : > { %v980_v3 = vadd.f32 %v900_v51, %v737_v53  ;;  %v1031_v53 = vld [vmem:[#allocation2 + $0x150] sm:$0xff]  ;;  %v2597_v51 = vld [vmem:[%s4049_s3 + $0x300] sm:$0xff] }
 0x131   : > { %v739_v38 = vpop.f32.mrf.mxu1  ;;  %v1097_v1 = vpop.f32.mrf.mxu3  ;;  %478 = vst [vmem:[#allocation2 + $0x181] sm:$0xff] %v402_v55  ;;  %1660 = vmatpush.msra.mxu2 %v2597_v51 }
 0x132   : > { %v1177_v20 = vadd.f32 %v1097_v1, %v980_v3  ;;  %1340 = vmatmul.f32.gmra.mxu0 %v3604_v12  ;;  %v740_v11 = vadd.f32 %v739_v38, %v3414_v29  ;;  %v2613_v3 = vld [vmem:[%s4049_s3 + $0x380] sm:$0xff] }
 0x133   : > { %1856 = vmatpush.msra.mxu3 %v2613_v3  ;;  %v2581_v38 = vld [vmem:[%s4049_s3 + $0x280] sm:$0xff] }
 0x134   : > { %v3619_v10 = vadd.f32 %v1293_v52, %v1177_v20  ;;  %786 = vmatmul.f32.gmra.mxu1 %v1028_v14  ;;  %950 = vmatmul.f32.gmra.mxu2 %v833_v50  ;;  %v403_v52 = vmax.f32 %v3632_v15, 0.0  ;;  %v3651_v50 = vld [vmem:[#allocation2 + $0x142] sm:$0xff]  ;;  %v1791_v15 = vld [vmem:[#allocation2 + $0x39] sm:$0xff] }
 0x135   : > { %1463 = vmatpush.msra.mxu1 %v2581_v38 }
 0x136   : > { %1147 = vmatmul.f32.gmra.mxu3 %v1030_v18  ;;  %479 = vst [vmem:[#allocation2 + $0x189] sm:$0xff] %v403_v52 }
 0x137   : > { %v903_v24 = vpop.f32.mrf.mxu2  ;;  %v1296_v43 = vpop.f32.mrf.mxu0 }
 0x138   : > { %v981_v14 = vadd.f32 %v903_v24, %v740_v11  ;;  %v2629_v24 = vld [vmem:[%s4049_s3 + $0x400] sm:$0xff] }
 0x139   : > { %v742_v40 = vpop.f32.mrf.mxu1  ;;  %v1100_v42 = vpop.f32.mrf.mxu3  ;;  %2052 = vmatpush.msra.mxu0 %v2629_v24 }
 0x13a   : > { %v1178_v29 = vadd.f32 %v1100_v42, %v981_v14  ;;  %1343 = vmatmul.f32.gmra.mxu0 %v3628_v22  ;;  %v743_v0 = vadd.f32 %v742_v40, %v3426_v33  ;;  %v3661_v14 = vld [vmem:[#allocation2 + $0x159] sm:$0xff] }
 0x13c   : > { %v3634_v49 = vadd.f32 %v1296_v43, %v1178_v29  ;;  %789 = vmatmul.f32.gmra.mxu1 %v1029_v61  ;;  %953 = vmatmul.f32.gmra.mxu2 %v834_v58  ;;  %v3663_v58 = vld [vmem:[#allocation2 + $0x152] sm:$0xff]  ;;  %v1033_v29 = vld [vmem:[#allocation2 + $0x168] sm:$0xff] }
 0x13e   : > { %1150 = vmatmul.f32.gmra.mxu3 %v1031_v53 }
 0x13f   : > { %v906_v6 = vpop.f32.mrf.mxu2  ;;  %v1299_v61 = vpop.f32.mrf.mxu0 }
 0x140   : > { %v982_v59 = vadd.f32 %v906_v6, %v743_v0  ;;  %v3670_v6 = vld [vmem:[#allocation2 + $0x169] sm:$0xff] }
 0x141   : > { %v745_v1 = vpop.f32.mrf.mxu1  ;;  %v1103_v33 = vpop.f32.mrf.mxu3 }
 0x142   : > { %v1179_v20 = vadd.f32 %v1103_v33, %v982_v59  ;;  %1346 = vmatmul.f32.gmra.mxu0 %v3646_v23  ;;  %v746_v16 = vadd.f32 %v745_v1, %v3444_v46  ;;  %v3672_v1 = vld [vmem:[#allocation2 + $0x15a] sm:$0xff] }
 0x144   : > { %v3654_v11 = vadd.f32 %v1299_v61, %v1179_v20  ;;  %792 = vmatmul.f32.gmra.mxu1 %v1030_v18  ;;  %956 = vmatmul.f32.gmra.mxu2 %v3651_v50  ;;  %v1034_v20 = vld [vmem:[#allocation2 + $0x170] sm:$0xff] }
 0x146   : > { %1153 = vmatmul.f32.gmra.mxu3 %v1032_v9 }
 0x147   : > { %v909_v43 = vpop.f32.mrf.mxu2  ;;  %v1302_v37 = vpop.f32.mrf.mxu0 }
 0x148   : > { %v983_v35 = vadd.f32 %v909_v43, %v746_v16  ;;  %v3679_v43 = vld [vmem:[#allocation2 + $0x171] sm:$0xff] }
 0x149   : > { %v748_v40 = vpop.f32.mrf.mxu1  ;;  %v1106_v42 = vpop.f32.mrf.mxu3 }
 0x14a   : > { %v1180_v18 = vadd.f32 %v1106_v42, %v983_v35  ;;  %1349 = vmatmul.f32.gmra.mxu0 %v3661_v14  ;;  %v749_v51 = vadd.f32 %v748_v40, %v3456_v56  ;;  %v3681_v42 = vld [vmem:[#allocation2 + $0x16a] sm:$0xff] }
 0x14c   : > { %v3666_v46 = vadd.f32 %v1302_v37, %v1180_v18  ;;  %795 = vmatmul.f32.gmra.mxu1 %v1031_v53  ;;  %959 = vmatmul.f32.gmra.mxu2 %v3663_v58 }
 0x14e   : > { %1156 = vmatmul.f32.gmra.mxu3 %v1033_v29 }
 0x14f   : > { %v912_v0 = vpop.f32.mrf.mxu2  ;;  %v1305_v3 = vpop.f32.mrf.mxu0 }
 0x150   : > { %v984_v61 = vadd.f32 %v912_v0, %v749_v51  ;;  %v1035_v51 = vld [vmem:[#allocation2 + $0x180] sm:$0xff] }
 0x151   : > { %v751_v59 = vpop.f32.mrf.mxu1  ;;  %v1109_v38 = vpop.f32.mrf.mxu3 }
 0x152   : > { %v1181_v33 = vadd.f32 %v1109_v38, %v984_v61  ;;  %1352 = vmatmul.f32.gmra.mxu0 %v3670_v6  ;;  %v752_v56 = vadd.f32 %v751_v59, %v3474_v62 }
 0x154   : > { %v3675_v16 = vadd.f32 %v1305_v3, %v1181_v33  ;;  %798 = vmatmul.f32.gmra.mxu1 %v1032_v9  ;;  %962 = vmatmul.f32.gmra.mxu2 %v3672_v1  ;;  %v3688_v33 = vld [vmem:[#allocation2 + $0x172] sm:$0xff] }
 0x156   : > { %1159 = vmatmul.f32.gmra.mxu3 %v1034_v20 }
 0x157   : > { %v915_v53 = vpop.f32.mrf.mxu2  ;;  %v1308_v24 = vpop.f32.mrf.mxu0 }
 0x158   : > { %v985_v37 = vadd.f32 %v915_v53, %v752_v56  ;;  %v3692_v53 = vld [vmem:[#allocation2 + $0x188] sm:$0xff] }
 0x159   : > { %v754_v35 = vpop.f32.mrf.mxu1  ;;  %v1112_v40 = vpop.f32.mrf.mxu3 }
 0x15a   : > { %v1182_v18 = vadd.f32 %v1112_v40, %v985_v37  ;;  %1355 = vmatmul.f32.gmra.mxu0 %v3679_v43  ;;  %v755_v62 = vadd.f32 %v754_v35, %v3486_v5 }
 0x15c   : > { %v3684_v0 = vadd.f32 %v1308_v24, %v1182_v18  ;;  %801 = vmatmul.f32.gmra.mxu1 %v1033_v29  ;;  %965 = vmatmul.f32.gmra.mxu2 %v3681_v42 }
 0x15e   : > { %1162 = vmatmul.f32.gmra.mxu3 %v1035_v51  ;;  %v1397_v51 = vld [vmem:[#allocation2 + $0x1a] sm:$0xff] }
 0x15f   : > { %v918_v9 = vpop.f32.mrf.mxu2  ;;  %v1311_v3 = vpop.f32.mrf.mxu0 }
 0x160   : > { %v986_v61 = vadd.f32 %v918_v9, %v755_v62  ;;  %v1594_v62 = vld [vmem:[#allocation2 + $0x30] sm:$0xff] }
 0x161   : > { %v757_v59 = vpop.f32.mrf.mxu1  ;;  %v1115_v38 = vpop.f32.mrf.mxu3 }
 0x162   : > { %v1183_v56 = vadd.f32 %v1115_v38, %v986_v61  ;;  %1358 = vmatmul.f32.gmra.mxu0 %v402_v55  ;;  %v758_v5 = vadd.f32 %v757_v59, %v3504_v19  ;;  %v1790_v55 = vld [vmem:[#allocation2 + $0x31] sm:$0xff] }
 0x163   : > { %v1986_v61 = vld [vmem:[#allocation2 + $0x32] sm:$0xff] }
 0x164   : > { %v3694_v24 = vadd.f32 %v1311_v3, %v1183_v56  ;;  %804 = vmatmul.f32.gmra.mxu1 %v1034_v20  ;;  %968 = vmatmul.f32.gmra.mxu2 %v3688_v33 }
 0x166   : > { %1165 = vmatmul.f32.gmra.mxu3 %v3692_v53 }
 0x167   : > { %v921_v29 = vpop.f32.mrf.mxu2  ;;  %v1314_v37 = vpop.f32.mrf.mxu0 }
 0x168   : > { %v987_v35 = vadd.f32 %v921_v29, %v758_v5  ;;  %v1398_v5 = vld [vmem:[#allocation2 + $0x22] sm:$0xff]  ;;  %v1595_v29 = vld [vmem:[#allocation2 + $0x38] sm:$0xff] }
 0x169   : > { %v760_v40 = vpop.f32.mrf.mxu1  ;;  %v1118_v18 = vpop.f32.mrf.mxu3 }
 0x16a   : > { %v1184_v60 = vadd.f32 %v1118_v18, %v987_v35  ;;  %1361 = vmatmul.f32.gmra.mxu0 %v403_v52  ;;  %v761_v19 = vadd.f32 %v760_v40, %v3407_v27  ;;  %v1987_v18 = vld [vmem:[#allocation2 + $0x3a] sm:$0xff] }
 0x16c   : > { %v3701_v9 = vadd.f32 %v1314_v37, %v1184_v60  ;;  %1464 = vmatmul.f32.vlgmr.msra.gmra.mxu1 %v1397_v51  ;;  %1661 = vmatmul.f32.vlgmr.msra.gmra.mxu2 %v1594_v62 }
 0x16e   : > { %1857 = vmatmul.f32.vlgmr.msra.gmra.mxu3 %v1790_v55  ;;  %v1596_v55 = vld [vmem:[#allocation2 + $0x48] sm:$0xff] }
 0x16f   : > { %v924_v20 = vpop.f32.mrf.mxu2  ;;  %v1317_v3 = vpop.f32.mrf.mxu0 }
 0x170   : > { %v988_v59 = vadd.f32 %v924_v20, %v761_v19  ;;  %v1792_v20 = vld [vmem:[#allocation2 + $0x49] sm:$0xff] }
 0x171   : > { %v763_v38 = vpop.f32.mrf.mxu1  ;;  %v1121_v56 = vpop.f32.mrf.mxu3 }
 0x172   : > { %v1185_v35 = vadd.f32 %v1121_v56, %v988_v59  ;;  %2053 = vmatmul.f32.vlgmr.msra.gmra.mxu0 %v1986_v61  ;;  %v764_v37 = vadd.f32 %v763_v38, %v3422_v36  ;;  %v1988_v38 = vld [vmem:[#allocation2 + $0x4a] sm:$0xff] }
 0x174   : > { %v3704_v52 = vadd.f32 %v1317_v3, %v1185_v35  ;;  %1467 = vmatmul.f32.gmra.mxu1 %v1398_v5  ;;  %1664 = vmatmul.f32.gmra.mxu2 %v1595_v29 }
 0x176   : > { %1860 = vmatmul.f32.gmra.mxu3 %v1791_v15  ;;  %v1597_v15 = vld [vmem:[#allocation2 + $0x50] sm:$0xff] }
 0x177   : > { %v927_v27 = vpop.f32.mrf.mxu2  ;;  %v1320_v40 = vpop.f32.mrf.mxu0 }
 0x178   : > { %v989_v51 = vadd.f32 %v927_v27, %v764_v37  ;;  %v1793_v27 = vld [vmem:[#allocation2 + $0x51] sm:$0xff] }
 0x179   : > { %v766_v62 = vpop.f32.mrf.mxu1  ;;  %v1124_v60 = vpop.f32.mrf.mxu3 }
 0x17a   : > { %v1186_v19 = vadd.f32 %v1124_v60, %v989_v51  ;;  %2056 = vmatmul.f32.gmra.mxu0 %v1987_v18  ;;  %v767_v3 = vadd.f32 %v766_v62, %v3437_v44  ;;  %v1989_v62 = vld [vmem:[#allocation2 + $0x52] sm:$0xff] }
 0x17c   : > { %v3707_v59 = vadd.f32 %v1320_v40, %v1186_v19  ;;  %1470 = vmatmul.f32.gmra.mxu1 %v1986_v61  ;;  %1667 = vmatmul.f32.gmra.mxu2 %v1596_v55 }
 0x17e   : > { %1863 = vmatmul.f32.gmra.mxu3 %v1792_v20  ;;  %v1598_v20 = vld [vmem:[#allocation2 + $0x60] sm:$0xff] }
 0x17f   : > { %v930_v56 = vpop.f32.mrf.mxu2  ;;  %v1323_v36 = vpop.f32.mrf.mxu0 }
 0x180   : > { %v990_v5 = vadd.f32 %v930_v56, %v767_v3  ;;  %v1794_v56 = vld [vmem:[#allocation2 + $0x61] sm:$0xff] }
 0x181   : > { %v769_v29 = vpop.f32.mrf.mxu1  ;;  %v1127_v35 = vpop.f32.mrf.mxu3 }
 0x182   : > { %v1187_v37 = vadd.f32 %v1127_v35, %v990_v5  ;;  %2059 = vmatmul.f32.gmra.mxu0 %v1988_v38  ;;  %v770_v61 = vadd.f32 %v769_v29, %v3452_v54  ;;  %v1990_v29 = vld [vmem:[#allocation2 + $0x62] sm:$0xff] }
 0x184   : > { %v3710_v51 = vadd.f32 %v1323_v36, %v1187_v37  ;;  %1473 = vmatmul.f32.gmra.mxu1 %v1987_v18  ;;  %1670 = vmatmul.f32.gmra.mxu2 %v1597_v15 }
 0x186   : > { %1866 = vmatmul.f32.gmra.mxu3 %v1793_v27  ;;  %v1599_v27 = vld [vmem:[#allocation2 + $0x68] sm:$0xff] }
 0x187   : > { %v933_v40 = vpop.f32.mrf.mxu2  ;;  %v1326_v44 = vpop.f32.mrf.mxu0 }
 0x188   : > { %v991_v60 = vadd.f32 %v933_v40, %v770_v61  ;;  %v1795_v40 = vld [vmem:[#allocation2 + $0x69] sm:$0xff] }
 0x189   : > { %v772_v55 = vpop.f32.mrf.mxu1  ;;  %v1130_v19 = vpop.f32.mrf.mxu3 }
 0x18a   : > { %v1188_v3 = vadd.f32 %v1130_v19, %v991_v60  ;;  %2062 = vmatmul.f32.gmra.mxu0 %v1989_v62  ;;  %v773_v18 = vadd.f32 %v772_v55, %v3467_v25  ;;  %v1991_v55 = vld [vmem:[#allocation2 + $0x6a] sm:$0xff] }
 0x18c   : > { %v3713_v5 = vadd.f32 %v1326_v44, %v1188_v3  ;;  %1476 = vmatmul.f32.gmra.mxu1 %v1988_v38  ;;  %1673 = vmatmul.f32.gmra.mxu2 %v1598_v20 }
 0x18e   : > { %1869 = vmatmul.f32.gmra.mxu3 %v1794_v56  ;;  %v1600_v56 = vld [vmem:[#allocation2 + $0x78] sm:$0xff] }
 0x18f   : > { %v936_v36 = vpop.f32.mrf.mxu2  ;;  %v1329_v54 = vpop.f32.mrf.mxu0 }
 0x190   : > { %v992_v35 = vadd.f32 %v936_v36, %v773_v18  ;;  %v1796_v36 = vld [vmem:[#allocation2 + $0x79] sm:$0xff] }
 0x191   : > { %v775_v15 = vpop.f32.mrf.mxu1  ;;  %v1133_v37 = vpop.f32.mrf.mxu3 }
 0x192   : > { %v1189_v61 = vadd.f32 %v1133_v37, %v992_v35  ;;  %2065 = vmatmul.f32.gmra.mxu0 %v1990_v29  ;;  %v776_v38 = vadd.f32 %v775_v15, %v3482_v4  ;;  %v1992_v15 = vld [vmem:[#allocation2 + $0x7a] sm:$0xff] }
 0x194   : > { %v3716_v60 = vadd.f32 %v1329_v54, %v1189_v61  ;;  %1479 = vmatmul.f32.gmra.mxu1 %v1989_v62  ;;  %1676 = vmatmul.f32.gmra.mxu2 %v1599_v27 }
 0x196   : > { %1872 = vmatmul.f32.gmra.mxu3 %v1795_v40  ;;  %v1601_v40 = vld [vmem:[#allocation2 + $0x80] sm:$0xff] }
 0x197   : > { %v939_v44 = vpop.f32.mrf.mxu2  ;;  %v1332_v25 = vpop.f32.mrf.mxu0 }
 0x198   : > { %v993_v19 = vadd.f32 %v939_v44, %v776_v38  ;;  %v1797_v44 = vld [vmem:[#allocation2 + $0x81] sm:$0xff] }
 0x199   : > { %v778_v20 = vpop.f32.mrf.mxu1  ;;  %v1136_v3 = vpop.f32.mrf.mxu3 }
 0x19a   : > { %v1190_v18 = vadd.f32 %v1136_v3, %v993_v19  ;;  %2068 = vmatmul.f32.gmra.mxu0 %v1991_v55  ;;  %v779_v62 = vadd.f32 %v778_v20, %v3497_v13  ;;  %v1993_v20 = vld [vmem:[#allocation2 + $0x82] sm:$0xff] }
 0x19c   : > { %v3719_v35 = vadd.f32 %v1332_v25, %v1190_v18  ;;  %1482 = vmatmul.f32.gmra.mxu1 %v1990_v29  ;;  %1679 = vmatmul.f32.gmra.mxu2 %v1600_v56 }
 0x19e   : > { %1875 = vmatmul.f32.gmra.mxu3 %v1796_v36  ;;  %v1602_v36 = vld [vmem:[#allocation2 + $0x90] sm:$0xff] }
 0x19f   : > { %v942_v54 = vpop.f32.mrf.mxu2  ;;  %v1335_v4 = vpop.f32.mrf.mxu0 }
 0x1a0   : > { %v994_v37 = vadd.f32 %v942_v54, %v779_v62  ;;  %v1798_v54 = vld [vmem:[#allocation2 + $0x91] sm:$0xff] }
 0x1a1   : > { %v781_v27 = vpop.f32.mrf.mxu1  ;;  %v1139_v61 = vpop.f32.mrf.mxu3 }
 0x1a2   : > { %v1191_v38 = vadd.f32 %v1139_v61, %v994_v37  ;;  %2071 = vmatmul.f32.gmra.mxu0 %v1992_v15  ;;  %v782_v29 = vadd.f32 %v781_v27, %v3511_v26  ;;  %v1994_v27 = vld [vmem:[#allocation2 + $0x92] sm:$0xff] }
 0x1a4   : > { %v3722_v19 = vadd.f32 %v1335_v4, %v1191_v38  ;;  %1485 = vmatmul.f32.gmra.mxu1 %v1991_v55  ;;  %1682 = vmatmul.f32.gmra.mxu2 %v1601_v40 }
 0x1a6   : > { %1878 = vmatmul.f32.gmra.mxu3 %v1797_v44  ;;  %v1603_v44 = vld [vmem:[#allocation2 + $0x98] sm:$0xff] }
 0x1a7   : > { %v945_v25 = vpop.f32.mrf.mxu2  ;;  %v1338_v13 = vpop.f32.mrf.mxu0 }
 0x1a8   : > { %v995_v3 = vadd.f32 %v945_v25, %v782_v29  ;;  %v1799_v25 = vld [vmem:[#allocation2 + $0x99] sm:$0xff] }
 0x1a9   : > { %v784_v56 = vpop.f32.mrf.mxu1  ;;  %v1142_v18 = vpop.f32.mrf.mxu3 }
 0x1aa   : > { %v1192_v62 = vadd.f32 %v1142_v18, %v995_v3  ;;  %2074 = vmatmul.f32.gmra.mxu0 %v1993_v20  ;;  %v785_v55 = vadd.f32 %v784_v56, %v3416_v31  ;;  %v1995_v56 = vld [vmem:[#allocation2 + $0x9a] sm:$0xff] }
 0x1ac   : > { %v3725_v37 = vadd.f32 %v1338_v13, %v1192_v62  ;;  %1488 = vmatmul.f32.gmra.mxu1 %v1992_v15  ;;  %1685 = vmatmul.f32.gmra.mxu2 %v1602_v36 }
 0x1ae   : > { %1881 = vmatmul.f32.gmra.mxu3 %v1798_v54  ;;  %v1604_v54 = vld [vmem:[#allocation2 + $0xa8] sm:$0xff] }
 0x1af   : > { %v948_v4 = vpop.f32.mrf.mxu2  ;;  %v1341_v26 = vpop.f32.mrf.mxu0 }
 0x1b0   : > { %v996_v61 = vadd.f32 %v948_v4, %v785_v55  ;;  %v1800_v4 = vld [vmem:[#allocation2 + $0xa9] sm:$0xff] }
 0x1b1   : > { %v787_v40 = vpop.f32.mrf.mxu1  ;;  %v1145_v38 = vpop.f32.mrf.mxu3 }
 0x1b2   : > { %v1193_v29 = vadd.f32 %v1145_v38, %v996_v61  ;;  %2077 = vmatmul.f32.gmra.mxu0 %v1994_v27  ;;  %v788_v15 = vadd.f32 %v787_v40, %v3428_v39  ;;  %v1996_v40 = vld [vmem:[#allocation2 + $0xaa] sm:$0xff] }
 0x1b4   : > { %v3728_v3 = vadd.f32 %v1341_v26, %v1193_v29  ;;  %1491 = vmatmul.f32.gmra.mxu1 %v1993_v20  ;;  %1688 = vmatmul.f32.gmra.mxu2 %v1603_v44 }
 0x1b6   : > { %1884 = vmatmul.f32.gmra.mxu3 %v1799_v25  ;;  %v1605_v25 = vld [vmem:[#allocation2 + $0xb0] sm:$0xff] }
 0x1b7   : > { %v951_v13 = vpop.f32.mrf.mxu2  ;;  %v1344_v31 = vpop.f32.mrf.mxu0 }
 0x1b8   : > { %v997_v18 = vadd.f32 %v951_v13, %v788_v15  ;;  %v1801_v13 = vld [vmem:[#allocation2 + $0xb1] sm:$0xff] }
 0x1b9   : > { %v790_v36 = vpop.f32.mrf.mxu1  ;;  %v1148_v62 = vpop.f32.mrf.mxu3 }
 0x1ba   : > { %v1194_v55 = vadd.f32 %v1148_v62, %v997_v18  ;;  %2080 = vmatmul.f32.gmra.mxu0 %v1995_v56  ;;  %v791_v20 = vadd.f32 %v790_v36, %v3446_v48  ;;  %v1997_v36 = vld [vmem:[#allocation2 + $0xb2] sm:$0xff] }
 0x1bc   : > { %v3731_v61 = vadd.f32 %v1344_v31, %v1194_v55  ;;  %1494 = vmatmul.f32.gmra.mxu1 %v1994_v27  ;;  %1691 = vmatmul.f32.gmra.mxu2 %v1604_v54 }
 0x1be   : > { %1887 = vmatmul.f32.gmra.mxu3 %v1800_v4  ;;  %v1606_v4 = vld [vmem:[#allocation2 + $0xc0] sm:$0xff] }
 0x1bf   : > { %v954_v26 = vpop.f32.mrf.mxu2  ;;  %v1347_v39 = vpop.f32.mrf.mxu0 }
 0x1c0   : > { %v998_v38 = vadd.f32 %v954_v26, %v791_v20  ;;  %v1802_v26 = vld [vmem:[#allocation2 + $0xc1] sm:$0xff] }
 0x1c1   : > { %v793_v44 = vpop.f32.mrf.mxu1  ;;  %v1151_v29 = vpop.f32.mrf.mxu3 }
 0x1c2   : > { %v1195_v15 = vadd.f32 %v1151_v29, %v998_v38  ;;  %2083 = vmatmul.f32.gmra.mxu0 %v1996_v40  ;;  %v794_v27 = vadd.f32 %v793_v44, %v3458_v57  ;;  %v1998_v44 = vld [vmem:[#allocation2 + $0xc2] sm:$0xff] }
 0x1c4   : > { %v3734_v18 = vadd.f32 %v1347_v39, %v1195_v15  ;;  %1497 = vmatmul.f32.gmra.mxu1 %v1995_v56  ;;  %1694 = vmatmul.f32.gmra.mxu2 %v1605_v25 }
 0x1c6   : > { %1890 = vmatmul.f32.gmra.mxu3 %v1801_v13  ;;  %v1607_v13 = vld [vmem:[#allocation2 + $0xc8] sm:$0xff] }
 0x1c7   : > { %v957_v31 = vpop.f32.mrf.mxu2  ;;  %v1350_v48 = vpop.f32.mrf.mxu0 }
 0x1c8   : > { %v999_v62 = vadd.f32 %v957_v31, %v794_v27  ;;  %v1803_v31 = vld [vmem:[#allocation2 + $0xc9] sm:$0xff] }
 0x1c9   : > { %v796_v54 = vpop.f32.mrf.mxu1  ;;  %v1154_v55 = vpop.f32.mrf.mxu3 }
 0x1ca   : > { %v1196_v20 = vadd.f32 %v1154_v55, %v999_v62  ;;  %2086 = vmatmul.f32.gmra.mxu0 %v1997_v36  ;;  %v797_v56 = vadd.f32 %v796_v54, %v3476_v63  ;;  %v1999_v54 = vld [vmem:[#allocation2 + $0xca] sm:$0xff] }
 0x1cc   : > { %v3737_v38 = vadd.f32 %v1350_v48, %v1196_v20  ;;  %1500 = vmatmul.f32.gmra.mxu1 %v1996_v40  ;;  %1697 = vmatmul.f32.gmra.mxu2 %v1606_v4 }
 0x1ce   : > { %1893 = vmatmul.f32.gmra.mxu3 %v1802_v26  ;;  %v1608_v26 = vld [vmem:[#allocation2 + $0xd8] sm:$0xff] }
 0x1cf   : > { %v960_v39 = vpop.f32.mrf.mxu2  ;;  %v1353_v57 = vpop.f32.mrf.mxu0 }
 0x1d0   : > { %v1000_v29 = vadd.f32 %v960_v39, %v797_v56  ;;  %v1804_v39 = vld [vmem:[#allocation2 + $0xd9] sm:$0xff] }
 0x1d1   : > { %v799_v25 = vpop.f32.mrf.mxu1  ;;  %v1157_v15 = vpop.f32.mrf.mxu3 }
 0x1d2   : > { %v1197_v27 = vadd.f32 %v1157_v15, %v1000_v29  ;;  %2089 = vmatmul.f32.gmra.mxu0 %v1998_v44  ;;  %v800_v40 = vadd.f32 %v799_v25, %v3488_v7  ;;  %v2000_v25 = vld [vmem:[#allocation2 + $0xda] sm:$0xff] }
 0x1d4   : > { %v3740_v62 = vadd.f32 %v1353_v57, %v1197_v27  ;;  %1503 = vmatmul.f32.gmra.mxu1 %v1997_v36  ;;  %1700 = vmatmul.f32.gmra.mxu2 %v1607_v13 }
 0x1d6   : > { %1896 = vmatmul.f32.gmra.mxu3 %v1803_v31  ;;  %v1609_v31 = vld [vmem:[#allocation2 + $0xe0] sm:$0xff] }
 0x1d7   : > { %v963_v48 = vpop.f32.mrf.mxu2  ;;  %v1356_v63 = vpop.f32.mrf.mxu0 }
 0x1d8   : > { %v1001_v55 = vadd.f32 %v963_v48, %v800_v40  ;;  %v1805_v48 = vld [vmem:[#allocation2 + $0xe1] sm:$0xff] }
 0x1d9   : > { %v802_v4 = vpop.f32.mrf.mxu1  ;;  %v1160_v20 = vpop.f32.mrf.mxu3 }
 0x1da   : > { %v1198_v56 = vadd.f32 %v1160_v20, %v1001_v55  ;;  %2092 = vmatmul.f32.gmra.mxu0 %v1999_v54  ;;  %v803_v36 = vadd.f32 %v802_v4, %v3506_v21  ;;  %v2001_v4 = vld [vmem:[#allocation2 + $0xe2] sm:$0xff] }
 0x1dc   : > { %v3743_v29 = vadd.f32 %v1356_v63, %v1198_v56  ;;  %1506 = vmatmul.f32.gmra.mxu1 %v1998_v44  ;;  %1703 = vmatmul.f32.gmra.mxu2 %v1608_v26 }
 0x1de   : > { %1899 = vmatmul.f32.gmra.mxu3 %v1804_v39  ;;  %v1610_v39 = vld [vmem:[#allocation2 + $0xf0] sm:$0xff] }
 0x1df   : > { %v966_v57 = vpop.f32.mrf.mxu2  ;;  %v1359_v7 = vpop.f32.mrf.mxu0 }
 0x1e0   : > { %v1002_v15 = vadd.f32 %v966_v57, %v803_v36  ;;  %v1806_v57 = vld [vmem:[#allocation2 + $0xf1] sm:$0xff] }
 0x1e1   : > { %v805_v13 = vpop.f32.mrf.mxu1  ;;  %v1163_v27 = vpop.f32.mrf.mxu3 }
 0x1e2   : > { %v1199_v40 = vadd.f32 %v1163_v27, %v1002_v15  ;;  %2095 = vmatmul.f32.gmra.mxu0 %v2000_v25  ;;  %v806_v44 = vadd.f32 %v805_v13, %v3515_v34  ;;  %v2002_v13 = vld [vmem:[#allocation2 + $0xf2] sm:$0xff] }
 0x1e4   : > { %v3746_v55 = vadd.f32 %v1359_v7, %v1199_v40  ;;  %1509 = vmatmul.f32.gmra.mxu1 %v1999_v54  ;;  %1706 = vmatmul.f32.gmra.mxu2 %v1609_v31 }
 0x1e6   : > { %1902 = vmatmul.f32.gmra.mxu3 %v1805_v48  ;;  %v1611_v48 = vld [vmem:[#allocation2 + $0xf8] sm:$0xff] }
 0x1e7   : > { %v969_v63 = vpop.f32.mrf.mxu2  ;;  %v1362_v21 = vpop.f32.mrf.mxu0 }
 0x1e8   : > { %v1003_v20 = vadd.f32 %v969_v63, %v806_v44 }
 0x1e9   : > { %v1166_v26 = vpop.f32.mrf.mxu3  ;;  %v1465_v56 = vpop.f32.mrf.mxu1 }
 0x1ea   : > { %v1200_v36 = vadd.f32 %v1166_v26, %v1003_v20  ;;  %2098 = vmatmul.f32.gmra.mxu0 %v2001_v4  ;;  %v1561_v54 = vadd.f32 %v1465_v56, %v3527_v2  ;;  %v2003_v26 = vld [vmem:[#allocation2 + $0xfa] sm:$0xff] }
 0x1ec   : > { %v3749_v15 = vadd.f32 %v1362_v21, %v1200_v36  ;;  %1512 = vmatmul.f32.gmra.mxu1 %v2000_v25  ;;  %1709 = vmatmul.f32.gmra.mxu2 %v1610_v39  ;;  %v1807_v25 = vld [vmem:[#allocation2 + $0xf9] sm:$0xff] }
 0x1ee   : > { %1905 = vmatmul.f32.gmra.mxu3 %v1806_v57  ;;  %v1612_v57 = vld [vmem:[#allocation2 + $0x108] sm:$0xff] }
 0x1ef   : > { %v1662_v34 = vpop.f32.mrf.mxu2  ;;  %v2054_v7 = vpop.f32.mrf.mxu0 }
 0x1f0   : > { %v1758_v27 = vadd.f32 %v1662_v34, %v1561_v54  ;;  %v1808_v34 = vld [vmem:[#allocation2 + $0x109] sm:$0xff] }
 0x1f1   : > { %v1468_v31 = vpop.f32.mrf.mxu1  ;;  %v1858_v40 = vpop.f32.mrf.mxu3 }
 0x1f2   : > { %v1954_v44 = vadd.f32 %v1858_v40, %v1758_v27  ;;  %2101 = vmatmul.f32.gmra.mxu0 %v2002_v13  ;;  %v1562_v2 = vadd.f32 %v1468_v31, %v3534_v8  ;;  %v2004_v31 = vld [vmem:[#allocation2 + $0x10a] sm:$0xff] }
 0x1f4   : > { %v3759_v63 = vadd.f32 %v2054_v7, %v1954_v44  ;;  %1515 = vmatmul.f32.gmra.mxu1 %v2001_v4  ;;  %1712 = vmatmul.f32.gmra.mxu2 %v1611_v48 }
 0x1f6   : > { %2182 = vst [vmem:[%s3757_s13] sm:$0xff] %v3759_v63  ;;  %1908 = vmatmul.f32.gmra.mxu3 %v1807_v25  ;;  %v1613_v25 = vld [vmem:[#allocation2 + $0x110] sm:$0xff] }
 0x1f7   : > { %v1665_v21 = vpop.f32.mrf.mxu2  ;;  %v2057_v20 = vpop.f32.mrf.mxu0 }
 0x1f8   : > { %v1759_v56 = vadd.f32 %v1665_v21, %v1562_v2  ;;  %v1809_v21 = vld [vmem:[#allocation2 + $0x111] sm:$0xff] }
 0x1f9   : > { %v1471_v39 = vpop.f32.mrf.mxu1  ;;  %v1861_v36 = vpop.f32.mrf.mxu3 }
 0x1fa   : > { %v1955_v54 = vadd.f32 %v1861_v36, %v1759_v56  ;;  %2104 = vmatmul.f32.gmra.mxu0 %v2003_v26  ;;  %v1563_v8 = vadd.f32 %v1471_v39, %v3547_v47  ;;  %v2005_v39 = vld [vmem:[#allocation2 + $0x112] sm:$0xff] }
 0x1fc   : > { %v3764_v7 = vadd.f32 %v2057_v20, %v1955_v54  ;;  %1518 = vmatmul.f32.gmra.mxu1 %v2002_v13  ;;  %1715 = vmatmul.f32.gmra.mxu2 %v1612_v57 }
 0x1fe   : > { %2183 = vst [vmem:[%s3757_s13 + $0x8] sm:$0xff] %v3764_v7  ;;  %1911 = vmatmul.f32.gmra.mxu3 %v1808_v34  ;;  %v1614_v34 = vld [vmem:[#allocation2 + $0x120] sm:$0xff] }
 0x1ff   : > { %v1668_v4 = vpop.f32.mrf.mxu2  ;;  %v2060_v27 = vpop.f32.mrf.mxu0 }
 0x200   : > { %v1760_v40 = vadd.f32 %v1668_v4, %v1563_v8  ;;  %v1810_v4 = vld [vmem:[#allocation2 + $0x121] sm:$0xff] }
 0x201   : > { %v1474_v48 = vpop.f32.mrf.mxu1  ;;  %v1864_v44 = vpop.f32.mrf.mxu3 }
 0x202   : > { %v1956_v2 = vadd.f32 %v1864_v44, %v1760_v40  ;;  %2107 = vmatmul.f32.gmra.mxu0 %v2004_v31  ;;  %v1564_v47 = vadd.f32 %v1474_v48, %v3554_v28  ;;  %v2006_v48 = vld [vmem:[#allocation2 + $0x122] sm:$0xff] }
 0x204   : > { %v3769_v20 = vadd.f32 %v2060_v27, %v1956_v2  ;;  %1521 = vmatmul.f32.gmra.mxu1 %v2003_v26  ;;  %1718 = vmatmul.f32.gmra.mxu2 %v1613_v25 }
 0x206   : > { %2184 = vst [vmem:[%s3757_s13 + $0x10] sm:$0xff] %v3769_v20  ;;  %1914 = vmatmul.f32.gmra.mxu3 %v1809_v21  ;;  %v1615_v21 = vld [vmem:[#allocation2 + $0x128] sm:$0xff] }
 0x207   : > { %v1671_v13 = vpop.f32.mrf.mxu2  ;;  %v2063_v56 = vpop.f32.mrf.mxu0 }
 0x208   : > { %v1761_v36 = vadd.f32 %v1671_v13, %v1564_v47 }
 0x209   : > { %v1477_v57 = vpop.f32.mrf.mxu1  ;;  %v1867_v54 = vpop.f32.mrf.mxu3 }
 0x20a   : > { %v1957_v8 = vadd.f32 %v1867_v54, %v1761_v36  ;;  %2110 = vmatmul.f32.gmra.mxu0 %v2005_v39  ;;  %v1565_v28 = vadd.f32 %v1477_v57, %v3567_v41  ;;  %v2007_v36 = vld [vmem:[#allocation2 + $0x12a] sm:$0xff] }
 0x20c   : > { %v3774_v27 = vadd.f32 %v2063_v56, %v1957_v8  ;;  %1524 = vmatmul.f32.gmra.mxu1 %v2004_v31  ;;  %1721 = vmatmul.f32.gmra.mxu2 %v1614_v34  ;;  %v1616_v8 = vld [vmem:[#allocation2 + $0x138] sm:$0xff] }
 0x20e   : > { %2185 = vst [vmem:[%s3757_s13 + $0x18] sm:$0xff] %v3774_v27  ;;  %1917 = vmatmul.f32.gmra.mxu3 %v1810_v4 }
 0x20f   : > { %v1674_v26 = vpop.f32.mrf.mxu2  ;;  %v2066_v40 = vpop.f32.mrf.mxu0 }
 0x210   : > { %v1762_v44 = vadd.f32 %v1674_v26, %v1565_v28  ;;  %v2008_v26 = vld [vmem:[#allocation2 + $0x13a] sm:$0xff] }
 0x211   : > { %v1480_v25 = vpop.f32.mrf.mxu1  ;;  %v1870_v2 = vpop.f32.mrf.mxu3 }
 0x212   : > { %v1958_v47 = vadd.f32 %v1870_v2, %v1762_v44  ;;  %2113 = vmatmul.f32.gmra.mxu0 %v2006_v48  ;;  %v1566_v31 = vadd.f32 %v1480_v25, %v3574_v45  ;;  %v1617_v2 = vld [vmem:[#allocation2 + $0x140] sm:$0xff] }
 0x214   : > { %v3779_v13 = vadd.f32 %v2066_v40, %v1958_v47  ;;  %1527 = vmatmul.f32.gmra.mxu1 %v2005_v39  ;;  %1724 = vmatmul.f32.gmra.mxu2 %v1615_v21 }
 0x216   : > { %2186 = vst [vmem:[%s3757_s13 + $0x20] sm:$0xff] %v3779_v13  ;;  %1920 = vmatmul.f32.gmra.mxu3 %v3592_v32 }
 0x217   : > { %v1677_v41 = vpop.f32.mrf.mxu2  ;;  %v2069_v56 = vpop.f32.mrf.mxu0 }
 0x218   : > { %v1763_v57 = vadd.f32 %v1677_v41, %v1566_v31 }
 0x219   : > { %v1483_v54 = vpop.f32.mrf.mxu1  ;;  %v1873_v34 = vpop.f32.mrf.mxu3 }
 0x21a   : > { %v1959_v4 = vadd.f32 %v1873_v34, %v1763_v57  ;;  %2116 = vmatmul.f32.gmra.mxu0 %v2007_v36  ;;  %v1567_v45 = vadd.f32 %v1483_v54, %v3586_v17  ;;  %v1618_v57 = vld [vmem:[#allocation2 + $0x150] sm:$0xff] }
 0x21c   : > { %v3785_v28 = vadd.f32 %v2069_v56, %v1959_v4  ;;  %1530 = vmatmul.f32.gmra.mxu1 %v2006_v48  ;;  %1727 = vmatmul.f32.gmra.mxu2 %v1616_v8 }
 0x21e   : > { %2187 = vst [vmem:[%s3757_s13 + $0x28] sm:$0xff] %v3785_v28  ;;  %1923 = vmatmul.f32.gmra.mxu3 %v3604_v12 }
 0x21f   : > { %v1680_v32 = vpop.f32.mrf.mxu2  ;;  %v2072_v39 = vpop.f32.mrf.mxu0 }
 0x220   : > { %v1764_v40 = vadd.f32 %v1680_v32, %v1567_v45  ;;  %v1422_v32 = vld [vmem:[#allocation2 + $0x142] sm:$0xff] }
 0x221   : > { %v1486_v44 = vpop.f32.mrf.mxu1  ;;  %v1876_v25 = vpop.f32.mrf.mxu3 }
 0x222   : > { %v1960_v21 = vadd.f32 %v1876_v25, %v1764_v40  ;;  %2119 = vmatmul.f32.gmra.mxu0 %v2008_v26  ;;  %v1568_v17 = vadd.f32 %v1486_v44, %v3595_v30 }
 0x224   : > { %v3791_v47 = vadd.f32 %v2072_v39, %v1960_v21  ;;  %1533 = vmatmul.f32.gmra.mxu1 %v2007_v36  ;;  %1730 = vmatmul.f32.gmra.mxu2 %v1617_v2  ;;  %v1619_v39 = vld [vmem:[#allocation2 + $0x158] sm:$0xff] }
 0x225   : > { %v1423_v21 = vld [vmem:[#allocation2 + $0x152] sm:$0xff] }
 0x226   : > { %2188 = vst [vmem:[%s3757_s13 + $0x30] sm:$0xff] %v3791_v47  ;;  %1926 = vmatmul.f32.gmra.mxu3 %v3628_v22 }
 0x227   : > { %v1683_v12 = vpop.f32.mrf.mxu2  ;;  %v2075_v48 = vpop.f32.mrf.mxu0 }
 0x228   : > { %v1765_v31 = vadd.f32 %v1683_v12, %v1568_v17  ;;  %v1620_v17 = vld [vmem:[#allocation2 + $0x168] sm:$0xff] }
 0x229   : > { %v1489_v41 = vpop.f32.mrf.mxu1  ;;  %v1879_v56 = vpop.f32.mrf.mxu3 }
 0x22a   : > { %v1961_v54 = vadd.f32 %v1879_v56, %v1765_v31  ;;  %2122 = vmatmul.f32.gmra.mxu0 %v3651_v50  ;;  %v1569_v36 = vadd.f32 %v1489_v41, %v3619_v10 }
 0x22c   : > { %v3798_v34 = vadd.f32 %v2075_v48, %v1961_v54  ;;  %1536 = vmatmul.f32.gmra.mxu1 %v2008_v26  ;;  %1733 = vmatmul.f32.gmra.mxu2 %v1618_v57  ;;  %v1424_v57 = vld [vmem:[#allocation2 + $0x15a] sm:$0xff]  ;;  %v1621_v54 = vld [vmem:[#allocation2 + $0x170] sm:$0xff] }
 0x22e   : > { %2189 = vst [vmem:[%s3757_s13 + $0x38] sm:$0xff] %v3798_v34  ;;  %1929 = vmatmul.f32.gmra.mxu3 %v3646_v23 }
 0x22f   : > { %v1686_v30 = vpop.f32.mrf.mxu2  ;;  %v2078_v22 = vpop.f32.mrf.mxu0 }
 0x230   : > { %v1766_v8 = vadd.f32 %v1686_v30, %v1569_v36 }
 0x231   : > { %v1492_v4 = vpop.f32.mrf.mxu1  ;;  %v1882_v45 = vpop.f32.mrf.mxu3 }
 0x232   : > { %v1962_v40 = vadd.f32 %v1882_v45, %v1766_v8  ;;  %2125 = vmatmul.f32.gmra.mxu0 %v3663_v58  ;;  %v1570_v10 = vadd.f32 %v1492_v4, %v3634_v49  ;;  %v1425_v45 = vld [vmem:[#allocation2 + $0x16a] sm:$0xff] }
 0x234   : > { %v3805_v50 = vadd.f32 %v2078_v22, %v1962_v40  ;;  %1539 = vmatmul.f32.gmra.mxu1 %v1422_v32  ;;  %1736 = vmatmul.f32.gmra.mxu2 %v1619_v39  ;;  %v1622_v32 = vld [vmem:[#allocation2 + $0x180] sm:$0xff] }
 0x236   : > { %2190 = vst [vmem:[%s3757_s13 + $0x40] sm:$0xff] %v3805_v50  ;;  %1932 = vmatmul.f32.gmra.mxu3 %v3661_v14 }
 0x237   : > { %v1689_v23 = vpop.f32.mrf.mxu2  ;;  %v2081_v26 = vpop.f32.mrf.mxu0 }
 0x238   : > { %v1767_v44 = vadd.f32 %v1689_v23, %v1570_v10  ;;  %v2014_v23 = vld [vmem:[#allocation2 + $0x182] sm:$0xff] }
 0x239   : > { %v1495_v25 = vpop.f32.mrf.mxu1  ;;  %v1885_v2 = vpop.f32.mrf.mxu3 }
 0x23a   : > { %v1963_v12 = vadd.f32 %v1885_v2, %v1767_v44  ;;  %2128 = vmatmul.f32.gmra.mxu0 %v3672_v1  ;;  %v1571_v49 = vadd.f32 %v1495_v25, %v3654_v11 }
 0x23c   : > { %v3812_v58 = vadd.f32 %v2081_v26, %v1963_v12  ;;  %1542 = vmatmul.f32.gmra.mxu1 %v1423_v21  ;;  %1739 = vmatmul.f32.gmra.mxu2 %v1620_v17 }
 0x23e   : > { %2191 = vst [vmem:[%s3757_s13 + $0x48] sm:$0xff] %v3812_v58  ;;  %1935 = vmatmul.f32.gmra.mxu3 %v3670_v6 }
 0x23f   : > { %v1692_v14 = vpop.f32.mrf.mxu2  ;;  %v2084_v48 = vpop.f32.mrf.mxu0 }
 0x240   : > { %v1768_v31 = vadd.f32 %v1692_v14, %v1571_v49  ;;  %v2015_v14 = vld [vmem:[#allocation2 + $0x18a] sm:$0xff] }
 0x241   : > { %v1498_v41 = vpop.f32.mrf.mxu1  ;;  %v1888_v56 = vpop.f32.mrf.mxu3 }
 0x242   : > { %v1964_v36 = vadd.f32 %v1888_v56, %v1768_v31  ;;  %2131 = vmatmul.f32.gmra.mxu0 %v3681_v42  ;;  %v1572_v11 = vadd.f32 %v1498_v41, %v3666_v46  ;;  %v1818_v42 = vld [vmem:[#allocation2 + $0x181] sm:$0xff]  ;;  %v1624_v56 = vld [vmem:[#allocation2 + $0x198] sm:$0xff] }
 0x244   : > { %v3819_v1 = vadd.f32 %v2084_v48, %v1964_v36  ;;  %1545 = vmatmul.f32.gmra.mxu1 %v1424_v57  ;;  %1742 = vmatmul.f32.gmra.mxu2 %v1621_v54  ;;  %v1820_v54 = vld [vmem:[#allocation2 + $0x199] sm:$0xff] }
 0x246   : > { %2192 = vst [vmem:[%s3757_s13 + $0x50] sm:$0xff] %v3819_v1  ;;  %1938 = vmatmul.f32.gmra.mxu3 %v3679_v43 }
 0x247   : > { %v1695_v6 = vpop.f32.mrf.mxu2  ;;  %v2087_v30 = vpop.f32.mrf.mxu0 }
 0x248   : > { %v1769_v22 = vadd.f32 %v1695_v6, %v1572_v11  ;;  %v2016_v11 = vld [vmem:[#allocation2 + $0x19a] sm:$0xff] }
 0x249   : > { %v1501_v8 = vpop.f32.mrf.mxu1  ;;  %v1891_v4 = vpop.f32.mrf.mxu3 }
 0x24a   : > { %v1965_v39 = vadd.f32 %v1891_v4, %v1769_v22  ;;  %2134 = vmatmul.f32.gmra.mxu0 %v3688_v33  ;;  %v1573_v46 = vadd.f32 %v1501_v8, %v3675_v16  ;;  %v2726_v16 = vld [vmem:[#allocation2 + $0x189] sm:$0xff]  ;;  %v1821_v4 = vld [vmem:[#allocation2 + $0x1a1] sm:$0xff] }
 0x24c   : > { %v3826_v40 = vadd.f32 %v2087_v30, %v1965_v39  ;;  %1548 = vmatmul.f32.gmra.mxu1 %v1425_v45  ;;  %1745 = vmatmul.f32.gmra.mxu2 %v1622_v32  ;;  %v2727_v32 = vld [vmem:[#allocation2 + $0x8] sm:$0xff] }
 0x24e   : > { %2193 = vst [vmem:[%s3757_s13 + $0x58] sm:$0xff] %v3826_v40  ;;  %1941 = vmatmul.f32.gmra.mxu3 %v1818_v42 }
 0x24f   : > { %v1698_v43 = vpop.f32.mrf.mxu2  ;;  %v2090_v10 = vpop.f32.mrf.mxu0 }
 0x250   : > { %v1770_v26 = vadd.f32 %v1698_v43, %v1573_v46  ;;  %v2017_v46 = vld [vmem:[#allocation2 + $0x1a2] sm:$0xff] }
 0x251   : > { %v1504_v44 = vpop.f32.mrf.mxu1  ;;  %v1894_v25 = vpop.f32.mrf.mxu3 }
 0x252   : > { %v1966_v2 = vadd.f32 %v1894_v25, %v1770_v26  ;;  %2137 = vmatmul.f32.gmra.mxu0 %v2014_v23  ;;  %v1574_v17 = vadd.f32 %v1504_v44, %v3684_v0 }
 0x254   : > { %v3831_v21 = vadd.f32 %v2090_v10, %v1966_v2  ;;  %1551 = vmatmul.f32.gmra.mxu1 %v3688_v33  ;;  %1748 = vmatmul.f32.gmra.mxu2 %v3692_v53 }
 0x256   : > { %2194 = vst [vmem:[%s3757_s13 + $0x60] sm:$0xff] %v3831_v21  ;;  %1944 = vmatmul.f32.gmra.mxu3 %v2726_v16 }
 0x257   : > { %v1701_v12 = vpop.f32.mrf.mxu2  ;;  %v2093_v49 = vpop.f32.mrf.mxu0 }
 0x258   : > { %v1771_v48 = vadd.f32 %v1701_v12, %v1574_v17 }
 0x259   : > { %v1507_v31 = vpop.f32.mrf.mxu1  ;;  %v1897_v41 = vpop.f32.mrf.mxu3 }
 0x25a   : > { %v1967_v57 = vadd.f32 %v1897_v41, %v1771_v48  ;;  %2140 = vmatmul.f32.gmra.mxu0 %v2015_v14  ;;  %v1575_v0 = vadd.f32 %v1507_v31, %v3694_v24 }
 0x25c   : > { %v3838_v33 = vadd.f32 %v2093_v49, %v1967_v57  ;;  %1554 = vmatmul.f32.gmra.mxu1 %v2014_v23  ;;  %1751 = vmatmul.f32.gmra.mxu2 %v1624_v56 }
 0x25e   : > { %2195 = vst [vmem:[%s3757_s13 + $0x68] sm:$0xff] %v3838_v33  ;;  %1947 = vmatmul.f32.gmra.mxu3 %v1820_v54 }
 0x25f   : > { %v1704_v53 = vpop.f32.mrf.mxu2  ;;  %v2096_v36 = vpop.f32.mrf.mxu0 }
 0x260   : > { %v1772_v6 = vadd.f32 %v1704_v53, %v1575_v0 }
 0x261   : > { %v1510_v30 = vpop.f32.mrf.mxu1  ;;  %v1900_v22 = vpop.f32.mrf.mxu3 }
 0x262   : > { %v1968_v8 = vadd.f32 %v1900_v22, %v1772_v6  ;;  %2143 = vmatmul.f32.gmra.mxu0 %v2016_v11  ;;  %v1576_v24 = vadd.f32 %v1510_v30, %v3701_v9 }
 0x264   : > { %v3843_v45 = vadd.f32 %v2096_v36, %v1968_v8  ;;  %1557 = vmatmul.f32.gmra.mxu1 %v2015_v14  ;;  %1754 = vmatmul.f32.gmra.mxu2 %v2727_v32 }
 0x266   : > { %2196 = vst [vmem:[%s3757_s13 + $0x70] sm:$0xff] %v3843_v45  ;;  %1950 = vmatmul.f32.gmra.mxu3 %v1821_v4 }
 0x267   : > { %v1707_v39 = vpop.f32.mrf.mxu2  ;;  %v2099_v42 = vpop.f32.mrf.mxu0 }
 0x268   : > { %v1773_v43 = vadd.f32 %v1707_v39, %v1576_v24 }
 0x269   : > { %v1513_v10 = vpop.f32.mrf.mxu1  ;;  %v1903_v23 = vpop.f32.mrf.mxu3 }
 0x26a   : > { %v1969_v26 = vadd.f32 %v1903_v23, %v1773_v43  ;;  %2146 = vmatmul.f32.gmra.mxu0 %v2017_v46  ;;  %v1577_v25 = vadd.f32 %v1513_v10, %v3704_v52 }
 0x26c   : > { %v3848_v44 = vadd.f32 %v2099_v42, %v1969_v26 }
 0x26e   : > { %2197 = vst [vmem:[%s3757_s13 + $0x78] sm:$0xff] %v3848_v44 }
 0x26f   : > { %v1710_v2 = vpop.f32.mrf.mxu2  ;;  %v2102_v9 = vpop.f32.mrf.mxu0 }
 0x270   : > { %v1774_v17 = vadd.f32 %v1710_v2, %v1577_v25 }
 0x271   : > { %v1516_v16 = vpop.f32.mrf.mxu1  ;;  %v1906_v12 = vpop.f32.mrf.mxu3 }
 0x272   : > { %v1970_v49 = vadd.f32 %v1906_v12, %v1774_v17  ;;  %v1578_v48 = vadd.f32 %v1516_v16, %v3707_v59 }
 0x274   : > { %v3853_v14 = vadd.f32 %v2102_v9, %v1970_v49 }
 0x276   : > { %2198 = vst [vmem:[%s3757_s13 + $0x80] sm:$0xff] %v3853_v14 }
 0x277   : > { %v1713_v31 = vpop.f32.mrf.mxu2  ;;  %v2105_v41 = vpop.f32.mrf.mxu0 }
 0x278   : > { %v1775_v56 = vadd.f32 %v1713_v31, %v1578_v48 }
 0x279   : > { %v1519_v52 = vpop.f32.mrf.mxu1  ;;  %v1909_v57 = vpop.f32.mrf.mxu3 }
 0x27a   : > { %v1971_v54 = vadd.f32 %v1909_v57, %v1775_v56  ;;  %v1579_v53 = vadd.f32 %v1519_v52, %v3710_v51 }
 0x27c   : > { %v3858_v0 = vadd.f32 %v2105_v41, %v1971_v54  ;;  %v2214_v41 = vadd.f32 %v3764_v7, %v3759_v63 }
 0x27e   : > { %2199 = vst [vmem:[%s3757_s13 + $0x88] sm:$0xff] %v3858_v0  ;;  %v2215_v52 = vadd.f32 %v2214_v41, %v3769_v20 }
 0x27f   : > { %v1716_v36 = vpop.f32.mrf.mxu2  ;;  %v2108_v11 = vpop.f32.mrf.mxu0 }
 0x280   : > { %v1776_v6 = vadd.f32 %v1716_v36, %v1579_v53  ;;  %v2216_v54 = vadd.f32 %v2215_v52, %v3774_v27 }
 0x281   : > { %v1522_v59 = vpop.f32.mrf.mxu1  ;;  %v1912_v30 = vpop.f32.mrf.mxu3 }
 0x282   : > { %v1972_v22 = vadd.f32 %v1912_v30, %v1776_v6  ;;  %v1580_v4 = vadd.f32 %v1522_v59, %v3713_v5 }
 0x284   : > { %v3863_v8 = vadd.f32 %v2108_v11, %v1972_v22  ;;  %v2217_v11 = vadd.f32 %v2216_v54, %v3779_v13 }
 0x286   : > { %2200 = vst [vmem:[%s3757_s13 + $0x90] sm:$0xff] %v3863_v8  ;;  %v2218_v22 = vadd.f32 %v2217_v11, %v3785_v28 }
 0x287   : > { %v1719_v32 = vpop.f32.mrf.mxu2  ;;  %v2111_v24 = vpop.f32.mrf.mxu0 }
 0x288   : > { %v1777_v39 = vadd.f32 %v1719_v32, %v1580_v4  ;;  %v2219_v32 = vadd.f32 %v2218_v22, %v3791_v47 }
 0x289   : > { %v1525_v51 = vpop.f32.mrf.mxu1  ;;  %v1915_v42 = vpop.f32.mrf.mxu3 }
 0x28a   : > { %v1973_v46 = vadd.f32 %v1915_v42, %v1777_v39  ;;  %v1581_v10 = vadd.f32 %v1525_v51, %v3716_v60  ;;  %v2220_v39 = vadd.f32 %v2219_v32, %v3798_v34 }
 0x28c   : > { %v3868_v43 = vadd.f32 %v2111_v24, %v1973_v46  ;;  %v2221_v46 = vadd.f32 %v2220_v39, %v3805_v50 }
 0x28e   : > { %2201 = vst [vmem:[%s3757_s13 + $0x98] sm:$0xff] %v3868_v43 }
 0x28f   : > { %v1722_v23 = vpop.f32.mrf.mxu2  ;;  %v2114_v26 = vpop.f32.mrf.mxu0 }
 0x290   : > { %v1778_v25 = vadd.f32 %v1722_v23, %v1581_v10 }
 0x291   : > { %v1528_v2 = vpop.f32.mrf.mxu1  ;;  %v1918_v5 = vpop.f32.mrf.mxu3 }
 0x292   : > { %v1974_v9 = vadd.f32 %v1918_v5, %v1778_v25  ;;  %v1582_v16 = vadd.f32 %v1528_v2, %v3719_v35  ;;  %v2222_v25 = vadd.f32 %v2221_v46, %v3812_v58 }
 0x294   : > { %v3873_v17 = vadd.f32 %v2114_v26, %v1974_v9  ;;  %v2223_v5 = vadd.f32 %v2222_v25, %v3819_v1 }
 0x296   : > { %2202 = vst [vmem:[%s3757_s13 + $0xa0] sm:$0xff] %v3873_v17 }
 0x297   : > { %v1725_v12 = vpop.f32.mrf.mxu2  ;;  %v2117_v49 = vpop.f32.mrf.mxu0 }
 0x298   : > { %v1779_v48 = vadd.f32 %v1725_v12, %v1582_v16  ;;  %v2224_v16 = vadd.f32 %v2223_v5, %v3826_v40 }
 0x299   : > { %v1531_v31 = vpop.f32.mrf.mxu1  ;;  %v1921_v60 = vpop.f32.mrf.mxu3 }
 0x29a   : > { %v1975_v56 = vadd.f32 %v1921_v60, %v1779_v48  ;;  %v1583_v35 = vadd.f32 %v1531_v31, %v3722_v19  ;;  %v2225_v48 = vadd.f32 %v2224_v16, %v3831_v21 }
 0x29c   : > { %v3881_v57 = vadd.f32 %v2117_v49, %v1975_v56  ;;  %v2226_v56 = vadd.f32 %v2225_v48, %v3838_v33 }
 0x29e   : > { %2203 = vst [vmem:[%s3757_s13 + $0xa8] sm:$0xff] %v3881_v57  ;;  %v2227_v54 = vadd.f32 %v2226_v56, %v3843_v45 }
 0x29f   : > { %v1728_v53 = vpop.f32.mrf.mxu2  ;;  %v2120_v36 = vpop.f32.mrf.mxu0 }
 0x2a0   : > { %v1780_v6 = vadd.f32 %v1728_v53, %v1583_v35  ;;  %v2228_v53 = vadd.f32 %v2227_v54, %v3848_v44 }
 0x2a1   : > { %v1534_v59 = vpop.f32.mrf.mxu1  ;;  %v1924_v30 = vpop.f32.mrf.mxu3 }
 0x2a2   : > { %v1976_v4 = vadd.f32 %v1924_v30, %v1780_v6  ;;  %v1584_v19 = vadd.f32 %v1534_v59, %v3725_v37  ;;  %v2229_v6 = vadd.f32 %v2228_v53, %v3853_v14 }
 0x2a4   : > { %v3890_v24 = vadd.f32 %v2120_v36, %v1976_v4  ;;  %v2230_v4 = vadd.f32 %v2229_v6, %v3858_v0 }
 0x2a6   : > { %2204 = vst [vmem:[%s3757_s13 + $0xb0] sm:$0xff] %v3890_v24  ;;  %v2231_v39 = vadd.f32 %v2230_v4, %v3863_v8 }
 0x2a7   : > { %v1731_v51 = vpop.f32.mrf.mxu2  ;;  %v2123_v42 = vpop.f32.mrf.mxu0 }
 0x2a8   : > { %v1781_v10 = vadd.f32 %v1731_v51, %v1584_v19  ;;  %v2232_v51 = vadd.f32 %v2231_v39, %v3868_v43 }
 0x2a9   : > { %v1537_v23 = vpop.f32.mrf.mxu1  ;;  %v1927_v26 = vpop.f32.mrf.mxu3 }
 0x2aa   : > { %v1977_v2 = vadd.f32 %v1927_v26, %v1781_v10  ;;  %v1585_v37 = vadd.f32 %v1537_v23, %v3728_v3  ;;  %v2233_v10 = vadd.f32 %v2232_v51, %v3873_v17 }
 0x2ac   : > { %v3899_v9 = vadd.f32 %v2123_v42, %v1977_v2  ;;  %v2234_v2 = vadd.f32 %v2233_v10, %v3881_v57 }
 0x2ae   : > { %2205 = vst [vmem:[%s3757_s13 + $0xb8] sm:$0xff] %v3899_v9  ;;  %v2235_v16 = vadd.f32 %v2234_v2, %v3890_v24 }
 0x2af   : > { %v1734_v12 = vpop.f32.mrf.mxu2  ;;  %v2126_v49 = vpop.f32.mrf.mxu0 }
 0x2b0   : > { %v1782_v31 = vadd.f32 %v1734_v12, %v1585_v37  ;;  %v2236_v12 = vadd.f32 %v2235_v16, %v3899_v9 }
 0x2b1   : > { %v1540_v60 = vpop.f32.mrf.mxu1  ;;  %v1930_v41 = vpop.f32.mrf.mxu3 }
 0x2b2   : > { %v1978_v52 = vadd.f32 %v1930_v41, %v1782_v31  ;;  %v1586_v3 = vadd.f32 %v1540_v60, %v3731_v61 }
 0x2b4   : > { %v3908_v35 = vadd.f32 %v2126_v49, %v1978_v52 }
 0x2b6   : > { %2206 = vst [vmem:[%s3757_s13 + $0xc0] sm:$0xff] %v3908_v35  ;;  %v2237_v31 = vadd.f32 %v2236_v12, %v3908_v35 }
 0x2b7   : > { %v1737_v36 = vpop.f32.mrf.mxu2  ;;  %v2129_v11 = vpop.f32.mrf.mxu0 }
 0x2b8   : > { %v1783_v59 = vadd.f32 %v1737_v36, %v1586_v3 }
 0x2b9   : > { %v1543_v30 = vpop.f32.mrf.mxu1  ;;  %v1933_v22 = vpop.f32.mrf.mxu3 }
 0x2ba   : > { %v1979_v32 = vadd.f32 %v1933_v22, %v1783_v59  ;;  %v1587_v61 = vadd.f32 %v1543_v30, %v3734_v18 }
 0x2bc   : > { %v3917_v19 = vadd.f32 %v2129_v11, %v1979_v32 }
 0x2be   : > { %2207 = vst [vmem:[%s3757_s13 + $0xc8] sm:$0xff] %v3917_v19  ;;  %v2238_v52 = vadd.f32 %v2237_v31, %v3917_v19 }
 0x2bf   : > { %v1740_v42 = vpop.f32.mrf.mxu2  ;;  %v2132_v46 = vpop.f32.mrf.mxu0 }
 0x2c0   : > { %v1784_v23 = vadd.f32 %v1740_v42, %v1587_v61 }
 0x2c1   : > { %v1546_v26 = vpop.f32.mrf.mxu1  ;;  %v1936_v25 = vpop.f32.mrf.mxu3 }
 0x2c2   : > { %v1980_v5 = vadd.f32 %v1936_v25, %v1784_v23  ;;  %v1588_v18 = vadd.f32 %v1546_v26, %v3737_v38 }
 0x2c4   : > { %v3926_v37 = vadd.f32 %v2132_v46, %v1980_v5 }
 0x2c6   : > { %2208 = vst [vmem:[%s3757_s13 + $0xd0] sm:$0xff] %v3926_v37  ;;  %v2239_v53 = vadd.f32 %v2238_v52, %v3926_v37 }
 0x2c7   : > { %v1743_v49 = vpop.f32.mrf.mxu2  ;;  %v2135_v48 = vpop.f32.mrf.mxu0 }
 0x2c8   : > { %v1785_v60 = vadd.f32 %v1743_v49, %v1588_v18 }
 0x2c9   : > { %v1549_v41 = vpop.f32.mrf.mxu1  ;;  %v1939_v56 = vpop.f32.mrf.mxu3 }
 0x2ca   : > { %v1981_v54 = vadd.f32 %v1939_v56, %v1785_v60  ;;  %v1589_v36 = vadd.f32 %v1549_v41, %v3740_v62 }
 0x2cc   : > { %v2177_v3 = vadd.f32 %v2135_v48, %v1981_v54 }
 0x2ce   : > { %2209 = vst [vmem:[%s3757_s13 + $0xd8] sm:$0xff] %v2177_v3  ;;  %v2240_v38 = vadd.f32 %v2239_v53, %v2177_v3 }
 0x2cf   : > { %v1746_v11 = vpop.f32.mrf.mxu2  ;;  %v2138_v6 = vpop.f32.mrf.mxu0 }
 0x2d0   : > { %v1786_v59 = vadd.f32 %v1746_v11, %v1589_v36 }
 0x2d1   : > { %v1552_v30 = vpop.f32.mrf.mxu1  ;;  %v1942_v22 = vpop.f32.mrf.mxu3 }
 0x2d2   : > { %v1982_v4 = vadd.f32 %v1942_v22, %v1786_v59  ;;  %v1590_v39 = vadd.f32 %v1552_v30, %v3743_v29 }
 0x2d4   : > { %v2178_v32 = vadd.f32 %v2138_v6, %v1982_v4 }
 0x2d6   : > { %2210 = vst [vmem:[%s3757_s13 + $0xe0] sm:$0xff] %v2178_v32  ;;  %v2241_v51 = vadd.f32 %v2240_v38, %v2178_v32 }
 0x2d7   : > { %v1749_v61 = vpop.f32.mrf.mxu2  ;;  %v2141_v42 = vpop.f32.mrf.mxu0 }
 0x2d8   : > { %v1787_v46 = vadd.f32 %v1749_v61, %v1590_v39 }
 0x2d9   : > { %v1555_v10 = vpop.f32.mrf.mxu1  ;;  %v1945_v62 = vpop.f32.mrf.mxu3 }
 0x2da   : > { %v1983_v23 = vadd.f32 %v1945_v62, %v1787_v46  ;;  %v1591_v25 = vadd.f32 %v1555_v10, %v3746_v55 }
 0x2dc   : > { %v2179_v26 = vadd.f32 %v2141_v42, %v1983_v23 }
 0x2de   : > { %2211 = vst [vmem:[%s3757_s13 + $0xe8] sm:$0xff] %v2179_v26  ;;  %v2242_v2 = vadd.f32 %v2241_v51, %v2179_v26 }
 0x2df   : > { %v1752_v5 = vpop.f32.mrf.mxu2  ;;  %v2144_v16 = vpop.f32.mrf.mxu0 }
 0x2e0   : > { %v1788_v12 = vadd.f32 %v1752_v5, %v1591_v25 }
 0x2e1   : > { %v1948_v18 = vpop.f32.mrf.mxu3  ;;  %v1558_v49 = vpop.f32.mrf.mxu1 }
 0x2e2   : > { %v1984_v29 = vadd.f32 %v1948_v18, %v1788_v12  ;;  %v1592_v31 = vadd.f32 %v1558_v49, %v3749_v15 }
 0x2e4   : > { %v2180_v48 = vadd.f32 %v2144_v16, %v1984_v29 }
 0x2e6   : > { %2212 = vst [vmem:[%s3757_s13 + $0xf0] sm:$0xff] %v2180_v48  ;;  %v2243_v60 = vadd.f32 %v2242_v2, %v2180_v48 }
 0x2e7   : > { %v1755_v41 = vpop.f32.mrf.mxu2  ;;  %v2147_v54 = vpop.f32.mrf.mxu0 }
 0x2e8   : > { %v1789_v56 = vadd.f32 %v1755_v41, %v1592_v31 }
 0x2e9   : > { %v1951_v52 = vpop.f32.mrf.mxu3 }
 0x2ea   : > { %v1985_v55 = vadd.f32 %v1951_v52, %v1789_v56 }
 0x2ec   : > { %v2181_v53 = vadd.f32 %v2147_v54, %v1985_v55 }
 0x2ee   : > { %2213 = vst [vmem:[%s3757_s13 + $0xf8] sm:$0xff] %v2181_v53  ;;  %v2244_v36 = vadd.f32 %v2243_v60, %v2181_v53 }
 0x2f0   : > { %v2245_v38 = vrot.slane %v2244_v36, 4 }
 0x2f2   : > { %v2246_v11 = vadd.f32 %v2245_v38, %v2244_v36 }
 0x2f4   : > { %v2247_v6 = vrot.slane %v2246_v11, 2 }
 0x2f6   : > { %v2248_v59 = vadd.f32 %v2247_v6, %v2246_v11 }
 0x2f8   : > { %v2249_v30 = vrot.slane %v2248_v59, 1 }
 0x2fa   : > { %v2250_v15 = vadd.f32 %v2249_v30, %v2248_v59 }
 0x2fc   : > { %2284 = vst [vmem:[%s3948_s16] sm:$0x1] %v2250_v15  ;;  %v3951_v22 = vmul.f32 0.00390625, %v2250_v15 }
 0x2fe   : > { %v3955_v4 = vsub.f32 %v3926_v37, %v3951_v22  ;;  %v3958_v39 = vsub.f32 %v2177_v3, %v3951_v22  ;;  %v3961_v51 = vsub.f32 %v2178_v32, %v3951_v22  ;;  %v3964_v61 = vsub.f32 %v2179_v26, %v3951_v22 }
 0x2ff   : > { %v3967_v42 = vsub.f32 %v2180_v48, %v3951_v22  ;;  %v3970_v46 = vsub.f32 %v2181_v53, %v3951_v22  ;;  %v2252_v10 = vsub.f32 %v3759_v63, %v3951_v22  ;;  %v2253_v37 = vsub.f32 %v3764_v7, %v3951_v22 }
 0x300   : > { %v2254_v3 = vsub.f32 %v3769_v20, %v3951_v22  ;;  %v2255_v23 = vsub.f32 %v3774_v27, %v3951_v22  ;;  %v2256_v26 = vsub.f32 %v3779_v13, %v3951_v22  ;;  %v2257_v5 = vsub.f32 %v3785_v28, %v3951_v22 }
 0x301   : > { %v2285_v32 = vmul.f32 %v2252_v10, %v2252_v10  ;;  %v2286_v62 = vmul.f32 %v2253_v37, %v2253_v37  ;;  %v2258_v7 = vsub.f32 %v3791_v47, %v3951_v22  ;;  %v2259_v18 = vsub.f32 %v3798_v34, %v3951_v22 }
 0x302   : > { %v2287_v25 = vmul.f32 %v2254_v3, %v2254_v3  ;;  %v2288_v63 = vmul.f32 %v2255_v23, %v2255_v23  ;;  %v2289_v12 = vmul.f32 %v2256_v26, %v2256_v26  ;;  %v2290_v29 = vmul.f32 %v2257_v5, %v2257_v5 }
 0x303   : > { %v2317_v2 = vadd.f32 %v2286_v62, %v2285_v32  ;;  %v2260_v13 = vsub.f32 %v3805_v50, %v3951_v22  ;;  %v2291_v49 = vmul.f32 %v2258_v7, %v2258_v7  ;;  %v2261_v28 = vsub.f32 %v3812_v58, %v3951_v22 }
 0x304   : > { %v2292_v31 = vmul.f32 %v2259_v18, %v2259_v18  ;;  %v2262_v47 = vsub.f32 %v3819_v1, %v3951_v22  ;;  %v2263_v34 = vsub.f32 %v3826_v40, %v3951_v22  ;;  %v2264_v50 = vsub.f32 %v3831_v21, %v3951_v22 }
 0x305   : > { %v2318_v16 = vadd.f32 %v2317_v2, %v2287_v25  ;;  %v2293_v41 = vmul.f32 %v2260_v13, %v2260_v13  ;;  %v2294_v52 = vmul.f32 %v2261_v28, %v2261_v28  ;;  %v2265_v58 = vsub.f32 %v3838_v33, %v3951_v22 }
 0x306   : > { %v2295_v55 = vmul.f32 %v2262_v47, %v2262_v47  ;;  %v2296_v36 = vmul.f32 %v2263_v34, %v2263_v34  ;;  %v2266_v1 = vsub.f32 %v3843_v45, %v3951_v22  ;;  %v2297_v11 = vmul.f32 %v2264_v50, %v2264_v50 }
 0x307   : > { %v2319_v20 = vadd.f32 %v2318_v16, %v2288_v63  ;;  %v2267_v40 = vsub.f32 %v3848_v44, %v3951_v22  ;;  %v2298_v59 = vmul.f32 %v2265_v58, %v2265_v58  ;;  %v2268_v21 = vsub.f32 %v3853_v14, %v3951_v22 }
 0x308   : > { %v2299_v15 = vmul.f32 %v2266_v1, %v2266_v1  ;;  %v2269_v33 = vsub.f32 %v3858_v0, %v3951_v22  ;;  %v2270_v45 = vsub.f32 %v3863_v8, %v3951_v22  ;;  %v2271_v44 = vsub.f32 %v3868_v43, %v3951_v22 }
 0x309   : > { %v2320_v27 = vadd.f32 %v2319_v20, %v2289_v12  ;;  %v2300_v37 = vmul.f32 %v2267_v40, %v2267_v40  ;;  %v2301_v32 = vmul.f32 %v2268_v21, %v2268_v21  ;;  %v2272_v14 = vsub.f32 %v3873_v17, %v3951_v22 }
 0x30a   : > { %v2302_v23 = vmul.f32 %v2269_v33, %v2269_v33  ;;  %v2303_v25 = vmul.f32 %v2270_v45, %v2270_v45  ;;  %v2273_v0 = vsub.f32 %v3881_v57, %v3951_v22  ;;  %v2304_v5 = vmul.f32 %v2271_v44, %v2271_v44 }
 0x30b   : > { %v2321_v48 = vadd.f32 %v2320_v27, %v2290_v29  ;;  %v2274_v8 = vsub.f32 %v3890_v24, %v3951_v22  ;;  %v2305_v16 = vmul.f32 %v2272_v14, %v2272_v14  ;;  %v2275_v43 = vsub.f32 %v3899_v9, %v3951_v22 }
 0x30c   : > { %v2306_v12 = vmul.f32 %v2273_v0, %v2273_v0  ;;  %v2276_v17 = vsub.f32 %v3908_v35, %v3951_v22  ;;  %v2277_v57 = vsub.f32 %v3917_v19, %v3951_v22  ;;  %v2313_v35 = vmul.f32 %v3961_v51, %v3961_v51 }
 0x30d   : > { %v2322_v60 = vadd.f32 %v2321_v48, %v2291_v49  ;;  %v2307_v18 = vmul.f32 %v2274_v8, %v2274_v8  ;;  %v2308_v27 = vmul.f32 %v2275_v43, %v2275_v43  ;;  %v2314_v19 = vmul.f32 %v3964_v61, %v3964_v61 }
 0x30e   : > { %v2309_v49 = vmul.f32 %v2276_v17, %v2276_v17  ;;  %v2310_v24 = vmul.f32 %v2277_v57, %v2277_v57 }
 0x30f   : > { %v2323_v56 = vadd.f32 %v2322_v60, %v2292_v31  ;;  %v2311_v31 = vmul.f32 %v3955_v4, %v3955_v4  ;;  %v2312_v60 = vmul.f32 %v3958_v39, %v3958_v39  ;;  %v2316_v4 = vmul.f32 %v3970_v46, %v3970_v46 }
 0x311   : > { %v2324_v54 = vadd.f32 %v2323_v56, %v2293_v41  ;;  %v2315_v56 = vmul.f32 %v3967_v42, %v3967_v42 }
 0x313   : > { %v2325_v53 = vadd.f32 %v2324_v54, %v2294_v52 }
 0x315   : > { %v2326_v38 = vadd.f32 %v2325_v53, %v2295_v55 }
 0x317   : > { %v2327_v6 = vadd.f32 %v2326_v38, %v2296_v36 }
 0x319   : > { %v2328_v30 = vadd.f32 %v2327_v6, %v2297_v11 }
 0x31b   : > { %v2329_v10 = vadd.f32 %v2328_v30, %v2298_v59 }
 0x31d   : > { %v2330_v3 = vadd.f32 %v2329_v10, %v2299_v15 }
 0x31f   : > { %v2331_v62 = vadd.f32 %v2330_v3, %v2300_v37 }
 0x321   : > { %v2332_v26 = vadd.f32 %v2331_v62, %v2301_v32 }
 0x323   : > { %v2333_v2 = vadd.f32 %v2332_v26, %v2302_v23 }
 0x325   : > { %v2334_v63 = vadd.f32 %v2333_v2, %v2303_v25 }
 0x327   : > { %v2335_v7 = vadd.f32 %v2334_v63, %v2304_v5 }
 0x329   : > { %v2336_v20 = vadd.f32 %v2335_v7, %v2305_v16 }
 0x32b   : > { %v2337_v29 = vadd.f32 %v2336_v20, %v2306_v12 }
 0x32d   : > { %v2338_v13 = vadd.f32 %v2337_v29, %v2307_v18 }
 0x32f   : > { %v2339_v48 = vadd.f32 %v2338_v13, %v2308_v27 }
 0x331   : > { %v2340_v28 = vadd.f32 %v2339_v48, %v2309_v49 }
 0x333   : > { %v2341_v9 = vadd.f32 %v2340_v28, %v2310_v24 }
 0x335   : > { %v2342_v47 = vadd.f32 %v2341_v9, %v2311_v31 }
 0x337   : > { %v2343_v41 = vadd.f32 %v2342_v47, %v2312_v60 }
 0x339   : > { %v2344_v22 = vadd.f32 %v2343_v41, %v2313_v35 }
 0x33b   : > { %v2345_v34 = vadd.f32 %v2344_v22, %v2314_v19 }
 0x33d   : > { %v2346_v52 = vadd.f32 %v2345_v34, %v2315_v56 }
 0x33f   : > { %v2347_v54 = vadd.f32 %v2346_v52, %v2316_v4 }
 0x341   : > { %v2348_v39 = vrot.slane %v2347_v54, 4 }
 0x343   : > { %v2349_v50 = vadd.f32 %v2348_v39, %v2347_v54 }
 0x345   : > { %v2350_v55 = vrot.slane %v2349_v50, 2 }
 0x347   : > { %v2351_v53 = vadd.f32 %v2350_v55, %v2349_v50 }
 0x349   : > { %v2352_v58 = vrot.slane %v2351_v53, 1 }
 0x34b   : > { %v2353_v51 = vadd.f32 %v2352_v58, %v2351_v53 }
 0x34d   : > { %2354 = vst [vmem:[%s3948_s16 + $0x1] sm:$0x1] %v2353_v51 }
 0x34e PF: > { %s16_s20 = sadd.s32 1, %s2750_s20   ;;  %s4052_s18 = smov %s2746_s19 }
 0x34f   : > { %p13_p5 = scmp.ge.s32.totalorder %s16_s20, 4   ;;  %s4053_s19 = smov %s4055_s21 }
 0x351   :  { %15 = sbr.rel (!%p13_p5) target bundleno = 2 (0x2), region = 95 }

</bundles_post_ra>
